<compile_context>
chip_gen: v7x
topology: tpu7x:2x2x1
jax: 0.10.0
libtpu: 0.0.40
codegen_flags: <defaults>
</compile_context>

<pallas_src>
import functools

import numpy as np

import jax
import jax.numpy as jnp
from jax.experimental import pallas as pl
from jax.experimental.pallas import tpu as pltpu

NEG_FILL = -1e20


def _round_up(x, m):
    return (x + m - 1) // m * m


def _auto_memory_kernel(tok_col_ref, tok_row_ref, sc_col_ref, sc_row_ref,
                        payload_ref, out_ref, *, pad_token, ti, tj):
    n = tok_row_ref.shape[1]
    m_pad = out_ref.shape[1]
    n_i = n // ti
    n_j = n // tj

    ones_tj = jnp.ones((tj, 1), jnp.bfloat16)   # lane (j) reduction on the MXU
    ones_ti = jnp.ones((1, ti), jnp.bfloat16)   # sublane (i) reduction on the MXU

    # ---- pass 1: later-duplicate counts (both layouts), i-outer / j-inner ----
    #   dup_col[i] = #{j > i : tok[j] == tok[i], both valid}
    #   dup_row[j] = #{i > j : tok[i] == tok[j], both valid}
    # Accumulators are loop-carried values over a static unroll (no scratch RMW).
    dup_col_tiles = []
    dup_row_tiles = [jnp.zeros((1, tj), jnp.float32) for _ in range(n_j)]
    for a in range(n_i):
        i0 = a * ti
        tok_i = tok_col_ref[i0:i0 + ti, :]                        # (TI, 1) int32
        val_i = tok_i != pad_token
        i_idx = i0 + jax.lax.broadcasted_iota(jnp.int32, (ti, 1), 0)
        dup_i = jnp.zeros((ti, 1), jnp.float32)
        for b in range(n_j):
            j0 = b * tj
            tok_j = tok_row_ref[:, j0:j0 + tj]                    # (1, TJ) int32
            val_j = tok_j != pad_token
            j_idx = j0 + jax.lax.broadcasted_iota(jnp.int32, (1, tj), 1)
            sv = (tok_i == tok_j) & val_i & val_j                 # (TI, TJ)
            m_col = (sv & (j_idx > i_idx)).astype(jnp.bfloat16)
            m_row = (sv & (i_idx > j_idx)).astype(jnp.bfloat16)
            dup_i = dup_i + jnp.dot(m_col, ones_tj,
                                    preferred_element_type=jnp.float32)
            dup_row_tiles[b] = dup_row_tiles[b] + jnp.dot(
                ones_ti, m_row, preferred_element_type=jnp.float32)
        dup_col_tiles.append(dup_i)

    # representative = last valid occurrence of its token (row layout per j-tile)
    rep_row_tiles = []
    for b in range(n_j):
        j0 = b * tj
        val_j = tok_row_ref[:, j0:j0 + tj] != pad_token
        rep_row_tiles.append(val_j & (dup_row_tiles[b] < 0.5))

    # ---- pass 2: rank among representatives + fused top-M selection ----------
    # rank[i] = #{j : rep[j] and (score[j], pos[j]) orders before (score[i], pos[i])}.
    # Only meaningful for representative i; non-representatives are masked out of
    # the one-hot below, so their (possibly aliasing) ranks never matter.
    out_acc = jnp.zeros((out_ref.shape[0], m_pad), jnp.float32)
    for a in range(n_i):
        i0 = a * ti
        sc_i = sc_col_ref[i0:i0 + ti, :]                          # (TI, 1) f32
        val_i = tok_col_ref[i0:i0 + ti, :] != pad_token
        i_idx = i0 + jax.lax.broadcasted_iota(jnp.int32, (ti, 1), 0)
        rank_i = jnp.zeros((ti, 1), jnp.float32)
        for b in range(n_j):
            j0 = b * tj
            sc_j = sc_row_ref[:, j0:j0 + tj]                      # (1, TJ) f32
            j_idx = j0 + jax.lax.broadcasted_iota(jnp.int32, (1, tj), 1)
            beats = (sc_j > sc_i) | ((sc_j == sc_i) & (j_idx < i_idx))
            before = (rep_row_tiles[b] & beats).astype(jnp.bfloat16)
            rank_i = rank_i + jnp.dot(before, ones_tj,
                                      preferred_element_type=jnp.float32)
        rep_i = val_i & (dup_col_tiles[a] < 0.5)                  # (TI, 1)
        k_idx = jax.lax.broadcasted_iota(jnp.int32, (ti, m_pad), 1).astype(jnp.float32)
        sel = ((rank_i == k_idx) & rep_i).astype(jnp.bfloat16)    # one-hot (TI, Mpad)
        # single fused selection matmul: rows = [tok bytes (3), score bytes (4), ones]
        out_acc = out_acc + jnp.dot(payload_ref[:, i0:i0 + ti], sel,
                                    preferred_element_type=jnp.float32)

    out_ref[...] = out_acc


def _vmem_limit_bytes(n_pad, m_pad, ti, tj):
    cap = 128 * 2**20
    try:
        info = pltpu.get_tpu_info()
        cap_attr = getattr(info, "vmem_capacity_bytes", None)
        if cap_attr:
            cap = int(cap_attr)
    except Exception:
        pass
    est = (2 * n_pad * 512        # (N,1) int32/f32 column inputs (lane padded)
           + 2 * 8 * n_pad * 4    # (1,N) row inputs (sublane padded)
           + 16 * n_pad * 2       # (8,N) bf16 payload (sublane padded to 16)
           + 8 * m_pad * 4        # (8,Mpad) f32 output
           + 2 * n_pad * 512      # spilled per-tile dup/rank carries
           + 8 * ti * tj          # live (TI,TJ) intermediates
           + (8 << 20))           # compiler headroom
    return int(min(int(0.75 * cap), max(est, 32 * 2**20)))


def auto_memory_forward(input_tokens, memory_context, emb_table,
                        w_in, b_in, w_mem, b_mem, *,
                        max_sentence_length, max_memory_context, padding_token=0):
    """JAX/Pallas equivalent of AutoMemoryModule.forward.

    Returns (trimmed_combined_tokens [M] int32, trimmed_scores [M] float32).
    """
    b, s = input_tokens.shape
    # The reference code's .view(batch_size, seq_len) only works when
    # seq_len == max_sentence_length; we keep the same requirement.
    assert s == max_sentence_length, "reference semantics require seq_len == max_sentence_length"

    if memory_context is None:
        memory_context = jnp.full((max_memory_context,), padding_token, jnp.int32)

    padded = jnp.pad(input_tokens.astype(jnp.int32),
                     ((0, 0), (0, max_sentence_length - s)),
                     constant_values=padding_token)
    tok_flat = jnp.concatenate(
        [padded.reshape(-1), memory_context.reshape(-1).astype(jnp.int32)])
    n = tok_flat.shape[0]
    bl = b * max_sentence_length

    # Collapse embedding + both Linear(E,1) heads into a (V, 2) score table
    # (tiny fused XLA matmul), then gather the per-token score and select the
    # head by segment (input vs. memory).
    w2 = jnp.concatenate([w_in.reshape(-1, 1), w_mem.reshape(-1, 1)],
                         axis=1).astype(jnp.float32)                         # (E, 2)
    b2 = jnp.stack([jnp.asarray(b_in, jnp.float32).reshape(()),
                    jnp.asarray(b_mem, jnp.float32).reshape(())]).reshape(1, 2)
    score_table = jnp.dot(emb_table.astype(jnp.float32), w2,
                          precision=jax.lax.Precision.HIGHEST) + b2          # (V, 2)
    per_tok = jnp.take(score_table, tok_flat, axis=0)                        # (N, 2)
    pos = jnp.arange(n, dtype=jnp.int32)
    score_flat = jnp.where(pos < bl, per_tok[:, 0], per_tok[:, 1]).astype(jnp.float32)

    # ---- tiling: pad the combined stream to a multiple of 512 -----------------
    TJ, TI = 512, 256
    n_pad = _round_up(max(n, TJ), TJ)       # divisible by both TI and TJ
    m_pad = _round_up(max_memory_context, 128)

    tok_p = jnp.pad(tok_flat, (0, n_pad - n), constant_values=padding_token)
    sc_p = jnp.pad(score_flat, (0, n_pad - n))

    # (8, N) bf16 payload: 3 token-id bytes, 4 score-bit bytes, ones row.
    # Every entry is an integer 0..255, exactly representable in bf16, so the
    # one-hot selection matmul is bit-exact (token ids up to 2^24 supported).
    tok_u = tok_p.astype(jnp.uint32)
    sbits = jax.lax.bitcast_convert_type(sc_p, jnp.uint32)
    payload = jnp.stack([
        (tok_u >> 16) & 0xFF, (tok_u >> 8) & 0xFF, tok_u & 0xFF,
        (sbits >> 24) & 0xFF, (sbits >> 16) & 0xFF, (sbits >> 8) & 0xFF, sbits & 0xFF,
        jnp.ones((n_pad,), jnp.uint32),
    ], axis=0).astype(jnp.bfloat16)                                          # (8, N)

    kernel = functools.partial(_auto_memory_kernel,
                               pad_token=padding_token, ti=TI, tj=TJ)

    vmem_limit = _vmem_limit_bytes(n_pad, m_pad, TI, TJ)
    cost = pl.CostEstimate(
        flops=int(24 * n_pad * n_pad + 16 * n_pad * m_pad),
        transcendentals=0,
        bytes_accessed=int(2 * n_pad * 4 + 2 * n_pad * 4 + 8 * n_pad * 2 + 8 * m_pad * 4))

    vmem = pltpu.MemorySpace.VMEM
    out8 = pl.pallas_call(
        kernel,
        out_shape=jax.ShapeDtypeStruct((8, m_pad), jnp.float32),
        in_specs=[pl.BlockSpec(memory_space=vmem)] * 5,
        out_specs=pl.BlockSpec(memory_space=vmem),
        compiler_params=pltpu.CompilerParams(vmem_limit_bytes=vmem_limit),
        cost_estimate=cost,
    )(tok_p.reshape(n_pad, 1), tok_p.reshape(1, n_pad),
      sc_p.reshape(n_pad, 1), sc_p.reshape(1, n_pad), payload)

    # Bit-exact reconstruction of the selected tokens / scores (tiny, XLA side).
    tok_sel = jnp.round(out8[0] * 65536.0 + out8[1] * 256.0 + out8[2]).astype(jnp.int32)
    byt = jnp.round(out8[3:7]).astype(jnp.uint32)
    bits = (byt[0] << 24) | (byt[1] << 16) | (byt[2] << 8) | byt[3]
    sc_sel = jax.lax.bitcast_convert_type(bits, jnp.float32)
    got = out8[7] > 0.5
    out_tok = jnp.where(got, tok_sel, jnp.int32(padding_token))[:max_memory_context]
    out_score = jnp.where(got, sc_sel, jnp.float32(NEG_FILL))[:max_memory_context]
    return out_tok, out_score


def _reference_forward(input_tokens, memory_context, emb_table, w_in, b_in,
                       w_mem, b_mem, *, max_sentence_length, max_memory_context,
                       padding_token):
    """Pure numpy transcription of the torch AutoMemoryModule.forward."""
    it = np.asarray(input_tokens, np.int64)
    mc = np.asarray(memory_context, np.int64)
    b, s = it.shape
    padded = np.pad(it, ((0, 0), (0, max_sentence_length - s)),
                    constant_values=padding_token).reshape(-1)
    emb = np.asarray(emb_table, np.float64)
    tab_in = emb @ np.asarray(w_in, np.float64).reshape(-1) + float(np.asarray(b_in).reshape(-1)[0])
    tab_mem = emb @ np.asarray(w_mem, np.float64).reshape(-1) + float(np.asarray(b_mem).reshape(-1)[0])
    toks = np.concatenate([padded, mc])
    pos = np.arange(toks.size)
    scores = np.where(pos < padded.size, tab_in[toks], tab_mem[toks])
    keep = toks != padding_token
    ftoks, fsc = toks[keep], scores[keep]
    uniq, inv = np.unique(ftoks, return_inverse=True)
    usc = np.full(uniq.shape, -1e20, np.float64)
    for k, v in zip(inv.tolist(), fsc.tolist()):   # serial scatter: last write wins
        usc[k] = v
    order = np.argsort(-usc, kind="stable")
    st, ss = uniq[order][:max_memory_context], usc[order][:max_memory_context]
    out_t = np.full(max_memory_context, padding_token, np.int64)
    out_s = np.full(max_memory_context, -1e20, np.float64)
    out_t[:st.size] = st
    out_s[:ss.size] = ss
    return out_t, out_s


if __name__ == "__main__":
    # Small, deterministic configuration (stand-in for vocab=50257, E=768, L=512).
    B, SEQ = 2, 8
    MAX_SENT = 8          # == SEQ (required by the reference .view())
    MAX_MEM = 16
    VOCAB, EMB = 64, 128
    PAD = 0

    key = jax.random.PRNGKey(0)
    k_emb, k_win, k_wmem, k_in, k_mem = jax.random.split(key, 5)

    emb_table = jax.random.normal(k_emb, (VOCAB, EMB), jnp.float32) * 0.02
    w_in = jax.random.normal(k_win, (EMB, 1), jnp.float32) * 0.05
    b_in = jnp.full((1, 1), 0.01, jnp.float32)
    w_mem = jax.random.normal(k_wmem, (EMB, 1), jnp.float32) * 0.05
    b_mem = jnp.full((1, 1), -0.01, jnp.float32)

    input_tokens = jax.random.randint(k_in, (B, SEQ), 0, VOCAB, jnp.int32)
    memory_context = jax.random.randint(k_mem, (MAX_MEM,), 0, VOCAB, jnp.int32)
    memory_context = memory_context.at[:4].set(PAD)   # some padding slots in memory

    toks_out, scores_out = auto_memory_forward(
        input_tokens, memory_context, emb_table, w_in, b_in, w_mem, b_mem,
        max_sentence_length=MAX_SENT, max_memory_context=MAX_MEM,
        padding_token=PAD)
    jax.block_until_ready((toks_out, scores_out))

    t_np = np.asarray(jax.device_get(toks_out)).astype(np.int64)
    s_np = np.asarray(jax.device_get(scores_out)).astype(np.float64)

    # sanity: scores sorted descending (empty slots = -1e20)
    assert all(s_np[i] >= s_np[i + 1] for i in range(len(s_np) - 1))

    # full reference check against a numpy transcription of the torch forward
    ref_t, ref_s = _reference_forward(
        input_tokens, memory_context, emb_table, w_in, b_in, w_mem, b_mem,
        max_sentence_length=MAX_SENT, max_memory_context=MAX_MEM,
        padding_token=PAD)
    assert np.array_equal(t_np, ref_t), (t_np, ref_t)
    assert np.allclose(s_np, ref_s, rtol=1e-4, atol=1e-6), (s_np, ref_s)

    print("KERNEL_OK")
</pallas_src>

<mosaic_0001>
module attributes {stable_mosaic.version = 11 : i64} {
  func.func @_auto_memory_kernel(%arg0: memref<512x1xi32, #tpu.memory_space<vmem>>, %arg1: memref<1x512xi32, #tpu.memory_space<vmem>>, %arg2: memref<512x1xf32, #tpu.memory_space<vmem>>, %arg3: memref<1x512xf32, #tpu.memory_space<vmem>>, %arg4: memref<8x512xbf16, #tpu.memory_space<vmem>>, %arg5: memref<8x128xf32, #tpu.memory_space<vmem>>) attributes {dimension_semantics = [], scalar_prefetch = 0 : i64, scratch_operands = 0 : i64, tpu.core_type = #tpu.core_type<tc>} {
    %cst = arith.constant 1.000000e+00 : bf16
    %0 = vector.broadcast %cst : bf16 to vector<512x1xbf16>
    %cst_0 = arith.constant 1.000000e+00 : bf16
    %1 = vector.broadcast %cst_0 : bf16 to vector<1x256xbf16>
    %cst_1 = arith.constant 0.000000e+00 : f32
    %2 = vector.broadcast %cst_1 : f32 to vector<1x512xf32>
    %c0 = arith.constant 0 : index
    %c0_2 = arith.constant 0 : index
    %3 = vector.load %arg0[%c0, %c0_2] : memref<512x1xi32, #tpu.memory_space<vmem>>, vector<256x1xi32>
    %c0_i32 = arith.constant 0 : i32
    %4 = vector.broadcast %c0_i32 : i32 to vector<256x1xi32>
    %5 = arith.cmpi ne, %3, %4 : vector<256x1xi32>
    %6 = tpu.iota {dimensions = array<i32: 0>} : vector<256x1xi32>
    %c0_i32_3 = arith.constant 0 : i32
    %7 = vector.broadcast %c0_i32_3 : i32 to vector<256x1xi32>
    %8 = arith.addi %7, %6 : vector<256x1xi32>
    %cst_4 = arith.constant 0.000000e+00 : f32
    %9 = vector.broadcast %cst_4 : f32 to vector<256x1xf32>
    %c0_5 = arith.constant 0 : index
    %c0_6 = arith.constant 0 : index
    %10 = vector.load %arg1[%c0_5, %c0_6] : memref<1x512xi32, #tpu.memory_space<vmem>>, vector<1x512xi32>
    %c0_i32_7 = arith.constant 0 : i32
    %11 = vector.broadcast %c0_i32_7 : i32 to vector<1x512xi32>
    %12 = arith.cmpi ne, %10, %11 : vector<1x512xi32>
    %13 = tpu.iota {dimensions = array<i32: 1>} : vector<1x512xi32>
    %c0_i32_8 = arith.constant 0 : i32
    %14 = vector.broadcast %c0_i32_8 : i32 to vector<1x512xi32>
    %15 = arith.addi %14, %13 : vector<1x512xi32>
    %16 = vector.broadcast %3 : vector<256x1xi32> to vector<256x512xi32>
    %17 = vector.broadcast %10 : vector<1x512xi32> to vector<256x512xi32>
    %18 = arith.cmpi eq, %16, %17 : vector<256x512xi32>
    %19 = vector.broadcast %5 : vector<256x1xi1> to vector<256x512xi1>
    %20 = arith.andi %18, %19 : vector<256x512xi1>
    %21 = vector.broadcast %12 : vector<1x512xi1> to vector<256x512xi1>
    %22 = arith.andi %20, %21 : vector<256x512xi1>
    %23 = vector.broadcast %15 : vector<1x512xi32> to vector<256x512xi32>
    %24 = vector.broadcast %8 : vector<256x1xi32> to vector<256x512xi32>
    %25 = arith.cmpi sgt, %23, %24 : vector<256x512xi32>
    %26 = arith.andi %22, %25 : vector<256x512xi1>
    %27 = arith.extui %26 : vector<256x512xi1> to vector<256x512xi32>
    %28 = arith.sitofp %27 : vector<256x512xi32> to vector<256x512xf32>
    %29 = arith.truncf %28 : vector<256x512xf32> to vector<256x512xbf16>
    %30 = vector.broadcast %8 : vector<256x1xi32> to vector<256x512xi32>
    %31 = vector.broadcast %15 : vector<1x512xi32> to vector<256x512xi32>
    %32 = arith.cmpi sgt, %30, %31 : vector<256x512xi32>
    %33 = arith.andi %22, %32 : vector<256x512xi1>
    %34 = arith.extui %33 : vector<256x512xi1> to vector<256x512xi32>
    %35 = arith.sitofp %34 : vector<256x512xi32> to vector<256x512xf32>
    %36 = arith.truncf %35 : vector<256x512xf32> to vector<256x512xbf16>
    %cst_9 = arith.constant dense<0.000000e+00> : vector<256x1xf32>
    %37 = tpu.matmul %29, %0, %cst_9 {dimension_numbers = #tpu.dot_dimension_numbers<[1], [0], [0], [1], [0, 0, 1, 1], [], []>} : vector<256x512xbf16>, vector<512x1xbf16>, vector<256x1xf32> -> vector<256x1xf32>
    %38 = arith.addf %9, %37 : vector<256x1xf32>
    %cst_10 = arith.constant dense<0.000000e+00> : vector<1x512xf32>
    %39 = tpu.matmul %1, %36, %cst_10 {dimension_numbers = #tpu.dot_dimension_numbers<[1], [0], [0], [1], [0, 0, 1, 1], [], []>} : vector<1x256xbf16>, vector<256x512xbf16>, vector<1x512xf32> -> vector<1x512xf32>
    %40 = arith.addf %2, %39 : vector<1x512xf32>
    %c256 = arith.constant 256 : index
    %c0_11 = arith.constant 0 : index
    %41 = vector.load %arg0[%c256, %c0_11] : memref<512x1xi32, #tpu.memory_space<vmem>>, vector<256x1xi32>
    %c0_i32_12 = arith.constant 0 : i32
    %42 = vector.broadcast %c0_i32_12 : i32 to vector<256x1xi32>
    %43 = arith.cmpi ne, %41, %42 : vector<256x1xi32>
    %44 = tpu.iota {dimensions = array<i32: 0>} : vector<256x1xi32>
    %c256_i32 = arith.constant 256 : i32
    %45 = vector.broadcast %c256_i32 : i32 to vector<256x1xi32>
    %46 = arith.addi %45, %44 : vector<256x1xi32>
    %cst_13 = arith.constant 0.000000e+00 : f32
    %47 = vector.broadcast %cst_13 : f32 to vector<256x1xf32>
    %c0_14 = arith.constant 0 : index
    %c0_15 = arith.constant 0 : index
    %48 = vector.load %arg1[%c0_14, %c0_15] : memref<1x512xi32, #tpu.memory_space<vmem>>, vector<1x512xi32>
    %c0_i32_16 = arith.constant 0 : i32
    %49 = vector.broadcast %c0_i32_16 : i32 to vector<1x512xi32>
    %50 = arith.cmpi ne, %48, %49 : vector<1x512xi32>
    %51 = tpu.iota {dimensions = array<i32: 1>} : vector<1x512xi32>
    %c0_i32_17 = arith.constant 0 : i32
    %52 = vector.broadcast %c0_i32_17 : i32 to vector<1x512xi32>
    %53 = arith.addi %52, %51 : vector<1x512xi32>
    %54 = vector.broadcast %41 : vector<256x1xi32> to vector<256x512xi32>
    %55 = vector.broadcast %48 : vector<1x512xi32> to vector<256x512xi32>
    %56 = arith.cmpi eq, %54, %55 : vector<256x512xi32>
    %57 = vector.broadcast %43 : vector<256x1xi1> to vector<256x512xi1>
    %58 = arith.andi %56, %57 : vector<256x512xi1>
    %59 = vector.broadcast %50 : vector<1x512xi1> to vector<256x512xi1>
    %60 = arith.andi %58, %59 : vector<256x512xi1>
    %61 = vector.broadcast %53 : vector<1x512xi32> to vector<256x512xi32>
    %62 = vector.broadcast %46 : vector<256x1xi32> to vector<256x512xi32>
    %63 = arith.cmpi sgt, %61, %62 : vector<256x512xi32>
    %64 = arith.andi %60, %63 : vector<256x512xi1>
    %65 = arith.extui %64 : vector<256x512xi1> to vector<256x512xi32>
    %66 = arith.sitofp %65 : vector<256x512xi32> to vector<256x512xf32>
    %67 = arith.truncf %66 : vector<256x512xf32> to vector<256x512xbf16>
    %68 = vector.broadcast %46 : vector<256x1xi32> to vector<256x512xi32>
    %69 = vector.broadcast %53 : vector<1x512xi32> to vector<256x512xi32>
    %70 = arith.cmpi sgt, %68, %69 : vector<256x512xi32>
    %71 = arith.andi %60, %70 : vector<256x512xi1>
    %72 = arith.extui %71 : vector<256x512xi1> to vector<256x512xi32>
    %73 = arith.sitofp %72 : vector<256x512xi32> to vector<256x512xf32>
    %74 = arith.truncf %73 : vector<256x512xf32> to vector<256x512xbf16>
    %cst_18 = arith.constant dense<0.000000e+00> : vector<256x1xf32>
    %75 = tpu.matmul %67, %0, %cst_18 {dimension_numbers = #tpu.dot_dimension_numbers<[1], [0], [0], [1], [0, 0, 1, 1], [], []>} : vector<256x512xbf16>, vector<512x1xbf16>, vector<256x1xf32> -> vector<256x1xf32>
    %76 = arith.addf %47, %75 : vector<256x1xf32>
    %cst_19 = arith.constant dense<0.000000e+00> : vector<1x512xf32>
    %77 = tpu.matmul %1, %74, %cst_19 {dimension_numbers = #tpu.dot_dimension_numbers<[1], [0], [0], [1], [0, 0, 1, 1], [], []>} : vector<1x256xbf16>, vector<256x512xbf16>, vector<1x512xf32> -> vector<1x512xf32>
    %78 = arith.addf %40, %77 : vector<1x512xf32>
    %c0_20 = arith.constant 0 : index
    %c0_21 = arith.constant 0 : index
    %79 = vector.load %arg1[%c0_20, %c0_21] : memref<1x512xi32, #tpu.memory_space<vmem>>, vector<1x512xi32>
    %c0_i32_22 = arith.constant 0 : i32
    %80 = vector.broadcast %c0_i32_22 : i32 to vector<1x512xi32>
    %81 = arith.cmpi ne, %79, %80 : vector<1x512xi32>
    %cst_23 = arith.constant 5.000000e-01 : f32
    %82 = vector.broadcast %cst_23 : f32 to vector<1x512xf32>
    %83 = arith.cmpf olt, %78, %82 : vector<1x512xf32>
    %84 = arith.andi %81, %83 : vector<1x512xi1>
    %cst_24 = arith.constant 0.000000e+00 : f32
    %85 = vector.broadcast %cst_24 : f32 to vector<8x128xf32>
    %c0_25 = arith.constant 0 : index
    %c0_26 = arith.constant 0 : index
    %86 = vector.load %arg2[%c0_25, %c0_26] : memref<512x1xf32, #tpu.memory_space<vmem>>, vector<256x1xf32>
    %c0_27 = arith.constant 0 : index
    %c0_28 = arith.constant 0 : index
    %87 = vector.load %arg0[%c0_27, %c0_28] : memref<512x1xi32, #tpu.memory_space<vmem>>, vector<256x1xi32>
    %c0_i32_29 = arith.constant 0 : i32
    %88 = vector.broadcast %c0_i32_29 : i32 to vector<256x1xi32>
    %89 = arith.cmpi ne, %87, %88 : vector<256x1xi32>
    %90 = tpu.iota {dimensions = array<i32: 0>} : vector<256x1xi32>
    %c0_i32_30 = arith.constant 0 : i32
    %91 = vector.broadcast %c0_i32_30 : i32 to vector<256x1xi32>
    %92 = arith.addi %91, %90 : vector<256x1xi32>
    %cst_31 = arith.constant 0.000000e+00 : f32
    %93 = vector.broadcast %cst_31 : f32 to vector<256x1xf32>
    %c0_32 = arith.constant 0 : index
    %c0_33 = arith.constant 0 : index
    %94 = vector.load %arg3[%c0_32, %c0_33] : memref<1x512xf32, #tpu.memory_space<vmem>>, vector<1x512xf32>
    %95 = tpu.iota {dimensions = array<i32: 1>} : vector<1x512xi32>
    %c0_i32_34 = arith.constant 0 : i32
    %96 = vector.broadcast %c0_i32_34 : i32 to vector<1x512xi32>
    %97 = arith.addi %96, %95 : vector<1x512xi32>
    %98 = vector.broadcast %94 : vector<1x512xf32> to vector<256x512xf32>
    %99 = vector.broadcast %86 : vector<256x1xf32> to vector<256x512xf32>
    %100 = arith.cmpf ogt, %98, %99 : vector<256x512xf32>
    %101 = vector.broadcast %94 : vector<1x512xf32> to vector<256x512xf32>
    %102 = vector.broadcast %86 : vector<256x1xf32> to vector<256x512xf32>
    %103 = arith.cmpf oeq, %101, %102 : vector<256x512xf32>
    %104 = vector.broadcast %97 : vector<1x512xi32> to vector<256x512xi32>
    %105 = vector.broadcast %92 : vector<256x1xi32> to vector<256x512xi32>
    %106 = arith.cmpi slt, %104, %105 : vector<256x512xi32>
    %107 = arith.andi %103, %106 : vector<256x512xi1>
    %108 = arith.ori %100, %107 : vector<256x512xi1>
    %109 = vector.broadcast %84 : vector<1x512xi1> to vector<256x512xi1>
    %110 = arith.andi %109, %108 : vector<256x512xi1>
    %111 = arith.extui %110 : vector<256x512xi1> to vector<256x512xi32>
    %112 = arith.sitofp %111 : vector<256x512xi32> to vector<256x512xf32>
    %113 = arith.truncf %112 : vector<256x512xf32> to vector<256x512xbf16>
    %cst_35 = arith.constant dense<0.000000e+00> : vector<256x1xf32>
    %114 = tpu.matmul %113, %0, %cst_35 {dimension_numbers = #tpu.dot_dimension_numbers<[1], [0], [0], [1], [0, 0, 1, 1], [], []>} : vector<256x512xbf16>, vector<512x1xbf16>, vector<256x1xf32> -> vector<256x1xf32>
    %115 = arith.addf %93, %114 : vector<256x1xf32>
    %cst_36 = arith.constant 5.000000e-01 : f32
    %116 = vector.broadcast %cst_36 : f32 to vector<256x1xf32>
    %117 = arith.cmpf olt, %38, %116 : vector<256x1xf32>
    %118 = arith.andi %89, %117 : vector<256x1xi1>
    %119 = tpu.iota {dimensions = array<i32: 1>} : vector<256x128xi32>
    %120 = arith.sitofp %119 : vector<256x128xi32> to vector<256x128xf32>
    %121 = vector.broadcast %115 : vector<256x1xf32> to vector<256x128xf32>
    %122 = arith.cmpf oeq, %121, %120 : vector<256x128xf32>
    %123 = vector.broadcast %118 : vector<256x1xi1> to vector<256x128xi1>
    %124 = arith.andi %122, %123 : vector<256x128xi1>
    %125 = arith.extui %124 : vector<256x128xi1> to vector<256x128xi32>
    %126 = arith.sitofp %125 : vector<256x128xi32> to vector<256x128xf32>
    %127 = arith.truncf %126 : vector<256x128xf32> to vector<256x128xbf16>
    %c0_37 = arith.constant 0 : index
    %c0_38 = arith.constant 0 : index
    %128 = vector.load %arg4[%c0_37, %c0_38] : memref<8x512xbf16, #tpu.memory_space<vmem>>, vector<8x256xbf16>
    %cst_39 = arith.constant dense<0.000000e+00> : vector<8x128xf32>
    %129 = tpu.matmul %128, %127, %cst_39 {dimension_numbers = #tpu.dot_dimension_numbers<[1], [0], [0], [1], [0, 0, 1, 1], [], []>} : vector<8x256xbf16>, vector<256x128xbf16>, vector<8x128xf32> -> vector<8x128xf32>
    %130 = arith.addf %85, %129 : vector<8x128xf32>
    %c256_40 = arith.constant 256 : index
    %c0_41 = arith.constant 0 : index
    %131 = vector.load %arg2[%c256_40, %c0_41] : memref<512x1xf32, #tpu.memory_space<vmem>>, vector<256x1xf32>
    %c256_42 = arith.constant 256 : index
    %c0_43 = arith.constant 0 : index
    %132 = vector.load %arg0[%c256_42, %c0_43] : memref<512x1xi32, #tpu.memory_space<vmem>>, vector<256x1xi32>
    %c0_i32_44 = arith.constant 0 : i32
    %133 = vector.broadcast %c0_i32_44 : i32 to vector<256x1xi32>
    %134 = arith.cmpi ne, %132, %133 : vector<256x1xi32>
    %135 = tpu.iota {dimensions = array<i32: 0>} : vector<256x1xi32>
    %c256_i32_45 = arith.constant 256 : i32
    %136 = vector.broadcast %c256_i32_45 : i32 to vector<256x1xi32>
    %137 = arith.addi %136, %135 : vector<256x1xi32>
    %cst_46 = arith.constant 0.000000e+00 : f32
    %138 = vector.broadcast %cst_46 : f32 to vector<256x1xf32>
    %c0_47 = arith.constant 0 : index
    %c0_48 = arith.constant 0 : index
    %139 = vector.load %arg3[%c0_47, %c0_48] : memref<1x512xf32, #tpu.memory_space<vmem>>, vector<1x512xf32>
    %140 = tpu.iota {dimensions = array<i32: 1>} : vector<1x512xi32>
    %c0_i32_49 = arith.constant 0 : i32
    %141 = vector.broadcast %c0_i32_49 : i32 to vector<1x512xi32>
    %142 = arith.addi %141, %140 : vector<1x512xi32>
    %143 = vector.broadcast %139 : vector<1x512xf32> to vector<256x512xf32>
    %144 = vector.broadcast %131 : vector<256x1xf32> to vector<256x512xf32>
    %145 = arith.cmpf ogt, %143, %144 : vector<256x512xf32>
    %146 = vector.broadcast %139 : vector<1x512xf32> to vector<256x512xf32>
    %147 = vector.broadcast %131 : vector<256x1xf32> to vector<256x512xf32>
    %148 = arith.cmpf oeq, %146, %147 : vector<256x512xf32>
    %149 = vector.broadcast %142 : vector<1x512xi32> to vector<256x512xi32>
    %150 = vector.broadcast %137 : vector<256x1xi32> to vector<256x512xi32>
    %151 = arith.cmpi slt, %149, %150 : vector<256x512xi32>
    %152 = arith.andi %148, %151 : vector<256x512xi1>
    %153 = arith.ori %145, %152 : vector<256x512xi1>
    %154 = vector.broadcast %84 : vector<1x512xi1> to vector<256x512xi1>
    %155 = arith.andi %154, %153 : vector<256x512xi1>
    %156 = arith.extui %155 : vector<256x512xi1> to vector<256x512xi32>
    %157 = arith.sitofp %156 : vector<256x512xi32> to vector<256x512xf32>
    %158 = arith.truncf %157 : vector<256x512xf32> to vector<256x512xbf16>
    %cst_50 = arith.constant dense<0.000000e+00> : vector<256x1xf32>
    %159 = tpu.matmul %158, %0, %cst_50 {dimension_numbers = #tpu.dot_dimension_numbers<[1], [0], [0], [1], [0, 0, 1, 1], [], []>} : vector<256x512xbf16>, vector<512x1xbf16>, vector<256x1xf32> -> vector<256x1xf32>
    %160 = arith.addf %138, %159 : vector<256x1xf32>
    %cst_51 = arith.constant 5.000000e-01 : f32
    %161 = vector.broadcast %cst_51 : f32 to vector<256x1xf32>
    %162 = arith.cmpf olt, %76, %161 : vector<256x1xf32>
    %163 = arith.andi %134, %162 : vector<256x1xi1>
    %164 = tpu.iota {dimensions = array<i32: 1>} : vector<256x128xi32>
    %165 = arith.sitofp %164 : vector<256x128xi32> to vector<256x128xf32>
    %166 = vector.broadcast %160 : vector<256x1xf32> to vector<256x128xf32>
    %167 = arith.cmpf oeq, %166, %165 : vector<256x128xf32>
    %168 = vector.broadcast %163 : vector<256x1xi1> to vector<256x128xi1>
    %169 = arith.andi %167, %168 : vector<256x128xi1>
    %170 = arith.extui %169 : vector<256x128xi1> to vector<256x128xi32>
    %171 = arith.sitofp %170 : vector<256x128xi32> to vector<256x128xf32>
    %172 = arith.truncf %171 : vector<256x128xf32> to vector<256x128xbf16>
    %c0_52 = arith.constant 0 : index
    %c256_53 = arith.constant 256 : index
    %173 = vector.load %arg4[%c0_52, %c256_53] : memref<8x512xbf16, #tpu.memory_space<vmem>>, vector<8x256xbf16>
    %cst_54 = arith.constant dense<0.000000e+00> : vector<8x128xf32>
    %174 = tpu.matmul %173, %172, %cst_54 {dimension_numbers = #tpu.dot_dimension_numbers<[1], [0], [0], [1], [0, 0, 1, 1], [], []>} : vector<8x256xbf16>, vector<256x128xbf16>, vector<8x128xf32> -> vector<8x128xf32>
    %175 = arith.addf %130, %174 : vector<8x128xf32>
    %c0_55 = arith.constant 0 : index
    %c0_56 = arith.constant 0 : index
    %176 = vector.load %arg5[%c0_55, %c0_56] : memref<8x128xf32, #tpu.memory_space<vmem>>, vector<8x128xf32>
    tpu.vector_store %arg5[%c0_55, %c0_56], %175 {strides = array<i32>} : memref<8x128xf32, #tpu.memory_space<vmem>>, vector<8x128xf32>,
    return
  }
}

</mosaic_0001>

<bundles_post_ra>
// kernel: tpu_custom_call.1
= control target key start
LH: loop header
LB: loop body
LE: loop exit
PB: predicated region body
PF: predicated region fallthrough
CT: control target
= control target key end

     0   :  { %v20555_v2 = vmov 0   ;;  %v20553_v4 = vmov 1065369472   ;;  %s20513_s0 = inlined_call_operand.vmem [shape: s32[512,1], index: 0, kind: input, shape index: {}]   ;;  %s20514_s1 = inlined_call_operand.vmem [shape: s32[1,512], index: 1, kind: input, shape index: {}]   ;;  %s20515_s2 = inlined_call_operand.vmem [shape: f32[512,1], index: 2, kind: input, shape index: {}]   ;;  %s20516_s3 = inlined_call_operand.vmem [shape: f32[1,512], index: 3, kind: input, shape index: {}]   ;;  %s20517_s4 = inlined_call_operand.vmem [shape: bf16[8,512], index: 4, kind: input, shape index: {}]   ;;  %s20518_s5 = inlined_call_operand.hbm [shape: f32[8,128], index: 5, kind: output, shape index: {}]  }
   0x1   :  { %v11408_v0 = vld [vmem:[%s20513_s0] sm:$0xff]  ;;  %v11413_v1 = vld [vmem:[%s20513_s0 + $0x8] sm:$0xff]  ;;  %11339 = vset.pattern.permute.xlu0 %v20555_v2  ;;  %11340 = vset.pattern.permute.xlu1 %v20555_v2  ;;  %v11436_v6 = vld [vmem:[%s20513_s0 + $0x10] sm:$0xff] }
   0x2   :  { %vm20562_vm0 = vcmp.ne.s32.totalorder %v11408_v0, 0  ;;  %vm20552_vm1 = vcmp.ne.s32.totalorder %v11413_v1, 0  ;;  %128 = vperm.xlu0 %11339, %v11408_v0   ;;  %10385 = vmatprep.subr.bf16.mxu0 %v20553_v4  ;;  %21101 = vst [vmem:[#allocation5_spill] sm:$0xff] %v11436_v6  ;;  %v11441_v7 = vld [vmem:[%s20513_s0 + $0x18] sm:$0xff]  ;;  %vm20551_vm2 = vcmp.ne.s32.totalorder %v11436_v6, 0  ;;  %v11464_v10 = vld [vmem:[%s20513_s0 + $0x20] sm:$0xff] }
   0x3   :  { %v367_v3 = vsel %vm20562_vm0, 1, %v20555_v2  ;;  %10497 = vmatprep.subr.bf16.mxu1 %v20553_v4  ;;  %v368_v5 = vsel %vm20552_vm1, 1, %v20555_v2  ;;  %10386 = vmatpush3.bf16.msra.mxu0 %v20553_v4  ;;  %21102 = vst [vmem:[#allocation6_spill] sm:$0xff] %v11441_v7  ;;  %vm20550_vm3 = vcmp.ne.s32.totalorder %v11441_v7, 0  ;;  %v369_v8 = vsel %vm20551_vm2, 1, %v20555_v2  ;;  %21103 = vst [vmem:[#allocation7_spill] sm:$0xff] %v11464_v10 }
   0x4   :  { %400 = vperm.xlu1 %11340, %v367_v3   ;;  %10498 = vmatpush3.bf16.msra.mxu1 %v20553_v4  ;;  %v370_v9 = vsel %vm20550_vm3, 1, %v20555_v2  ;;  %v11469_v11 = vld [vmem:[%s20513_s0 + $0x28] sm:$0xff]  ;;  %vm20549_vm4 = vcmp.ne.s32.totalorder %v11464_v10, 0 }
   0x5   :  { %10387 = vmatprep.subr.bf16.mxu0 %v20553_v4  ;;  %10499 = vmatprep.subr.bf16.mxu1 %v20553_v4  ;;  %21104 = vst [vmem:[#allocation8_spill] sm:$0xff] %v11469_v11  ;;  %vm20547_vm5 = vcmp.ne.s32.totalorder %v11469_v11, 0  ;;  %v371_v12 = vsel %vm20549_vm4, 1, %v20555_v2 }
   0x6   :  { %131 = vperm.xlu0 %11339, %v11413_v1   ;;  %v372_v13 = vsel %vm20547_vm5, 1, %v20555_v2 }
   0x7   :  { %10388 = vmatpush3.bf16.msra.mxu0 %v20553_v4 }
   0x8   :  { %403 = vperm.xlu1 %11340, %v368_v5   ;;  %10500 = vmatpush3.bf16.msra.mxu1 %v20553_v4 }
   0x9   :  { %10389 = vmatprep.subr.bf16.mxu0 %v20553_v4  ;;  %10501 = vmatprep.subr.bf16.mxu1 %v20553_v4 }
   0xa   :  { %134 = vperm.xlu0 %11339, %v11436_v6  }
   0xb   :  { %10390 = vmatpush3.bf16.msra.mxu0 %v20553_v4 }
   0xc   :  { %137 = vperm.xlu1 %11340, %v11441_v7   ;;  %10502 = vmatpush3.bf16.msra.mxu1 %v20553_v4 }
   0xd   :  { %10391 = vmatprep.subr.bf16.mxu0 %v20553_v4  ;;  %10503 = vmatprep.subr.bf16.mxu1 %v20553_v4 }
   0xe   :  { %406 = vperm.xlu0 %11339, %v369_v8  }
   0xf   :  { %10392 = vmatpush3.bf16.msra.mxu0 %v20553_v4 }
  0x10   :  { %409 = vperm.xlu1 %11340, %v370_v9   ;;  %10504 = vmatpush3.bf16.msra.mxu1 %v20553_v4 }
  0x11   :  { %10393 = vmatprep.subr.bf16.mxu0 %v20553_v4  ;;  %10505 = vmatprep.subr.bf16.mxu1 %v20553_v4 }
  0x12   :  { %140 = vperm.xlu0 %11339, %v11464_v10  }
  0x13   :  { %10394 = vmatpush3.bf16.msra.mxu0 %v20553_v4 }
  0x14   :  { %143 = vperm.xlu1 %11340, %v11469_v11   ;;  %10506 = vmatpush3.bf16.msra.mxu1 %v20553_v4 }
  0x15   :  { %10 = vsyncpa [#allocation3], 0  ;;  %10395 = vmatprep.subr.bf16.mxu0 %v20553_v4  ;;  %10507 = vmatprep.subr.bf16.mxu1 %v20553_v4  ;;  %v11492_v14 = vld [vmem:[%s20513_s0 + $0x30] sm:$0xff]  ;;  %v11497_v15 = vld [vmem:[%s20513_s0 + $0x38] sm:$0xff]  ;;  %v87_v60 = vlaneseq }
  0x16   :  { %412 = vperm.xlu0 %11339, %v371_v12   ;;  %21105 = vst [vmem:[#allocation9_spill] sm:$0xff] %v11492_v14  ;;  %21106 = vst [vmem:[#allocation10_spill] sm:$0xff] %v11497_v15  ;;  %vm20548_vm6 = vcmp.ne.s32.totalorder %v11492_v14, 0  ;;  %vm20546_vm7 = vcmp.ne.s32.totalorder %v11497_v15, 0  ;;  %v11520_v18 = vld [vmem:[%s20513_s0 + $0x40] sm:$0xff]  ;;  %v11525_v19 = vld [vmem:[%s20513_s0 + $0x48] sm:$0xff] }
  0x17   :  { %10396 = vmatpush3.bf16.msra.mxu0 %v20553_v4  ;;  %v373_v16 = vsel %vm20548_vm6, 1, %v20555_v2  ;;  %v374_v17 = vsel %vm20546_vm7, 1, %v20555_v2  ;;  %21107 = vst [vmem:[#allocation11_spill] sm:$0xff] %v11520_v18  ;;  %21108 = vst [vmem:[#allocation12_spill] sm:$0xff] %v11525_v19  ;;  %vm20543_vm8 = vcmp.ne.s32.totalorder %v11520_v18, 0  ;;  %vm20525_vm9 = vcmp.ne.s32.totalorder %v11525_v19, 0 }
  0x18   :  { %415 = vperm.xlu1 %11340, %v372_v13   ;;  %10508 = vmatpush3.bf16.msra.mxu1 %v20553_v4  ;;  %v375_v20 = vsel %vm20543_vm8, 1, %v20555_v2  ;;  %v376_v21 = vsel %vm20525_vm9, 1, %v20555_v2  ;;  %v11544_v22 = vld [vmem:[%s20513_s0 + $0x50] sm:$0xff]  ;;  %v11549_v23 = vld [vmem:[%s20513_s0 + $0x58] sm:$0xff]  ;;  %v11564_v26 = vld [vmem:[%s20513_s0 + $0x60] sm:$0xff]  ;;  %v11742_v63 = vshrl.u32 %v87_v60, 7 }
  0x19   :  { %10397 = vmatprep.subr.bf16.mxu0 %v20553_v4  ;;  %10509 = vmatprep.subr.bf16.mxu1 %v20553_v4  ;;  %21109 = vst [vmem:[#allocation13_spill] sm:$0xff] %v11544_v22  ;;  %21110 = vst [vmem:[#allocation14_spill] sm:$0xff] %v11549_v23  ;;  %vm20524_vm10 = vcmp.ne.s32.totalorder %v11544_v22, 0  ;;  %vm20523_vm11 = vcmp.ne.s32.totalorder %v11549_v23, 0  ;;  %v11569_v27 = vld [vmem:[%s20513_s0 + $0x68] sm:$0xff]  ;;  %vm20519_vm12 = vcmp.ne.s32.totalorder %v11564_v26, 0 }
  0x1a   :  { %146 = vperm.xlu0 %11339, %v11492_v14   ;;  %v377_v24 = vsel %vm20524_vm10, 1, %v20555_v2  ;;  %v378_v25 = vsel %vm20523_vm11, 1, %v20555_v2  ;;  %21111 = vst [vmem:[#allocation15_spill] sm:$0xff] %v11564_v26  ;;  %21112 = vst [vmem:[#allocation16_spill] sm:$0xff] %v11569_v27  ;;  %vm20522_vm13 = vcmp.ne.s32.totalorder %v11569_v27, 0  ;;  %v379_v28 = vsel %vm20519_vm12, 1, %v20555_v2 }
  0x1b   :  { %10398 = vmatpush3.bf16.msra.mxu0 %v20553_v4  ;;  %v380_v29 = vsel %vm20522_vm13, 1, %v20555_v2  ;;  %v11584_v30 = vld [vmem:[%s20513_s0 + $0x70] sm:$0xff]  ;;  %v11589_v31 = vld [vmem:[%s20513_s0 + $0x78] sm:$0xff]  ;;  %v11604_v34 = vld [vmem:[%s20513_s0 + $0x80] sm:$0xff]  ;;  %v11764_v9 = vsub.s32 1, %v11742_v63 }
  0x1c   :  { %149 = vperm.xlu1 %11340, %v11497_v15   ;;  %10510 = vmatpush3.bf16.msra.mxu1 %v20553_v4  ;;  %21113 = vst [vmem:[#allocation17_spill] sm:$0xff] %v11584_v30  ;;  %21114 = vst [vmem:[#allocation18_spill] sm:$0xff] %v11589_v31  ;;  %vm20520_vm14 = vcmp.ne.s32.totalorder %v11584_v30, 0  ;;  %vm20521_vm15 = vcmp.ne.s32.totalorder %v11589_v31, 0  ;;  %v11609_v35 = vld [vmem:[%s20513_s0 + $0x88] sm:$0xff]  ;;  %vm20542_vm12 = vcmp.ne.s32.totalorder %v11604_v34, 0 }
  0x1d   :  { %10399 = vmatprep.subr.bf16.mxu0 %v20553_v4  ;;  %10511 = vmatprep.subr.bf16.mxu1 %v20553_v4  ;;  %v381_v32 = vsel %vm20520_vm14, 1, %v20555_v2  ;;  %v382_v33 = vsel %vm20521_vm15, 1, %v20555_v2  ;;  %21115 = vst [vmem:[#allocation19_spill] sm:$0xff] %v11604_v34  ;;  %21116 = vst [vmem:[#allocation20_spill] sm:$0xff] %v11609_v35  ;;  %vm20541_vm14 = vcmp.ne.s32.totalorder %v11609_v35, 0  ;;  %v383_v36 = vsel %vm20542_vm12, 1, %v20555_v2 }
  0x1e   :  { %418 = vperm.xlu0 %11339, %v373_v16   ;;  %v384_v37 = vsel %vm20541_vm14, 1, %v20555_v2  ;;  %v11624_v38 = vld [vmem:[%s20513_s0 + $0x90] sm:$0xff]  ;;  %v11629_v39 = vld [vmem:[%s20513_s0 + $0x98] sm:$0xff]  ;;  %v11644_v42 = vld [vmem:[%s20513_s0 + $0xa0] sm:$0xff]  ;;  %21132 = vst [vmem:[#allocation36_spill] sm:$0xff] %v11764_v9  ;;  %v11774_v16 = vsub.s32 0, %v11742_v63 }
  0x1f   :  { %10400 = vmatpush3.bf16.msra.mxu0 %v20553_v4  ;;  %21117 = vst [vmem:[#allocation21_spill] sm:$0xff] %v11624_v38  ;;  %21118 = vst [vmem:[#allocation22_spill] sm:$0xff] %v11629_v39  ;;  %vm20540_vm15 = vcmp.ne.s32.totalorder %v11624_v38, 0  ;;  %vm20539_vm13 = vcmp.ne.s32.totalorder %v11629_v39, 0  ;;  %v11649_v43 = vld [vmem:[%s20513_s0 + $0xa8] sm:$0xff]  ;;  %vm20526_vm11 = vcmp.ne.s32.totalorder %v11644_v42, 0 }
  0x20   :  { %421 = vperm.xlu1 %11340, %v374_v17   ;;  %10512 = vmatpush3.bf16.msra.mxu1 %v20553_v4  ;;  %v385_v40 = vsel %vm20540_vm15, 1, %v20555_v2  ;;  %v386_v41 = vsel %vm20539_vm13, 1, %v20555_v2  ;;  %21119 = vst [vmem:[#allocation23_spill] sm:$0xff] %v11644_v42  ;;  %21120 = vst [vmem:[#allocation24_spill] sm:$0xff] %v11649_v43  ;;  %vm20527_vm10 = vcmp.ne.s32.totalorder %v11649_v43, 0  ;;  %v387_v44 = vsel %vm20526_vm11, 1, %v20555_v2 }
  0x21   :  { %10609 = vmatprep.subr.bf16.mxu0 %v20553_v4  ;;  %10721 = vmatprep.subr.bf16.mxu1 %v20553_v4  ;;  %v388_v45 = vsel %vm20527_vm10, 1, %v20555_v2  ;;  %v11664_v46 = vld [vmem:[%s20513_s0 + $0xb0] sm:$0xff]  ;;  %v11669_v47 = vld [vmem:[%s20513_s0 + $0xb8] sm:$0xff]  ;;  %v11684_v50 = vld [vmem:[%s20513_s0 + $0xc0] sm:$0xff]  ;;  %21133 = vst [vmem:[#allocation37_spill] sm:$0xff] %v11774_v16  ;;  %v21152_v4 = vmov 0 }
  0x22   :  { %152 = vperm.xlu0 %11339, %v11520_v18   ;;  %21121 = vst [vmem:[#allocation25_spill] sm:$0xff] %v11664_v46  ;;  %21122 = vst [vmem:[#allocation26_spill] sm:$0xff] %v11669_v47  ;;  %vm20528_vm9 = vcmp.ne.s32.totalorder %v11664_v46, 0  ;;  %vm20529_vm11 = vcmp.ne.s32.totalorder %v11669_v47, 0  ;;  %v11689_v51 = vld [vmem:[%s20513_s0 + $0xc8] sm:$0xff]  ;;  %vm20530_vm10 = vcmp.ne.s32.totalorder %v11684_v50, 0 }
  0x23   :  { %v389_v48 = vsel %vm20528_vm9, 1, %v20555_v2  ;;  %v390_v49 = vsel %vm20529_vm11, 1, %v20555_v2  ;;  %21123 = vst [vmem:[#allocation27_spill] sm:$0xff] %v11684_v50  ;;  %21124 = vst [vmem:[#allocation28_spill] sm:$0xff] %v11689_v51  ;;  %vm20531_vm9 = vcmp.ne.s32.totalorder %v11689_v51, 0  ;;  %v391_v52 = vsel %vm20530_vm10, 1, %v20555_v2 }
  0x24   :  { %155 = vperm.xlu1 %11340, %v11525_v19   ;;  %v392_v53 = vsel %vm20531_vm9, 1, %v20555_v2  ;;  %v11704_v54 = vld [vmem:[%s20513_s0 + $0xd0] sm:$0xff]  ;;  %v11709_v55 = vld [vmem:[%s20513_s0 + $0xd8] sm:$0xff]  ;;  %v11724_v58 = vld [vmem:[%s20513_s0 + $0xe0] sm:$0xff]  ;;  %v12297_v19 = vadd.s32 40, %v11742_v63 }
  0x25   :  { %21125 = vst [vmem:[#allocation29_spill] sm:$0xff] %v11704_v54  ;;  %21126 = vst [vmem:[#allocation30_spill] sm:$0xff] %v11709_v55  ;;  %vm20532_vm11 = vcmp.ne.s32.totalorder %v11704_v54, 0  ;;  %vm20535_vm10 = vcmp.ne.s32.totalorder %v11709_v55, 0  ;;  %v11729_v59 = vld [vmem:[%s20513_s0 + $0xe8] sm:$0xff]  ;;  %vm20534_vm9 = vcmp.ne.s32.totalorder %v11724_v58, 0 }
  0x26   :  { %424 = vperm.xlu0 %11339, %v375_v20   ;;  %v393_v56 = vsel %vm20532_vm11, 1, %v20555_v2  ;;  %v394_v57 = vsel %vm20535_vm10, 1, %v20555_v2  ;;  %21127 = vst [vmem:[#allocation31_spill] sm:$0xff] %v11724_v58  ;;  %21128 = vst [vmem:[#allocation32_spill] sm:$0xff] %v11729_v59  ;;  %vm20533_vm11 = vcmp.ne.s32.totalorder %v11729_v59, 0  ;;  %v395_v61 = vsel %vm20534_vm9, 1, %v20555_v2 }
  0x27   :  { %v396_v62 = vsel %vm20533_vm11, 1, %v20555_v2  ;;  %v11747_v3 = vld [vmem:[%s20514_s1] sm:$0xf]  ;;  %v11752_v5 = vld [vmem:[%s20513_s0 + $0xf0] sm:$0xff]  ;;  %v11757_v8 = vld [vmem:[%s20513_s0 + $0xf8] sm:$0xff]  ;;  %v11782_v20 = vsub.s32 3, %v11742_v63 }
  0x28   :  { %427 = vperm.xlu1 %11340, %v376_v21   ;;  %21129 = vst [vmem:[#allocation33_spill] sm:$0xff] %v11747_v3  ;;  %21130 = vst [vmem:[#allocation34_spill] sm:$0xff] %v11752_v5  ;;  %vm20536_vm11 = vcmp.ne.s32.totalorder %v11752_v5, 0  ;;  %vm20537_vm9 = vcmp.ne.s32.totalorder %v11757_v8, 0  ;;  %vm20538_vm10 = vcmp.ne.s32.totalorder %v11747_v3, 0  ;;  %v11786_v21 = vrot.slane %v11747_v3, %v11764_v9  ;;  %v4701_v10 = vld [vmem:[%s20515_s2 + $0x78] sm:$0xff] }
  0x29   :  { %21131 = vst [vmem:[#allocation35_spill] sm:$0xff] %v11757_v8  ;;  %v397_v12 = vsel %vm20536_vm11, 1, %v20555_v2  ;;  %v398_v13 = vsel %vm20537_vm9, 1, %v20555_v2  ;;  %v11779_v17 = vsel %vm20538_vm10, 1, %v20555_v2  ;;  %21134 = vst [vmem:[#allocation38_spill] sm:$0xff] %v11782_v20  ;;  %v4705_v7 = vld [vmem:[%s20515_s2 + $0x98] sm:$0xff] }
  0x2a   :  { %158 = vperm.xlu0 %11339, %v11544_v22   ;;  %v4711_v6 = vld [vmem:[%s20515_s2 + $0xc8] sm:$0xff] }
  0x2c   :  { %161 = vperm.xlu1 %11340, %v11549_v23   ;;  %v12111_v23 = vadd.s32 24, %v11742_v63 }
  0x2e   :  { %430 = vperm.xlu0 %11339, %v377_v24   ;;  %v11791_v24 = vld [vmem:[%s20513_s0 + $0x100] sm:$0xff] }
  0x2f   :  { %21135 = vst [vmem:[#allocation39_spill] sm:$0xff] %v11791_v24  ;;  %vm20544_vm11 = vcmp.ne.s32.totalorder %v11791_v24, 0 }
  0x30   :  { %433 = vperm.xlu1 %11340, %v378_v25   ;;  %v663_v25 = vrot.slane %v11779_v17, %v11764_v9 }
  0x32   :  { %164 = vperm.xlu0 %11339, %v11564_v26   ;;  %vm11822_vm15 = vcmp.eq.s32.totalorder %v663_v25, 1  ;;  %v20558_v25 = vmov 1.0|1.0   ;;  %v21169_v26 = vmov 0 }
  0x34   :  { %167 = vperm.xlu1 %11340, %v11569_v27   ;;  %v12132_v27 = vld [vmem:[%s20513_s0 + $0x150] sm:$0xff] }
  0x35   :  { %21180 = vst [vmem:[#allocation52_spill] sm:$0xff] %v12132_v27 }
  0x36   :  { %436 = vperm.xlu0 %11339, %v379_v28   ;;  %v11797_v28 = vrot.slane %v11747_v3, %v11774_v16 }
  0x38   :  { %439 = vperm.xlu1 %11340, %v380_v29   ;;  %v11802_v29 = vld [vmem:[%s20513_s0 + $0x108] sm:$0xff] }
  0x39   :  { %21136 = vst [vmem:[#allocation40_spill] sm:$0xff] %v11802_v29  ;;  %vm20545_vm9 = vcmp.ne.s32.totalorder %v11802_v29, 0 }
  0x3a   :  { %170 = vperm.xlu0 %11339, %v11584_v30  }
  0x3c   :  { %173 = vperm.xlu1 %11340, %v11589_v31   ;;  %v21157_v31 = vmov 0 }
  0x3e   :  { %442 = vperm.xlu0 %11339, %v381_v32   ;;  %v11807_v32 = vrot.slane %v11747_v3, %v11782_v20 }
  0x40   :  { %445 = vperm.xlu1 %11340, %v382_v33  }
  0x42   :  { %176 = vperm.xlu0 %11339, %v11604_v34   ;;  %v12937_v34 = vadd.s32 136, %v11742_v63 }
  0x44   :  { %179 = vperm.xlu1 %11340, %v11609_v35   ;;  %21284 = vst [vmem:[#allocation104_spill] sm:$0xff] %v12937_v34 }
  0x46   :  { %448 = vperm.xlu0 %11339, %v383_v36  }
  0x48   :  { %451 = vperm.xlu1 %11340, %v384_v37   ;;  %v2598_v37 = vsel %vm20544_vm11, 1, %v20555_v2 }
  0x4a   :  { %182 = vperm.xlu0 %11339, %v11624_v38  }
  0x4c   :  { %185 = vperm.xlu1 %11340, %v11629_v39  }
  0x4e   :  { %454 = vperm.xlu0 %11339, %v385_v40   ;;  %v21137_v40 = vmov 0 }
  0x4f   :  { %v21138_v40 = vsel %vm11822_vm15, 4294967295, %v21137_v40 }
  0x50   :  { %457 = vperm.xlu1 %11340, %v386_v41   ;;  %v2599_v41 = vsel %vm20545_vm9, 1, %v20555_v2 }
  0x52   :  { %188 = vperm.xlu0 %11339, %v11644_v42   ;;  %v12785_v42 = vld [vmem:[%s20513_s0 + $0x1e0] sm:$0xff] }
  0x53   :  { %21257 = vst [vmem:[#allocation88_spill] sm:$0xff] %v12785_v42 }
  0x54   :  { %191 = vperm.xlu1 %11340, %v11649_v43   ;;  %v12265_v43 = vld [vmem:[%s20513_s0 + $0x170] sm:$0xff] }
  0x55   :  { %21196 = vst [vmem:[#allocation58_spill] sm:$0xff] %v12265_v43 }
  0x56   :  { %460 = vperm.xlu0 %11339, %v387_v44  }
  0x58   :  { %463 = vperm.xlu1 %11340, %v388_v45  }
  0x5a   :  { %194 = vperm.xlu0 %11339, %v11664_v46   ;;  %v12272_v46 = vld [vmem:[%s20513_s0 + $0x178] sm:$0xff] }
  0x5b   :  { %21197 = vst [vmem:[#allocation59_spill] sm:$0xff] %v12272_v46 }
  0x5c   :  { %197 = vperm.xlu1 %11340, %v11669_v47  }
  0x5e   :  { %466 = vperm.xlu0 %11339, %v389_v48  }
  0x60   :  { %469 = vperm.xlu1 %11340, %v390_v49   ;;  %v671_v49 = vrot.slane %v11779_v17, %v11782_v20  ;;  %v12311_v20 = vld [vmem:[%s20513_s0 + $0x180] sm:$0xff] }
  0x61   :  { %21201 = vst [vmem:[#allocation60_spill] sm:$0xff] %v12311_v20 }
  0x62   :  { %200 = vperm.xlu0 %11339, %v11684_v50   ;;  %vm11891_vm1 = vcmp.eq.s32.totalorder %v671_v49, 1  ;;  %v11925_v49 = vand.u32 127, %v87_v60 }
  0x64   :  { %203 = vperm.xlu1 %11340, %v11689_v51  }
  0x66   :  { %472 = vperm.xlu0 %11339, %v391_v52   ;;  %v21141_v52 = vmov 0 }
  0x68   :  { %475 = vperm.xlu1 %11340, %v392_v53   ;;  %v11863_v53 = vld [vmem:[%s20513_s0 + $0x110] sm:$0xff] }
  0x69   :  { %21143 = vst [vmem:[#allocation41_spill] sm:$0xff] %v11863_v53  ;;  %vm20561_vm4 = vcmp.ne.s32.totalorder %v11863_v53, 0 }
  0x6a   :  { %206 = vperm.xlu0 %11339, %v11704_v54  }
  0x6c   :  { %209 = vperm.xlu1 %11340, %v11709_v55  }
  0x6e   :  { %478 = vperm.xlu0 %11339, %v393_v56   ;;  %v11946_v56 = vld [vmem:[%s20513_s0 + $0x128] sm:$0xff] }
  0x6f   :  { %21155 = vst [vmem:[#allocation45_spill] sm:$0xff] %v11946_v56 }
  0x70   :  { %481 = vperm.xlu1 %11340, %v394_v57   ;;  %v21146_v57 = vmov 0 }
  0x72   :  { %212 = vperm.xlu0 %11339, %v11724_v58  }
  0x74   :  { %215 = vperm.xlu1 %11340, %v11729_v59   ;;  %v12071_v59 = vld [vmem:[%s20513_s0 + $0x140] sm:$0xff] }
  0x75   :  { %21174 = vst [vmem:[#allocation50_spill] sm:$0xff] %v12071_v59 }
  0x76   :  { %484 = vperm.xlu0 %11339, %v395_v61   ;;  %v11880_v61 = vld [vmem:[%s20513_s0 + $0x118] sm:$0xff] }
  0x77   :  { %21148 = vst [vmem:[#allocation42_spill] sm:$0xff] %v11880_v61  ;;  %vm20557_vm2 = vcmp.ne.s32.totalorder %v11880_v61, 0 }
  0x78   :  { %487 = vperm.xlu1 %11340, %v396_v62   ;;  %v21149_v62 = vmov 0  ;;  %v2601_v45 = vsel %vm20557_vm2, 1, %v20555_v2 }
  0x79   :  { %v21150_v62 = vsel %vm11891_vm1, 4294967295, %v21149_v62 }
  0x7a   :  { %218 = vperm.xlu0 %11339, %v11752_v5  }
  0x7c   :  { %221 = vperm.xlu1 %11340, %v11757_v8  }
  0x7e   :  { %490 = vperm.xlu0 %11339, %v397_v12   ;;  %v659_v12 = vrot.slane %v11779_v17, %v11774_v16 }
  0x80   :  { %493 = vperm.xlu1 %11340, %v398_v13   ;;  %v2600_v13 = vsel %vm20561_vm4, 1, %v20555_v2  ;;  %v11934_v2 = vld [vmem:[%s20513_s0 + $0x120] sm:$0xff] }
  0x81   :  { %v11809_v33 = vpop.permute.xlu0 %128  ;;  %21154 = vst [vmem:[#allocation44_spill] sm:$0xff] %v11934_v2 }
  0x82   :  { %2375 = vperm.xlu0 %11339, %v11791_v24   ;;  %vm240_vm10 = vcmp.eq.s32.totalorder %v11809_v33, %v11786_v21  ;;  %vm239_vm14 = vcmp.eq.s32.totalorder %v11809_v33, %v11797_v28  ;;  %vm242_vm12 = vcmp.eq.s32.totalorder %v11809_v33, %v11807_v32 }
  0x83   :  { %v11813_v36 = vpop.permute.xlu1 %400 }
  0x84   :  { %vm495_vm13 = vcmp.eq.s32.totalorder %v11813_v36, 1  ;;  %2378 = vperm.xlu1 %11340, %v11802_v29   ;;  %v12013_v36 = vld [vmem:[%s20513_s0 + $0x138] sm:$0xff] }
  0x85   :  { %v11833_v44 = vpop.permute.xlu0 %131  ;;  %vm11837_vm8 = vmand %vm240_vm10, %vm495_vm13  ;;  %21164 = vst [vmem:[#allocation47_spill] sm:$0xff] %v12013_v36 }
  0x86   :  { %2631 = vperm.xlu0 %11339, %v2598_v37   ;;  %vm243_vm11 = vcmp.eq.s32.totalorder %v11833_v44, %v11797_v28  ;;  %vm244_vm9 = vcmp.eq.s32.totalorder %v11833_v44, %v11786_v21  ;;  %vm677_vm7 = vmand %vm11837_vm8, %vm11822_vm15  ;;  %v11910_v37 = vadd.s32 8, %v11742_v63 }
  0x87   :  { %v11843_v48 = vpop.permute.xlu1 %403  ;;  %vm11855_vm10 = vmand %vm239_vm14, %vm495_vm13 }
  0x88   :  { %v21142_v52 = vsel %vm11855_vm10, 4294967295, %v21141_v52  ;;  %vm20564_vm5 = vcmp.eq.s32.totalorder %v11843_v48, 1  ;;  %2634 = vperm.xlu1 %11340, %v2599_v41   ;;  %vm11867_vm6 = vmand %vm242_vm12, %vm495_vm13  ;;  %vm246_vm12 = vcmp.eq.s32.totalorder %v11833_v44, %v11807_v32  ;;  %v11913_v41 = vsub.s32 2, %v11742_v63 }
  0x89   :  { %vm11873_vm14 = vmand %vm243_vm11, %vm20564_vm5 }
  0x8a   :  { %v21147_v57 = vsel %vm11873_vm14, 4294967295, %v21146_v57  ;;  %vm532_vm3 = vmand %vm244_vm9, %vm20564_vm5  ;;  %2381 = vperm.xlu0 %11339, %v11863_v53   ;;  %21151 = vst [vmem:[#allocation43_spill] sm:$0xff] %v11913_v41  ;;  %v11941_v60 = vrot.slane %v11747_v3, %v11913_v41 }
  0x8b   :  { %vm681_vm11 = vmand %vm532_vm3, %vm11822_vm15 }
  0x8c   :  { %2384 = vperm.xlu1 %11340, %v11880_v61   ;;  %vm9261_vm9 = vmpackc.low %vm681_vm11, %vm677_vm7  ;;  %vm11927_vm11 = vcmp.eq.s32.totalorder %v659_v12, 1  ;;  %v11949_v12 = vpop.permute.xlu0 %134  ;;  %vm241_vm4 = vcmp.eq.s32.totalorder %v11809_v33, %v11941_v60  ;;  %v21159_v33 = vmov 1.0|1.0  }
  0x8d   :  { %9262 = vmatprep.mubr.msk.bf16.mxu0 %vm9261_vm9, %v20558_v25  ;;  %vm534_vm3 = vmand %vm246_vm12, %vm20564_vm5  ;;  %v21153_v4 = vsel %vm11927_vm11, 4294967295, %v21152_v4  ;;  %vm20569_vm9 = vcmp.ne.s32.totalorder %v11934_v2, 0 }
  0x8e   :  { %vm679_vm7 = vmand %vm11867_vm6, %vm11891_vm1  ;;  %2637 = vperm.xlu0 %11339, %v2600_v13   ;;  %vm808_vm6 = vcmp.gt.s32.totalorder %v11925_v49, %v11910_v37  ;;  %v11956_v13 = vpop.permute.xlu1 %137 }
  0x8f   :  { %vm683_vm8 = vmand %vm534_vm3, %vm11891_vm1 }
  0x90   :  { %vm9309_vm12 = vmpackc.low %vm683_vm8, %vm679_vm7  ;;  %2640 = vperm.xlu1 %11340, %v2601_v45   ;;  %vm20566_vm7 = vcmp.ne.s32.totalorder %v11946_v56, 0  ;;  %v667_v45 = vrot.slane %v11779_v17, %v11913_v41  ;;  %v11999_v8 = vpop.permute.xlu0 %406 }
  0x91   :  { %9310 = vmatprep.mubr.msk.bf16.mxu1 %vm9309_vm12, %v20558_v25  ;;  %vm20563_vm3 = vmand %vm11873_vm14, %vm11927_vm11  ;;  %vm804_vm12 = vcmp.gt.s32.totalorder %v11925_v49, %v11742_v63  ;;  %v21156_v25 = vmov 0  }
  0x92   :  { %vm20575_vm8 = vmand %vm11855_vm10, %vm11927_vm11  ;;  %2387 = vperm.xlu0 %11339, %v11934_v2   ;;  %v2602_v30 = vsel %vm20569_vm9, 1, %v21156_v25  ;;  %v2603_v17 = vsel %vm20566_vm7, 1, %v21156_v25  ;;  %vm11988_vm5 = vcmp.eq.s32.totalorder %v667_v45, 1  ;;  %v21165_v45 = vmov 1065369472  }
  0x93   :  { %vm936_vm2 = vmand %vm20563_vm3, %vm808_vm6  ;;  %vm245_vm6 = vcmp.eq.s32.totalorder %v11833_v44, %v11941_v60  ;;  %v21158_v31 = vsel %vm11988_vm5, 4294967295, %v21157_v31  ;;  %v12004_v44 = vld [vmem:[%s20513_s0 + $0x130] sm:$0xff] }
  0x94   :  { %2390 = vperm.xlu1 %11340, %v11946_v56   ;;  %vm932_vm0 = vmand %vm20575_vm8, %vm804_vm12  ;;  %21162 = vst [vmem:[#allocation46_spill] sm:$0xff] %v12004_v44 }
  0x95   :  { %vm9263_vm3 = vmpackc.low %vm936_vm2, %vm932_vm0  ;;  %vm21163_vm0 = vcmp.eq.s32.totalorder %v11843_v48, 1 }
  0x96   :  { %2643 = vperm.xlu0 %11339, %v2602_v30   ;;  %9264 = vmatmul.mubr.msk.bf16.vlgmr.msra.gmra.mrb[0].mxu0 %vm9263_vm3, %v21159_v33  ;;  %vm11995_vm7 = vmand %vm241_vm4, %vm495_vm13  ;;  %v12008_v30 = vpop.permute.xlu1 %409  ;;  %vm20573_vm4 = vcmp.ne.s32.totalorder %v12004_v44, 0  ;;  %vm20571_vm3 = vcmp.ne.s32.totalorder %v12013_v36, 0 }
  0x97   :  { %vm533_vm2 = vmand %vm245_vm6, %vm21163_vm0  ;;  %10610 = vmatpush3.bf16.msra.mxu0 %v21165_v45  ;;  %vm20582_vm6 = vcmp.eq.s32.totalorder %v11999_v8, 1  ;;  %vm20576_vm9 = vcmp.eq.s32.totalorder %v12008_v30, 1  ;;  %v2604_v5 = vsel %vm20573_vm4, 1, %v21156_v25  ;;  %v2605_v48 = vsel %vm20571_vm3, 1, %v21156_v25 }
  0x98   :  { %2646 = vperm.xlu1 %11340, %v2603_v17   ;;  %vm678_vm13 = vmand %vm11995_vm7, %vm11988_vm5  ;;  %10611 = vmatprep.subr.bf16.mxu0 %v21165_v45  ;;  %vm247_vm7 = vcmp.eq.s32.totalorder %v11949_v12, %v11797_v28  ;;  %v21166_v17 = vmov 0 }
  0x99   :  { %vm682_vm12 = vmand %vm533_vm2, %vm11988_vm5 }
  0x9a   :  { %2393 = vperm.xlu0 %11339, %v12004_v44   ;;  %vm9311_vm0 = vmpackc.low %vm682_vm12, %vm678_vm13  ;;  %vm251_vm13 = vcmp.eq.s32.totalorder %v11956_v13, %v11797_v28  ;;  %vm248_vm12 = vcmp.eq.s32.totalorder %v11949_v12, %v11786_v21  ;;  %v12157_v22 = vpop.permute.xlu1 %143 }
  0x9b   :  { %9312 = vmatmul.mubr.msk.bf16.vlgmr.msra.gmra.mrb[0].mxu1 %vm9311_vm0, %v21159_v33  ;;  %10612 = vmatpush3.bf16.msra.mxu0 %v21165_v45  ;;  %vm12041_vm2 = vmand %vm247_vm7, %vm20582_vm6  ;;  %vm252_vm7 = vcmp.eq.s32.totalorder %v11956_v13, %v11786_v21 }
  0x9c   :  { %2396 = vperm.xlu1 %11340, %v12013_v36   ;;  %v21167_v17 = vsel %vm12041_vm2, 4294967295, %v21166_v17  ;;  %10722 = vmatpush3.bf16.msra.mxu1 %v21165_v45  ;;  %vm12053_vm0 = vmand %vm251_vm13, %vm20576_vm9  ;;  %v12615_v36 = vld [vmem:[%s20513_s0 + $0x1c0] sm:$0xff] }
  0x9d   :  { %21168 = vst [vmem:[#allocation48_spill] sm:$0xff] %v21167_v17  ;;  %10613 = vmatprep.subr.bf16.mxu0 %v21165_v45  ;;  %v21170_v26 = vsel %vm12053_vm0, 4294967295, %v21169_v26  ;;  %vm12061_vm3 = vmand %vm248_vm12, %vm20582_vm6  ;;  %10723 = vmatprep.subr.bf16.mxu1 %v21165_v45  ;;  %vm254_vm12 = vcmp.eq.s32.totalorder %v11956_v13, %v11807_v32 }
  0x9e   :  { %21171 = vst [vmem:[#allocation49_spill] sm:$0xff] %v21170_v26  ;;  %2649 = vperm.xlu0 %11339, %v2604_v5   ;;  %vm540_vm4 = vmand %vm252_vm7, %vm20576_vm9  ;;  %v12080_v5 = vld [vmem:[%s20513_s0 + $0x148] sm:$0xff] }
  0x9f   :  { %vm685_vm13 = vmand %vm12061_vm3, %vm11822_vm15  ;;  %21175 = vst [vmem:[#allocation51_spill] sm:$0xff] %v12080_v5  ;;  %10614 = vmatpush3.bf16.msra.mxu0 %v21165_v45  ;;  %vm20581_vm8 = vcmp.ne.s32.totalorder %v12080_v5, 0  ;;  %vm250_vm3 = vcmp.eq.s32.totalorder %v11949_v12, %v11807_v32 }
  0xa0   :  { %2652 = vperm.xlu1 %11340, %v2605_v48   ;;  %vm689_vm7 = vmand %vm540_vm4, %vm11822_vm15  ;;  %10724 = vmatpush3.bf16.msra.mxu1 %v21165_v45  ;;  %v12102_v48 = vadd.s32 16, %v11742_v63  ;;  %v2607_v54 = vsel %vm20581_vm8, 1, %v21156_v25  ;;  %21238 = vst [vmem:[#allocation78_spill] sm:$0xff] %v12615_v36 }
  0xa1   :  { %10615 = vmatprep.subr.bf16.mxu0 %v21165_v45  ;;  %vm9265_vm9 = vmpackc.low %vm689_vm7, %vm685_vm13  ;;  %vm21178_vm13 = vcmp.ne.s32.totalorder %v12071_v59, 0  ;;  %10725 = vmatprep.subr.bf16.mxu1 %v21165_v45 }
  0xa2   :  { %2399 = vperm.xlu0 %11339, %v12071_v59   ;;  %9266 = vmatprep.mubr.msk.bf16.mxu0 %vm9265_vm9, %v21159_v33  ;;  %vm12097_vm4 = vmand %vm250_vm3, %vm20582_vm6  ;;  %v2606_v58 = vsel %vm21178_vm13, 1, %v21156_v25  ;;  %vm21179_vm9 = vcmp.eq.s32.totalorder %v12008_v30, 1 }
  0xa3   :  { %vm542_vm7 = vmand %vm254_vm12, %vm21179_vm9  ;;  %10616 = vmatpush3.bf16.msra.mxu0 %v21165_v45  ;;  %vm812_vm9 = vcmp.gt.s32.totalorder %v11925_v49, %v12102_v48 }
  0xa4   :  { %2402 = vperm.xlu1 %11340, %v12080_v5   ;;  %vm687_vm3 = vmand %vm12097_vm4, %vm11891_vm1  ;;  %10726 = vmatpush3.bf16.msra.mxu1 %v21165_v45  ;;  %v12532_v5 = vld [vmem:[%s20513_s0 + $0x1b0] sm:$0xff] }
  0xa5   :  { %10617 = vmatprep.subr.bf16.mxu0 %v21165_v45  ;;  %vm691_vm12 = vmand %vm542_vm7, %vm11891_vm1  ;;  %10727 = vmatprep.subr.bf16.mxu1 %v21165_v45  ;;  %vm816_vm7 = vcmp.gt.s32.totalorder %v11925_v49, %v12111_v23  ;;  %21227 = vst [vmem:[#allocation74_spill] sm:$0xff] %v12532_v5 }
  0xa6   :  { %2655 = vperm.xlu0 %11339, %v2606_v58   ;;  %vm9313_vm13 = vmpackc.low %vm691_vm12, %vm687_vm3  ;;  %v12144_v58 = vld [vmem:[%s20513_s0 + $0x158] sm:$0xff]  ;;  %vm20586_vm3 = vcmp.ne.s32.totalorder %v12132_v27, 0 }
  0xa7   :  { %9314 = vmatprep.mubr.msk.bf16.mxu1 %vm9313_vm13, %v21159_v33  ;;  %vm20590_vm4 = vmand %vm12041_vm2, %vm11927_vm11  ;;  %21181 = vst [vmem:[#allocation53_spill] sm:$0xff] %v12144_v58  ;;  %10618 = vmatpush3.bf16.msra.mxu0 %v21165_v45  ;;  %vm20585_vm13 = vcmp.ne.s32.totalorder %v12144_v58, 0  ;;  %v2608_v55 = vsel %vm20586_vm3, 1, %v21156_v25  ;;  %vm21182_vm3 = vcmp.eq.s32.totalorder %v11999_v8, 1  ;;  %v12210_v8 = vld [vmem:[%s20513_s0 + $0x168] sm:$0xff] }
  0xa8   :  { %2658 = vperm.xlu1 %11340, %v2607_v54   ;;  %v12148_v54 = vpop.permute.xlu0 %140  ;;  %vm20587_vm12 = vmand %vm12053_vm0, %vm11927_vm11  ;;  %10728 = vmatpush3.bf16.msra.mxu1 %v21165_v45  ;;  %v2609_v51 = vsel %vm20585_vm13, 1, %v21156_v25  ;;  %vm253_vm13 = vcmp.eq.s32.totalorder %v11956_v13, %v11941_v60  ;;  %21187 = vst [vmem:[#allocation55_spill] sm:$0xff] %v12210_v8  ;;  %v21190_v13 = vmov 0 }
  0xa9   :  { %10619 = vmatprep.subr.bf16.mxu0 %v21165_v45  ;;  %vm940_vm8 = vmand %vm20590_vm4, %vm812_vm9  ;;  %10729 = vmatprep.subr.bf16.mxu1 %v21165_v45  ;;  %vm258_vm2 = vcmp.eq.s32.totalorder %v12148_v54, %v11807_v32 }
  0xaa   :  { %2405 = vperm.xlu0 %11339, %v12132_v27   ;;  %vm944_vm6 = vmand %vm20587_vm12, %vm816_vm7  ;;  %vm249_vm7 = vcmp.eq.s32.totalorder %v11949_v12, %v11941_v60  ;;  %v12205_v12 = vpop.permute.xlu1 %415 }
  0xab   :  { %10620 = vmatpush3.bf16.msra.mxu0 %v21165_v45  ;;  %vm9267_vm9 = vmpackc.low %vm944_vm6, %vm940_vm8  ;;  %vm21186_vm8 = vcmp.eq.s32.totalorder %v12008_v30, 1  ;;  %v21193_v30 = vmov 0 }
  0xac   :  { %2408 = vperm.xlu1 %11340, %v12144_v58   ;;  %10730 = vmatpush3.bf16.msra.mxu1 %v21165_v45  ;;  %vm12192_vm12 = vmand %vm249_vm7, %vm21182_vm3  ;;  %v12196_v47 = vpop.permute.xlu0 %412  ;;  %vm20595_vm3 = vcmp.eq.s32.totalorder %v12205_v12, 1  ;;  %vm255_vm7 = vcmp.eq.s32.totalorder %v12148_v54, %v11797_v28 }
  0xad   :  { %10621 = vmatprep.subr.bf16.mxu0 %v21165_v45  ;;  %10731 = vmatprep.subr.bf16.mxu1 %v21165_v45  ;;  %vm541_vm6 = vmand %vm253_vm13, %vm21186_vm8  ;;  %vm20594_vm8 = vcmp.eq.s32.totalorder %v12196_v47, 1 }
  0xae   :  { %2661 = vperm.xlu0 %11339, %v2608_v55   ;;  %9268 = vmatmul.mubr.msk.bf16.gmra.mrb[4].mxu0 %vm9267_vm9, %v21159_v33  ;;  %v12201_v55 = vld [vmem:[%s20513_s0 + $0x160] sm:$0xff]  ;;  %vm686_vm9 = vmand %vm12192_vm12, %vm11988_vm5  ;;  %v12331_v3 = vpop.permute.xlu1 %149 }
  0xaf   :  { %21185 = vst [vmem:[#allocation54_spill] sm:$0xff] %v12201_v55  ;;  %10622 = vmatpush3.bf16.msra.mxu0 %v21165_v45  ;;  %vm690_vm13 = vmand %vm541_vm6, %vm11988_vm5  ;;  %vm21188_vm12 = vcmp.ne.s32.totalorder %v12201_v55, 0  ;;  %vm21189_vm6 = vcmp.ne.s32.totalorder %v12210_v8, 0 }
  0xb0   :  { %2664 = vperm.xlu1 %11340, %v2609_v51   ;;  %10732 = vmatpush3.bf16.msra.mxu1 %v21165_v45  ;;  %vm9315_vm4 = vmpackc.low %vm690_vm13, %vm686_vm9  ;;  %v2610_v50 = vsel %vm21188_vm12, 1, %v21156_v25  ;;  %v2611_v51 = vsel %vm21189_vm6, 1, %v21156_v25  ;;  %vm259_vm13 = vcmp.eq.s32.totalorder %v12157_v22, %v11797_v28 }
  0xb1   :  { %10623 = vmatprep.subr.bf16.mxu0 %v21165_v45  ;;  %9316 = vmatmul.mubr.msk.bf16.gmra.mrb[4].mxu1 %vm9315_vm4, %v21159_v33  ;;  %vm12239_vm9 = vmand %vm255_vm7, %vm20594_vm8  ;;  %vm256_vm4 = vcmp.eq.s32.totalorder %v12148_v54, %v11786_v21  ;;  %vm260_vm7 = vcmp.eq.s32.totalorder %v12157_v22, %v11786_v21 }
  0xb2   :  { %2411 = vperm.xlu0 %11339, %v12201_v55   ;;  %10733 = vmatprep.subr.bf16.mxu1 %v21165_v45  ;;  %v21191_v13 = vsel %vm12239_vm9, 4294967295, %v21190_v13  ;;  %vm12251_vm12 = vmand %vm259_vm13, %vm20595_vm3 }
  0xb3   :  { %21192 = vst [vmem:[#allocation56_spill] sm:$0xff] %v21191_v13  ;;  %10624 = vmatpush3.bf16.msra.mxu0 %v21165_v45  ;;  %v21194_v30 = vsel %vm12251_vm12, 4294967295, %v21193_v30  ;;  %vm544_vm6 = vmand %vm256_vm4, %vm20594_vm8  ;;  %vm21198_vm4 = vcmp.eq.s32.totalorder %v12196_v47, 1 }
  0xb4   :  { %2414 = vperm.xlu1 %11340, %v12210_v8   ;;  %10734 = vmatpush3.bf16.msra.mxu1 %v21165_v45  ;;  %21195 = vst [vmem:[#allocation57_spill] sm:$0xff] %v21194_v30  ;;  %vm548_vm0 = vmand %vm260_vm7, %vm20595_vm3  ;;  %vm20606_vm7 = vcmp.ne.s32.totalorder %v12272_v46, 0  ;;  %v20626_v8 = vmov 0.0|0.0   ;;  %v4715_v30 = vld [vmem:[%s20515_s2 + $0xe8] sm:$0xff] }
  0xb5   :  { %10735 = vmatprep.subr.bf16.mxu1 %v21165_v45  ;;  %vm693_vm13 = vmand %vm544_vm6, %vm11822_vm15  ;;  %vm262_vm6 = vcmp.eq.s32.totalorder %v12157_v22, %v11807_v32  ;;  %v2613_v41 = vsel %vm20606_vm7, 1, %v21156_v25 }
  0xb6   :  { %2667 = vperm.xlu0 %11339, %v2610_v50   ;;  %vm697_vm8 = vmand %vm548_vm0, %vm11822_vm15  ;;  %v12288_v50 = vadd.s32 32, %v11742_v63  ;;  %vm21199_vm0 = vcmp.ne.s32.totalorder %v12265_v43, 0 }
  0xb7   :  { %vm9269_vm3 = vmpackc.low %vm697_vm8, %vm693_vm13  ;;  %vm21200_vm8 = vcmp.eq.s32.totalorder %v12205_v12, 1 }
  0xb8   :  { %2670 = vperm.xlu1 %11340, %v2611_v51   ;;  %10736 = vmatpush3.bf16.msra.mxu1 %v21165_v45  ;;  %vm546_vm10 = vmand %vm258_vm2, %vm21198_vm4  ;;  %v2612_v51 = vsel %vm21199_vm0, 1, %v21156_v25  ;;  %vm820_vm0 = vcmp.gt.s32.totalorder %v11925_v49, %v12288_v50 }
  0xb9   :  { %9270 = vmatprep.mubr.msk.bf16.mxu0 %vm9269_vm3, %v21159_v33  ;;  %vm550_vm13 = vmand %vm262_vm6, %vm21200_vm8  ;;  %vm824_vm6 = vcmp.gt.s32.totalorder %v11925_v49, %v12297_v19  ;;  %4529 = vmatprep.subr.bf16.mxu1 %v20626_v8  ;;  %v12459_v8 = vld [vmem:[%s20513_s0 + $0x1a0] sm:$0xff] }
  0xba   :  { %2417 = vperm.xlu0 %11339, %v12265_v43   ;;  %vm695_vm2 = vmand %vm546_vm10, %vm11891_vm1  ;;  %21216 = vst [vmem:[#allocation68_spill] sm:$0xff] %v12459_v8 }
  0xbb   :  { %vm699_vm3 = vmand %vm550_vm13, %vm11891_vm1 }
  0xbc   :  { %2420 = vperm.xlu1 %11340, %v12272_v46   ;;  %vm9317_vm4 = vmpackc.low %vm699_vm3, %vm695_vm2  ;;  %vm20614_vm2 = vcmp.ne.s32.totalorder %v12311_v20, 0 }
  0xbd   :  { %9318 = vmatprep.mubr.msk.bf16.mxu1 %vm9317_vm4, %v21159_v33  ;;  %vm20607_vm10 = vmand %vm12239_vm9, %vm11927_vm11  ;;  %v2614_v9 = vsel %vm20614_vm2, 1, %v21156_v25 }
  0xbe   :  { %2673 = vperm.xlu0 %11339, %v2612_v51   ;;  %v12323_v51 = vld [vmem:[%s20513_s0 + $0x188] sm:$0xff]  ;;  %vm20608_vm8 = vmand %vm12251_vm12, %vm11927_vm11 }
  0xbf   :  { %21202 = vst [vmem:[#allocation61_spill] sm:$0xff] %v12323_v51  ;;  %vm948_vm13 = vmand %vm20607_vm10, %vm820_vm0  ;;  %vm20613_vm4 = vcmp.ne.s32.totalorder %v12323_v51, 0  ;;  %vm257_vm0 = vcmp.eq.s32.totalorder %v12148_v54, %v11941_v60  ;;  %vm261_vm10 = vcmp.eq.s32.totalorder %v12157_v22, %v11941_v60  ;;  %v12372_v22 = vld [vmem:[%s20513_s0 + $0x198] sm:$0xff]  ;;  %v12410_v54 = vadd.s32 48, %v11742_v63 }
  0xc0   :  { %2676 = vperm.xlu1 %11340, %v2613_v41   ;;  %v12325_v41 = vpop.permute.xlu0 %146  ;;  %vm952_vm3 = vmand %vm20608_vm8, %vm824_vm6  ;;  %vm21203_vm6 = vcmp.eq.s32.totalorder %v12196_v47, 1  ;;  %v2615_v46 = vsel %vm20613_vm4, 1, %v21156_v25  ;;  %21206 = vst [vmem:[#allocation63_spill] sm:$0xff] %v12372_v22  ;;  %v21210_v47 = vmov 0 }
  0xc1   :  { %vm9271_vm7 = vmpackc.low %vm952_vm3, %vm948_vm13  ;;  %vm21205_vm13 = vcmp.eq.s32.totalorder %v12205_v12, 1  ;;  %21213 = vst [vmem:[#allocation66_spill] sm:$0xff] %v12410_v54  ;;  %v12414_v12 = vadd.s32 56, %v11742_v63 }
  0xc2   :  { %2423 = vperm.xlu0 %11339, %v12311_v20   ;;  %9272 = vmatmul.mubr.msk.bf16.gmra.mrb[8].mxu0 %vm9271_vm7, %v21159_v33  ;;  %vm545_vm8 = vmand %vm257_vm0, %vm21203_vm6  ;;  %v12363_v20 = vld [vmem:[%s20513_s0 + $0x190] sm:$0xff] }
  0xc3   :  { %21204 = vst [vmem:[#allocation62_spill] sm:$0xff] %v12363_v20  ;;  %vm549_vm3 = vmand %vm261_vm10, %vm21205_vm13  ;;  %vm263_vm10 = vcmp.eq.s32.totalorder %v12325_v41, %v11797_v28  ;;  %vm267_vm13 = vcmp.eq.s32.totalorder %v12331_v3, %v11797_v28 }
  0xc4   :  { %2426 = vperm.xlu1 %11340, %v12323_v51   ;;  %v419_v16 = vpop.permute.xlu0 %418  ;;  %vm694_vm7 = vmand %vm545_vm8, %vm11988_vm5  ;;  %21214 = vst [vmem:[#allocation67_spill] sm:$0xff] %v12414_v12 }
  0xc5   :  { %vm698_vm0 = vmand %vm549_vm3, %vm11988_vm5  ;;  %vm501_vm6 = vcmp.eq.s32.totalorder %v419_v16, 1  ;;  %vm264_vm3 = vcmp.eq.s32.totalorder %v12325_v41, %v11786_v21  ;;  %vm270_vm5 = vcmp.eq.s32.totalorder %v12331_v3, %v11807_v32  ;;  %v21222_v16 = vmov 0 }
  0xc6   :  { %2679 = vperm.xlu0 %11339, %v2614_v9   ;;  %v422_v9 = vpop.permute.xlu1 %421  ;;  %vm9319_vm4 = vmpackc.low %vm698_vm0, %vm694_vm7 }
  0xc7   :  { %vm502_vm2 = vcmp.eq.s32.totalorder %v422_v9, 1  ;;  %9320 = vmatmul.mubr.msk.bf16.gmra.mrb[8].mxu1 %vm9319_vm4, %v21159_v33  ;;  %vm12382_vm8 = vmand %vm263_vm10, %vm501_vm6  ;;  %vm268_vm4 = vcmp.eq.s32.totalorder %v12331_v3, %v11786_v21  ;;  %v12516_v9 = vadd.s32 72, %v11742_v63 }
  0xc8   :  { %2682 = vperm.xlu1 %11340, %v2615_v46   ;;  %v21207_v46 = vmov 0  ;;  %vm12391_vm7 = vmand %vm267_vm13, %vm502_vm2  ;;  %vm266_vm13 = vcmp.eq.s32.totalorder %v12325_v41, %v11807_v32  ;;  %v12430_v51 = vpop.permute.xlu0 %152 }
  0xc9   :  { %v21208_v46 = vsel %vm12382_vm8, 4294967295, %v21207_v46  ;;  %v21211_v47 = vsel %vm12391_vm7, 4294967295, %v21210_v47  ;;  %vm552_vm0 = vmand %vm264_vm3, %vm501_vm6  ;;  %21226 = vst [vmem:[#allocation73_spill] sm:$0xff] %v12516_v9 }
  0xca   :  { %2429 = vperm.xlu0 %11339, %v12363_v20   ;;  %21209 = vst [vmem:[#allocation64_spill] sm:$0xff] %v21208_v46  ;;  %21212 = vst [vmem:[#allocation65_spill] sm:$0xff] %v21211_v47  ;;  %v12441_v55 = vpop.permute.xlu1 %155  ;;  %v21382_v46 = vmov 0 }
  0xcb   :  { %vm556_vm10 = vmand %vm268_vm4, %vm502_vm2  ;;  %vm828_vm4 = vcmp.gt.s32.totalorder %v11925_v49, %v12410_v54 }
  0xcc   :  { %2432 = vperm.xlu1 %11340, %v12372_v22   ;;  %vm701_vm12 = vmand %vm552_vm0, %vm11822_vm15  ;;  %vm832_vm0 = vcmp.gt.s32.totalorder %v11925_v49, %v12414_v12 }
  0xcd   :  { %vm705_vm9 = vmand %vm556_vm10, %vm11822_vm15  ;;  %vm20629_vm10 = vcmp.ne.s32.totalorder %v12363_v20, 0 }
  0xce   :  { %vm9273_vm14 = vmpackc.low %vm705_vm9, %vm701_vm12  ;;  %v2616_v43 = vsel %vm20629_vm10, 1, %v21156_v25 }
  0xcf   :  { %9274 = vmatprep.mubr.msk.bf16.mxu0 %vm9273_vm14, %v21159_v33  ;;  %vm554_vm7 = vmand %vm266_vm13, %vm501_vm6  ;;  %2685 = vperm.xlu0 %11339, %v2616_v43   ;;  %v12464_v43 = vld [vmem:[%s20513_s0 + $0x1a8] sm:$0xff] }
  0xd0   :  { %vm558_vm3 = vmand %vm270_vm5, %vm502_vm2  ;;  %21217 = vst [vmem:[#allocation69_spill] sm:$0xff] %v12464_v43 }
  0xd1   :  { %vm703_vm9 = vmand %vm554_vm7, %vm11891_vm1  ;;  %vm21215_vm7 = vnez %v21211_v47  ;;  %v4704_v47 = vld [vmem:[%s20515_s2 + $0x90] sm:$0xff] }
  0xd2   :  { %vm707_vm12 = vmand %vm558_vm3, %vm11891_vm1  ;;  %vm20628_vm3 = vcmp.ne.s32.totalorder %v12372_v22, 0  ;;  %v428_v22 = vpop.permute.xlu1 %427 }
  0xd3   :  { %vm9321_vm14 = vmpackc.low %vm707_vm12, %vm703_vm9  ;;  %v2617_v58 = vsel %vm20628_vm3, 1, %v21156_v25  ;;  %2435 = vperm.xlu0 %11339, %v12459_v8  }
  0xd4   :  { %9322 = vmatprep.mubr.msk.bf16.mxu1 %vm9321_vm14, %v21159_v33  ;;  %vm20632_vm5 = vmand %vm12382_vm8, %vm11927_vm11  ;;  %2688 = vperm.xlu1 %11340, %v2617_v58   ;;  %v425_v58 = vpop.permute.xlu0 %424 }
  0xd5   :  { %vm20631_vm13 = vmand %vm21215_vm7, %vm11927_vm11 }
  0xd6   :  { %vm956_vm9 = vmand %vm20632_vm5, %vm828_vm4  ;;  %vm265_vm4 = vcmp.eq.s32.totalorder %v12325_v41, %v11941_v60  ;;  %vm503_vm5 = vcmp.eq.s32.totalorder %v425_v58, 1  ;;  %v12511_v41 = vadd.s32 64, %v11742_v63 }
  0xd7   :  { %vm960_vm12 = vmand %vm20631_vm13, %vm832_vm0  ;;  %vm269_vm0 = vcmp.eq.s32.totalorder %v12331_v3, %v11941_v60  ;;  %v21219_v3 = vmov 0 }
  0xd8   :  { %vm9275_vm14 = vmpackc.low %vm960_vm12, %vm956_vm9  ;;  %2438 = vperm.xlu1 %11340, %v12464_v43   ;;  %vm21218_vm9 = vnez %v21158_v31  ;;  %21225 = vst [vmem:[#allocation72_spill] sm:$0xff] %v12511_v41 }
  0xd9   :  { %9276 = vmatmul.mubr.msk.bf16.gmra.mrb[12].mxu0 %vm9275_vm14, %v21159_v33  ;;  %vm553_vm3 = vmand %vm265_vm4, %vm501_vm6  ;;  %vm20643_vm14 = vcmp.eq.s32.totalorder %v428_v22, 1  ;;  %vm271_vm6 = vcmp.eq.s32.totalorder %v12430_v51, %v11797_v28 }
  0xda   :  { %vm557_vm10 = vmand %vm269_vm0, %vm502_vm2  ;;  %vm275_vm2 = vcmp.eq.s32.totalorder %v12441_v55, %v11797_v28 }
  0xdb   :  { %vm702_vm12 = vmand %vm553_vm3, %vm21218_vm9  ;;  %vm272_vm3 = vcmp.eq.s32.totalorder %v12430_v51, %v11786_v21 }
  0xdc   :  { %vm706_vm13 = vmand %vm557_vm10, %vm21218_vm9  ;;  %vm278_vm9 = vcmp.eq.s32.totalorder %v12441_v55, %v11807_v32 }
  0xdd   :  { %vm9323_vm7 = vmpackc.low %vm706_vm13, %vm702_vm12 }
  0xde   :  { %9324 = vmatmul.mubr.msk.bf16.gmra.mrb[12].mxu1 %vm9323_vm7, %v21159_v33  ;;  %vm12483_vm4 = vmand %vm271_vm6, %vm503_vm5  ;;  %vm276_vm7 = vcmp.eq.s32.totalorder %v12441_v55, %v11786_v21 }
  0xdf   :  { %v21220_v3 = vsel %vm12483_vm4, 4294967295, %v21219_v3  ;;  %vm12492_vm10 = vmand %vm275_vm2, %vm20643_vm14  ;;  %vm274_vm2 = vcmp.eq.s32.totalorder %v12430_v51, %v11807_v32 }
  0xe0   :  { %21221 = vst [vmem:[#allocation70_spill] sm:$0xff] %v21220_v3  ;;  %v21223_v16 = vsel %vm12492_vm10, 4294967295, %v21222_v16  ;;  %vm560_vm13 = vmand %vm272_vm3, %vm503_vm5  ;;  %vm20642_vm3 = vcmp.ne.s32.totalorder %v12459_v8, 0 }
  0xe1   :  { %21224 = vst [vmem:[#allocation71_spill] sm:$0xff] %v21223_v16  ;;  %vm564_vm0 = vmand %vm276_vm7, %vm20643_vm14  ;;  %v2618_v20 = vsel %vm20642_vm3, 1, %v21156_v25  ;;  %vm277_vm3 = vcmp.eq.s32.totalorder %v12441_v55, %v11941_v60  ;;  %v21232_v55 = vmov 0 }
  0xe2   :  { %vm709_vm12 = vmand %vm560_vm13, %vm11822_vm15  ;;  %2691 = vperm.xlu0 %11339, %v2618_v20   ;;  %v12539_v20 = vld [vmem:[%s20513_s0 + $0x1b8] sm:$0xff] }
  0xe3   :  { %vm713_vm6 = vmand %vm564_vm0, %vm11822_vm15  ;;  %21228 = vst [vmem:[#allocation75_spill] sm:$0xff] %v12539_v20 }
  0xe4   :  { %vm9277_vm8 = vmpackc.low %vm713_vm6, %vm709_vm12  ;;  %vm836_vm12 = vcmp.gt.s32.totalorder %v11925_v49, %v12511_v41  ;;  %vm840_vm6 = vcmp.gt.s32.totalorder %v11925_v49, %v12516_v9 }
  0xe5   :  { %9278 = vmatprep.mubr.msk.bf16.mxu0 %vm9277_vm8, %v21159_v33  ;;  %vm562_vm10 = vmand %vm274_vm2, %vm503_vm5  ;;  %vm20641_vm8 = vcmp.ne.s32.totalorder %v12464_v43, 0  ;;  %vm21229_vm2 = vnez %v21223_v16  ;;  %v12555_v43 = vpop.permute.xlu1 %161  ;;  %v4702_v16 = vld [vmem:[%s20515_s2 + $0x80] sm:$0xff] }
  0xe6   :  { %vm566_vm7 = vmand %vm278_vm9, %vm20643_vm14  ;;  %v2619_v27 = vsel %vm20641_vm8, 1, %v21156_v25  ;;  %2441 = vperm.xlu0 %11339, %v12532_v5   ;;  %vm273_vm8 = vcmp.eq.s32.totalorder %v12430_v51, %v11941_v60  ;;  %v21235_v51 = vmov 0 }
  0xe7   :  { %vm711_vm13 = vmand %vm562_vm10, %vm11891_vm1  ;;  %2694 = vperm.xlu1 %11340, %v2619_v27   ;;  %v12548_v27 = vpop.permute.xlu0 %158 }
  0xe8   :  { %vm715_vm9 = vmand %vm566_vm7, %vm11891_vm1 }
  0xe9   :  { %vm9325_vm0 = vmpackc.low %vm715_vm9, %vm711_vm13  ;;  %v434_v59 = vpop.permute.xlu1 %433 }
  0xea   :  { %9326 = vmatprep.mubr.msk.bf16.mxu1 %vm9325_vm0, %v21159_v33  ;;  %vm20645_vm10 = vmand %vm12483_vm4, %vm11927_vm11  ;;  %vm21231_vm4 = vnez %v21158_v31 }
  0xeb   :  { %vm20650_vm7 = vmand %vm21229_vm2, %vm11927_vm11  ;;  %2444 = vperm.xlu1 %11340, %v12539_v20   ;;  %v431_v8 = vpop.permute.xlu0 %430 }
  0xec   :  { %vm964_vm13 = vmand %vm20645_vm10, %vm836_vm12  ;;  %vm21230_vm12 = vcmp.eq.s32.totalorder %v428_v22, 1  ;;  %vm21243_vm2 = vcmp.eq.s32.totalorder %v431_v8, 1 }
  0xed   :  { %vm968_vm9 = vmand %vm20650_vm7, %vm840_vm6  ;;  %vm20655_vm7 = vcmp.eq.s32.totalorder %v434_v59, 1  ;;  %v12656_v44 = vpop.permute.xlu1 %167 }
  0xee   :  { %vm9279_vm0 = vmpackc.low %vm968_vm9, %vm964_vm13  ;;  %vm20658_vm13 = vcmp.eq.s32.totalorder %v431_v8, 1  ;;  %v12693_v8 = vld [vmem:[%s20513_s0 + $0x1d0] sm:$0xff] }
  0xef   :  { %9280 = vmatmul.mubr.msk.bf16.gmra.mrb[16].mxu0 %vm9279_vm0, %v21159_v33  ;;  %vm561_vm14 = vmand %vm273_vm8, %vm503_vm5  ;;  %vm279_vm0 = vcmp.eq.s32.totalorder %v12548_v27, %v11797_v28  ;;  %21245 = vst [vmem:[#allocation82_spill] sm:$0xff] %v12693_v8 }
  0xf0   :  { %vm565_vm10 = vmand %vm277_vm3, %vm21230_vm12  ;;  %vm283_vm3 = vcmp.eq.s32.totalorder %v12555_v43, %v11797_v28  ;;  %vm20654_vm12 = vcmp.ne.s32.totalorder %v12532_v5, 0  ;;  %v12650_v5 = vpop.permute.xlu0 %164 }
  0xf1   :  { %vm710_vm1 = vmand %vm561_vm14, %vm21231_vm4  ;;  %vm280_vm14 = vcmp.eq.s32.totalorder %v12548_v27, %v11786_v21  ;;  %v2620_v22 = vsel %vm20654_vm12, 1, %v21156_v25  ;;  %v440_v2 = vpop.permute.xlu1 %439 }
  0xf2   :  { %vm714_vm6 = vmand %vm565_vm10, %vm21231_vm4  ;;  %2697 = vperm.xlu0 %11339, %v2620_v22   ;;  %v12622_v22 = vld [vmem:[%s20513_s0 + $0x1c8] sm:$0xff] }
  0xf3   :  { %vm9327_vm9 = vmpackc.low %vm714_vm6, %vm710_vm1  ;;  %vm284_vm1 = vcmp.eq.s32.totalorder %v12555_v43, %v11786_v21  ;;  %21239 = vst [vmem:[#allocation79_spill] sm:$0xff] %v12622_v22 }
  0xf4   :  { %9328 = vmatmul.mubr.msk.bf16.gmra.mrb[16].mxu1 %vm9327_vm9, %v21159_v33  ;;  %vm12583_vm5 = vmand %vm279_vm0, %vm20658_vm13  ;;  %vm20653_vm9 = vcmp.ne.s32.totalorder %v12539_v20, 0  ;;  %v12633_v20 = vadd.s32 88, %v11742_v63  ;;  %v437_v56 = vpop.permute.xlu0 %436 }
  0xf5   :  { %v21233_v55 = vsel %vm12583_vm5, 4294967295, %v21232_v55  ;;  %vm12592_vm8 = vmand %vm283_vm3, %vm20655_vm7  ;;  %v2621_v58 = vsel %vm20653_vm9, 1, %v21156_v25  ;;  %v12756_v53 = vpop.permute.xlu1 %173 }
  0xf6   :  { %21234 = vst [vmem:[#allocation76_spill] sm:$0xff] %v21233_v55  ;;  %v21236_v51 = vsel %vm12592_vm8, 4294967295, %v21235_v51  ;;  %vm568_vm10 = vmand %vm280_vm14, %vm20658_vm13  ;;  %2700 = vperm.xlu1 %11340, %v2621_v58   ;;  %v12629_v58 = vadd.s32 80, %v11742_v63  ;;  %2447 = vperm.xlu0 %11339, %v12615_v36   ;;  %v13315_v55 = vadd.s32 200, %v11742_v63 }
  0xf7   :  { %21237 = vst [vmem:[#allocation77_spill] sm:$0xff] %v21236_v51  ;;  %vm572_vm6 = vmand %vm284_vm1, %vm20655_vm7  ;;  %vm282_vm1 = vcmp.eq.s32.totalorder %v12548_v27, %v11807_v32  ;;  %v13310_v51 = vadd.s32 192, %v11742_v63 }
  0xf8   :  { %vm717_vm0 = vmand %vm568_vm10, %vm11822_vm15  ;;  %vm286_vm10 = vcmp.eq.s32.totalorder %v12555_v43, %v11807_v32  ;;  %21240 = vst [vmem:[#allocation80_spill] sm:$0xff] %v12629_v58  ;;  %v12750_v61 = vpop.permute.xlu0 %170 }
  0xf9   :  { %vm721_vm3 = vmand %vm572_vm6, %vm11822_vm15  ;;  %21241 = vst [vmem:[#allocation81_spill] sm:$0xff] %v12633_v20 }
  0xfa   :  { %vm9281_vm14 = vmpackc.low %vm721_vm3, %vm717_vm0  ;;  %vm21242_vm3 = vnez %v21150_v62  ;;  %2450 = vperm.xlu1 %11340, %v12622_v22   ;;  %21337 = vst [vmem:[#allocation135_spill] sm:$0xff] %v13310_v51 }
  0xfb   :  { %9282 = vmatprep.mubr.msk.bf16.mxu0 %vm9281_vm14, %v21159_v33  ;;  %vm570_vm6 = vmand %vm282_vm1, %vm20658_vm13  ;;  %vm844_vm1 = vcmp.gt.s32.totalorder %v11925_v49, %v12629_v58  ;;  %vm285_vm13 = vcmp.eq.s32.totalorder %v12555_v43, %v11941_v60  ;;  %v21246_v43 = vmov 0  ;;  %21338 = vst [vmem:[#allocation136_spill] sm:$0xff] %v13315_v55 }
  0xfc   :  { %vm574_vm0 = vmand %vm286_vm10, %vm20655_vm7  ;;  %vm848_vm7 = vcmp.gt.s32.totalorder %v11925_v49, %v12633_v20 }
  0xfd   :  { %vm719_vm9 = vmand %vm570_vm6, %vm21242_vm3 }
  0xfe   :  { %vm723_vm14 = vmand %vm574_vm0, %vm21242_vm3 }
  0xff   :  { %vm9329_vm12 = vmpackc.low %vm723_vm14, %vm719_vm9  ;;  %vm281_vm14 = vcmp.eq.s32.totalorder %v12548_v27, %v11941_v60 }
 0x100   :  { %9330 = vmatprep.mubr.msk.bf16.mxu1 %vm9329_vm12, %v21159_v33  ;;  %vm20664_vm10 = vmand %vm12583_vm5, %vm11927_vm11  ;;  %vm21244_vm5 = vcmp.eq.s32.totalorder %v434_v59, 1 }
 0x101   :  { %vm20667_vm9 = vmand %vm12592_vm8, %vm11927_vm11 }
 0x102   :  { %vm972_vm12 = vmand %vm20664_vm10, %vm844_vm1 }
 0x103   :  { %vm976_vm6 = vmand %vm20667_vm9, %vm848_vm7  ;;  %vm20666_vm7 = vcmp.ne.s32.totalorder %v12615_v36, 0  ;;  %vm290_vm9 = vcmp.eq.s32.totalorder %v12650_v5, %v11807_v32  ;;  %v12735_v36 = vadd.s32 104, %v11742_v63 }
 0x104   :  { %vm9283_vm0 = vmpackc.low %vm976_vm6, %vm972_vm12  ;;  %vm20675_vm6 = vcmp.eq.s32.totalorder %v437_v56, 1  ;;  %v2622_v27 = vsel %vm20666_vm7, 1, %v21156_v25 }
 0x105   :  { %9284 = vmatmul.mubr.msk.bf16.gmra.mrb[20].mxu0 %vm9283_vm0, %v21159_v33  ;;  %vm569_vm3 = vmand %vm281_vm14, %vm21243_vm2  ;;  %vm20665_vm0 = vcmp.ne.s32.totalorder %v12622_v22, 0  ;;  %vm20674_vm14 = vcmp.eq.s32.totalorder %v440_v2, 1  ;;  %2703 = vperm.xlu0 %11339, %v2622_v27   ;;  %v12707_v27 = vld [vmem:[%s20513_s0 + $0x1d8] sm:$0xff]  ;;  %v12731_v22 = vadd.s32 96, %v11742_v63  ;;  %21254 = vst [vmem:[#allocation87_spill] sm:$0xff] %v12735_v36 }
 0x106   :  { %vm573_vm1 = vmand %vm285_vm13, %vm21244_vm5  ;;  %v2623_v59 = vsel %vm20665_vm0, 1, %v21156_v25  ;;  %vm287_vm13 = vcmp.eq.s32.totalorder %v12650_v5, %v11797_v28  ;;  %21249 = vst [vmem:[#allocation84_spill] sm:$0xff] %v12707_v27 }
 0x107   :  { %vm718_vm10 = vmand %vm569_vm3, %vm21231_vm4  ;;  %2706 = vperm.xlu1 %11340, %v2623_v59   ;;  %vm291_vm3 = vcmp.eq.s32.totalorder %v12656_v44, %v11797_v28  ;;  %v21250_v59 = vmov 0  ;;  %21253 = vst [vmem:[#allocation86_spill] sm:$0xff] %v12731_v22  ;;  %vm852_vm8 = vcmp.gt.s32.totalorder %v11925_v49, %v12731_v22 }
 0x108   :  { %vm722_vm12 = vmand %vm573_vm1, %vm21231_vm4 }
 0x109   :  { %vm9331_vm2 = vmpackc.low %vm722_vm12, %vm718_vm10  ;;  %vm288_vm10 = vcmp.eq.s32.totalorder %v12650_v5, %v11786_v21  ;;  %vm292_vm12 = vcmp.eq.s32.totalorder %v12656_v44, %v11786_v21  ;;  %2453 = vperm.xlu0 %11339, %v12693_v8  }
 0x10a   :  { %9332 = vmatmul.mubr.msk.bf16.gmra.mrb[20].mxu1 %vm9331_vm2, %v21159_v33  ;;  %vm12696_vm5 = vmand %vm287_vm13, %vm20675_vm6 }
 0x10b   :  { %v21247_v43 = vsel %vm12696_vm5, 4294967295, %v21246_v43  ;;  %vm12710_vm1 = vmand %vm291_vm3, %vm20674_vm14  ;;  %2456 = vperm.xlu1 %11340, %v12707_v27  }
 0x10c   :  { %21248 = vst [vmem:[#allocation83_spill] sm:$0xff] %v21247_v43  ;;  %v21251_v59 = vsel %vm12710_vm1, 4294967295, %v21250_v59  ;;  %vm576_vm2 = vmand %vm288_vm10, %vm20675_vm6  ;;  %vm294_vm10 = vcmp.eq.s32.totalorder %v12656_v44, %v11807_v32  ;;  %v4692_v43 = vld [vmem:[%s20515_s2 + $0x30] sm:$0xff] }
 0x10d   :  { %21252 = vst [vmem:[#allocation85_spill] sm:$0xff] %v21251_v59  ;;  %vm580_vm13 = vmand %vm292_vm12, %vm20674_vm14 }
 0x10e   :  { %vm725_vm0 = vmand %vm576_vm2, %vm11822_vm15 }
 0x10f   :  { %vm729_vm3 = vmand %vm580_vm13, %vm11822_vm15 }
 0x110   :  { %vm9285_vm7 = vmpackc.low %vm729_vm3, %vm725_vm0  ;;  %vm21255_vm0 = vnez %v21150_v62 }
 0x111   :  { %9286 = vmatprep.mubr.msk.bf16.mxu0 %vm9285_vm7, %v21159_v33  ;;  %vm578_vm12 = vmand %vm290_vm9, %vm20675_vm6  ;;  %vm289_vm6 = vcmp.eq.s32.totalorder %v12650_v5, %v11941_v60  ;;  %v12791_v5 = vld [vmem:[%s20513_s0 + $0x1e8] sm:$0xff] }
 0x112   :  { %vm582_vm2 = vmand %vm294_vm10, %vm20674_vm14  ;;  %vm856_vm10 = vcmp.gt.s32.totalorder %v11925_v49, %v12735_v36  ;;  %21259 = vst [vmem:[#allocation89_spill] sm:$0xff] %v12791_v5 }
 0x113   :  { %vm727_vm13 = vmand %vm578_vm12, %vm21255_vm0 }
 0x114   :  { %vm731_vm3 = vmand %vm582_vm2, %vm21255_vm0 }
 0x115   :  { %vm9333_vm7 = vmpackc.low %vm731_vm3, %vm727_vm13  ;;  %vm20681_vm3 = vcmp.ne.s32.totalorder %v12693_v8, 0  ;;  %v443_v8 = vpop.permute.xlu0 %442 }
 0x116   :  { %9334 = vmatprep.mubr.msk.bf16.mxu1 %vm9333_vm7, %v21159_v33  ;;  %vm20682_vm9 = vmand %vm12696_vm5, %vm11927_vm11  ;;  %v2624_v29 = vsel %vm20681_vm3, 1, %v21156_v25  ;;  %vm20680_vm7 = vcmp.ne.s32.totalorder %v12707_v27, 0 }
 0x117   :  { %vm20677_vm12 = vmand %vm12710_vm1, %vm11927_vm11  ;;  %2709 = vperm.xlu0 %11339, %v2624_v29   ;;  %v2625_v24 = vsel %vm20680_vm7, 1, %v21156_v25  ;;  %v446_v29 = vpop.permute.xlu1 %445 }
 0x118   :  { %vm980_vm2 = vmand %vm20682_vm9, %vm852_vm8  ;;  %vm293_vm8 = vcmp.eq.s32.totalorder %v12656_v44, %v11941_v60  ;;  %2712 = vperm.xlu1 %11340, %v2625_v24   ;;  %vm510_vm3 = vcmp.eq.s32.totalorder %v446_v29, 1  ;;  %v21263_v24 = vmov 0  ;;  %v12835_v44 = vadd.s32 120, %v11742_v63 }
 0x119   :  { %vm984_vm13 = vmand %vm20677_vm12, %vm856_vm10  ;;  %vm21256_vm10 = vcmp.eq.s32.totalorder %v437_v56, 1  ;;  %v12831_v56 = vadd.s32 112, %v11742_v63  ;;  %v12862_v38 = vpop.permute.xlu0 %176  ;;  %v12932_v29 = vadd.s32 128, %v11925_v49 }
 0x11a   :  { %vm9287_vm14 = vmpackc.low %vm984_vm13, %vm980_vm2  ;;  %vm21258_vm2 = vcmp.eq.s32.totalorder %v440_v2, 1  ;;  %v21260_v2 = vmov 0  ;;  %21267 = vst [vmem:[#allocation93_spill] sm:$0xff] %v12835_v44 }
 0x11b   :  { %9288 = vmatmul.mubr.msk.bf16.gmra.mrb[24].mxu0 %vm9287_vm14, %v21159_v33  ;;  %vm577_vm12 = vmand %vm289_vm6, %vm21256_vm10  ;;  %vm509_vm10 = vcmp.eq.s32.totalorder %v443_v8, 1  ;;  %2459 = vperm.xlu0 %11339, %v12785_v42   ;;  %21266 = vst [vmem:[#allocation92_spill] sm:$0xff] %v12831_v56  ;;  %v12874_v35 = vpop.permute.xlu1 %179  ;;  %v12929_v8 = vadd.s32 128, %v11742_v63 }
 0x11c   :  { %vm581_vm13 = vmand %vm293_vm8, %vm21258_vm2  ;;  %2462 = vperm.xlu1 %11340, %v12791_v5   ;;  %vm295_vm8 = vcmp.eq.s32.totalorder %v12750_v61, %v11797_v28  ;;  %21269 = vst [vmem:[#allocation94_spill] sm:$0xff] %v12862_v38 }
 0x11d   :  { %vm726_vm14 = vmand %vm577_vm12, %vm21231_vm4  ;;  %vm299_vm12 = vcmp.eq.s32.totalorder %v12756_v53, %v11797_v28  ;;  %21271 = vst [vmem:[#allocation96_spill] sm:$0xff] %v12874_v35 }
 0x11e   :  { %vm730_vm6 = vmand %vm581_vm13, %vm21231_vm4  ;;  %vm296_vm13 = vcmp.eq.s32.totalorder %v12750_v61, %v11786_v21  ;;  %vm302_vm4 = vcmp.eq.s32.totalorder %v12756_v53, %v11807_v32  ;;  %21282 = vst [vmem:[#allocation102_spill] sm:$0xff] %v12929_v8 }
 0x11f   :  { %vm9335_vm7 = vmpackc.low %vm730_vm6, %vm726_vm14  ;;  %21283 = vst [vmem:[#allocation103_spill] sm:$0xff] %v12932_v29 }
 0x120   :  { %9336 = vmatmul.mubr.msk.bf16.gmra.mrb[24].mxu1 %vm9335_vm7, %v21159_v33  ;;  %vm12803_vm2 = vmand %vm295_vm8, %vm509_vm10  ;;  %vm300_vm7 = vcmp.eq.s32.totalorder %v12756_v53, %v11786_v21 }
 0x121   :  { %v21261_v2 = vsel %vm12803_vm2, 4294967295, %v21260_v2  ;;  %vm12812_vm14 = vmand %vm299_vm12, %vm510_vm3  ;;  %vm298_vm12 = vcmp.eq.s32.totalorder %v12750_v61, %v11807_v32 }
 0x122   :  { %21262 = vst [vmem:[#allocation90_spill] sm:$0xff] %v21261_v2  ;;  %v21264_v24 = vsel %vm12812_vm14, 4294967295, %v21263_v24  ;;  %vm584_vm6 = vmand %vm296_vm13, %vm509_vm10 }
 0x123   :  { %21265 = vst [vmem:[#allocation91_spill] sm:$0xff] %v21264_v24  ;;  %vm588_vm8 = vmand %vm300_vm7, %vm510_vm3  ;;  %vm860_vm7 = vcmp.gt.s32.totalorder %v11925_v49, %v12831_v56 }
 0x124   :  { %vm733_vm9 = vmand %vm584_vm6, %vm11822_vm15  ;;  %vm20693_vm6 = vcmp.ne.s32.totalorder %v12785_v42, 0  ;;  %v12872_v42 = vld [vmem:[%s20513_s0 + $0x1f0] sm:$0xff] }
 0x125   :  { %vm737_vm1 = vmand %vm588_vm8, %vm11822_vm15  ;;  %vm864_vm8 = vcmp.gt.s32.totalorder %v11925_v49, %v12835_v44  ;;  %v2626_v27 = vsel %vm20693_vm6, 1, %v21156_v25  ;;  %21270 = vst [vmem:[#allocation95_spill] sm:$0xff] %v12872_v42 }
 0x126   :  { %vm9289_vm5 = vmpackc.low %vm737_vm1, %vm733_vm9  ;;  %2715 = vperm.xlu0 %11339, %v2626_v27   ;;  %v12884_v27 = vld [vmem:[%s20513_s0 + $0x1f8] sm:$0xff] }
 0x127   :  { %9290 = vmatprep.mubr.msk.bf16.mxu0 %vm9289_vm5, %v21159_v33  ;;  %vm586_vm14 = vmand %vm298_vm12, %vm509_vm10  ;;  %vm21268_vm12 = vnez %v21264_v24  ;;  %21272 = vst [vmem:[#allocation97_spill] sm:$0xff] %v12884_v27 }
 0x128   :  { %vm590_vm13 = vmand %vm302_vm4, %vm510_vm3 }
 0x129   :  { %vm735_vm1 = vmand %vm586_vm14, %vm21255_vm0  ;;  %vm20692_vm14 = vcmp.ne.s32.totalorder %v12791_v5, 0  ;;  %v12899_v5 = vpop.permute.xlu1 %451 }
 0x12a   :  { %vm739_vm9 = vmand %vm590_vm13, %vm21255_vm0  ;;  %v2627_v39 = vsel %vm20692_vm14, 1, %v21156_v25  ;;  %2465 = vperm.xlu0 %11339, %v12872_v42   ;;  %vm301_vm14 = vcmp.eq.s32.totalorder %v12756_v53, %v11941_v60  ;;  %21275 = vst [vmem:[#allocation99_spill] sm:$0xff] %v12899_v5  ;;  %v21276_v53 = vmov 0 }
 0x12b   :  { %vm9337_vm5 = vmpackc.low %vm739_vm9, %vm735_vm1  ;;  %2718 = vperm.xlu1 %11340, %v2627_v39   ;;  %v12895_v39 = vpop.permute.xlu0 %448 }
 0x12c   :  { %9338 = vmatprep.mubr.msk.bf16.mxu1 %vm9337_vm5, %v21159_v33  ;;  %vm20695_vm4 = vmand %vm12803_vm2, %vm11927_vm11  ;;  %21273 = vst [vmem:[#allocation98_spill] sm:$0xff] %v12895_v39 }
 0x12d   :  { %vm20694_vm13 = vmand %vm21268_vm12, %vm11927_vm11  ;;  %vm20707_vm12 = vcmp.eq.s32.totalorder %v12899_v5, 1 }
 0x12e   :  { %vm988_vm1 = vmand %vm20695_vm4, %vm860_vm7  ;;  %vm297_vm7 = vcmp.eq.s32.totalorder %v12750_v61, %v11941_v60  ;;  %v21279_v61 = vmov 0 }
 0x12f   :  { %vm992_vm9 = vmand %vm20694_vm13, %vm864_vm8  ;;  %2468 = vperm.xlu1 %11340, %v12884_v27   ;;  %vm21274_vm13 = vnez %v21158_v31  ;;  %v12953_v18 = vpop.permute.xlu0 %182 }
 0x130   :  { %vm9291_vm5 = vmpackc.low %vm992_vm9, %vm988_vm1  ;;  %21285 = vst [vmem:[#allocation105_spill] sm:$0xff] %v12953_v18 }
 0x131   :  { %9292 = vmatmul.mubr.msk.bf16.gmra.mrb[28].mxu0 %vm9291_vm5, %v21159_v33  ;;  %vm585_vm8 = vmand %vm297_vm7, %vm509_vm10  ;;  %vm20700_vm5 = vcmp.eq.s32.totalorder %v12895_v39, 1  ;;  %vm310_vm7 = vcmp.eq.s32.totalorder %v12874_v35, %v11807_v32 }
 0x132   :  { %vm589_vm6 = vmand %vm301_vm14, %vm510_vm3  ;;  %vm304_vm3 = vcmp.eq.s32.totalorder %v12862_v38, %v11786_v21  ;;  %vm308_vm14 = vcmp.eq.s32.totalorder %v12874_v35, %v11786_v21 }
 0x133   :  { %vm734_vm4 = vmand %vm585_vm8, %vm21274_vm13 }
 0x134   :  { %vm738_vm1 = vmand %vm589_vm6, %vm21274_vm13 }
 0x135   :  { %vm9339_vm9 = vmpackc.low %vm738_vm1, %vm734_vm4  ;;  %vm306_vm4 = vcmp.eq.s32.totalorder %v12862_v38, %v11807_v32 }
 0x136   :  { %9340 = vmatmul.mubr.msk.bf16.gmra.mrb[28].mxu1 %vm9339_vm9, %v21159_v33  ;;  %vm12910_vm10 = vmand %vm304_vm3, %vm20700_vm5  ;;  %vm20706_vm3 = vcmp.ne.s32.totalorder %v12872_v42, 0  ;;  %v12965_v42 = vpop.permute.xlu1 %185 }
 0x137   :  { %v21277_v53 = vsel %vm12910_vm10, 4294967295, %v21276_v53  ;;  %vm12918_vm6 = vmand %vm308_vm14, %vm20707_vm12  ;;  %v2628_v24 = vsel %vm20706_vm3, 1, %v21156_v25  ;;  %21286 = vst [vmem:[#allocation106_spill] sm:$0xff] %v12965_v42  ;;  %vm305_vm3 = vcmp.eq.s32.totalorder %v12862_v38, %v11941_v60  ;;  %v4689_v38 = vld [vmem:[%s20515_s2 + $0x18] sm:$0xff] }
 0x138   :  { %21278 = vst [vmem:[#allocation100_spill] sm:$0xff] %v21277_v53  ;;  %v21280_v61 = vsel %vm12918_vm6, 4294967295, %v21279_v61  ;;  %vm594_vm8 = vmand %vm306_vm4, %vm20700_vm5  ;;  %vm20705_vm4 = vcmp.ne.s32.totalorder %v12884_v27, 0  ;;  %2721 = vperm.xlu0 %11339, %v2628_v24   ;;  %v4686_v24 = vld [vmem:[%s20515_s2] sm:$0xff]  ;;  %v4687_v27 = vld [vmem:[%s20515_s2 + $0x8] sm:$0xff]  ;;  %v21295_v53 = vmov 0 }
 0x139   :  { %21281 = vst [vmem:[#allocation101_spill] sm:$0xff] %v21280_v61  ;;  %vm598_vm1 = vmand %vm310_vm7, %vm20707_vm12  ;;  %vm869_vm7 = vcmp.gt.s32.totalorder %v12932_v29, %v12929_v8  ;;  %v2629_v2 = vsel %vm20705_vm4, 1, %v21156_v25  ;;  %vm309_vm12 = vcmp.eq.s32.totalorder %v12874_v35, %v11941_v60  ;;  %v21290_v61 = vmov 0.0|0.0  }
 0x13a   :  { %vm743_vm9 = vmand %vm594_vm8, %vm21255_vm0  ;;  %2724 = vperm.xlu1 %11340, %v2629_v2   ;;  %v12993_v2 = vpop.permute.xlu0 %454  ;;  %v13033_v35 = vadd.s32 152, %v11742_v63 }
 0x13b   :  { %vm747_vm14 = vmand %vm598_vm1, %vm21255_vm0  ;;  %vm873_vm1 = vcmp.gt.s32.totalorder %v12932_v29, %v12937_v34  ;;  %21289 = vst [vmem:[#allocation107_spill] sm:$0xff] %v12993_v2 }
 0x13c   :  { %vm9341_vm5 = vmpackc.low %vm747_vm14, %vm743_vm9  ;;  %4742 = vperm.xlu0 %11339, %v4686_v24   ;;  %v12998_v24 = vpop.permute.xlu1 %457  ;;  %21299 = vst [vmem:[#allocation112_spill] sm:$0xff] %v13033_v35 }
 0x13d   :  { %9342 = vmatprep.mubr.msk.bf16.mxu1 %vm9341_vm5, %v21159_v33  ;;  %vm20709_vm8 = vmand %vm12910_vm10, %vm11822_vm15  ;;  %vm21287_vm10 = vcmp.eq.s32.totalorder %v12895_v39, 1  ;;  %21291 = vst [vmem:[#allocation108_spill] sm:$0xff] %v12998_v24  ;;  %v4688_v39 = vld [vmem:[%s20515_s2 + $0x10] sm:$0xff] }
 0x13e   :  { %vm20716_vm5 = vmand %vm12918_vm6, %vm11822_vm15  ;;  %4747 = vperm.xlu1 %11340, %v4687_v27   ;;  %v21292_v27 = vmov 0  ;;  %v13047_v15 = vpop.permute.xlu0 %188 }
 0x13f   :  { %vm997_vm9 = vmand %vm20709_vm8, %vm869_vm7  ;;  %vm21288_vm8 = vcmp.eq.s32.totalorder %v12899_v5, 1  ;;  %v13028_v5 = vadd.s32 144, %v11742_v63  ;;  %21300 = vst [vmem:[#allocation113_spill] sm:$0xff] %v13047_v15 }
 0x140   :  { %vm1001_vm14 = vmand %vm20716_vm5, %vm873_vm1  ;;  %4752 = vperm.xlu0 %11339, %v4688_v39   ;;  %v13056_v59 = vpop.permute.xlu1 %191  ;;  %v4690_v39 = vld [vmem:[%s20515_s2 + $0x20] sm:$0xff] }
 0x141   :  { %vm9293_vm4 = vmpackc.low %vm1001_vm14, %vm997_vm9  ;;  %vm20728_vm14 = vcmp.eq.s32.totalorder %v12993_v2, 1  ;;  %21298 = vst [vmem:[#allocation111_spill] sm:$0xff] %v13028_v5  ;;  %vm877_vm5 = vcmp.gt.s32.totalorder %v12932_v29, %v13028_v5 }
 0x142   :  { %9294 = vmatprep.mubr.msk.bf16.mxu0 %vm9293_vm4, %v21159_v33  ;;  %vm593_vm7 = vmand %vm305_vm3, %vm21287_vm10  ;;  %vm20720_vm10 = vcmp.eq.s32.totalorder %v12998_v24, 1  ;;  %4757 = vperm.xlu1 %11340, %v4689_v38   ;;  %21301 = vst [vmem:[#allocation114_spill] sm:$0xff] %v13056_v59  ;;  %v4691_v38 = vld [vmem:[%s20515_s2 + $0x28] sm:$0xff] }
 0x143   :  { %vm597_vm2 = vmand %vm309_vm12, %vm21288_vm8  ;;  %2053 = vmatmul.mubr.bf16.gmra.mrb[32].mxu0 %v21290_v61  ;;  %vm312_vm12 = vcmp.eq.s32.totalorder %v12953_v18, %v11786_v21  ;;  %vm316_vm8 = vcmp.eq.s32.totalorder %v12965_v42, %v11786_v21 }
 0x144   :  { %vm742_vm1 = vmand %vm593_vm7, %vm21274_vm13  ;;  %vm314_vm7 = vcmp.eq.s32.totalorder %v12953_v18, %v11807_v32  ;;  %4762 = vperm.xlu0 %11339, %v4690_v39   ;;  %v13087_v39 = vpop.permute.xlu0 %460 }
 0x145   :  { %vm746_vm4 = vmand %vm597_vm2, %vm21274_vm13  ;;  %21303 = vst [vmem:[#allocation115_spill] sm:$0xff] %v13087_v39 }
 0x146   :  { %vm9343_vm9 = vmpackc.low %vm746_vm4, %vm742_vm1  ;;  %vm318_vm1 = vcmp.eq.s32.totalorder %v12965_v42, %v11807_v32  ;;  %4767 = vperm.xlu1 %11340, %v4691_v38   ;;  %v21305_v38 = vmov 0 }
 0x147   :  { %9344 = vmatmul.mubr.msk.bf16.gmra.mrb[32].mxu1 %vm9343_vm9, %v21159_v33  ;;  %vm13009_vm3 = vmand %vm312_vm12, %vm20728_vm14 }
 0x148   :  { %v21293_v27 = vsel %vm13009_vm3, 4294967295, %v21292_v27  ;;  %vm13017_vm2 = vmand %vm316_vm8, %vm20720_vm10  ;;  %v13135_v2 = vpop.permute.xlu0 %194  ;;  %4772 = vperm.xlu0 %11339, %v4692_v43  }
 0x149   :  { %21294 = vst [vmem:[#allocation109_spill] sm:$0xff] %v21293_v27  ;;  %v21296_v53 = vsel %vm13017_vm2, 4294967295, %v21295_v53  ;;  %vm602_vm4 = vmand %vm314_vm7, %vm20728_vm14  ;;  %v21308_v27 = vmov 0 }
 0x14a   :  { %21297 = vst [vmem:[#allocation110_spill] sm:$0xff] %v21296_v53  ;;  %vm606_vm9 = vmand %vm318_vm1, %vm20720_vm10  ;;  %vm313_vm10 = vcmp.eq.s32.totalorder %v12953_v18, %v11941_v60  ;;  %v13092_v53 = vpop.permute.xlu1 %463 }
 0x14b   :  { %vm751_vm12 = vmand %vm602_vm4, %vm21255_vm0  ;;  %vm881_vm4 = vcmp.gt.s32.totalorder %v12932_v29, %v13033_v35  ;;  %21304 = vst [vmem:[#allocation116_spill] sm:$0xff] %v13092_v53 }
 0x14c   :  { %vm755_vm8 = vmand %vm606_vm9, %vm21255_vm0  ;;  %21313 = vst [vmem:[#allocation121_spill] sm:$0xff] %v13135_v2 }
 0x14d   :  { %vm9345_vm7 = vmpackc.low %vm755_vm8, %vm751_vm12 }
 0x14e   :  { %9346 = vmatprep.mubr.msk.bf16.mxu1 %vm9345_vm7, %v21159_v33  ;;  %vm20721_vm1 = vmand %vm13009_vm3, %vm11822_vm15  ;;  %v13144_v18 = vpop.permute.xlu1 %197 }
 0x14f   :  { %vm20722_vm9 = vmand %vm13017_vm2, %vm11822_vm15  ;;  %vm20742_vm2 = vcmp.eq.s32.totalorder %v13087_v39, 1  ;;  %21314 = vst [vmem:[#allocation122_spill] sm:$0xff] %v13144_v18  ;;  %v4695_v39 = vld [vmem:[%s20515_s2 + $0x48] sm:$0xff] }
 0x150   :  { %vm1005_vm12 = vmand %vm20721_vm1, %vm877_vm5  ;;  %vm317_vm5 = vcmp.eq.s32.totalorder %v12965_v42, %v11941_v60  ;;  %v13127_v42 = vadd.s32 168, %v11742_v63 }
 0x151   :  { %vm1009_vm8 = vmand %vm20722_vm9, %vm881_vm4  ;;  %vm21302_vm4 = vcmp.eq.s32.totalorder %v12998_v24, 1  ;;  %v13122_v24 = vadd.s32 160, %v11742_v63 }
 0x152   :  { %vm9295_vm7 = vmpackc.low %vm1009_vm8, %vm1005_vm12  ;;  %21312 = vst [vmem:[#allocation120_spill] sm:$0xff] %v13127_v42  ;;  %v13183_v43 = vpop.permute.xlu1 %469 }
 0x153   :  { %9296 = vmatprep.mubr.msk.bf16.mxu0 %vm9295_vm7, %v21159_v33  ;;  %vm601_vm1 = vmand %vm313_vm10, %vm20728_vm14  ;;  %vm20734_vm10 = vcmp.eq.s32.totalorder %v13092_v53, 1  ;;  %21311 = vst [vmem:[#allocation119_spill] sm:$0xff] %v13122_v24  ;;  %vm885_vm6 = vcmp.gt.s32.totalorder %v12932_v29, %v13122_v24 }
 0x154   :  { %vm605_vm9 = vmand %vm317_vm5, %vm21302_vm4  ;;  %2061 = vmatmul.mubr.bf16.gmra.mrb[36].mxu0 %v21290_v61  ;;  %vm320_vm5 = vcmp.eq.s32.totalorder %v13047_v15, %v11786_v21  ;;  %21317 = vst [vmem:[#allocation124_spill] sm:$0xff] %v13183_v43 }
 0x155   :  { %vm750_vm12 = vmand %vm601_vm1, %vm21274_vm13  ;;  %vm324_vm1 = vcmp.eq.s32.totalorder %v13056_v59, %v11786_v21 }
 0x156   :  { %vm754_vm8 = vmand %vm605_vm9, %vm21274_vm13  ;;  %v13238_v11 = vpop.permute.xlu1 %203 }
 0x157   :  { %vm9347_vm7 = vmpackc.low %vm754_vm8, %vm750_vm12  ;;  %vm322_vm12 = vcmp.eq.s32.totalorder %v13047_v15, %v11807_v32  ;;  %vm326_vm8 = vcmp.eq.s32.totalorder %v13056_v59, %v11807_v32  ;;  %21327 = vst [vmem:[#allocation130_spill] sm:$0xff] %v13238_v11 }
 0x158   :  { %9348 = vmatmul.mubr.msk.bf16.gmra.mrb[36].mxu1 %vm9347_vm7, %v21159_v33  ;;  %vm13103_vm4 = vmand %vm320_vm5, %vm20742_vm2 }
 0x159   :  { %v21306_v38 = vsel %vm13103_vm4, 4294967295, %v21305_v38  ;;  %vm13111_vm9 = vmand %vm324_vm1, %vm20734_vm10 }
 0x15a   :  { %21307 = vst [vmem:[#allocation117_spill] sm:$0xff] %v21306_v38  ;;  %v21309_v27 = vsel %vm13111_vm9, 4294967295, %v21308_v27  ;;  %vm610_vm7 = vmand %vm322_vm12, %vm20742_vm2  ;;  %v13175_v38 = vpop.permute.xlu0 %466 }
 0x15b   :  { %21310 = vst [vmem:[#allocation118_spill] sm:$0xff] %v21309_v27  ;;  %vm614_vm5 = vmand %vm326_vm8, %vm20734_vm10  ;;  %vm889_vm8 = vcmp.gt.s32.totalorder %v12932_v29, %v13127_v42  ;;  %vm325_vm10 = vcmp.eq.s32.totalorder %v13056_v59, %v11941_v60  ;;  %v4693_v27 = vld [vmem:[%s20515_s2 + $0x38] sm:$0xff]  ;;  %v4694_v59 = vld [vmem:[%s20515_s2 + $0x40] sm:$0xff] }
 0x15c   :  { %vm759_vm1 = vmand %vm610_vm7, %vm21255_vm0  ;;  %21316 = vst [vmem:[#allocation123_spill] sm:$0xff] %v13175_v38  ;;  %4777 = vperm.xlu1 %11340, %v4693_v27   ;;  %4782 = vperm.xlu0 %11339, %v4694_v59   ;;  %v21318_v27 = vmov 0  ;;  %v21321_v59 = vmov 0 }
 0x15d   :  { %vm763_vm14 = vmand %vm614_vm5, %vm21255_vm0 }
 0x15e   :  { %vm9349_vm3 = vmpackc.low %vm763_vm14, %vm759_vm1  ;;  %vm321_vm1 = vcmp.eq.s32.totalorder %v13047_v15, %v11941_v60  ;;  %v13229_v15 = vpop.permute.xlu0 %200 }
 0x15f   :  { %9350 = vmatprep.mubr.msk.bf16.mxu1 %vm9349_vm3, %v21159_v33  ;;  %vm20740_vm12 = vmand %vm13103_vm4, %vm11822_vm15  ;;  %21326 = vst [vmem:[#allocation129_spill] sm:$0xff] %v13229_v15 }
 0x160   :  { %vm20739_vm14 = vmand %vm13111_vm9, %vm11822_vm15  ;;  %4787 = vperm.xlu1 %11340, %v4695_v39   ;;  %v13216_v39 = vadd.s32 176, %v11742_v63 }
 0x161   :  { %vm1013_vm3 = vmand %vm20740_vm12, %vm885_vm6 }
 0x162   :  { %vm1017_vm7 = vmand %vm20739_vm14, %vm889_vm8  ;;  %vm21315_vm8 = vcmp.eq.s32.totalorder %v13092_v53, 1  ;;  %21324 = vst [vmem:[#allocation127_spill] sm:$0xff] %v13216_v39  ;;  %v13221_v53 = vadd.s32 184, %v11742_v63  ;;  %vm893_vm4 = vcmp.gt.s32.totalorder %v12932_v29, %v13216_v39 }
 0x163   :  { %vm9297_vm5 = vmpackc.low %vm1017_vm7, %vm1013_vm3 }
 0x164   :  { %9298 = vmatprep.mubr.msk.bf16.mxu0 %vm9297_vm5, %v21159_v33  ;;  %vm609_vm6 = vmand %vm321_vm1, %vm20742_vm2  ;;  %vm20760_vm1 = vcmp.eq.s32.totalorder %v13175_v38, 1  ;;  %21325 = vst [vmem:[#allocation128_spill] sm:$0xff] %v13221_v53  ;;  %v4698_v38 = vld [vmem:[%s20515_s2 + $0x60] sm:$0xff] }
 0x165   :  { %vm613_vm3 = vmand %vm325_vm10, %vm21315_vm8  ;;  %2069 = vmatmul.mubr.bf16.gmra.mrb[40].mxu0 %v21290_v61  ;;  %vm20747_vm8 = vcmp.eq.s32.totalorder %v13183_v43, 1 }
 0x166   :  { %vm758_vm7 = vmand %vm609_vm6, %vm21274_vm13  ;;  %vm328_vm6 = vcmp.eq.s32.totalorder %v13135_v2, %v11786_v21 }
 0x167   :  { %vm762_vm10 = vmand %vm613_vm3, %vm21274_vm13  ;;  %vm332_vm3 = vcmp.eq.s32.totalorder %v13144_v18, %v11786_v21 }
 0x168   :  { %vm9351_vm5 = vmpackc.low %vm762_vm10, %vm758_vm7  ;;  %vm330_vm10 = vcmp.eq.s32.totalorder %v13135_v2, %v11807_v32 }
 0x169   :  { %9352 = vmatmul.mubr.msk.bf16.gmra.mrb[40].mxu1 %vm9351_vm5, %v21159_v33  ;;  %vm13197_vm14 = vmand %vm328_vm6, %vm20760_vm1  ;;  %vm334_vm5 = vcmp.eq.s32.totalorder %v13144_v18, %v11807_v32 }
 0x16a   :  { %v21319_v27 = vsel %vm13197_vm14, 4294967295, %v21318_v27  ;;  %vm13205_vm7 = vmand %vm332_vm3, %vm20747_vm8 }
 0x16b   :  { %21320 = vst [vmem:[#allocation125_spill] sm:$0xff] %v21319_v27  ;;  %v21322_v59 = vsel %vm13205_vm7, 4294967295, %v21321_v59  ;;  %vm618_vm6 = vmand %vm330_vm10, %vm20760_vm1  ;;  %v13268_v27 = vpop.permute.xlu1 %475 }
 0x16c   :  { %21323 = vst [vmem:[#allocation126_spill] sm:$0xff] %v21322_v59  ;;  %vm622_vm12 = vmand %vm334_vm5, %vm20747_vm8  ;;  %vm897_vm5 = vcmp.gt.s32.totalorder %v12932_v29, %v13221_v53  ;;  %vm333_vm8 = vcmp.eq.s32.totalorder %v13144_v18, %v11941_v60  ;;  %v13263_v59 = vpop.permute.xlu0 %472  ;;  %v4697_v18 = vld [vmem:[%s20515_s2 + $0x58] sm:$0xff] }
 0x16d   :  { %vm767_vm3 = vmand %vm618_vm6, %vm21255_vm0  ;;  %21329 = vst [vmem:[#allocation131_spill] sm:$0xff] %v13263_v59  ;;  %4797 = vperm.xlu1 %11340, %v4697_v18   ;;  %v21334_v18 = vmov 0 }
 0x16e   :  { %vm771_vm2 = vmand %vm622_vm12, %vm21255_vm0  ;;  %21330 = vst [vmem:[#allocation132_spill] sm:$0xff] %v13268_v27 }
 0x16f   :  { %vm9353_vm9 = vmpackc.low %vm771_vm2, %vm767_vm3  ;;  %vm329_vm3 = vcmp.eq.s32.totalorder %v13135_v2, %v11941_v60  ;;  %v21331_v2 = vmov 0 }
 0x170   :  { %9354 = vmatprep.mubr.msk.bf16.mxu1 %vm9353_vm9, %v21159_v33  ;;  %vm20750_vm10 = vmand %vm13197_vm14, %vm11822_vm15  ;;  %v13323_v14 = vpop.permute.xlu0 %206 }
 0x171   :  { %vm20759_vm2 = vmand %vm13205_vm7, %vm11822_vm15  ;;  %21339 = vst [vmem:[#allocation137_spill] sm:$0xff] %v13323_v14  ;;  %vm21341_vm7 = vcmp.eq.s32.totalorder %v13263_v59, 1 }
 0x172   :  { %vm1021_vm9 = vmand %vm20750_vm10, %vm893_vm4  ;;  %vm21328_vm4 = vcmp.eq.s32.totalorder %v13183_v43, 1  ;;  %v4696_v43 = vld [vmem:[%s20515_s2 + $0x50] sm:$0xff] }
 0x173   :  { %vm1025_vm12 = vmand %vm20759_vm2, %vm897_vm5  ;;  %4792 = vperm.xlu0 %11339, %v4696_v43   ;;  %v4699_v43 = vld [vmem:[%s20515_s2 + $0x68] sm:$0xff] }
 0x174   :  { %vm9299_vm6 = vmpackc.low %vm1025_vm12, %vm1021_vm9  ;;  %4807 = vperm.xlu1 %11340, %v4699_v43   ;;  %v13357_v43 = vpop.permute.xlu0 %478 }
 0x175   :  { %9300 = vmatprep.mubr.msk.bf16.mxu0 %vm9299_vm6, %v21159_v33  ;;  %vm617_vm11 = vmand %vm329_vm3, %vm20760_vm1  ;;  %vm20763_vm6 = vcmp.eq.s32.totalorder %v13263_v59, 1  ;;  %vm340_vm3 = vcmp.eq.s32.totalorder %v13238_v11, %v11786_v21  ;;  %21343 = vst [vmem:[#allocation139_spill] sm:$0xff] %v13357_v43  ;;  %v13397_v59 = vadd.s32 216, %v11742_v63 }
 0x176   :  { %vm621_vm10 = vmand %vm333_vm8, %vm21328_vm4  ;;  %2077 = vmatmul.mubr.bf16.gmra.mrb[44].mxu0 %v21290_v61  ;;  %vm20762_vm8 = vcmp.eq.s32.totalorder %v13268_v27, 1 }
 0x177   :  { %vm766_vm5 = vmand %vm617_vm11, %vm21274_vm13  ;;  %vm336_vm11 = vcmp.eq.s32.totalorder %v13229_v15, %v11786_v21  ;;  %4802 = vperm.xlu0 %11339, %v4698_v38   ;;  %v13332_v38 = vpop.permute.xlu1 %209  ;;  %21351 = vst [vmem:[#allocation143_spill] sm:$0xff] %v13397_v59 }
 0x178   :  { %vm770_vm9 = vmand %vm621_vm10, %vm21274_vm13  ;;  %21340 = vst [vmem:[#allocation138_spill] sm:$0xff] %v13332_v38  ;;  %4817 = vperm.xlu1 %11340, %v4701_v10   ;;  %v13417_v3 = vpop.permute.xlu0 %212 }
 0x179   :  { %vm9355_vm12 = vmpackc.low %vm770_vm9, %vm766_vm5  ;;  %vm338_vm5 = vcmp.eq.s32.totalorder %v13229_v15, %v11807_v32  ;;  %vm342_vm9 = vcmp.eq.s32.totalorder %v13238_v11, %v11807_v32  ;;  %21352 = vst [vmem:[#allocation144_spill] sm:$0xff] %v13417_v3 }
 0x17a   :  { %9356 = vmatmul.mubr.msk.bf16.gmra.mrb[44].mxu1 %vm9355_vm12, %v21159_v33  ;;  %vm13288_vm10 = vmand %vm336_vm11, %vm20763_vm6 }
 0x17b   :  { %v21332_v2 = vsel %vm13288_vm10, 4294967295, %v21331_v2  ;;  %vm13299_vm4 = vmand %vm340_vm3, %vm20762_vm8 }
 0x17c   :  { %21333 = vst [vmem:[#allocation133_spill] sm:$0xff] %v21332_v2  ;;  %v21335_v18 = vsel %vm13299_vm4, 4294967295, %v21334_v18  ;;  %vm626_vm12 = vmand %vm338_vm5, %vm20763_vm6  ;;  %vm901_vm5 = vcmp.gt.s32.totalorder %v12932_v29, %v13310_v51  ;;  %vm341_vm6 = vcmp.eq.s32.totalorder %v13238_v11, %v11941_v60  ;;  %v21345_v2 = vmov 0 }
 0x17d   :  { %21336 = vst [vmem:[#allocation134_spill] sm:$0xff] %v21335_v18  ;;  %vm630_vm11 = vmand %vm342_vm9, %vm20762_vm8  ;;  %vm905_vm8 = vcmp.gt.s32.totalorder %v12932_v29, %v13315_v55  ;;  %v13362_v18 = vpop.permute.xlu1 %481  ;;  %v13392_v11 = vadd.s32 208, %v11742_v63 }
 0x17e   :  { %vm775_vm3 = vmand %vm626_vm12, %vm21255_vm0  ;;  %21344 = vst [vmem:[#allocation140_spill] sm:$0xff] %v13362_v18 }
 0x17f   :  { %vm779_vm2 = vmand %vm630_vm11, %vm21255_vm0 }
 0x180   :  { %vm9357_vm1 = vmpackc.low %vm779_vm2, %vm775_vm3  ;;  %vm337_vm3 = vcmp.eq.s32.totalorder %v13229_v15, %v11941_v60  ;;  %v4700_v15 = vld [vmem:[%s20515_s2 + $0x70] sm:$0xff] }
 0x181   :  { %9358 = vmatprep.mubr.msk.bf16.mxu1 %vm9357_vm1, %v21159_v33  ;;  %vm20766_vm9 = vmand %vm13288_vm10, %vm11822_vm15  ;;  %4812 = vperm.xlu0 %11339, %v4700_v15   ;;  %v4703_v15 = vld [vmem:[%s20515_s2 + $0x88] sm:$0xff]  ;;  %v13426_v10 = vpop.permute.xlu1 %215 }
 0x182   :  { %vm20776_vm2 = vmand %vm13299_vm4, %vm11822_vm15  ;;  %21353 = vst [vmem:[#allocation145_spill] sm:$0xff] %v13426_v10  ;;  %4827 = vperm.xlu1 %11340, %v4703_v15   ;;  %vm21354_vm4 = vcmp.eq.s32.totalorder %v13357_v43, 1 }
 0x183   :  { %vm1029_vm1 = vmand %vm20766_vm9, %vm901_vm5  ;;  %vm21342_vm5 = vcmp.eq.s32.totalorder %v13268_v27, 1  ;;  %v21348_v27 = vmov 0 }
 0x184   :  { %vm1033_vm12 = vmand %vm20776_vm2, %vm905_vm8 }
 0x185   :  { %vm9301_vm11 = vmpackc.low %vm1033_vm12, %vm1029_vm1  ;;  %4822 = vperm.xlu0 %11339, %v4702_v16   ;;  %v13451_v16 = vpop.permute.xlu0 %484  ;;  %v13456_v15 = vpop.permute.xlu1 %487 }
 0x186   :  { %9302 = vmatprep.mubr.msk.bf16.mxu0 %vm9301_vm11, %v21159_v33  ;;  %vm625_vm14 = vmand %vm337_vm3, %vm21341_vm7  ;;  %vm20778_vm11 = vcmp.eq.s32.totalorder %v13357_v43, 1  ;;  %vm20777_vm7 = vcmp.eq.s32.totalorder %v13362_v18, 1  ;;  %21356 = vst [vmem:[#allocation146_spill] sm:$0xff] %v13451_v16  ;;  %4837 = vperm.xlu1 %11340, %v4705_v7  }
 0x187   :  { %vm629_vm9 = vmand %vm341_vm6, %vm21342_vm5  ;;  %2085 = vmatmul.mubr.bf16.gmra.mrb[48].mxu0 %v21290_v61  ;;  %vm344_vm6 = vcmp.eq.s32.totalorder %v13323_v14, %v11786_v21  ;;  %vm346_vm5 = vcmp.eq.s32.totalorder %v13323_v14, %v11807_v32  ;;  %21357 = vst [vmem:[#allocation147_spill] sm:$0xff] %v13456_v15 }
 0x188   :  { %vm774_vm8 = vmand %vm625_vm14, %vm21274_vm13  ;;  %vm348_vm14 = vcmp.eq.s32.totalorder %v13332_v38, %v11786_v21 }
 0x189   :  { %vm778_vm1 = vmand %vm629_vm9, %vm21274_vm13  ;;  %v13499_v43 = vpop.permute.xlu0 %218  ;;  %4832 = vperm.xlu0 %11339, %v4704_v47   ;;  %v4707_v47 = vld [vmem:[%s20515_s2 + $0xa8] sm:$0xff] }
 0x18a   :  { %vm9359_vm12 = vmpackc.low %vm778_vm1, %vm774_vm8  ;;  %vm350_vm8 = vcmp.eq.s32.totalorder %v13332_v38, %v11807_v32  ;;  %21366 = vst [vmem:[#allocation152_spill] sm:$0xff] %v13499_v43  ;;  %4847 = vperm.xlu1 %11340, %v4707_v47   ;;  %v13580_v47 = vadd.s32 240, %v11742_v63 }
 0x18b   :  { %9360 = vmatmul.mubr.msk.bf16.gmra.mrb[48].mxu1 %vm9359_vm12, %v21159_v33  ;;  %vm13373_vm3 = vmand %vm344_vm6, %vm20778_vm11 }
 0x18c   :  { %v21346_v2 = vsel %vm13373_vm3, 4294967295, %v21345_v2  ;;  %vm13381_vm9 = vmand %vm348_vm14, %vm20777_vm7 }
 0x18d   :  { %21347 = vst [vmem:[#allocation141_spill] sm:$0xff] %v21346_v2  ;;  %v21349_v27 = vsel %vm13381_vm9, 4294967295, %v21348_v27  ;;  %vm634_vm1 = vmand %vm346_vm5, %vm20778_vm11  ;;  %vm349_vm11 = vcmp.eq.s32.totalorder %v13332_v38, %v11941_v60  ;;  %v21361_v2 = vmov 0  ;;  %v13491_v38 = vadd.s32 232, %v11742_v63  ;;  %v13545_v7 = vpop.permute.xlu0 %490 }
 0x18e   :  { %21350 = vst [vmem:[#allocation142_spill] sm:$0xff] %v21349_v27  ;;  %vm638_vm12 = vmand %vm350_vm8, %vm20777_vm7  ;;  %vm909_vm8 = vcmp.gt.s32.totalorder %v12932_v29, %v13392_v11  ;;  %vm345_vm7 = vcmp.eq.s32.totalorder %v13323_v14, %v11941_v60  ;;  %v21358_v27 = vmov 0  ;;  %v13508_v14 = vpop.permute.xlu1 %221 }
 0x18f   :  { %vm783_vm6 = vmand %vm634_vm1, %vm21255_vm0  ;;  %21365 = vst [vmem:[#allocation151_spill] sm:$0xff] %v13491_v38 }
 0x190   :  { %vm787_vm14 = vmand %vm638_vm12, %vm21255_vm0  ;;  %vm913_vm12 = vcmp.gt.s32.totalorder %v12932_v29, %v13397_v59  ;;  %21367 = vst [vmem:[#allocation153_spill] sm:$0xff] %v13508_v14 }
 0x191   :  { %vm9361_vm5 = vmpackc.low %vm787_vm14, %vm783_vm6  ;;  %21368 = vst [vmem:[#allocation154_spill] sm:$0xff] %v13545_v7 }
 0x192   :  { %9362 = vmatprep.mubr.msk.bf16.mxu1 %vm9361_vm5, %v21159_v33  ;;  %vm20781_vm1 = vmand %vm13373_vm3, %vm11822_vm15 }
 0x193   :  { %vm20786_vm6 = vmand %vm13381_vm9, %vm11822_vm15 }
 0x194   :  { %vm1037_vm14 = vmand %vm20781_vm1, %vm909_vm8  ;;  %vm21355_vm8 = vcmp.eq.s32.totalorder %v13362_v18, 1  ;;  %v13486_v18 = vadd.s32 224, %v11742_v63 }
 0x195   :  { %vm1041_vm5 = vmand %vm20786_vm6, %vm913_vm12 }
 0x196   :  { %vm9303_vm2 = vmpackc.low %vm1041_vm5, %vm1037_vm14  ;;  %vm20799_vm5 = vcmp.eq.s32.totalorder %v13451_v16, 1  ;;  %21364 = vst [vmem:[#allocation150_spill] sm:$0xff] %v13486_v18  ;;  %vm917_vm9 = vcmp.gt.s32.totalorder %v12932_v29, %v13486_v18  ;;  %v2376_v16 = vpop.permute.xlu0 %2375 }
 0x197   :  { %9304 = vmatprep.mubr.msk.bf16.mxu0 %vm9303_vm2, %v21159_v33  ;;  %vm633_vm3 = vmand %vm345_vm7, %vm21354_vm4  ;;  %vm20797_vm4 = vcmp.eq.s32.totalorder %v13456_v15, 1  ;;  %v21370_v15 = vmov 0 }
 0x198   :  { %vm637_vm1 = vmand %vm349_vm11, %vm21355_vm8  ;;  %2093 = vmatmul.mubr.bf16.gmra.mrb[52].mxu0 %v21290_v61  ;;  %vm352_vm11 = vcmp.eq.s32.totalorder %v13417_v3, %v11786_v21  ;;  %vm354_vm8 = vcmp.eq.s32.totalorder %v13417_v3, %v11807_v32 }
 0x199   :  { %vm782_vm12 = vmand %vm633_vm3, %vm21274_vm13  ;;  %vm356_vm3 = vcmp.eq.s32.totalorder %v13426_v10, %v11786_v21 }
 0x19a   :  { %vm786_vm2 = vmand %vm637_vm1, %vm21274_vm13 }
 0x19b   :  { %vm9363_vm14 = vmpackc.low %vm786_vm2, %vm782_vm12  ;;  %vm358_vm12 = vcmp.eq.s32.totalorder %v13426_v10, %v11807_v32 }
 0x19c   :  { %9364 = vmatmul.mubr.msk.bf16.gmra.mrb[52].mxu1 %vm9363_vm14, %v21159_v33  ;;  %vm13467_vm7 = vmand %vm352_vm11, %vm20799_vm5 }
 0x19d   :  { %v21359_v27 = vsel %vm13467_vm7, 4294967295, %v21358_v27  ;;  %vm13475_vm1 = vmand %vm356_vm3, %vm20797_vm4 }
 0x19e   :  { %21360 = vst [vmem:[#allocation148_spill] sm:$0xff] %v21359_v27  ;;  %v21362_v2 = vsel %vm13475_vm1, 4294967295, %v21361_v2  ;;  %vm642_vm2 = vmand %vm354_vm8, %vm20799_vm5  ;;  %v4706_v27 = vld [vmem:[%s20515_s2 + $0xa0] sm:$0xff] }
 0x19f   :  { %21363 = vst [vmem:[#allocation149_spill] sm:$0xff] %v21362_v2  ;;  %vm646_vm14 = vmand %vm358_vm12, %vm20797_vm4  ;;  %vm921_vm12 = vcmp.gt.s32.totalorder %v12932_v29, %v13491_v38  ;;  %v13550_v2 = vpop.permute.xlu1 %493  ;;  %4842 = vperm.xlu0 %11339, %v4706_v27   ;;  %v21373_v27 = vmov 0 }
 0x1a0   :  { %vm791_vm11 = vmand %vm642_vm2, %vm21255_vm0  ;;  %21369 = vst [vmem:[#allocation155_spill] sm:$0xff] %v13550_v2 }
 0x1a1   :  { %vm795_vm3 = vmand %vm646_vm14, %vm21255_vm0 }
 0x1a2   :  { %vm9365_vm6 = vmpackc.low %vm795_vm3, %vm791_vm11  ;;  %vm353_vm3 = vcmp.eq.s32.totalorder %v13417_v3, %v11941_v60 }
 0x1a3   :  { %9366 = vmatprep.mubr.msk.bf16.mxu1 %vm9365_vm6, %v21159_v33  ;;  %vm20795_vm8 = vmand %vm13467_vm7, %vm11822_vm15  ;;  %v13609_v3 = vpop.permute.xlu1 %2378 }
 0x1a4   :  { %vm20794_vm2 = vmand %vm13475_vm1, %vm11822_vm15 }
 0x1a5   :  { %vm1045_vm6 = vmand %vm20795_vm8, %vm917_vm9  ;;  %vm357_vm9 = vcmp.eq.s32.totalorder %v13426_v10, %v11941_v60  ;;  %vm360_vm8 = vcmp.eq.s32.totalorder %v13499_v43, %v11786_v21  ;;  %v13585_v10 = vadd.s32 248, %v11742_v63 }
 0x1a6   :  { %vm1049_vm14 = vmand %vm20794_vm2, %vm921_vm12  ;;  %vm20804_vm2 = vcmp.eq.s32.totalorder %v13545_v7, 1 }
 0x1a7   :  { %vm9305_vm11 = vmpackc.low %vm1049_vm14, %vm1045_vm6  ;;  %21376 = vst [vmem:[#allocation158_spill] sm:$0xff] %v13585_v10 }
 0x1a8   :  { %9306 = vmatprep.mubr.msk.bf16.mxu0 %vm9305_vm11, %v21159_v33  ;;  %vm641_vm12 = vmand %vm353_vm3, %vm20799_vm5 }
 0x1a9   :  { %vm645_vm6 = vmand %vm357_vm9, %vm20797_vm4  ;;  %2101 = vmatmul.mubr.bf16.gmra.mrb[56].mxu0 %v21290_v61  ;;  %vm20802_vm9 = vcmp.eq.s32.totalorder %v13550_v2, 1 }
 0x1aa   :  { %vm790_vm14 = vmand %vm641_vm12, %vm21274_vm13 }
 0x1ab   :  { %vm794_vm11 = vmand %vm645_vm6, %vm21274_vm13  ;;  %vm364_vm6 = vcmp.eq.s32.totalorder %v13508_v14, %v11786_v21 }
 0x1ac   :  { %vm9367_vm3 = vmpackc.low %vm794_vm11, %vm790_vm14  ;;  %vm362_vm11 = vcmp.eq.s32.totalorder %v13499_v43, %v11807_v32 }
 0x1ad   :  { %9368 = vmatmul.mubr.msk.bf16.gmra.mrb[56].mxu1 %vm9367_vm3, %v21159_v33  ;;  %vm13561_vm12 = vmand %vm360_vm8, %vm20804_vm2  ;;  %vm366_vm3 = vcmp.eq.s32.totalorder %v13508_v14, %v11807_v32 }
 0x1ae   :  { %v21371_v15 = vsel %vm13561_vm12, 4294967295, %v21370_v15  ;;  %vm13569_vm14 = vmand %vm364_vm6, %vm20802_vm9 }
 0x1af   :  { %21372 = vst [vmem:[#allocation156_spill] sm:$0xff] %v21371_v15  ;;  %v21374_v27 = vsel %vm13569_vm14, 4294967295, %v21373_v27  ;;  %vm650_vm8 = vmand %vm362_vm11, %vm20804_vm2  ;;  %vm925_vm11 = vcmp.gt.s32.totalorder %v12932_v29, %v13580_v47  ;;  %vm365_vm2 = vcmp.eq.s32.totalorder %v13508_v14, %v11941_v60  ;;  %v2632_v15 = vpop.permute.xlu0 %2631  ;;  %v2635_v14 = vpop.permute.xlu1 %2634 }
 0x1b0   :  { %21375 = vst [vmem:[#allocation157_spill] sm:$0xff] %v21374_v27  ;;  %vm654_vm4 = vmand %vm366_vm3, %vm20802_vm9  ;;  %vm929_vm9 = vcmp.gt.s32.totalorder %v12932_v29, %v13585_v10  ;;  %v4708_v27 = vld [vmem:[%s20515_s2 + $0xb0] sm:$0xff]  ;;  %v13646_v29 = vadd.s32 256, %v11910_v37 }
 0x1b1   :  { %vm799_vm6 = vmand %vm650_vm8, %vm21255_vm0  ;;  %4852 = vperm.xlu0 %11339, %v4708_v27   ;;  %v4710_v27 = vld [vmem:[%s20515_s2 + $0xc0] sm:$0xff] }
 0x1b2   :  { %vm803_vm5 = vmand %vm654_vm4, %vm21255_vm0  ;;  %21381 = vst [vmem:[#allocation161_spill] sm:$0xff] %v13646_v29 }
 0x1b3   :  { %vm9369_vm1 = vmpackc.low %vm803_vm5, %vm799_vm6  ;;  %vm361_vm6 = vcmp.eq.s32.totalorder %v13499_v43, %v11941_v60  ;;  %v13642_v43 = vadd.s32 256, %v11742_v63  ;;  %v2385_v13 = vpop.permute.xlu1 %2384 }
 0x1b4   :  { %9370 = vmatprep.mubr.msk.bf16.mxu1 %vm9369_vm1, %v21159_v33  ;;  %vm20807_vm3 = vmand %vm13561_vm12, %vm11822_vm15  ;;  %vm21377_vm12 = vcmp.eq.s32.totalorder %v13545_v7, 1  ;;  %v13639_v7 = vadd.s32 256, %v11925_v49 }
 0x1b5   :  { %vm20818_vm4 = vmand %vm13569_vm14, %vm11822_vm15  ;;  %21380 = vst [vmem:[#allocation160_spill] sm:$0xff] %v13642_v43  ;;  %4862 = vperm.xlu0 %11339, %v4710_v27  }
 0x1b6   :  { %vm1053_vm5 = vmand %vm20807_vm3, %vm925_vm11  ;;  %vm21378_vm3 = vcmp.eq.s32.totalorder %v13550_v2, 1  ;;  %v4709_v2 = vld [vmem:[%s20515_s2 + $0xb8] sm:$0xff]  ;;  %21379 = vst [vmem:[#allocation159_spill] sm:$0xff] %v13639_v7 }
 0x1b7   :  { %vm1057_vm1 = vmand %vm20818_vm4, %vm929_vm9  ;;  %4857 = vperm.xlu1 %11340, %v4709_v2   ;;  %v21384_v2 = vmov 0  ;;  %vm2473_vm4 = vcmp.eq.s32.totalorder %v2376_v16, %v11807_v32 }
 0x1b8   :  { %vm9307_vm8 = vmpackc.low %vm1057_vm1, %vm1053_vm5  ;;  %vm2726_vm1 = vcmp.eq.s32.totalorder %v2632_v15, 1  ;;  %v2641_v15 = vpop.permute.xlu1 %2640 }
 0x1b9   :  { %9308 = vmatprep.mubr.msk.bf16.mxu0 %vm9307_vm8, %v21159_v33  ;;  %vm649_vm11 = vmand %vm361_vm6, %vm21377_vm12  ;;  %vm3016_vm8 = vcmp.gt.s32.totalorder %v13639_v7, %v13642_v43 }
 0x1ba   :  { %vm653_vm7 = vmand %vm365_vm2, %vm21378_vm3  ;;  %2109 = vmatmul.mubr.bf16.gmra.mrb[60].mxu0 %v21290_v61  ;;  %vm20819_vm3 = vcmp.eq.s32.totalorder %v2635_v14, 1 }
 0x1bb   :  { %vm798_vm9 = vmand %vm649_vm11, %vm21274_vm13  ;;  %4198 = vmatprep.mubr.bf16.mxu0 %v21290_v61  ;;  %vm2476_vm11 = vcmp.eq.s32.totalorder %v13609_v3, %v11941_v60  ;;  %4867 = vperm.xlu1 %11340, %v4711_v6   ;;  %v21403_v6 = vmov 0 }
 0x1bc   :  { %vm802_vm5 = vmand %vm653_vm7, %vm21274_vm13  ;;  %vm2472_vm7 = vcmp.eq.s32.totalorder %v2376_v16, %v11941_v60 }
 0x1bd   :  { %vm9371_vm12 = vmpackc.low %vm802_vm5, %vm798_vm9  ;;  %vm3020_vm9 = vcmp.gt.s32.totalorder %v13639_v7, %v13646_v29 }
 0x1be   :  { %9372 = vmatmul.mubr.msk.bf16.gmra.mrb[60].mxu1 %vm9371_vm12, %v21159_v33  ;;  %vm13652_vm2 = vmand %vm2472_vm7, %vm2726_vm1 }
 0x1bf   :  { %v21383_v46 = vsel %vm13652_vm2, 4294967295, %v21382_v46  ;;  %vm20821_vm6 = vmand %vm13652_vm2, %vm21274_vm13 }
 0x1c0   :  { %vm13671_vm5 = vmand %vm2476_vm11, %vm20819_vm3  ;;  %vm2477_vm3 = vcmp.eq.s32.totalorder %v13609_v3, %v11807_v32 }
 0x1c1   :  { %v21385_v2 = vsel %vm13671_vm5, 4294967295, %v21384_v2  ;;  %vm20824_vm12 = vmand %vm13671_vm5, %vm21274_vm13  ;;  %vm2471_vm5 = vcmp.eq.s32.totalorder %v2376_v16, %v11786_v21 }
 0x1c2   :  { %4199 = vmatmul.mubr.bf16.vlgmr.msra.gmra.mrb[64].mxu0 %v21290_v61  ;;  %vm13685_vm7 = vmand %vm20821_vm6, %vm3016_vm8  ;;  %vm21390_vm8 = vcmp.eq.s32.totalorder %v2635_v14, 1 }
 0x1c3   :  { %4206 = vmatprep.mubr.bf16.mxu0 %v21290_v61  ;;  %vm13694_vm11 = vmand %vm20824_vm12, %vm3020_vm9  ;;  %vm2470_vm9 = vcmp.eq.s32.totalorder %v2376_v16, %v11797_v28  ;;  %v2382_v16 = vpop.permute.xlu0 %2381 }
 0x1c4   :  { %vm2761_vm14 = vmand %vm2473_vm4, %vm2726_vm1 }
 0x1c5   :  { %vm2765_vm6 = vmand %vm2477_vm3, %vm21390_vm8 }
 0x1c6   :  { %vm2889_vm10 = vmand %vm2761_vm14, %vm21255_vm0  ;;  %vm2475_vm14 = vcmp.eq.s32.totalorder %v13609_v3, %v11786_v21 }
 0x1c7   :  { %vm2893_vm2 = vmand %vm2765_vm6, %vm21255_vm0 }
 0x1c8   :  { %vm9533_vm12 = vmpackc.low %vm2893_vm2, %vm2889_vm10 }
 0x1c9   :  { %vm13711_vm13 = vmand %vm2470_vm9, %vm2726_vm1  ;;  %9534 = vmatprep.mubr.msk.bf16.mxu1 %vm9533_vm12, %v21159_v33  ;;  %vm3596_vm9 = vcmp.gt.s32.totalorder %v13646_v29, %v13639_v7 }
 0x1ca   :  { %4207 = vmatmul.mubr.bf16.gmra.mrb[68].mxu0 %v21290_v61  ;;  %vm2759_vm4 = vmand %vm2471_vm5, %vm2726_vm1  ;;  %vm21394_vm5 = vnez %v21383_v46  ;;  %v2638_v46 = vpop.permute.xlu0 %2637 }
 0x1cb   :  { %4214 = vmatprep.mubr.bf16.mxu0 %v21290_v61  ;;  %vm21393_vm3 = vmmov %vm21390_vm8  ;;  %vm3592_vm8 = vcmp.gt.s32.totalorder %v13642_v43, %v13639_v7 }
 0x1cc   :  { %vm2763_vm10 = vmand %vm2475_vm14, %vm21393_vm3  ;;  %vm21395_vm14 = vnez %v21158_v31 }
 0x1cd   :  { %vm2887_vm2 = vmand %vm2759_vm4, %vm11822_vm15 }
 0x1ce   :  { %vm2891_vm6 = vmand %vm2763_vm10, %vm11822_vm15  ;;  %vm21397_vm10 = vnez %v21385_v2  ;;  %v4712_v2 = vld [vmem:[%s20515_s2 + $0xd0] sm:$0xff] }
 0x1cf   :  { %vm9581_vm12 = vmpackc.low %vm2891_vm6, %vm2887_vm2  ;;  %4872 = vperm.xlu0 %11339, %v4712_v2   ;;  %v13799_v2 = vadd.s32 256, %v12102_v48 }
 0x1d0   :  { %9582 = vmatprep.subr.msk.bf16.mxu0 %vm9581_vm12, %v21159_v33  ;;  %vm9535_vm1 = vmpackc.low %vm13694_vm11, %vm13685_vm7  ;;  %vm2474_vm12 = vcmp.eq.s32.totalorder %v13609_v3, %v11797_v28  ;;  %vm21399_vm11 = vcmp.eq.s32.totalorder %v2635_v14, 1  ;;  %v4713_v14 = vld [vmem:[%s20515_s2 + $0xd8] sm:$0xff]  ;;  %v4714_v3 = vld [vmem:[%s20515_s2 + $0xe0] sm:$0xff] }
 0x1d1   :  { %9536 = vmatmul.mubr.msk.bf16.vlgmr.msra.gmra.mrb[64].mxu1 %vm9535_vm1, %v21159_v33  ;;  %vm21396_vm4 = vmand %vm21394_vm5, %vm21395_vm14  ;;  %vm2728_vm5 = vcmp.eq.s32.totalorder %v2638_v46, 1  ;;  %4877 = vperm.xlu1 %11340, %v4713_v14   ;;  %21405 = vst [vmem:[#allocation162_spill] sm:$0xff] %v13799_v2  ;;  %v2391_v46 = vpop.permute.xlu1 %2390  ;;  %v4717_v14 = vld [vmem:[%s20515_s2 + $0xf8] sm:$0xff] }
 0x1d2   :  { %vm3720_vm3 = vmand %vm21396_vm4, %vm3592_vm8  ;;  %4215 = vmatmul.mubr.bf16.gmra.mrb[72].mxu0 %v21290_v61  ;;  %vm21400_vm8 = vnez %v21153_v4 }
 0x1d3   :  { %vm21398_vm2 = vmand %vm21397_vm10, %vm21395_vm14  ;;  %4222 = vmatprep.mubr.bf16.mxu0 %v21290_v61  ;;  %vm2729_vm10 = vcmp.eq.s32.totalorder %v2641_v15, 1  ;;  %4882 = vperm.xlu0 %11339, %v4714_v3   ;;  %v6861_v3 = vld [vmem:[%s20515_s2 + $0x100] sm:$0xff]  ;;  %v6862_v15 = vld [vmem:[%s20515_s2 + $0x108] sm:$0xff] }
 0x1d4   :  { %vm3724_vm6 = vmand %vm21398_vm2, %vm3596_vm9 }
 0x1d5   :  { %vm9645_vm7 = vmpackc.low %vm3724_vm6, %vm3720_vm3  ;;  %vm2484_vm6 = vcmp.eq.s32.totalorder %v2385_v13, %v11941_v60  ;;  %4887 = vperm.xlu1 %11340, %v4715_v30   ;;  %v21419_v30 = vmov 0 }
 0x1d6   :  { %vm2762_vm1 = vmand %vm2474_vm12, %vm21399_vm11  ;;  %9646 = vmatpush1.bf16.msk.msra.mxu1 %vm9645_vm7, %v21159_v33  ;;  %vm2481_vm12 = vcmp.eq.s32.totalorder %v2382_v16, %v11807_v32  ;;  %vm2485_vm11 = vcmp.eq.s32.totalorder %v2385_v13, %v11807_v32 }
 0x1d7   :  { %4531 = vmatprep.subr.bf16.mxu1 %v21290_v61  ;;  %vm2886_vm9 = vmand %vm13711_vm13, %vm21400_vm8  ;;  %vm2480_vm13 = vcmp.eq.s32.totalorder %v2382_v16, %v11941_v60 }
 0x1d8   :  { %vm2890_vm4 = vmand %vm2762_vm1, %vm21400_vm8  ;;  %vm2478_vm8 = vcmp.eq.s32.totalorder %v2382_v16, %v11797_v28 }
 0x1d9   :  { %vm9583_vm3 = vmpackc.low %vm2890_vm4, %vm2886_vm9  ;;  %4897 = vperm.xlu1 %11340, %v4717_v14   ;;  %v13905_v14 = vadd.s32 256, %v12288_v50 }
 0x1da   :  { %9584 = vmatpush1.bf16.msk.msra.mxu0 %vm9583_vm3, %v21159_v33  ;;  %vm13773_vm2 = vmand %vm2480_vm13, %vm2728_vm5 }
 0x1db   :  { %4223 = vmatmul.mubr.bf16.gmra.mrb[76].mxu0 %v21290_v61  ;;  %vm13781_vm7 = vmand %vm2484_vm6, %vm2729_vm10  ;;  %vm2479_vm6 = vcmp.eq.s32.totalorder %v2382_v16, %v11786_v21  ;;  %v13809_v16 = vadd.s32 256, %v12111_v23  ;;  %21421 = vst [vmem:[#allocation164_spill] sm:$0xff] %v13905_v14 }
 0x1dc   :  { %v21404_v6 = vsel %vm13781_vm7, 4294967295, %v21403_v6  ;;  %vm2769_vm1 = vmand %vm2481_vm12, %vm2728_vm5  ;;  %4230 = vmatprep.mubr.bf16.mxu0 %v21290_v61  ;;  %vm2483_vm12 = vcmp.eq.s32.totalorder %v2385_v13, %v11786_v21 }
 0x1dd   :  { %vm2773_vm9 = vmand %vm2485_vm11, %vm2729_vm10  ;;  %21408 = vst [vmem:[#allocation163_spill] sm:$0xff] %v13809_v16  ;;  %6900 = vperm.xlu1 %11340, %v6862_v15   ;;  %v6865_v15 = vld [vmem:[%s20515_s2 + $0x120] sm:$0xff] }
 0x1de   :  { %vm2897_vm4 = vmand %vm2769_vm1, %vm21255_vm0  ;;  %vm2482_vm1 = vcmp.eq.s32.totalorder %v2385_v13, %v11797_v28  ;;  %v2388_v13 = vpop.permute.xlu0 %2387 }
 0x1df   :  { %vm2901_vm3 = vmand %vm2773_vm9, %vm21255_vm0 }
 0x1e0   :  { %vm9537_vm13 = vmpackc.low %vm2901_vm3, %vm2897_vm4 }
 0x1e1   :  { %9538 = vmatprep.mubr.msk.bf16.mxu1 %vm9537_vm13, %v21159_v33  ;;  %vm2767_vm7 = vmand %vm2479_vm6, %vm2728_vm5  ;;  %vm3024_vm13 = vcmp.gt.s32.totalorder %v13639_v7, %v13799_v2  ;;  %vm21411_vm6 = vnez %v21404_v6  ;;  %v2647_v6 = vpop.permute.xlu1 %2646 }
 0x1e2   :  { %vm13802_vm11 = vmand %vm2478_vm8, %vm2728_vm5  ;;  %v2644_v27 = vpop.permute.xlu0 %2643 }
 0x1e3   :  { %vm2771_vm9 = vmand %vm2483_vm12, %vm2729_vm10  ;;  %4231 = vmatmul.mubr.bf16.gmra.mrb[80].mxu0 %v21290_v61 }
 0x1e4   :  { %vm13812_vm4 = vmand %vm2482_vm1, %vm2729_vm10  ;;  %4238 = vmatprep.mubr.bf16.mxu0 %v21290_v61  ;;  %vm3600_vm1 = vcmp.gt.s32.totalorder %v13799_v2, %v13639_v7 }
 0x1e5   :  { %vm2895_vm3 = vmand %vm2767_vm7, %vm11822_vm15  ;;  %vm3028_vm7 = vcmp.gt.s32.totalorder %v13639_v7, %v13809_v16 }
 0x1e6   :  { %vm2899_vm8 = vmand %vm2771_vm9, %vm11822_vm15 }
 0x1e7   :  { %vm9585_vm5 = vmpackc.low %vm2899_vm8, %vm2895_vm3  ;;  %vm3604_vm3 = vcmp.gt.s32.totalorder %v13809_v16, %v13639_v7  ;;  %v4716_v16 = vld [vmem:[%s20515_s2 + $0xf0] sm:$0xff] }
 0x1e8   :  { %9586 = vmatprep.subr.msk.bf16.mxu0 %vm9585_vm5, %v21159_v33  ;;  %vm2896_vm10 = vmand %vm13773_vm2, %vm21395_vm14  ;;  %4892 = vperm.xlu0 %11339, %v4716_v16  }
 0x1e9   :  { %vm2900_vm12 = vmand %vm21411_vm6, %vm21395_vm14 }
 0x1ea   :  { %vm3152_vm9 = vmand %vm2896_vm10, %vm3024_vm13  ;;  %vm21416_vm13 = vnez %v21153_v4 }
 0x1eb   :  { %vm3156_vm8 = vmand %vm2900_vm12, %vm3028_vm7  ;;  %4239 = vmatmul.mubr.bf16.gmra.mrb[84].mxu0 %v21290_v61 }
 0x1ec   :  { %vm13839_vm5 = vmand %vm2896_vm10, %vm3600_vm1  ;;  %4246 = vmatprep.mubr.bf16.mxu0 %v21290_v61  ;;  %6895 = vperm.xlu0 %11339, %v6861_v3   ;;  %v6864_v3 = vld [vmem:[%s20515_s2 + $0x118] sm:$0xff] }
 0x1ed   :  { %vm13843_vm2 = vmand %vm2900_vm12, %vm3604_vm3  ;;  %6910 = vperm.xlu1 %11340, %v6864_v3   ;;  %v6867_v3 = vld [vmem:[%s20515_s2 + $0x130] sm:$0xff] }
 0x1ee   :  { %vm9539_vm6 = vmpackc.low %vm3156_vm8, %vm3152_vm9  ;;  %vm2488_vm9 = vcmp.eq.s32.totalorder %v2388_v13, %v11941_v60  ;;  %vm2492_vm8 = vcmp.eq.s32.totalorder %v2391_v46, %v11941_v60 }
 0x1ef   :  { %9540 = vmatmul.mubr.msk.bf16.gmra.mrb[68].mxu1 %vm9539_vm6, %v21159_v33  ;;  %vm2894_vm7 = vmand %vm13802_vm11, %vm21416_vm13  ;;  %vm2730_vm11 = vcmp.eq.s32.totalorder %v2644_v27, 1  ;;  %vm2493_vm6 = vcmp.eq.s32.totalorder %v2391_v46, %v11807_v32  ;;  %v2397_v27 = vpop.permute.xlu1 %2396 }
 0x1f0   :  { %vm2898_vm10 = vmand %vm13812_vm4, %vm21416_vm13  ;;  %vm2731_vm4 = vcmp.eq.s32.totalorder %v2647_v6, 1  ;;  %vm2487_vm13 = vcmp.eq.s32.totalorder %v2388_v13, %v11786_v21 }
 0x1f1   :  { %vm9587_vm12 = vmpackc.low %vm2898_vm10, %vm2894_vm7 }
 0x1f2   :  { %9588 = vmatpush1.bf16.msk.msra.mxu0 %vm9587_vm12, %v21159_v33  ;;  %vm9647_vm1 = vmpackc.low %vm13843_vm2, %vm13839_vm5  ;;  %vm2489_vm5 = vcmp.eq.s32.totalorder %v2388_v13, %v11807_v32 }
 0x1f3   :  { %9648 = vmatpush1.bf16.msk.msra.mxu1 %vm9647_vm1, %v21159_v33  ;;  %4247 = vmatmul.mubr.bf16.gmra.mrb[88].mxu0 %v21290_v61  ;;  %vm13880_vm3 = vmand %vm2488_vm9, %vm2730_vm11 }
 0x1f4   :  { %4533 = vmatprep.subr.bf16.mxu1 %v21290_v61  ;;  %4254 = vmatprep.mubr.bf16.mxu0 %v21290_v61  ;;  %vm13888_vm2 = vmand %vm2492_vm8, %vm2731_vm4  ;;  %vm2486_vm8 = vcmp.eq.s32.totalorder %v2388_v13, %v11797_v28  ;;  %v13915_v13 = vadd.s32 256, %v12297_v19 }
 0x1f5   :  { %v21420_v30 = vsel %vm13888_vm2, 4294967295, %v21419_v30  ;;  %vm2777_vm7 = vmand %vm2489_vm5, %vm2730_vm11  ;;  %vm2491_vm2 = vcmp.eq.s32.totalorder %v2391_v46, %v11786_v21 }
 0x1f6   :  { %vm2781_vm10 = vmand %vm2493_vm6, %vm2731_vm4  ;;  %21424 = vst [vmem:[#allocation165_spill] sm:$0xff] %v13915_v13 }
 0x1f7   :  { %vm2905_vm12 = vmand %vm2777_vm7, %vm21255_vm0  ;;  %vm2490_vm7 = vcmp.eq.s32.totalorder %v2391_v46, %v11797_v28  ;;  %v2394_v46 = vpop.permute.xlu0 %2393 }
 0x1f8   :  { %vm2909_vm1 = vmand %vm2781_vm10, %vm21255_vm0 }
 0x1f9   :  { %vm9541_vm9 = vmpackc.low %vm2909_vm1, %vm2905_vm12 }
 0x1fa   :  { %9542 = vmatprep.mubr.msk.bf16.mxu1 %vm9541_vm9, %v21159_v33  ;;  %vm2775_vm5 = vmand %vm2487_vm13, %vm2730_vm11  ;;  %vm3036_vm9 = vcmp.gt.s32.totalorder %v13639_v7, %v13915_v13 }
 0x1fb   :  { %vm13908_vm6 = vmand %vm2486_vm8, %vm2730_vm11  ;;  %4255 = vmatmul.mubr.bf16.gmra.mrb[92].mxu0 %v21290_v61  ;;  %vm21427_vm8 = vnez %v21420_v30  ;;  %v2650_v16 = vpop.permute.xlu0 %2649  ;;  %v2653_v30 = vpop.permute.xlu1 %2652 }
 0x1fc   :  { %vm2779_vm10 = vmand %vm2491_vm2, %vm2731_vm4  ;;  %4262 = vmatprep.mubr.bf16.mxu0 %v21290_v61  ;;  %vm3032_vm2 = vcmp.gt.s32.totalorder %v13639_v7, %v13905_v14 }
 0x1fd   :  { %vm13919_vm12 = vmand %vm2490_vm7, %vm2731_vm4  ;;  %vm3608_vm7 = vcmp.gt.s32.totalorder %v13905_v14, %v13639_v7  ;;  %v6868_v14 = vld [vmem:[%s20515_s2 + $0x138] sm:$0xff] }
 0x1fe   :  { %vm2903_vm13 = vmand %vm2775_vm5, %vm11822_vm15 }
 0x1ff   :  { %vm2907_vm11 = vmand %vm2779_vm10, %vm11822_vm15 }
 0x200   :  { %vm9589_vm1 = vmpackc.low %vm2907_vm11, %vm2903_vm13  ;;  %vm3612_vm13 = vcmp.gt.s32.totalorder %v13915_v13, %v13639_v7  ;;  %v6863_v13 = vld [vmem:[%s20515_s2 + $0x110] sm:$0xff] }
 0x201   :  { %9590 = vmatprep.subr.msk.bf16.mxu0 %vm9589_vm1, %v21159_v33  ;;  %vm2904_vm4 = vmand %vm13880_vm3, %vm21395_vm14  ;;  %6905 = vperm.xlu0 %11339, %v6863_v13   ;;  %v6866_v13 = vld [vmem:[%s20515_s2 + $0x128] sm:$0xff] }
 0x202   :  { %vm2908_vm5 = vmand %vm21427_vm8, %vm21395_vm14  ;;  %vm21430_vm14 = vnez %v21153_v4  ;;  %6920 = vperm.xlu1 %11340, %v6866_v13   ;;  %v6869_v13 = vld [vmem:[%s20515_s2 + $0x140] sm:$0xff] }
 0x203   :  { %vm3160_vm10 = vmand %vm2904_vm4, %vm3032_vm2  ;;  %4263 = vmatmul.mubr.bf16.gmra.mrb[96].mxu0 %v21290_v61 }
 0x204   :  { %vm3164_vm11 = vmand %vm2908_vm5, %vm3036_vm9  ;;  %4270 = vmatprep.mubr.bf16.mxu0 %v21290_v61 }
 0x205   :  { %vm13945_vm1 = vmand %vm2904_vm4, %vm3608_vm7  ;;  %vm2496_vm7 = vcmp.eq.s32.totalorder %v2394_v46, %v11941_v60  ;;  %6915 = vperm.xlu0 %11339, %v6865_v15   ;;  %v14005_v15 = vadd.s32 256, %v12410_v54 }
 0x206   :  { %vm3740_vm3 = vmand %vm2908_vm5, %vm3612_vm13  ;;  %vm2500_vm13 = vcmp.eq.s32.totalorder %v2397_v27, %v11941_v60  ;;  %6930 = vperm.xlu1 %11340, %v6868_v14   ;;  %v14099_v14 = vadd.s32 256, %v12511_v41 }
 0x207   :  { %vm9543_vm8 = vmpackc.low %vm3164_vm11, %vm3160_vm10  ;;  %vm2497_vm11 = vcmp.eq.s32.totalorder %v2394_v46, %v11807_v32  ;;  %21435 = vst [vmem:[#allocation166_spill] sm:$0xff] %v14005_v15 }
 0x208   :  { %9544 = vmatmul.mubr.msk.bf16.gmra.mrb[72].mxu1 %vm9543_vm8, %v21159_v33  ;;  %vm2902_vm2 = vmand %vm13908_vm6, %vm21430_vm14  ;;  %vm2732_vm6 = vcmp.eq.s32.totalorder %v2650_v16, 1  ;;  %v2403_v16 = vpop.permute.xlu1 %2402  ;;  %21447 = vst [vmem:[#allocation168_spill] sm:$0xff] %v14099_v14 }
 0x209   :  { %vm2906_vm4 = vmand %vm13919_vm12, %vm21430_vm14  ;;  %vm2733_vm12 = vcmp.eq.s32.totalorder %v2653_v30, 1  ;;  %vm2499_vm14 = vcmp.eq.s32.totalorder %v2397_v27, %v11786_v21  ;;  %6925 = vperm.xlu0 %11339, %v6867_v3   ;;  %v6871_v3 = vld [vmem:[%s20515_s2 + $0x150] sm:$0xff] }
 0x20a   :  { %vm9591_vm9 = vmpackc.low %vm2906_vm4, %vm2902_vm2 }
 0x20b   :  { %9592 = vmatpush1.bf16.msk.msra.mxu0 %vm9591_vm9, %v21159_v33  ;;  %vm9649_vm5 = vmpackc.low %vm3740_vm3, %vm13945_vm1  ;;  %vm2501_vm3 = vcmp.eq.s32.totalorder %v2397_v27, %v11807_v32 }
 0x20c   :  { %9650 = vmatpush1.bf16.msk.msra.mxu1 %vm9649_vm5, %v21159_v33  ;;  %4271 = vmatmul.mubr.bf16.gmra.mrb[100].mxu0 %v21290_v61  ;;  %vm13980_vm10 = vmand %vm2496_vm7, %vm2732_vm6  ;;  %vm2495_vm7 = vcmp.eq.s32.totalorder %v2394_v46, %v11786_v21  ;;  %v2659_v6 = vpop.permute.xlu1 %2658 }
 0x20d   :  { %4535 = vmatprep.subr.bf16.mxu1 %v21290_v61  ;;  %4278 = vmatprep.mubr.bf16.mxu0 %v21290_v61  ;;  %vm13988_vm1 = vmand %vm2500_vm13, %vm2733_vm12  ;;  %vm2494_vm13 = vcmp.eq.s32.totalorder %v2394_v46, %v11797_v28  ;;  %v14015_v46 = vadd.s32 256, %v12414_v12 }
 0x20e   :  { %vm2785_vm8 = vmand %vm2497_vm11, %vm2732_vm6  ;;  %6935 = vperm.xlu0 %11339, %v6869_v13   ;;  %v6872_v13 = vld [vmem:[%s20515_s2 + $0x158] sm:$0xff] }
 0x20f   :  { %vm2789_vm2 = vmand %vm2501_vm3, %vm2733_vm12  ;;  %21438 = vst [vmem:[#allocation167_spill] sm:$0xff] %v14015_v46 }
 0x210   :  { %vm2913_vm4 = vmand %vm2785_vm8, %vm21255_vm0  ;;  %vm2498_vm8 = vcmp.eq.s32.totalorder %v2397_v27, %v11797_v28  ;;  %v2400_v27 = vpop.permute.xlu0 %2399 }
 0x211   :  { %vm2917_vm9 = vmand %vm2789_vm2, %vm21255_vm0 }
 0x212   :  { %vm9545_vm5 = vmpackc.low %vm2917_vm9, %vm2913_vm4  ;;  %6945 = vperm.xlu0 %11339, %v6871_v3   ;;  %v6875_v3 = vld [vmem:[%s20515_s2 + $0x170] sm:$0xff] }
 0x213   :  { %9546 = vmatprep.mubr.msk.bf16.mxu1 %vm9545_vm5, %v21159_v33  ;;  %vm2783_vm11 = vmand %vm2495_vm7, %vm2732_vm6  ;;  %vm21441_vm7 = vnez %v21158_v31 }
 0x214   :  { %vm14008_vm3 = vmand %vm2494_vm13, %vm2732_vm6  ;;  %4279 = vmatmul.mubr.bf16.gmra.mrb[104].mxu0 %v21290_v61  ;;  %vm3044_vm13 = vcmp.gt.s32.totalorder %v13639_v7, %v14015_v46  ;;  %v2656_v30 = vpop.permute.xlu0 %2655 }
 0x215   :  { %vm2787_vm2 = vmand %vm2499_vm14, %vm2733_vm12  ;;  %4286 = vmatprep.mubr.bf16.mxu0 %v21290_v61  ;;  %vm3040_vm14 = vcmp.gt.s32.totalorder %v13639_v7, %v14005_v15 }
 0x216   :  { %vm14019_vm4 = vmand %vm2498_vm8, %vm2733_vm12  ;;  %vm3616_vm8 = vcmp.gt.s32.totalorder %v14005_v15, %v13639_v7  ;;  %v6870_v15 = vld [vmem:[%s20515_s2 + $0x148] sm:$0xff] }
 0x217   :  { %vm2911_vm6 = vmand %vm2783_vm11, %vm11822_vm15  ;;  %6940 = vperm.xlu1 %11340, %v6870_v15   ;;  %v14109_v15 = vadd.s32 256, %v12516_v9 }
 0x218   :  { %vm2915_vm9 = vmand %vm2787_vm2, %vm11822_vm15 }
 0x219   :  { %vm9593_vm5 = vmpackc.low %vm2915_vm9, %vm2911_vm6  ;;  %vm3620_vm6 = vcmp.gt.s32.totalorder %v14015_v46, %v13639_v7  ;;  %21450 = vst [vmem:[#allocation169_spill] sm:$0xff] %v14109_v15 }
 0x21a   :  { %9594 = vmatprep.subr.msk.bf16.mxu0 %vm9593_vm5, %v21159_v33  ;;  %vm2912_vm12 = vmand %vm13980_vm10, %vm21441_vm7 }
 0x21b   :  { %vm2916_vm11 = vmand %vm13988_vm1, %vm21441_vm7  ;;  %vm21442_vm1 = vnez %v21153_v4  ;;  %6950 = vperm.xlu1 %11340, %v6872_v13   ;;  %v14193_v13 = vadd.s32 256, %v12629_v58 }
 0x21c   :  { %vm3168_vm2 = vmand %vm2912_vm12, %vm3040_vm14  ;;  %4287 = vmatmul.mubr.bf16.gmra.mrb[108].mxu0 %v21290_v61 }
 0x21d   :  { %vm3172_vm9 = vmand %vm2916_vm11, %vm3044_vm13  ;;  %4294 = vmatprep.mubr.bf16.mxu0 %v21290_v61  ;;  %21460 = vst [vmem:[#allocation170_spill] sm:$0xff] %v14193_v13 }
 0x21e   :  { %vm3744_vm5 = vmand %vm2912_vm12, %vm3616_vm8  ;;  %vm2505_vm8 = vcmp.eq.s32.totalorder %v2400_v27, %v11807_v32 }
 0x21f   :  { %vm3748_vm10 = vmand %vm2916_vm11, %vm3620_vm6  ;;  %vm2734_vm11 = vcmp.eq.s32.totalorder %v2656_v30, 1  ;;  %vm2509_vm6 = vcmp.eq.s32.totalorder %v2403_v16, %v11807_v32  ;;  %v2409_v30 = vpop.permute.xlu1 %2408 }
 0x220   :  { %vm9547_vm15 = vmpackc.low %vm3172_vm9, %vm3168_vm2 }
 0x221   :  { %9548 = vmatmul.mubr.msk.bf16.gmra.mrb[76].mxu1 %vm9547_vm15, %v21159_v33  ;;  %vm2910_vm7 = vmand %vm14008_vm3, %vm21442_vm1  ;;  %vm2735_vm15 = vcmp.eq.s32.totalorder %v2659_v6, 1  ;;  %vm2504_vm3 = vcmp.eq.s32.totalorder %v2400_v27, %v11941_v60 }
 0x222   :  { %vm2914_vm14 = vmand %vm14019_vm4, %vm21442_vm1 }
 0x223   :  { %vm9595_vm12 = vmpackc.low %vm2914_vm14, %vm2910_vm7  ;;  %vm2508_vm7 = vcmp.eq.s32.totalorder %v2403_v16, %v11941_v60  ;;  %v2665_v6 = vpop.permute.xlu1 %2664 }
 0x224   :  { %9596 = vmatpush1.bf16.msk.msra.mxu0 %vm9595_vm12, %v21159_v33  ;;  %vm9651_vm13 = vmpackc.low %vm3748_vm10, %vm3744_vm5 }
 0x225   :  { %9652 = vmatpush1.bf16.msk.msra.mxu1 %vm9651_vm13, %v21159_v33  ;;  %4295 = vmatmul.mubr.bf16.gmra.mrb[112].mxu0 %v21290_v61  ;;  %vm14071_vm4 = vmand %vm2504_vm3, %vm2734_vm11  ;;  %vm2503_vm13 = vcmp.eq.s32.totalorder %v2400_v27, %v11786_v21  ;;  %vm2502_vm3 = vcmp.eq.s32.totalorder %v2400_v27, %v11797_v28  ;;  %v6873_v27 = vld [vmem:[%s20515_s2 + $0x160] sm:$0xff] }
 0x226   :  { %4537 = vmatprep.subr.bf16.mxu1 %v21290_v61  ;;  %4302 = vmatprep.mubr.bf16.mxu0 %v21290_v61  ;;  %vm14079_vm2 = vmand %vm2508_vm7, %vm2735_vm15  ;;  %vm2507_vm7 = vcmp.eq.s32.totalorder %v2403_v16, %v11786_v21 }
 0x227   :  { %vm2793_vm9 = vmand %vm2505_vm8, %vm2734_vm11  ;;  %6955 = vperm.xlu0 %11339, %v6873_v27   ;;  %v10401_v27 = vpop.f32.mrb[0].mxu0 }
 0x228   :  { %vm2797_vm5 = vmand %vm2509_vm6, %vm2735_vm15 }
 0x229   :  { %vm2921_vm10 = vmand %vm2793_vm9, %vm21255_vm0  ;;  %vm2506_vm9 = vcmp.eq.s32.totalorder %v2403_v16, %v11797_v28  ;;  %v2406_v16 = vpop.permute.xlu0 %2405 }
 0x22a   :  { %vm2925_vm14 = vmand %vm2797_vm5, %vm21255_vm0 }
 0x22b   :  { %vm9549_vm12 = vmpackc.low %vm2925_vm14, %vm2921_vm10  ;;  %vm21453_vm14 = vnez %v21138_v40  ;;  %6965 = vperm.xlu0 %11339, %v6875_v3   ;;  %v10402_v3 = vpop.f32.mrb[1].mxu0 }
 0x22c   :  { %9550 = vmatprep.mubr.msk.bf16.mxu1 %vm9549_vm12, %v21159_v33  ;;  %vm2791_vm8 = vmand %vm2503_vm13, %vm2734_vm11  ;;  %v10403_v58 = vadd.f32 %v10402_v3, %v10401_v27  ;;  %v10404_v41 = vpop.f32.mrb[2].mxu0 }
 0x22d   :  { %vm14102_vm6 = vmand %vm2502_vm3, %vm2734_vm11  ;;  %4303 = vmatmul.mubr.bf16.gmra.mrb[116].mxu0 %v21290_v61  ;;  %vm3048_vm3 = vcmp.gt.s32.totalorder %v13639_v7, %v14099_v14  ;;  %v2662_v46 = vpop.permute.xlu0 %2661  ;;  %v10405_v54 = vpop.f32.mrb[3].mxu0 }
 0x22e   :  { %vm2795_vm5 = vmand %vm2507_vm7, %vm2735_vm15  ;;  %4310 = vmatprep.mubr.bf16.mxu0 %v21290_v61  ;;  %vm21454_vm7 = vnez %v21158_v31  ;;  %v10406_v17 = vadd.f32 %v10405_v54, %v10404_v41  ;;  %v14301_v41 = vadd.s32 256, %v12735_v36 }
 0x22f   :  { %vm14113_vm10 = vmand %vm2506_vm9, %vm2735_vm15  ;;  %vm3052_vm9 = vcmp.gt.s32.totalorder %v13639_v7, %v14109_v15 }
 0x230   :  { %vm2919_vm11 = vmand %vm2791_vm8, %vm21453_vm14  ;;  %21478 = vst [vmem:[#allocation173_spill] sm:$0xff] %v14301_v41 }
 0x231   :  { %vm2923_vm12 = vmand %vm2795_vm5, %vm21453_vm14  ;;  %vm3624_vm5 = vcmp.gt.s32.totalorder %v14099_v14, %v13639_v7  ;;  %v6874_v14 = vld [vmem:[%s20515_s2 + $0x168] sm:$0xff] }
 0x232   :  { %vm9597_vm13 = vmpackc.low %vm2923_vm12, %vm2919_vm11  ;;  %vm3628_vm12 = vcmp.gt.s32.totalorder %v14109_v15, %v13639_v7  ;;  %6960 = vperm.xlu1 %11340, %v6874_v14   ;;  %v14203_v14 = vadd.s32 256, %v12633_v20 }
 0x233   :  { %9598 = vmatprep.subr.msk.bf16.mxu0 %vm9597_vm13, %v21159_v33  ;;  %vm2920_vm15 = vmand %vm14071_vm4, %vm21454_vm7 }
 0x234   :  { %vm2924_vm8 = vmand %vm14079_vm2, %vm21454_vm7  ;;  %21463 = vst [vmem:[#allocation171_spill] sm:$0xff] %v14203_v14 }
 0x235   :  { %vm3176_vm11 = vmand %vm2920_vm15, %vm3048_vm3  ;;  %4311 = vmatmul.mubr.bf16.gmra.mrb[120].mxu0 %v21290_v61 }
 0x236   :  { %vm3180_vm13 = vmand %vm2924_vm8, %vm3052_vm9  ;;  %4318 = vmatprep.mubr.bf16.mxu0 %v21290_v61 }
 0x237   :  { %vm3752_vm14 = vmand %vm2920_vm15, %vm3624_vm5  ;;  %vm2513_vm5 = vcmp.eq.s32.totalorder %v2406_v16, %v11807_v32 }
 0x238   :  { %vm3756_vm4 = vmand %vm2924_vm8, %vm3628_vm12  ;;  %vm2736_vm8 = vcmp.eq.s32.totalorder %v2662_v46, 1  ;;  %vm2517_vm12 = vcmp.eq.s32.totalorder %v2409_v30, %v11807_v32  ;;  %v2415_v46 = vpop.permute.xlu1 %2414 }
 0x239   :  { %vm9551_vm0 = vmpackc.low %vm3180_vm13, %vm3176_vm11 }
 0x23a   :  { %9552 = vmatmul.mubr.msk.bf16.gmra.mrb[80].mxu1 %vm9551_vm0, %v21159_v33  ;;  %vm2918_vm2 = vmand %vm14102_vm6, %vm21442_vm1  ;;  %vm2737_vm0 = vcmp.eq.s32.totalorder %v2665_v6, 1  ;;  %vm2512_vm6 = vcmp.eq.s32.totalorder %v2406_v16, %v11941_v60 }
 0x23b   :  { %vm2922_vm3 = vmand %vm14113_vm10, %vm21442_vm1 }
 0x23c   :  { %vm9599_vm15 = vmpackc.low %vm2922_vm3, %vm2918_vm2  ;;  %vm21459_vm2 = vnez %v21150_v62  ;;  %v2671_v6 = vpop.permute.xlu1 %2670 }
 0x23d   :  { %9600 = vmatpush1.bf16.msk.msra.mxu0 %vm9599_vm15, %v21159_v33  ;;  %vm9653_vm9 = vmpackc.low %vm3756_vm4, %vm3752_vm14  ;;  %vm2516_vm14 = vcmp.eq.s32.totalorder %v2409_v30, %v11941_v60 }
 0x23e   :  { %9654 = vmatpush1.bf16.msk.msra.mxu1 %vm9653_vm9, %v21159_v33  ;;  %4319 = vmatmul.mubr.bf16.gmra.mrb[124].mxu0 %v21290_v61  ;;  %vm14165_vm10 = vmand %vm2512_vm6, %vm2736_vm8  ;;  %vm2511_vm6 = vcmp.eq.s32.totalorder %v2406_v16, %v11786_v21 }
 0x23f   :  { %4539 = vmatprep.subr.bf16.mxu1 %v21290_v61  ;;  %4520 = vmatprep.mubr.bf16.mxu0 %v21165_v45  ;;  %vm14173_vm11 = vmand %vm2516_vm14, %vm2737_vm0  ;;  %vm2510_vm14 = vcmp.eq.s32.totalorder %v2406_v16, %v11797_v28  ;;  %v10513_v16 = vpop.f32.mrb[0].mxu1 }
 0x240   :  { %vm2801_vm13 = vmand %vm2513_vm5, %vm2736_vm8  ;;  %vm2515_vm5 = vcmp.eq.s32.totalorder %v2409_v30, %v11786_v21  ;;  %v10514_v29 = vpop.f32.mrb[1].mxu1 }
 0x241   :  { %vm2805_vm4 = vmand %vm2517_vm12, %vm2737_vm0  ;;  %v10515_v9 = vadd.f32 %v10514_v29, %v10513_v16  ;;  %v10516_v12 = vpop.f32.mrb[2].mxu1  ;;  %v6883_v16 = vld [vmem:[%s20515_s2 + $0x1b0] sm:$0xff] }
 0x242   :  { %vm2929_vm3 = vmand %vm2801_vm13, %vm21459_vm2  ;;  %vm2514_vm13 = vcmp.eq.s32.totalorder %v2409_v30, %v11797_v28  ;;  %v2412_v30 = vpop.permute.xlu0 %2411  ;;  %v10517_v27 = vpop.f32.mrb[3].mxu1 }
 0x243   :  { %vm2933_vm15 = vmand %vm2805_vm4, %vm21459_vm2  ;;  %vm21467_vm2 = vnez %v21153_v4  ;;  %v14279_v26 = vadd.f32 %v10515_v9, %v10403_v58  ;;  %v10518_v29 = vadd.f32 %v10517_v27, %v10516_v12  ;;  %v14289_v9 = vadd.s32 256, %v12731_v22  ;;  %v2421_v58 = vpop.permute.xlu1 %2420 }
 0x244   :  { %vm9553_vm9 = vmpackc.low %vm2933_vm15, %vm2929_vm3  ;;  %vm21466_vm15 = vnez %v21138_v40 }
 0x245   :  { %9554 = vmatprep.mubr.msk.bf16.mxu1 %vm9553_vm9, %v21159_v33  ;;  %vm2799_vm1 = vmand %vm2511_vm6, %vm2736_vm8  ;;  %21475 = vst [vmem:[#allocation172_spill] sm:$0xff] %v14289_v9  ;;  %v14291_v54 = vadd.f32 %v10518_v29, %v10406_v17  ;;  %v6884_v29 = vld [vmem:[%s20515_s2 + $0x1b8] sm:$0xff] }
 0x246   :  { %vm14196_vm12 = vmand %vm2510_vm14, %vm2736_vm8  ;;  %vm3056_vm14 = vcmp.gt.s32.totalorder %v13639_v7, %v14193_v13  ;;  %v2668_v15 = vpop.permute.xlu0 %2667 }
 0x247   :  { %vm2803_vm4 = vmand %vm2515_vm5, %vm2737_vm0  ;;  %vm3060_vm5 = vcmp.gt.s32.totalorder %v13639_v7, %v14203_v14  ;;  %v2677_v2 = vpop.permute.xlu1 %2676 }
 0x248   :  { %vm14206_vm3 = vmand %vm2514_vm13, %vm2737_vm0  ;;  %vm3632_vm13 = vcmp.gt.s32.totalorder %v14193_v13, %v13639_v7  ;;  %v6877_v13 = vld [vmem:[%s20515_s2 + $0x180] sm:$0xff] }
 0x249   :  { %vm2927_vm9 = vmand %vm2799_vm1, %vm21466_vm15  ;;  %6975 = vperm.xlu0 %11339, %v6877_v13   ;;  %v6879_v13 = vld [vmem:[%s20515_s2 + $0x190] sm:$0xff] }
 0x24a   :  { %vm2931_vm8 = vmand %vm2803_vm4, %vm21466_vm15  ;;  %v2418_v17 = vpop.permute.xlu0 %2417 }
 0x24b   :  { %vm9601_vm6 = vmpackc.low %vm2931_vm8, %vm2927_vm9  ;;  %vm3636_vm9 = vcmp.gt.s32.totalorder %v14203_v14, %v13639_v7  ;;  %v6876_v14 = vld [vmem:[%s20515_s2 + $0x178] sm:$0xff] }
 0x24c   :  { %9602 = vmatprep.subr.msk.bf16.mxu0 %vm9601_vm6, %v21159_v33  ;;  %vm2928_vm0 = vmand %vm14165_vm10, %vm21454_vm7  ;;  %6970 = vperm.xlu1 %11340, %v6876_v14   ;;  %v6878_v14 = vld [vmem:[%s20515_s2 + $0x188] sm:$0xff] }
 0x24d   :  { %vm2932_vm1 = vmand %vm14173_vm11, %vm21454_vm7  ;;  %6985 = vperm.xlu0 %11339, %v6879_v13  }
 0x24e   :  { %vm3184_vm4 = vmand %vm2928_vm0, %vm3056_vm14  ;;  %v2674_v43 = vpop.permute.xlu0 %2673 }
 0x24f   :  { %vm3188_vm8 = vmand %vm2932_vm1, %vm3060_vm5  ;;  %vm2738_vm5 = vcmp.eq.s32.totalorder %v2668_v15, 1  ;;  %v6880_v15 = vld [vmem:[%s20515_s2 + $0x198] sm:$0xff] }
 0x250   :  { %vm3760_vm6 = vmand %vm2928_vm0, %vm3632_vm13  ;;  %6980 = vperm.xlu1 %11340, %v6878_v14  }
 0x251   :  { %vm3764_vm10 = vmand %vm2932_vm1, %vm3636_vm9  ;;  %vm2521_vm1 = vcmp.eq.s32.totalorder %v2412_v30, %v11807_v32 }
 0x252   :  { %vm9555_vm15 = vmpackc.low %vm3188_vm8, %vm3184_vm4  ;;  %vm2525_vm4 = vcmp.eq.s32.totalorder %v2415_v46, %v11807_v32 }
 0x253   :  { %9556 = vmatmul.mubr.msk.bf16.gmra.mrb[84].mxu1 %vm9555_vm15, %v21159_v33  ;;  %vm2926_vm11 = vmand %vm14196_vm12, %vm21467_vm2  ;;  %vm2739_vm15 = vcmp.eq.s32.totalorder %v2671_v6, 1  ;;  %vm2520_vm12 = vcmp.eq.s32.totalorder %v2412_v30, %v11941_v60  ;;  %v6881_v6 = vld [vmem:[%s20515_s2 + $0x1a0] sm:$0xff] }
 0x254   :  { %vm2930_vm14 = vmand %vm14206_vm3, %vm21467_vm2  ;;  %vm2524_vm3 = vcmp.eq.s32.totalorder %v2415_v46, %v11941_v60  ;;  %6990 = vperm.xlu1 %11340, %v6880_v15   ;;  %v6882_v15 = vld [vmem:[%s20515_s2 + $0x1a8] sm:$0xff]  ;;  %6995 = vperm.xlu0 %11339, %v6881_v6   ;;  %v14387_v6 = vadd.s32 256, %v12831_v56 }
 0x255   :  { %vm9603_vm7 = vmpackc.low %vm2930_vm14, %vm2926_vm11 }
 0x256   :  { %9604 = vmatpush1.bf16.msk.msra.mxu0 %vm9603_vm7, %v21159_v33  ;;  %vm9655_vm0 = vmpackc.low %vm3764_vm10, %vm3760_vm6  ;;  %vm21474_vm6 = vnez %v21150_v62  ;;  %21490 = vst [vmem:[#allocation174_spill] sm:$0xff] %v14387_v6 }
 0x257   :  { %9656 = vmatpush1.bf16.msk.msra.mxu1 %vm9655_vm0, %v21159_v33  ;;  %vm14254_vm7 = vmand %vm2520_vm12, %vm2738_vm5  ;;  %vm2519_vm0 = vcmp.eq.s32.totalorder %v2412_v30, %v11786_v21  ;;  %vm2518_vm12 = vcmp.eq.s32.totalorder %v2412_v30, %v11797_v28  ;;  %v10407_v30 = vpop.f32.mrb[4].mxu0 }
 0x258   :  { %4541 = vmatprep.subr.bf16.mxu1 %v21290_v61  ;;  %vm14261_vm13 = vmand %vm2524_vm3, %vm2739_vm15  ;;  %vm2523_vm3 = vcmp.eq.s32.totalorder %v2415_v46, %v11786_v21  ;;  %v10408_v3 = vpop.f32.mrb[5].mxu0  ;;  %7000 = vperm.xlu1 %11340, %v6882_v15  }
 0x259   :  { %vm14267_vm9 = vmand %vm2521_vm1, %vm2738_vm5  ;;  %v10409_v12 = vadd.f32 %v10408_v3, %v10407_v30  ;;  %v10410_v13 = vpop.f32.mrb[6].mxu0  ;;  %7005 = vperm.xlu0 %11339, %v6883_v16   ;;  %v6886_v3 = vld [vmem:[%s20515_s2 + $0x1c8] sm:$0xff] }
 0x25a   :  { %vm2813_vm8 = vmand %vm2525_vm4, %vm2739_vm15 }
 0x25b   :  { %vm2937_vm10 = vmand %vm14267_vm9, %vm21474_vm6  ;;  %vm2522_vm9 = vcmp.eq.s32.totalorder %v2415_v46, %v11797_v28  ;;  %v10519_v46 = vpop.f32.mrb[4].mxu1 }
 0x25c   :  { %vm2941_vm11 = vmand %vm2813_vm8, %vm21474_vm6  ;;  %v10520_v14 = vpop.f32.mrb[5].mxu1  ;;  %7010 = vperm.xlu1 %11340, %v6884_v29  }
 0x25d   :  { %vm9557_vm14 = vmpackc.low %vm2941_vm11, %vm2937_vm10  ;;  %vm21481_vm11 = vnez %v21138_v40  ;;  %v10521_v20 = vadd.f32 %v10520_v14, %v10519_v46 }
 0x25e   :  { %9558 = vmatprep.mubr.msk.bf16.mxu1 %vm9557_vm14, %v21159_v33  ;;  %vm2807_vm1 = vmand %vm2519_vm0, %vm2738_vm5 }
 0x25f   :  { %vm14294_vm4 = vmand %vm2518_vm12, %vm2738_vm5  ;;  %vm3064_vm12 = vcmp.gt.s32.totalorder %v13639_v7, %v14289_v9  ;;  %v14377_v36 = vadd.f32 %v10521_v20, %v10409_v12  ;;  %v6885_v12 = vld [vmem:[%s20515_s2 + $0x1c0] sm:$0xff] }
 0x260   :  { %vm2811_vm8 = vmand %vm2523_vm3, %vm2739_vm15  ;;  %vm21482_vm3 = vnez %v21158_v31  ;;  %7015 = vperm.xlu0 %11339, %v6885_v12   ;;  %7020 = vperm.xlu1 %11340, %v6886_v3   ;;  %v6889_v3 = vld [vmem:[%s20515_s2 + $0x1e0] sm:$0xff] }
 0x261   :  { %vm14304_vm10 = vmand %vm2522_vm9, %vm2739_vm15  ;;  %vm3068_vm9 = vcmp.gt.s32.totalorder %v13639_v7, %v14301_v41 }
 0x262   :  { %vm2935_vm14 = vmand %vm2807_vm1, %vm21481_vm11 }
 0x263   :  { %vm2939_vm5 = vmand %vm2811_vm8, %vm21481_vm11  ;;  %vm3640_vm8 = vcmp.gt.s32.totalorder %v14289_v9, %v13639_v7  ;;  %v10411_v9 = vpop.f32.mrb[7].mxu0 }
 0x264   :  { %vm9605_vm0 = vmpackc.low %vm2939_vm5, %vm2935_vm14  ;;  %vm3644_vm5 = vcmp.gt.s32.totalorder %v14301_v41, %v13639_v7  ;;  %v10522_v41 = vpop.f32.mrb[6].mxu1  ;;  %v10412_v22 = vadd.f32 %v10411_v9, %v10410_v13  ;;  %v10413_v14 = vpop.f32.mrb[8].mxu0 }
 0x265   :  { %9606 = vmatprep.subr.msk.bf16.mxu0 %vm9605_vm0, %v21159_v33  ;;  %vm2936_vm15 = vmand %vm14254_vm7, %vm21482_vm3  ;;  %v10523_v30 = vpop.f32.mrb[7].mxu1  ;;  %v10414_v20 = vpop.f32.mrb[9].mxu0 }
 0x266   :  { %vm2940_vm1 = vmand %vm14261_vm13, %vm21482_vm3  ;;  %v10524_v46 = vadd.f32 %v10523_v30, %v10522_v41  ;;  %v10525_v27 = vpop.f32.mrb[8].mxu1  ;;  %v10415_v30 = vadd.f32 %v10414_v20, %v10413_v14  ;;  %v10416_v41 = vpop.f32.mrb[10].mxu0  ;;  %v6890_v20 = vld [vmem:[%s20515_s2 + $0x1e8] sm:$0xff] }
 0x267   :  { %vm3192_vm14 = vmand %vm2936_vm15, %vm3064_vm12  ;;  %v10526_v13 = vpop.f32.mrb[9].mxu1 }
 0x268   :  { %vm3196_vm0 = vmand %vm2940_vm1, %vm3068_vm9  ;;  %vm2740_vm9 = vcmp.eq.s32.totalorder %v2674_v43, 1  ;;  %v14389_v9 = vadd.f32 %v10524_v46, %v10412_v22  ;;  %v14427_v22 = vpop.permute.xlu0 %2423  ;;  %v10527_v46 = vadd.f32 %v10526_v13, %v10525_v27  ;;  %v10528_v14 = vpop.f32.mrb[10].mxu1  ;;  %v14499_v13 = vadd.s32 384, %v11925_v49 }
 0x269   :  { %vm3768_vm11 = vmand %vm2936_vm15, %vm3640_vm8  ;;  %vm2533_vm8 = vcmp.eq.s32.totalorder %v2421_v58, %v11807_v32  ;;  %v10417_v27 = vpop.f32.mrb[11].mxu0  ;;  %v10529_v12 = vpop.f32.mrb[11].mxu1 }
 0x26a   :  { %vm3772_vm7 = vmand %vm2940_vm1, %vm3644_vm5  ;;  %21506 = vst [vmem:[#allocation176_spill] sm:$0xff] %v14499_v13  ;;  %v10530_v56 = vadd.f32 %v10529_v12, %v10528_v14 }
 0x26b   :  { %vm9559_vm6 = vmpackc.low %vm3196_vm0, %vm3192_vm14  ;;  %vm21489_vm0 = vnez %v21150_v62 }
 0x26c   :  { %9560 = vmatmul.mubr.msk.bf16.gmra.mrb[88].mxu1 %vm9559_vm6, %v21159_v33  ;;  %vm2934_vm13 = vmand %vm14294_vm4, %vm21467_vm2  ;;  %vm2741_vm6 = vcmp.eq.s32.totalorder %v2677_v2, 1  ;;  %vm2528_vm4 = vcmp.eq.s32.totalorder %v2418_v17, %v11941_v60  ;;  %v14440_v43 = vpop.permute.xlu0 %2679 }
 0x26d   :  { %vm2938_vm12 = vmand %vm14304_vm10, %vm21467_vm2 }
 0x26e   :  { %vm9607_vm3 = vmpackc.low %vm2938_vm12, %vm2934_vm13 }
 0x26f   :  { %9608 = vmatpush1.bf16.msk.msra.mxu0 %vm9607_vm3, %v21159_v33  ;;  %vm9657_vm15 = vmpackc.low %vm3772_vm7, %vm3768_vm11  ;;  %vm2532_vm11 = vcmp.eq.s32.totalorder %v2421_v58, %v11941_v60  ;;  %vm2529_vm3 = vcmp.eq.s32.totalorder %v2418_v17, %v11807_v32 }
 0x270   :  { %9658 = vmatpush1.bf16.msk.msra.mxu1 %vm9657_vm15, %v21159_v33  ;;  %vm14352_vm10 = vmand %vm2528_vm4, %vm2740_vm9  ;;  %vm2527_vm15 = vcmp.eq.s32.totalorder %v2418_v17, %v11786_v21  ;;  %vm2526_vm4 = vcmp.eq.s32.totalorder %v2418_v17, %v11797_v28  ;;  %v14399_v17 = vadd.s32 256, %v12835_v44  ;;  %v14509_v44 = vadd.s32 256, %v12937_v34 }
 0x271   :  { %4543 = vmatprep.subr.bf16.mxu1 %v21290_v61  ;;  %vm14359_vm1 = vmand %vm2532_vm11, %vm2741_vm6  ;;  %vm2531_vm11 = vcmp.eq.s32.totalorder %v2421_v58, %v11786_v21 }
 0x272   :  { %vm14365_vm14 = vmand %vm2529_vm3, %vm2740_vm9  ;;  %21493 = vst [vmem:[#allocation175_spill] sm:$0xff] %v14399_v17 }
 0x273   :  { %vm2821_vm5 = vmand %vm2533_vm8, %vm2741_vm6  ;;  %21508 = vst [vmem:[#allocation178_spill] sm:$0xff] %v14509_v44 }
 0x274   :  { %vm2945_vm7 = vmand %vm14365_vm14, %vm21489_vm0  ;;  %vm2530_vm14 = vcmp.eq.s32.totalorder %v2421_v58, %v11797_v28  ;;  %v14429_v58 = vpop.permute.xlu1 %2426 }
 0x275   :  { %vm2949_vm13 = vmand %vm2821_vm5, %vm21489_vm0 }
 0x276   :  { %vm9561_vm12 = vmpackc.low %vm2949_vm13, %vm2945_vm7  ;;  %vm21496_vm13 = vnez %v21138_v40 }
 0x277   :  { %9562 = vmatprep.mubr.msk.bf16.mxu1 %vm9561_vm12, %v21159_v33  ;;  %vm2815_vm3 = vmand %vm2527_vm15, %vm2740_vm9 }
 0x278   :  { %vm14392_vm8 = vmand %vm2526_vm4, %vm2740_vm9  ;;  %vm3072_vm4 = vcmp.gt.s32.totalorder %v13639_v7, %v14387_v6  ;;  %v14443_v2 = vpop.permute.xlu1 %2682 }
 0x279   :  { %vm2819_vm5 = vmand %vm2531_vm11, %vm2741_vm6  ;;  %vm21497_vm11 = vnez %v21158_v31 }
 0x27a   :  { %vm14402_vm7 = vmand %vm2530_vm14, %vm2741_vm6  ;;  %vm3076_vm14 = vcmp.gt.s32.totalorder %v13639_v7, %v14399_v17 }
 0x27b   :  { %vm2943_vm12 = vmand %vm2815_vm3, %vm21496_vm13 }
 0x27c   :  { %vm2947_vm9 = vmand %vm2819_vm5, %vm21496_vm13  ;;  %vm3648_vm5 = vcmp.gt.s32.totalorder %v14387_v6, %v13639_v7  ;;  %v14504_v6 = vadd.f32 %v10527_v46, %v10415_v30 }
 0x27d   :  { %vm9609_vm15 = vmpackc.low %vm2947_vm9, %vm2943_vm12  ;;  %vm3652_vm9 = vcmp.gt.s32.totalorder %v14399_v17, %v13639_v7  ;;  %v14502_v17 = vadd.s32 256, %v12929_v8  ;;  %v10418_v7 = vadd.f32 %v10417_v27, %v10416_v41 }
 0x27e   :  { %9610 = vmatprep.subr.msk.bf16.mxu0 %vm9609_vm15, %v21159_v33  ;;  %vm2944_vm6 = vmand %vm14352_vm10, %vm21497_vm11 }
 0x27f   :  { %vm2948_vm3 = vmand %vm14359_vm1, %vm21497_vm11  ;;  %21507 = vst [vmem:[#allocation177_spill] sm:$0xff] %v14502_v17  ;;  %v14515_v8 = vadd.f32 %v10530_v56, %v10418_v7  ;;  %v14547_v56 = vpop.permute.xlu0 %2429  ;;  %v14556_v7 = vpop.permute.xlu1 %2432 }
 0x280   :  { %vm3200_vm12 = vmand %vm2944_vm6, %vm3072_vm4 }
 0x281   :  { %vm3204_vm15 = vmand %vm2948_vm3, %vm3076_vm14  ;;  %vm2541_vm14 = vcmp.eq.s32.totalorder %v14429_v58, %v11807_v32 }
 0x282   :  { %vm3776_vm10 = vmand %vm2944_vm6, %vm3648_vm5  ;;  %vm2538_vm5 = vcmp.eq.s32.totalorder %v14429_v58, %v11797_v28 }
 0x283   :  { %vm3780_vm0 = vmand %vm2948_vm3, %vm3652_vm9  ;;  %vm2535_vm9 = vcmp.eq.s32.totalorder %v14427_v22, %v11786_v21  ;;  %v14578_v15 = vpop.permute.xlu0 %2685  ;;  %v14580_v30 = vpop.permute.xlu1 %2688 }
 0x284   :  { %vm9563_vm13 = vmpackc.low %vm3204_vm15, %vm3200_vm12  ;;  %vm2539_vm15 = vcmp.eq.s32.totalorder %v14429_v58, %v11786_v21 }
 0x285   :  { %9564 = vmatmul.mubr.msk.bf16.gmra.mrb[92].mxu1 %vm9563_vm13, %v21159_v33  ;;  %vm2942_vm1 = vmand %vm14392_vm8, %vm21467_vm2  ;;  %vm20898_vm8 = vcmp.eq.s32.totalorder %v14440_v43, 1  ;;  %vm20897_vm13 = vcmp.eq.s32.totalorder %v14443_v2, 1 }
 0x286   :  { %vm2946_vm4 = vmand %vm14402_vm7, %vm21467_vm2  ;;  %vm2534_vm7 = vcmp.eq.s32.totalorder %v14427_v22, %v11797_v28 }
 0x287   :  { %vm9611_vm11 = vmpackc.low %vm2946_vm4, %vm2942_vm1 }
 0x288   :  { %9612 = vmatpush1.bf16.msk.msra.mxu0 %vm9611_vm11, %v21159_v33  ;;  %vm9659_vm6 = vmpackc.low %vm3780_vm0, %vm3776_vm10  ;;  %vm2537_vm0 = vcmp.eq.s32.totalorder %v14427_v22, %v11807_v32 }
 0x289   :  { %9660 = vmatpush1.bf16.msk.msra.mxu1 %vm9659_vm6, %v21159_v33  ;;  %vm14463_vm11 = vmand %vm2537_vm0, %vm20898_vm8  ;;  %vm21509_vm6 = vnez %v21138_v40 }
 0x28a   :  { %vm14474_vm3 = vmand %vm2534_vm7, %vm20898_vm8 }
 0x28b   :  { %vm14482_vm12 = vmand %vm2541_vm14, %vm20897_vm13 }
 0x28c   :  { %vm14492_vm10 = vmand %vm2538_vm5, %vm20897_vm13  ;;  %vm3081_vm5 = vcmp.gt.s32.totalorder %v14499_v13, %v14502_v17 }
 0x28d   :  { %vm2823_vm1 = vmand %vm2535_vm9, %vm20898_vm8  ;;  %vm21510_vm9 = vnez %v21150_v62  ;;  %vm3657_vm8 = vcmp.gt.s32.totalorder %v14502_v17, %v14499_v13  ;;  %v14647_v17 = vadd.s32 256, %v13033_v35  ;;  %v21652_v62 = vld [vmem:[#allocation48_spill] sm:$0xff] }
 0x28e   :  { %vm2827_vm4 = vmand %vm2539_vm15, %vm20897_vm13  ;;  %vm3085_vm13 = vcmp.gt.s32.totalorder %v14499_v13, %v14509_v44 }
 0x28f   :  { %vm2951_vm0 = vmand %vm2823_vm1, %vm21509_vm6  ;;  %21523 = vst [vmem:[#allocation180_spill] sm:$0xff] %v14647_v17 }
 0x290   :  { %vm2955_vm7 = vmand %vm2827_vm4, %vm21509_vm6 }
 0x291   :  { %vm9613_vm14 = vmpackc.low %vm2955_vm7, %vm2951_vm0 }
 0x292   :  { %9614 = vmatprep.subr.msk.bf16.mxu0 %vm9613_vm14, %v21159_v33  ;;  %vm2953_vm15 = vmand %vm14463_vm11, %vm21510_vm9 }
 0x293   :  { %vm2957_vm1 = vmand %vm14482_vm12, %vm21510_vm9  ;;  %vm21513_vm12 = vnez %v21158_v31 }
 0x294   :  { %vm3209_vm4 = vmand %vm2953_vm15, %vm3081_vm5 }
 0x295   :  { %vm3213_vm0 = vmand %vm2957_vm1, %vm3085_vm13  ;;  %vm3661_vm13 = vcmp.gt.s32.totalorder %v14509_v44, %v14499_v13 }
 0x296   :  { %vm9565_vm7 = vmpackc.low %vm3213_vm0, %vm3209_vm4  ;;  %vm2536_vm0 = vcmp.eq.s32.totalorder %v14427_v22, %v11941_v60  ;;  %v6887_v22 = vld [vmem:[%s20515_s2 + $0x1d0] sm:$0xff] }
 0x297   :  { %9566 = vmatprep.mubr.msk.bf16.mxu1 %vm9565_vm7, %v21159_v33  ;;  %vm2950_vm14 = vmand %vm14474_vm3, %vm21467_vm2  ;;  %7025 = vperm.xlu0 %11339, %v6887_v22  }
 0x298   :  { %vm2954_vm5 = vmand %vm14492_vm10, %vm21467_vm2  ;;  %4424 = vmatmul.mubr.bf16.gmra.mrb[96].mxu1 %v21290_v61 }
 0x299   :  { %vm9615_vm4 = vmpackc.low %vm2954_vm5, %vm2950_vm14  ;;  %vm21511_vm14 = vcmp.eq.s32.totalorder %v14440_v43, 1  ;;  %v10531_v43 = vpop.f32.mrb[12].mxu1 }
 0x29a   :  { %9616 = vmatpush1.bf16.msk.msra.mxu0 %vm9615_vm4, %v21159_v33  ;;  %vm3785_vm3 = vmand %vm2953_vm15, %vm3657_vm8  ;;  %vm2540_vm4 = vcmp.eq.s32.totalorder %v14429_v58, %v11941_v60  ;;  %vm21512_vm8 = vcmp.eq.s32.totalorder %v14443_v2, 1  ;;  %v10419_v58 = vpop.f32.mrb[12].mxu0  ;;  %v6888_v2 = vld [vmem:[%s20515_s2 + $0x1d8] sm:$0xff]  ;;  %v10532_v41 = vpop.f32.mrb[13].mxu1 }
 0x29b   :  { %vm3789_vm10 = vmand %vm2957_vm1, %vm3661_vm13  ;;  %vm20905_vm1 = vcmp.eq.s32.totalorder %v14578_v15, 1  ;;  %7030 = vperm.xlu1 %11340, %v6888_v2   ;;  %v10420_v46 = vpop.f32.mrb[13].mxu0  ;;  %v10533_v14 = vadd.f32 %v10532_v41, %v10531_v43  ;;  %7035 = vperm.xlu0 %11339, %v6889_v3   ;;  %v14776_v2 = vadd.s32 256, %v13122_v24 }
 0x29c   :  { %vm9661_vm7 = vmpackc.low %vm3789_vm10, %vm3785_vm3  ;;  %vm20906_vm10 = vcmp.eq.s32.totalorder %v14580_v30, 1  ;;  %v10421_v29 = vadd.f32 %v10420_v46, %v10419_v58  ;;  %v10422_v27 = vpop.f32.mrb[14].mxu0  ;;  %v10534_v58 = vpop.f32.mrb[14].mxu1  ;;  %v14640_v46 = vadd.s32 256, %v13028_v5 }
 0x29d   :  { %vm2824_vm5 = vmand %vm2536_vm0, %vm21511_vm14  ;;  %9662 = vmatprep.subr.msk.bf16.mxu1 %vm9661_vm7, %v21159_v33  ;;  %vm2545_vm0 = vcmp.eq.s32.totalorder %v14547_v56, %v11807_v32  ;;  %vm2542_vm7 = vcmp.eq.s32.totalorder %v14547_v56, %v11797_v28  ;;  %v10423_v43 = vpop.f32.mrb[15].mxu0  ;;  %v10535_v3 = vpop.f32.mrb[15].mxu1  ;;  %21537 = vst [vmem:[#allocation182_spill] sm:$0xff] %v14776_v2 }
 0x29e   :  { %vm2828_vm11 = vmand %vm2540_vm4, %vm21512_vm8  ;;  %vm2546_vm8 = vcmp.eq.s32.totalorder %v14556_v7, %v11797_v28  ;;  %21522 = vst [vmem:[#allocation179_spill] sm:$0xff] %v14640_v46  ;;  %v14642_v41 = vadd.f32 %v10533_v14, %v10421_v29  ;;  %v10424_v44 = vadd.f32 %v10423_v43, %v10422_v27  ;;  %v10536_v34 = vadd.f32 %v10535_v3, %v10534_v58  ;;  %v6892_v14 = vld [vmem:[%s20515_s2 + $0x1f8] sm:$0xff] }
 0x29f   :  { %vm2952_vm15 = vmand %vm2824_vm5, %vm21513_vm12  ;;  %vm2549_vm5 = vcmp.eq.s32.totalorder %v14556_v7, %v11807_v32  ;;  %7040 = vperm.xlu1 %11340, %v6890_v20  }
 0x2a0   :  { %vm2956_vm13 = vmand %vm2828_vm11, %vm21513_vm12  ;;  %v14653_v5 = vadd.f32 %v10536_v34, %v10424_v44  ;;  %v14685_v34 = vpop.permute.xlu0 %2435  ;;  %v14694_v44 = vpop.permute.xlu1 %2438 }
 0x2a1   :  { %vm9663_vm3 = vmpackc.low %vm2956_vm13, %vm2952_vm15  ;;  %vm2543_vm15 = vcmp.eq.s32.totalorder %v14547_v56, %v11786_v21 }
 0x2a2   :  { %9664 = vmatpush1.bf16.msk.msra.mxu1 %vm9663_vm3, %v21159_v33  ;;  %vm14604_vm14 = vmand %vm2545_vm0, %vm20905_vm1  ;;  %vm2547_vm3 = vcmp.eq.s32.totalorder %v14556_v7, %v11786_v21  ;;  %21524 = vst [vmem:[#allocation181_spill] sm:$0xff] %v14653_v5 }
 0x2a3   :  { %vm14615_vm4 = vmand %vm2542_vm7, %vm20905_vm1  ;;  %7050 = vperm.xlu1 %11340, %v6892_v14  }
 0x2a4   :  { %vm14623_vm11 = vmand %vm2549_vm5, %vm20906_vm10  ;;  %v14716_v16 = vpop.permute.xlu0 %2691  ;;  %v14718_v29 = vpop.permute.xlu1 %2694 }
 0x2a5   :  { %vm14631_vm13 = vmand %vm2546_vm8, %vm20906_vm10 }
 0x2a6   :  { %vm2831_vm0 = vmand %vm2543_vm15, %vm20905_vm1  ;;  %vm3089_vm1 = vcmp.gt.s32.totalorder %v14499_v13, %v14640_v46 }
 0x2a7   :  { %vm2835_vm7 = vmand %vm2547_vm3, %vm20906_vm10  ;;  %vm3093_vm10 = vcmp.gt.s32.totalorder %v14499_v13, %v14647_v17 }
 0x2a8   :  { %vm2959_vm5 = vmand %vm2831_vm0, %vm21509_vm6 }
 0x2a9   :  { %vm2963_vm8 = vmand %vm2835_vm7, %vm21509_vm6  ;;  %vm3665_vm6 = vcmp.gt.s32.totalorder %v14640_v46, %v14499_v13 }
 0x2aa   :  { %vm9617_vm15 = vmpackc.low %vm2963_vm8, %vm2959_vm5 }
 0x2ab   :  { %9618 = vmatprep.subr.msk.bf16.mxu0 %vm9617_vm15, %v21159_v33  ;;  %vm2961_vm3 = vmand %vm14604_vm14, %vm21510_vm9 }
 0x2ac   :  { %vm2965_vm0 = vmand %vm14623_vm11, %vm21510_vm9 }
 0x2ad   :  { %vm3217_vm7 = vmand %vm2961_vm3, %vm3089_vm1 }
 0x2ae   :  { %vm3221_vm5 = vmand %vm2965_vm0, %vm3093_vm10  ;;  %vm3669_vm10 = vcmp.gt.s32.totalorder %v14647_v17, %v14499_v13  ;;  %v14781_v17 = vadd.s32 256, %v13127_v42 }
 0x2af   :  { %vm9567_vm8 = vmpackc.low %vm3221_vm5, %vm3217_vm7  ;;  %vm2544_vm5 = vcmp.eq.s32.totalorder %v14547_v56, %v11941_v60  ;;  %v6891_v56 = vld [vmem:[%s20515_s2 + $0x1f0] sm:$0xff] }
 0x2b0   :  { %9568 = vmatprep.mubr.msk.bf16.mxu1 %vm9567_vm8, %v21159_v33  ;;  %vm2958_vm15 = vmand %vm14615_vm4, %vm21467_vm2  ;;  %7045 = vperm.xlu0 %11339, %v6891_v56   ;;  %21538 = vst [vmem:[#allocation183_spill] sm:$0xff] %v14781_v17 }
 0x2b1   :  { %vm2962_vm1 = vmand %vm14631_vm13, %vm21467_vm2  ;;  %4432 = vmatmul.mubr.bf16.gmra.mrb[100].mxu1 %v21290_v61 }
 0x2b2   :  { %vm9619_vm7 = vmpackc.low %vm2962_vm1, %vm2958_vm15  ;;  %vm21525_vm15 = vcmp.eq.s32.totalorder %v14578_v15, 1  ;;  %v10425_v15 = vpop.f32.mrb[16].mxu0 }
 0x2b3   :  { %9620 = vmatpush1.bf16.msk.msra.mxu0 %vm9619_vm7, %v21159_v33  ;;  %vm3793_vm4 = vmand %vm2961_vm3, %vm3665_vm6  ;;  %vm2548_vm7 = vcmp.eq.s32.totalorder %v14556_v7, %v11941_v60  ;;  %vm21526_vm6 = vcmp.eq.s32.totalorder %v14580_v30, 1  ;;  %vm20917_vm3 = vcmp.eq.s32.totalorder %v14716_v16, 1  ;;  %v10537_v30 = vpop.f32.mrb[16].mxu1  ;;  %v10426_v12 = vpop.f32.mrb[17].mxu0 }
 0x2b4   :  { %vm3797_vm13 = vmand %vm2965_vm0, %vm3669_vm10  ;;  %v10538_v22 = vpop.f32.mrb[17].mxu1  ;;  %v10427_v3 = vadd.f32 %v10426_v12, %v10425_v15  ;;  %v10428_v14 = vpop.f32.mrb[18].mxu0 }
 0x2b5   :  { %vm9665_vm8 = vmpackc.low %vm3797_vm13, %vm3793_vm4  ;;  %vm20916_vm4 = vcmp.eq.s32.totalorder %v14718_v29, 1  ;;  %vm2553_vm13 = vcmp.eq.s32.totalorder %v14685_v34, %v11807_v32  ;;  %v10539_v56 = vadd.f32 %v10538_v22, %v10537_v30  ;;  %v10540_v46 = vpop.f32.mrb[18].mxu1  ;;  %v10429_v5 = vpop.f32.mrb[19].mxu0  ;;  %v14908_v22 = vadd.s32 256, %v13216_v39 }
 0x2b6   :  { %vm2832_vm1 = vmand %vm2544_vm5, %vm21525_vm15  ;;  %9666 = vmatprep.subr.msk.bf16.mxu1 %vm9665_vm8, %v21159_v33  ;;  %vm2550_vm5 = vcmp.eq.s32.totalorder %v14685_v34, %v11797_v28  ;;  %vm2557_vm15 = vcmp.eq.s32.totalorder %v14694_v44, %v11807_v32  ;;  %v10541_v24 = vpop.f32.mrb[19].mxu1  ;;  %v10430_v15 = vadd.f32 %v10429_v5, %v10428_v14  ;;  %v14823_v5 = vpop.permute.xlu0 %2441 }
 0x2b7   :  { %vm2836_vm14 = vmand %vm2548_vm7, %vm21526_vm6  ;;  %vm2554_vm7 = vcmp.eq.s32.totalorder %v14694_v44, %v11797_v28  ;;  %v14787_v35 = vadd.f32 %v10539_v56, %v10427_v3  ;;  %v10542_v30 = vadd.f32 %v10541_v24, %v10540_v46  ;;  %v14832_v24 = vpop.permute.xlu1 %2444  ;;  %21553 = vst [vmem:[#allocation185_spill] sm:$0xff] %v14908_v22  ;;  %v10543_v58 = vpop.f32.mrb[20].mxu1  ;;  %v14913_v3 = vadd.s32 256, %v13221_v53 }
 0x2b8   :  { %vm2960_vm11 = vmand %vm2832_vm1, %vm21513_vm12  ;;  %v10544_v14 = vpop.f32.mrb[21].mxu1 }
 0x2b9   :  { %vm2964_vm0 = vmand %vm2836_vm14, %vm21513_vm12  ;;  %vm2551_vm14 = vcmp.eq.s32.totalorder %v14685_v34, %v11786_v21  ;;  %v14800_v12 = vadd.f32 %v10542_v30, %v10430_v15  ;;  %21554 = vst [vmem:[#allocation186_spill] sm:$0xff] %v14913_v3  ;;  %v10545_v15 = vadd.f32 %v10544_v14, %v10543_v58 }
 0x2ba   :  { %vm9667_vm10 = vmpackc.low %vm2964_vm0, %vm2960_vm11  ;;  %vm2555_vm0 = vcmp.eq.s32.totalorder %v14694_v44, %v11786_v21  ;;  %v14854_v46 = vpop.permute.xlu0 %2697 }
 0x2bb   :  { %9668 = vmatpush1.bf16.msk.msra.mxu1 %vm9667_vm10, %v21159_v33  ;;  %vm14736_vm8 = vmand %vm2553_vm13, %vm20917_vm3  ;;  %21540 = vst [vmem:[#allocation184_spill] sm:$0xff] %v14800_v12  ;;  %v14856_v7 = vpop.permute.xlu1 %2700  ;;  %v10546_v12 = vpop.f32.mrb[22].mxu1 }
 0x2bc   :  { %vm14747_vm1 = vmand %vm2550_vm5, %vm20917_vm3  ;;  %vm21539_vm5 = vnez %v21138_v40 }
 0x2bd   :  { %vm14755_vm6 = vmand %vm2557_vm15, %vm20916_vm4 }
 0x2be   :  { %vm14763_vm11 = vmand %vm2554_vm7, %vm20916_vm4  ;;  %v14948_v58 = vpop.permute.xlu0 %2447 }
 0x2bf   :  { %vm14771_vm10 = vmand %vm2551_vm14, %vm20917_vm3 }
 0x2c0   :  { %vm2843_vm13 = vmand %vm2555_vm0, %vm20916_vm4  ;;  %vm3097_vm0 = vcmp.gt.s32.totalorder %v14499_v13, %v14776_v2  ;;  %vm3101_vm4 = vcmp.gt.s32.totalorder %v14499_v13, %v14781_v17 }
 0x2c1   :  { %vm2967_vm15 = vmand %vm14771_vm10, %vm21539_vm5 }
 0x2c2   :  { %vm2971_vm7 = vmand %vm2843_vm13, %vm21539_vm5  ;;  %vm3673_vm5 = vcmp.gt.s32.totalorder %v14776_v2, %v14499_v13  ;;  %v10547_v2 = vpop.f32.mrb[23].mxu1 }
 0x2c3   :  { %vm9621_vm14 = vmpackc.low %vm2971_vm7, %vm2967_vm15 }
 0x2c4   :  { %9622 = vmatprep.subr.msk.bf16.mxu0 %vm9621_vm14, %v21159_v33  ;;  %vm2969_vm10 = vmand %vm14736_vm8, %vm21510_vm9  ;;  %vm21542_vm8 = vcmp.eq.s32.totalorder %v14718_v29, 1  ;;  %v10431_v29 = vpop.f32.mrb[20].mxu0 }
 0x2c5   :  { %vm2973_vm13 = vmand %vm14755_vm6, %vm21510_vm9  ;;  %v10432_v43 = vpop.f32.mrb[21].mxu0 }
 0x2c6   :  { %vm3225_vm15 = vmand %vm2969_vm10, %vm3097_vm0  ;;  %v10433_v56 = vadd.f32 %v10432_v43, %v10431_v29  ;;  %v10434_v30 = vpop.f32.mrb[22].mxu0  ;;  %v10548_v43 = vadd.f32 %v10547_v2, %v10546_v12  ;;  %v10549_v2 = vpop.f32.mrb[24].mxu1 }
 0x2c7   :  { %vm3229_vm7 = vmand %vm2973_vm13, %vm3101_vm4  ;;  %vm3677_vm4 = vcmp.gt.s32.totalorder %v14781_v17, %v14499_v13  ;;  %v10435_v17 = vpop.f32.mrb[23].mxu0  ;;  %v10550_v14 = vpop.f32.mrb[25].mxu1 }
 0x2c8   :  { %vm9569_vm14 = vmpackc.low %vm3229_vm7, %vm3225_vm15  ;;  %vm2552_vm7 = vcmp.eq.s32.totalorder %v14685_v34, %v11941_v60  ;;  %v14923_v53 = vadd.f32 %v10545_v15, %v10433_v56  ;;  %v10436_v29 = vadd.f32 %v10435_v17, %v10434_v30  ;;  %v10437_v17 = vpop.f32.mrb[24].mxu0  ;;  %v10551_v15 = vadd.f32 %v10550_v14, %v10549_v2 }
 0x2c9   :  { %9570 = vmatprep.mubr.msk.bf16.mxu1 %vm9569_vm14, %v21159_v33  ;;  %vm2966_vm3 = vmand %vm14747_vm1, %vm21467_vm2  ;;  %v10438_v12 = vpop.f32.mrb[25].mxu0 }
 0x2ca   :  { %vm2970_vm0 = vmand %vm14763_vm11, %vm21467_vm2  ;;  %4440 = vmatmul.mubr.bf16.gmra.mrb[104].mxu1 %v21290_v61  ;;  %21556 = vst [vmem:[#allocation187_spill] sm:$0xff] %v14923_v53  ;;  %v14936_v20 = vadd.f32 %v10548_v43, %v10436_v29  ;;  %v10439_v56 = vadd.f32 %v10438_v12, %v10437_v17  ;;  %v10440_v30 = vpop.f32.mrb[26].mxu0  ;;  %v10552_v29 = vpop.f32.mrb[26].mxu1 }
 0x2cb   :  { %vm9623_vm15 = vmpackc.low %vm2970_vm0, %vm2966_vm3  ;;  %vm21541_vm3 = vcmp.eq.s32.totalorder %v14716_v16, 1  ;;  %v10441_v43 = vpop.f32.mrb[27].mxu0  ;;  %v10553_v17 = vpop.f32.mrb[27].mxu1 }
 0x2cc   :  { %9624 = vmatpush1.bf16.msk.msra.mxu0 %vm9623_vm15, %v21159_v33  ;;  %vm3801_vm1 = vmand %vm2969_vm10, %vm3673_vm5  ;;  %vm2556_vm15 = vcmp.eq.s32.totalorder %v14694_v44, %v11941_v60  ;;  %vm20924_vm10 = vcmp.eq.s32.totalorder %v14854_v46, 1  ;;  %21557 = vst [vmem:[#allocation188_spill] sm:$0xff] %v14936_v20  ;;  %v14964_v44 = vpop.permute.xlu1 %2450  ;;  %v14966_v12 = vadd.f32 %v10551_v15, %v10439_v56  ;;  %v10442_v2 = vadd.f32 %v10441_v43, %v10440_v30  ;;  %v10443_v20 = vpop.f32.mrb[28].mxu0 }
 0x2cd   :  { %vm3805_vm11 = vmand %vm2973_vm13, %vm3677_vm4  ;;  %v10554_v14 = vadd.f32 %v10553_v17, %v10552_v29  ;;  %v10555_v27 = vpop.f32.mrb[28].mxu1  ;;  %v10444_v15 = vpop.f32.mrb[29].mxu0 }
 0x2ce   :  { %vm9669_vm14 = vmpackc.low %vm3805_vm11, %vm3801_vm1  ;;  %vm20923_vm1 = vcmp.eq.s32.totalorder %v14856_v7, 1  ;;  %vm2561_vm11 = vcmp.eq.s32.totalorder %v14823_v5, %v11807_v32  ;;  %21558 = vst [vmem:[#allocation189_spill] sm:$0xff] %v14966_v12  ;;  %v10556_v30 = vpop.f32.mrb[29].mxu1  ;;  %v10445_v34 = vadd.f32 %v10444_v15, %v10443_v20  ;;  %v10446_v43 = vpop.f32.mrb[30].mxu0 }
 0x2cf   :  { %vm2840_vm0 = vmand %vm2552_vm7, %vm21541_vm3  ;;  %9670 = vmatprep.subr.msk.bf16.mxu1 %vm9669_vm14, %v21159_v33  ;;  %vm2558_vm7 = vcmp.eq.s32.totalorder %v14823_v5, %v11797_v28  ;;  %vm2565_vm3 = vcmp.eq.s32.totalorder %v14832_v24, %v11807_v32  ;;  %v14982_v56 = vadd.f32 %v10554_v14, %v10442_v2  ;;  %v10557_v29 = vadd.f32 %v10556_v30, %v10555_v27  ;;  %v10558_v17 = vpop.f32.mrb[30].mxu1  ;;  %v10447_v2 = vpop.f32.mrb[31].mxu0 }
 0x2d0   :  { %vm2844_vm5 = vmand %vm2556_vm15, %vm21542_vm8  ;;  %vm2562_vm15 = vcmp.eq.s32.totalorder %v14832_v24, %v11797_v28  ;;  %v10448_v14 = vadd.f32 %v10447_v2, %v10446_v43  ;;  %v10559_v27 = vpop.f32.mrb[31].mxu1  ;;  %v10449_v30 = vpop.f32.mrb[32].mxu0 }
 0x2d1   :  { %vm2968_vm6 = vmand %vm2840_vm0, %vm21513_vm12  ;;  %21559 = vst [vmem:[#allocation190_spill] sm:$0xff] %v14982_v56  ;;  %v14999_v20 = vadd.f32 %v10557_v29, %v10445_v34  ;;  %v10560_v15 = vadd.f32 %v10559_v27, %v10558_v17  ;;  %v10450_v29 = vpop.f32.mrb[33].mxu0 }
 0x2d2   :  { %vm2972_vm13 = vmand %vm2844_vm5, %vm21513_vm12  ;;  %vm2559_vm5 = vcmp.eq.s32.totalorder %v14823_v5, %v11786_v21  ;;  %v10451_v16 = vadd.f32 %v10450_v29, %v10449_v30  ;;  %v15053_v30 = vadd.s32 256, %v13310_v51 }
 0x2d3   :  { %vm9671_vm4 = vmpackc.low %vm2972_vm13, %vm2968_vm6  ;;  %vm2563_vm13 = vcmp.eq.s32.totalorder %v14832_v24, %v11786_v21  ;;  %21564 = vst [vmem:[#allocation191_spill] sm:$0xff] %v14999_v20  ;;  %v15060_v20 = vadd.s32 256, %v13315_v55  ;;  %v15200_v55 = vadd.s32 256, %v13397_v59 }
 0x2d4   :  { %9672 = vmatpush1.bf16.msk.msra.mxu1 %vm9671_vm4, %v21159_v33  ;;  %vm14871_vm14 = vmand %vm2561_vm11, %vm20924_vm10  ;;  %21574 = vst [vmem:[#allocation193_spill] sm:$0xff] %v15053_v30 }
 0x2d5   :  { %vm14879_vm0 = vmand %vm2558_vm7, %vm20924_vm10  ;;  %vm21555_vm7 = vnez %v21138_v40  ;;  %21575 = vst [vmem:[#allocation194_spill] sm:$0xff] %v15060_v20 }
 0x2d6   :  { %vm14887_vm8 = vmand %vm2565_vm3, %vm20923_vm1  ;;  %21591 = vst [vmem:[#allocation198_spill] sm:$0xff] %v15200_v55 }
 0x2d7   :  { %vm14895_vm6 = vmand %vm2562_vm15, %vm20923_vm1 }
 0x2d8   :  { %vm14903_vm4 = vmand %vm2559_vm5, %vm20924_vm10  ;;  %vm3681_vm10 = vcmp.gt.s32.totalorder %v14908_v22, %v14499_v13 }
 0x2d9   :  { %vm2851_vm11 = vmand %vm2563_vm13, %vm20923_vm1  ;;  %vm3105_vm13 = vcmp.gt.s32.totalorder %v14499_v13, %v14908_v22 }
 0x2da   :  { %vm2975_vm3 = vmand %vm14903_vm4, %vm21555_vm7 }
 0x2db   :  { %vm2979_vm15 = vmand %vm2851_vm11, %vm21555_vm7  ;;  %vm3109_vm11 = vcmp.gt.s32.totalorder %v14499_v13, %v14913_v3 }
 0x2dc   :  { %vm9625_vm5 = vmpackc.low %vm2979_vm15, %vm2975_vm3 }
 0x2dd   :  { %9626 = vmatprep.subr.msk.bf16.mxu0 %vm9625_vm5, %v21159_v33  ;;  %vm2977_vm4 = vmand %vm14871_vm14, %vm21510_vm9 }
 0x2de   :  { %vm2981_vm3 = vmand %vm14887_vm8, %vm21510_vm9  ;;  %vm2564_vm8 = vcmp.eq.s32.totalorder %v14832_v24, %v11941_v60  ;;  %v15010_v24 = vadd.f32 %v10560_v15, %v10448_v14  ;;  %v10452_v15 = vpop.f32.mrb[34].mxu0 }
 0x2df   :  { %vm3233_vm15 = vmand %vm2977_vm4, %vm3105_vm13  ;;  %v10453_v12 = vpop.f32.mrb[35].mxu0 }
 0x2e0   :  { %vm3237_vm5 = vmand %vm2981_vm3, %vm3109_vm11  ;;  %21565 = vst [vmem:[#allocation192_spill] sm:$0xff] %v15010_v24  ;;  %v10454_v56 = vadd.f32 %v10453_v12, %v10452_v15 }
 0x2e1   :  { %vm9571_vm1 = vmpackc.low %vm3237_vm5, %vm3233_vm15  ;;  %vm3685_vm15 = vcmp.gt.s32.totalorder %v14913_v3, %v14499_v13  ;;  %vm2560_vm5 = vcmp.eq.s32.totalorder %v14823_v5, %v11941_v60  ;;  %v14997_v5 = vpop.permute.xlu0 %2703 }
 0x2e2   :  { %9572 = vmatprep.mubr.msk.bf16.mxu1 %vm9571_vm1, %v21159_v33  ;;  %vm2974_vm13 = vmand %vm14879_vm0, %vm21467_vm2 }
 0x2e3   :  { %vm2978_vm11 = vmand %vm14895_vm6, %vm21467_vm2  ;;  %4448 = vmatmul.mubr.bf16.gmra.mrb[108].mxu1 %v21290_v61 }
 0x2e4   :  { %vm9627_vm1 = vmpackc.low %vm2978_vm11, %vm2974_vm13 }
 0x2e5   :  { %9628 = vmatpush1.bf16.msk.msra.mxu0 %vm9627_vm1, %v21159_v33  ;;  %vm3809_vm0 = vmand %vm2977_vm4, %vm3681_vm10  ;;  %vm21560_vm10 = vcmp.eq.s32.totalorder %v14854_v46, 1  ;;  %vm21563_vm4 = vcmp.eq.s32.totalorder %v14856_v7, 1  ;;  %v15001_v46 = vpop.permute.xlu1 %2706  ;;  %v10561_v7 = vpop.f32.mrb[32].mxu1 }
 0x2e6   :  { %vm3813_vm6 = vmand %vm2981_vm3, %vm3685_vm15  ;;  %vm20925_vm15 = vcmp.eq.s32.totalorder %v14997_v5, 1  ;;  %v10562_v34 = vpop.f32.mrb[33].mxu1 }
 0x2e7   :  { %vm9673_vm13 = vmpackc.low %vm3813_vm6, %vm3809_vm0  ;;  %vm20928_vm6 = vcmp.eq.s32.totalorder %v15001_v46, 1  ;;  %v10563_v17 = vadd.f32 %v10562_v34, %v10561_v7  ;;  %v10564_v2 = vpop.f32.mrb[34].mxu1 }
 0x2e8   :  { %vm14988_vm14 = vmand %vm2560_vm5, %vm21560_vm10  ;;  %9674 = vmatprep.subr.msk.bf16.mxu1 %vm9673_vm13, %v21159_v33  ;;  %vm2569_vm5 = vcmp.eq.s32.totalorder %v14948_v58, %v11807_v32  ;;  %vm2566_vm13 = vcmp.eq.s32.totalorder %v14948_v58, %v11797_v28  ;;  %v10565_v29 = vpop.f32.mrb[35].mxu1 }
 0x2e9   :  { %vm2852_vm3 = vmand %vm2564_vm8, %vm21563_vm4  ;;  %vm2570_vm4 = vcmp.eq.s32.totalorder %v14964_v44, %v11797_v28  ;;  %v15055_v34 = vadd.f32 %v10563_v17, %v10451_v16  ;;  %v10566_v24 = vadd.f32 %v10565_v29, %v10564_v2  ;;  %v10567_v53 = vpop.f32.mrb[36].mxu1  ;;  %v10455_v16 = vpop.f32.mrb[36].mxu0 }
 0x2ea   :  { %vm2976_vm11 = vmand %vm14988_vm14, %vm21513_vm12  ;;  %vm2573_vm14 = vcmp.eq.s32.totalorder %v14964_v44, %v11807_v32  ;;  %v10568_v12 = vpop.f32.mrb[37].mxu1  ;;  %v10456_v2 = vpop.f32.mrb[37].mxu0 }
 0x2eb   :  { %vm2980_vm1 = vmand %vm2852_vm3, %vm21513_vm12  ;;  %v15068_v17 = vadd.f32 %v10566_v24, %v10454_v56  ;;  %v10569_v56 = vadd.f32 %v10568_v12, %v10567_v53  ;;  %v10457_v24 = vadd.f32 %v10456_v2, %v10455_v16  ;;  %v10570_v15 = vpop.f32.mrb[38].mxu1  ;;  %v10458_v29 = vpop.f32.mrb[38].mxu0 }
 0x2ec   :  { %vm9675_vm0 = vmpackc.low %vm2980_vm1, %vm2976_vm11  ;;  %vm2567_vm11 = vcmp.eq.s32.totalorder %v14948_v58, %v11786_v21  ;;  %v10571_v22 = vpop.f32.mrb[39].mxu1  ;;  %v10459_v16 = vpop.f32.mrb[39].mxu0 }
 0x2ed   :  { %9676 = vmatpush1.bf16.msk.msra.mxu1 %vm9675_vm0, %v21159_v33  ;;  %vm15020_vm10 = vmand %vm2569_vm5, %vm20925_vm15  ;;  %vm2571_vm0 = vcmp.eq.s32.totalorder %v14964_v44, %v11786_v21  ;;  %v15091_v3 = vadd.f32 %v10569_v56, %v10457_v24  ;;  %v10572_v53 = vadd.f32 %v10571_v22, %v10570_v15  ;;  %v10460_v12 = vadd.f32 %v10459_v16, %v10458_v29  ;;  %v15100_v2 = vpop.permute.xlu0 %2453  ;;  %v15109_v22 = vpop.permute.xlu1 %2456 }
 0x2ee   :  { %vm15028_vm8 = vmand %vm2566_vm13, %vm20925_vm15  ;;  %v10573_v56 = vpop.f32.mrb[40].mxu1  ;;  %v10461_v7 = vpop.f32.mrb[40].mxu0 }
 0x2ef   :  { %vm15036_vm3 = vmand %vm2573_vm14, %vm20928_vm6  ;;  %v15111_v14 = vadd.f32 %v10572_v53, %v10460_v12  ;;  %v10574_v24 = vpop.f32.mrb[41].mxu1  ;;  %v10462_v29 = vpop.f32.mrb[41].mxu0 }
 0x2f0   :  { %vm15044_vm1 = vmand %vm2570_vm4, %vm20928_vm6  ;;  %v10575_v15 = vadd.f32 %v10574_v24, %v10573_v56  ;;  %v10576_v53 = vpop.f32.mrb[42].mxu1  ;;  %v10463_v43 = vadd.f32 %v10462_v29, %v10461_v7  ;;  %v10464_v16 = vpop.f32.mrb[42].mxu0 }
 0x2f1   :  { %vm2855_vm5 = vmand %vm2567_vm11, %vm20925_vm15  ;;  %vm3113_vm15 = vcmp.gt.s32.totalorder %v14499_v13, %v15053_v30  ;;  %v10577_v27 = vpop.f32.mrb[43].mxu1  ;;  %v15137_v56 = vpop.permute.xlu0 %2709 }
 0x2f2   :  { %vm2859_vm13 = vmand %vm2571_vm0, %vm20928_vm6  ;;  %vm3689_vm6 = vcmp.gt.s32.totalorder %v15053_v30, %v14499_v13  ;;  %v10578_v7 = vadd.f32 %v10577_v27, %v10576_v53  ;;  %v10465_v24 = vpop.f32.mrb[43].mxu0 }
 0x2f3   :  { %vm2983_vm14 = vmand %vm2855_vm5, %vm21555_vm7  ;;  %vm3117_vm5 = vcmp.gt.s32.totalorder %v14499_v13, %v15060_v20  ;;  %v10466_v29 = vadd.f32 %v10465_v24, %v10464_v16 }
 0x2f4   :  { %vm2987_vm4 = vmand %vm2859_vm13, %vm21555_vm7 }
 0x2f5   :  { %vm9629_vm11 = vmpackc.low %vm2987_vm4, %vm2983_vm14 }
 0x2f6   :  { %9630 = vmatprep.subr.msk.bf16.mxu0 %vm9629_vm11, %v21159_v33  ;;  %vm2985_vm0 = vmand %vm15020_vm10, %vm21510_vm9  ;;  %vm21576_vm10 = vcmp.eq.s32.totalorder %v14997_v5, 1  ;;  %v15141_v5 = vpop.permute.xlu1 %2712 }
 0x2f7   :  { %vm2989_vm13 = vmand %vm15036_vm3, %vm21510_vm9  ;;  %vm21579_vm3 = vcmp.eq.s32.totalorder %v15001_v46, 1  ;;  %v10579_v46 = vpop.f32.mrb[44].mxu1 }
 0x2f8   :  { %vm3241_vm14 = vmand %vm2985_vm0, %vm3113_vm15  ;;  %v10580_v53 = vpop.f32.mrb[45].mxu1 }
 0x2f9   :  { %vm3245_vm4 = vmand %vm2989_vm13, %vm3117_vm5  ;;  %v10582_v12 = vpop.f32.mrb[46].mxu1 }
 0x2fa   :  { %vm9573_vm11 = vmpackc.low %vm3245_vm4, %vm3241_vm14  ;;  %vm3693_vm14 = vcmp.gt.s32.totalorder %v15060_v20, %v14499_v13 }
 0x2fb   :  { %9574 = vmatprep.mubr.msk.bf16.mxu1 %vm9573_vm11, %v21159_v33  ;;  %vm2982_vm15 = vmand %vm15028_vm8, %vm21467_vm2  ;;  %vm2568_vm11 = vcmp.eq.s32.totalorder %v14948_v58, %v11941_v60  ;;  %v15139_v58 = vadd.f32 %v10575_v15, %v10463_v43  ;;  %v10467_v15 = vpop.f32.mrb[44].mxu0  ;;  %v10581_v43 = vadd.f32 %v10580_v53, %v10579_v46 }
 0x2fc   :  { %vm2986_vm5 = vmand %vm15044_vm1, %vm21467_vm2  ;;  %4456 = vmatmul.mubr.bf16.gmra.mrb[112].mxu1 %v21290_v61  ;;  %v10468_v16 = vpop.f32.mrb[45].mxu0 }
 0x2fd   :  { %vm9631_vm4 = vmpackc.low %vm2986_vm5, %vm2982_vm15  ;;  %v10470_v24 = vpop.f32.mrb[46].mxu0 }
 0x2fe   :  { %9632 = vmatpush1.bf16.msk.msra.mxu0 %vm9631_vm4, %v21159_v33  ;;  %vm3817_vm8 = vmand %vm2985_vm0, %vm3689_vm6  ;;  %vm2572_vm0 = vcmp.eq.s32.totalorder %v14964_v44, %v11941_v60  ;;  %v15150_v44 = vadd.f32 %v10578_v7, %v10466_v29  ;;  %v10469_v7 = vadd.f32 %v10468_v16, %v10467_v15  ;;  %v10583_v15 = vpop.f32.mrb[47].mxu1  ;;  %v15193_v16 = vadd.s32 256, %v13392_v11  ;;  %v10471_v30 = vpop.f32.mrb[47].mxu0 }
 0x2ff   :  { %vm3821_vm1 = vmand %vm2989_vm13, %vm3693_vm14  ;;  %vm20937_vm14 = vcmp.eq.s32.totalorder %v15137_v56, 1  ;;  %v10584_v20 = vadd.f32 %v10583_v15, %v10582_v12  ;;  %v10472_v51 = vadd.f32 %v10471_v30, %v10470_v24  ;;  %v15247_v29 = vpop.permute.xlu0 %2459 }
 0x300   :  { %vm9677_vm15 = vmpackc.low %vm3821_vm1, %vm3817_vm8  ;;  %21580 = vst [vmem:[#allocation195_spill] sm:$0xff] %v15150_v44  ;;  %vm20938_vm1 = vcmp.eq.s32.totalorder %v15141_v5, 1  ;;  %v15195_v44 = vadd.f32 %v10581_v43, %v10469_v7 }
 0x301   :  { %vm15128_vm6 = vmand %vm2568_vm11, %vm21576_vm10  ;;  %9678 = vmatprep.subr.msk.bf16.mxu1 %vm9677_vm15, %v21159_v33  ;;  %vm2577_vm11 = vcmp.eq.s32.totalorder %v15100_v2, %v11807_v32  ;;  %vm2574_vm15 = vcmp.eq.s32.totalorder %v15100_v2, %v11797_v28  ;;  %21589 = vst [vmem:[#allocation196_spill] sm:$0xff] %v15193_v16  ;;  %v15206_v39 = vadd.f32 %v10584_v20, %v10472_v51  ;;  %v10585_v51 = vpop.f32.mrb[48].mxu1  ;;  %v10473_v20 = vpop.f32.mrb[48].mxu0 }
 0x302   :  { %vm2860_vm13 = vmand %vm2572_vm0, %vm21579_vm3  ;;  %vm2578_vm3 = vcmp.eq.s32.totalorder %v15109_v22, %v11797_v28  ;;  %21590 = vst [vmem:[#allocation197_spill] sm:$0xff] %v15195_v44  ;;  %v10586_v30 = vpop.f32.mrb[49].mxu1  ;;  %v10474_v12 = vpop.f32.mrb[49].mxu0 }
 0x303   :  { %vm2984_vm5 = vmand %vm15128_vm6, %vm21513_vm12  ;;  %vm2581_vm6 = vcmp.eq.s32.totalorder %v15109_v22, %v11807_v32  ;;  %21592 = vst [vmem:[#allocation199_spill] sm:$0xff] %v15206_v39  ;;  %v10587_v43 = vadd.f32 %v10586_v30, %v10585_v51  ;;  %v10475_v7 = vadd.f32 %v10474_v12, %v10473_v20  ;;  %v10588_v24 = vpop.f32.mrb[50].mxu1  ;;  %v10476_v15 = vpop.f32.mrb[50].mxu0 }
 0x304   :  { %vm2988_vm4 = vmand %vm2860_vm13, %vm21513_vm12  ;;  %v10589_v39 = vpop.f32.mrb[51].mxu1  ;;  %v10477_v53 = vpop.f32.mrb[51].mxu0 }
 0x305   :  { %vm9679_vm8 = vmpackc.low %vm2988_vm4, %vm2984_vm5  ;;  %vm2575_vm5 = vcmp.eq.s32.totalorder %v15100_v2, %v11786_v21  ;;  %v15245_v51 = vadd.f32 %v10587_v43, %v10475_v7  ;;  %v10590_v20 = vadd.f32 %v10589_v39, %v10588_v24  ;;  %v15255_v30 = vpop.permute.xlu1 %2462  ;;  %v10478_v39 = vadd.f32 %v10477_v53, %v10476_v15  ;;  %v15273_v46 = vpop.permute.xlu0 %2715 }
 0x306   :  { %9680 = vmatpush1.bf16.msk.msra.mxu1 %vm9679_vm8, %v21159_v33  ;;  %vm15160_vm10 = vmand %vm2577_vm11, %vm20937_vm14  ;;  %vm2579_vm8 = vcmp.eq.s32.totalorder %v15109_v22, %v11786_v21 }
 0x307   :  { %vm15168_vm0 = vmand %vm2574_vm15, %vm20937_vm14  ;;  %21593 = vst [vmem:[#allocation200_spill] sm:$0xff] %v15245_v51  ;;  %v15269_v27 = vadd.f32 %v10590_v20, %v10478_v39 }
 0x308   :  { %vm15176_vm13 = vmand %vm2581_vm6, %vm20938_vm1 }
 0x309   :  { %vm15184_vm4 = vmand %vm2578_vm3, %vm20938_vm1  ;;  %21595 = vst [vmem:[#allocation201_spill] sm:$0xff] %v15269_v27 }
 0x30a   :  { %vm2863_vm11 = vmand %vm2575_vm5, %vm20937_vm14  ;;  %vm3121_vm14 = vcmp.gt.s32.totalorder %v14499_v13, %v15193_v16 }
 0x30b   :  { %vm2867_vm15 = vmand %vm2579_vm8, %vm20938_vm1  ;;  %vm3125_vm1 = vcmp.gt.s32.totalorder %v14499_v13, %v15200_v55 }
 0x30c   :  { %vm2991_vm6 = vmand %vm2863_vm11, %vm21555_vm7 }
 0x30d   :  { %vm2995_vm3 = vmand %vm2867_vm15, %vm21555_vm7 }
 0x30e   :  { %vm9633_vm5 = vmpackc.low %vm2995_vm3, %vm2991_vm6 }
 0x30f   :  { %9634 = vmatprep.subr.msk.bf16.mxu0 %vm9633_vm5, %v21159_v33  ;;  %vm2993_vm8 = vmand %vm15160_vm10, %vm21510_vm9  ;;  %vm3697_vm5 = vcmp.gt.s32.totalorder %v15193_v16, %v14499_v13  ;;  %vm2580_vm10 = vcmp.eq.s32.totalorder %v15109_v22, %v11941_v60  ;;  %v10479_v22 = vpop.f32.mrb[52].mxu0 }
 0x310   :  { %vm2997_vm11 = vmand %vm15176_vm13, %vm21510_vm9  ;;  %v10480_v12 = vpop.f32.mrb[53].mxu0 }
 0x311   :  { %vm3249_vm15 = vmand %vm2993_vm8, %vm3121_vm14  ;;  %v10481_v7 = vadd.f32 %v10480_v12, %v10479_v22  ;;  %v10482_v15 = vpop.f32.mrb[54].mxu0 }
 0x312   :  { %vm3253_vm6 = vmand %vm2997_vm11, %vm3125_vm1  ;;  %v10483_v22 = vpop.f32.mrb[55].mxu0 }
 0x313   :  { %vm9575_vm3 = vmpackc.low %vm3253_vm6, %vm3249_vm15  ;;  %vm3701_vm15 = vcmp.gt.s32.totalorder %v15200_v55, %v14499_v13  ;;  %v10485_v27 = vpop.f32.mrb[56].mxu0 }
 0x314   :  { %9576 = vmatprep.mubr.msk.bf16.mxu1 %vm9575_vm3, %v21159_v33  ;;  %vm2990_vm14 = vmand %vm15168_vm0, %vm21467_vm2  ;;  %vm2576_vm3 = vcmp.eq.s32.totalorder %v15100_v2, %v11941_v60  ;;  %v15279_v2 = vpop.permute.xlu1 %2718  ;;  %v10486_v55 = vpop.f32.mrb[57].mxu0 }
 0x315   :  { %vm2994_vm1 = vmand %vm15184_vm4, %vm21467_vm2  ;;  %4464 = vmatmul.mubr.bf16.gmra.mrb[116].mxu1 %v21290_v61  ;;  %v10487_v16 = vadd.f32 %v10486_v55, %v10485_v27  ;;  %v10488_v59 = vpop.f32.mrb[58].mxu0 }
 0x316   :  { %vm9635_vm6 = vmpackc.low %vm2994_vm1, %vm2990_vm14  ;;  %vm21594_vm1 = vcmp.eq.s32.totalorder %v15137_v56, 1  ;;  %v10591_v56 = vpop.f32.mrb[52].mxu1  ;;  %v10489_v27 = vpop.f32.mrb[59].mxu0 }
 0x317   :  { %9636 = vmatpush1.bf16.msk.msra.mxu0 %vm9635_vm6, %v21159_v33  ;;  %vm3825_vm0 = vmand %vm2993_vm8, %vm3697_vm5  ;;  %vm21596_vm8 = vcmp.eq.s32.totalorder %v15141_v5, 1  ;;  %v10592_v43 = vpop.f32.mrb[53].mxu1 }
 0x318   :  { %vm3829_vm4 = vmand %vm2997_vm11, %vm3701_vm15  ;;  %v10593_v5 = vadd.f32 %v10592_v43, %v10591_v56  ;;  %v10594_v24 = vpop.f32.mrb[54].mxu1 }
 0x319   :  { %vm9681_vm14 = vmpackc.low %vm3829_vm4, %vm3825_vm0  ;;  %vm20948_vm0 = vcmp.eq.s32.totalorder %v15273_v46, 1  ;;  %vm20945_vm4 = vcmp.eq.s32.totalorder %v15279_v2, 1  ;;  %v10595_v20 = vpop.f32.mrb[55].mxu1 }
 0x31a   :  { %vm2864_vm6 = vmand %vm2576_vm3, %vm21594_vm1  ;;  %9682 = vmatprep.subr.msk.bf16.mxu1 %vm9681_vm14, %v21159_v33  ;;  %vm2585_vm3 = vcmp.eq.s32.totalorder %v15247_v29, %v11807_v32  ;;  %vm2582_vm14 = vcmp.eq.s32.totalorder %v15247_v29, %v11797_v28  ;;  %v15296_v39 = vadd.f32 %v10593_v5, %v10481_v7  ;;  %v10596_v56 = vadd.f32 %v10595_v20, %v10594_v24  ;;  %v10491_v24 = vpop.f32.mrb[60].mxu0 }
 0x31b   :  { %vm2868_vm5 = vmand %vm2580_vm10, %vm21596_vm8  ;;  %vm2586_vm8 = vcmp.eq.s32.totalorder %v15255_v30, %v11797_v28  ;;  %v10484_v5 = vadd.f32 %v10483_v22, %v10482_v15  ;;  %v15329_v20 = vadd.s32 256, %v13486_v18  ;;  %v15334_v15 = vadd.s32 256, %v13491_v38  ;;  %v10492_v38 = vpop.f32.mrb[61].mxu0 }
 0x31c   :  { %vm2992_vm13 = vmand %vm2864_vm6, %vm21513_vm12  ;;  %vm2589_vm6 = vcmp.eq.s32.totalorder %v15255_v30, %v11807_v32  ;;  %21599 = vst [vmem:[#allocation202_spill] sm:$0xff] %v15296_v39  ;;  %v10597_v39 = vpop.f32.mrb[56].mxu1 }
 0x31d   :  { %vm2996_vm11 = vmand %vm2868_vm5, %vm21513_vm12  ;;  %21608 = vst [vmem:[#allocation203_spill] sm:$0xff] %v15329_v20  ;;  %v15336_v22 = vadd.f32 %v10596_v56, %v10484_v5  ;;  %v10598_v51 = vpop.f32.mrb[57].mxu1  ;;  %v10490_v5 = vadd.f32 %v10489_v27, %v10488_v59 }
 0x31e   :  { %vm9683_vm15 = vmpackc.low %vm2996_vm11, %vm2992_vm13  ;;  %vm2583_vm13 = vcmp.eq.s32.totalorder %v15247_v29, %v11786_v21  ;;  %21609 = vst [vmem:[#allocation204_spill] sm:$0xff] %v15334_v15  ;;  %v10599_v44 = vadd.f32 %v10598_v51, %v10597_v39  ;;  %v10600_v18 = vpop.f32.mrb[58].mxu1 }
 0x31f   :  { %9684 = vmatpush1.bf16.msk.msra.mxu1 %vm9683_vm15, %v21159_v33  ;;  %vm15290_vm1 = vmand %vm2585_vm3, %vm20948_vm0  ;;  %vm2587_vm15 = vcmp.eq.s32.totalorder %v15255_v30, %v11786_v21  ;;  %21610 = vst [vmem:[#allocation205_spill] sm:$0xff] %v15336_v22  ;;  %v10601_v56 = vpop.f32.mrb[59].mxu1 }
 0x320   :  { %vm15300_vm10 = vmand %vm2582_vm14, %vm20948_vm0  ;;  %v15353_v51 = vadd.f32 %v10599_v44, %v10487_v16  ;;  %v10602_v55 = vadd.f32 %v10601_v56, %v10600_v18  ;;  %v10603_v39 = vpop.f32.mrb[60].mxu1  ;;  %v10493_v16 = vadd.f32 %v10492_v38, %v10491_v24  ;;  %v10494_v56 = vpop.f32.mrb[62].mxu0 }
 0x321   :  { %vm15308_vm5 = vmand %vm2589_vm6, %vm20945_vm4  ;;  %v10604_v22 = vpop.f32.mrb[61].mxu1 }
 0x322   :  { %vm15316_vm11 = vmand %vm2586_vm8, %vm20945_vm4  ;;  %21611 = vst [vmem:[#allocation206_spill] sm:$0xff] %v15353_v51  ;;  %v15369_v18 = vadd.f32 %v10602_v55, %v10490_v5  ;;  %v10605_v44 = vadd.f32 %v10604_v22, %v10603_v39  ;;  %v10606_v59 = vpop.f32.mrb[62].mxu1  ;;  %v10495_v5 = vpop.f32.mrb[63].mxu0 }
 0x323   :  { %vm15324_vm3 = vmand %vm2583_vm13, %vm20948_vm0  ;;  %v10607_v27 = vpop.f32.mrb[63].mxu1  ;;  %vm3705_vm0 = vcmp.gt.s32.totalorder %v15329_v20, %v14499_v13  ;;  %v10496_v38 = vadd.f32 %v10495_v5, %v10494_v56  ;;  %v10625_v22 = vpop.f32.mrb[64].mxu0 }
 0x324   :  { %vm2875_vm14 = vmand %vm2587_vm15, %vm20945_vm4  ;;  %vm3129_vm15 = vcmp.gt.s32.totalorder %v14499_v13, %v15329_v20  ;;  %vm3133_vm4 = vcmp.gt.s32.totalorder %v14499_v13, %v15334_v15  ;;  %21612 = vst [vmem:[#allocation207_spill] sm:$0xff] %v15369_v18  ;;  %v15378_v51 = vadd.f32 %v10605_v44, %v10493_v16  ;;  %v10608_v55 = vadd.f32 %v10607_v27, %v10606_v59  ;;  %v10737_v43 = vpop.f32.mrb[64].mxu1  ;;  %v15387_v39 = vpop.permute.xlu0 %2465 }
 0x325   :  { %vm2999_vm6 = vmand %vm15324_vm3, %vm21555_vm7  ;;  %v10738_v24 = vpop.f32.mrb[65].mxu1  ;;  %v10626_v59 = vpop.f32.mrb[65].mxu0 }
 0x326   :  { %vm3003_vm8 = vmand %vm2875_vm14, %vm21555_vm7  ;;  %21613 = vst [vmem:[#allocation208_spill] sm:$0xff] %v15378_v51  ;;  %v15399_v44 = vadd.f32 %v10608_v55, %v10496_v38  ;;  %v10739_v16 = vadd.f32 %v10738_v24, %v10737_v43  ;;  %v10740_v56 = vpop.f32.mrb[66].mxu1  ;;  %v15401_v27 = vpop.permute.xlu1 %2468  ;;  %v10627_v53 = vadd.f32 %v10626_v59, %v10625_v22 }
 0x327   :  { %vm9637_vm13 = vmpackc.low %vm3003_vm8, %vm2999_vm6  ;;  %v10628_v5 = vpop.f32.mrb[66].mxu0  ;;  %v10741_v55 = vpop.f32.mrb[67].mxu1 }
 0x328   :  { %9638 = vmatprep.subr.msk.bf16.mxu0 %vm9637_vm13, %v21159_v33  ;;  %vm3001_vm3 = vmand %vm15290_vm1, %vm21510_vm9  ;;  %21616 = vst [vmem:[#allocation209_spill] sm:$0xff] %v15399_v44  ;;  %v10629_v38 = vpop.f32.mrb[67].mxu0  ;;  %v15424_v12 = vadd.f32 %v10739_v16, %v10627_v53  ;;  %v10742_v22 = vadd.f32 %v10741_v55, %v10740_v56  ;;  %v10743_v24 = vpop.f32.mrb[68].mxu1 }
 0x329   :  { %vm3005_vm14 = vmand %vm15308_vm5, %vm21510_vm9  ;;  %vm2588_vm5 = vcmp.eq.s32.totalorder %v15255_v30, %v11941_v60  ;;  %v10744_v59 = vpop.f32.mrb[69].mxu1  ;;  %v15432_v51 = vpop.permute.xlu0 %2721 }
 0x32a   :  { %vm3257_vm6 = vmand %vm3001_vm3, %vm3129_vm15  ;;  %v10745_v30 = vadd.f32 %v10744_v59, %v10743_v24  ;;  %v10746_v56 = vpop.f32.mrb[70].mxu1  ;;  %v15444_v53 = vpop.permute.xlu1 %2724 }
 0x32b   :  { %vm3261_vm8 = vmand %vm3005_vm14, %vm3133_vm4 }
 0x32c   :  { %vm9577_vm13 = vmpackc.low %vm3261_vm8, %vm3257_vm6  ;;  %vm3709_vm6 = vcmp.gt.s32.totalorder %v15334_v15, %v14499_v13  ;;  %vm21617_vm8 = vcmp.eq.s32.totalorder %v15273_v46, 1  ;;  %v10631_v46 = vpop.f32.mrb[68].mxu0 }
 0x32d   :  { %9578 = vmatprep.mubr.msk.bf16.mxu1 %vm9577_vm13, %v21159_v33  ;;  %vm2998_vm15 = vmand %vm15300_vm10, %vm21467_vm2  ;;  %v10632_v18 = vpop.f32.mrb[69].mxu0 }
 0x32e   :  { %vm3002_vm4 = vmand %vm15316_vm11, %vm21467_vm2  ;;  %4472 = vmatmul.mubr.bf16.gmra.mrb[120].mxu1 %v21290_v61  ;;  %v10633_v16 = vadd.f32 %v10632_v18, %v10631_v46 }
 0x32f   :  { %vm9639_vm10 = vmpackc.low %vm3002_vm4, %vm2998_vm15 }
 0x330   :  { %9640 = vmatpush1.bf16.msk.msra.mxu0 %vm9639_vm10, %v21159_v33  ;;  %vm15395_vm11 = vmand %vm3001_vm3, %vm3705_vm0  ;;  %vm2584_vm0 = vcmp.eq.s32.totalorder %v15247_v29, %v11941_v60  ;;  %v10630_v29 = vadd.f32 %v10629_v38, %v10628_v5  ;;  %v10747_v5 = vpop.f32.mrb[71].mxu1  ;;  %v15446_v55 = vadd.f32 %v10745_v30, %v10633_v16 }
 0x331   :  { %vm3837_vm1 = vmand %vm3005_vm14, %vm3709_vm6  ;;  %vm21620_vm14 = vcmp.eq.s32.totalorder %v15279_v2, 1  ;;  %v10634_v2 = vpop.f32.mrb[70].mxu0  ;;  %v10748_v38 = vadd.f32 %v10747_v5, %v10746_v56  ;;  %v21655_v56 = vmov 0 }
 0x332   :  { %vm9685_vm3 = vmpackc.low %vm3837_vm1, %vm15395_vm11  ;;  %v15434_v44 = vadd.f32 %v10742_v22, %v10630_v29  ;;  %v10635_v22 = vpop.f32.mrb[71].mxu0  ;;  %v10749_v29 = vpop.f32.mrb[72].mxu1  ;;  %vm2756_vm11 = vcmp.eq.s32.totalorder %v15432_v51, 1  ;;  %vm2593_vm1 = vcmp.eq.s32.totalorder %v15387_v39, %v11807_v32 }
 0x333   :  { %vm15417_vm13 = vmand %vm2584_vm0, %vm21617_vm8  ;;  %9686 = vmatprep.subr.msk.bf16.mxu1 %vm9685_vm3, %v21159_v33  ;;  %v10636_v18 = vadd.f32 %v10635_v22, %v10634_v2  ;;  %v10637_v43 = vpop.f32.mrb[72].mxu0  ;;  %vm6331_vm0 = vcmp.lt.f32.partialorder %v14279_v26, 0.5  ;;  %v10750_v24 = vpop.f32.mrb[73].mxu1  ;;  %vm2757_vm3 = vcmp.eq.s32.totalorder %v15444_v53, 1 }
 0x334   :  { %vm15428_vm15 = vmand %vm2588_vm5, %vm21620_vm14  ;;  %v10638_v7 = vpop.f32.mrb[73].mxu0  ;;  %v10751_v59 = vadd.f32 %v10750_v24, %v10749_v29  ;;  %v10752_v16 = vpop.f32.mrb[74].mxu1  ;;  %vm2597_vm5 = vcmp.eq.s32.totalorder %v15401_v27, %v11807_v32  ;;  %vm21625_vm14 = vcmp.ne.s32.totalorder %v11408_v0, 0  ;;  %v21644_v0 = vmov 0  ;;  %v21657_v29 = vld [vmem:[#allocation49_spill] sm:$0xff] }
 0x335   :  { %vm3000_vm4 = vmand %vm15417_vm13, %vm21513_vm12  ;;  %v15454_v46 = vadd.f32 %v10748_v38, %v10636_v18  ;;  %v10639_v30 = vadd.f32 %v10638_v7, %v10637_v43  ;;  %vm6332_vm13 = vcmp.lt.f32.partialorder %v14291_v54, 0.5  ;;  %v10640_v2 = vpop.f32.mrb[74].mxu0  ;;  %v10753_v5 = vpop.f32.mrb[75].mxu1  ;;  %v15508_v54 = vadd.s32 256, %v13580_v47 }
 0x336   :  { %vm3004_vm6 = vmand %vm15428_vm15, %vm21513_vm12  ;;  %v10754_v38 = vadd.f32 %v10753_v5, %v10752_v16  ;;  %v10641_v22 = vpop.f32.mrb[75].mxu0  ;;  %v10755_v32 = vpop.f32.mrb[76].mxu1 }
 0x337   :  { %vm9687_vm10 = vmpackc.low %vm3004_vm6, %vm3000_vm4  ;;  %v15467_v26 = vadd.f32 %v10751_v59, %v10639_v30  ;;  %vm2590_vm4 = vcmp.eq.s32.totalorder %v15387_v39, %v11797_v28  ;;  %v10642_v43 = vadd.f32 %v10641_v22, %v10640_v2  ;;  %v10643_v24 = vpop.f32.mrb[76].mxu0  ;;  %v10756_v7 = vpop.f32.mrb[77].mxu1  ;;  %21635 = vst [vmem:[#allocation210_spill] sm:$0xff] %v15508_v54  ;;  %v15515_v22 = vadd.s32 256, %v13585_v10  ;;  %v21664_v59 = vld [vmem:[#allocation66_spill] sm:$0xff] }
 0x338   :  { %9688 = vmatpush1.bf16.msk.msra.mxu1 %vm9687_vm10, %v21159_v33  ;;  %vm15458_vm8 = vmand %vm2593_vm1, %vm2756_vm11  ;;  %vm2594_vm1 = vcmp.eq.s32.totalorder %v15401_v27, %v11797_v28  ;;  %v10644_v2 = vpop.f32.mrb[77].mxu0  ;;  %v10758_v5 = vpop.f32.mrb[78].mxu1 }
 0x339   :  { %vm6363_vm15 = vmand %vm21625_vm14, %vm6331_vm0  ;;  %vm21630_vm0 = vcmp.ne.s32.totalorder %v11413_v1, 0  ;;  %vm2591_vm14 = vcmp.eq.s32.totalorder %v15387_v39, %v11786_v21  ;;  %v15510_v16 = vadd.f32 %v10754_v38, %v10642_v43  ;;  %21636 = vst [vmem:[#allocation211_spill] sm:$0xff] %v15515_v22  ;;  %v10646_v15 = vpop.f32.mrb[78].mxu0  ;;  %v10759_v20 = vpop.f32.mrb[79].mxu1 }
 0x33a   :  { %vm15473_vm6 = vmand %vm2597_vm5, %vm2757_vm3  ;;  %v6588_v18 = vsel %vm6363_vm15, 1, %v21156_v25  ;;  %vm2595_vm15 = vcmp.eq.s32.totalorder %v15401_v27, %v11786_v21  ;;  %v10757_v21 = vadd.f32 %v10756_v7, %v10755_v32  ;;  %v10647_v38 = vpop.f32.mrb[79].mxu0  ;;  %v10760_v32 = vadd.f32 %v10759_v20, %v10758_v5 }
 0x33b   :  { %vm15480_vm10 = vmand %vm2590_vm4, %vm2756_vm11  ;;  %6621 = vperm.xlu0 %11339, %v6588_v18   ;;  %v10645_v18 = vadd.f32 %v10644_v2, %v10643_v24  ;;  %v10648_v7 = vadd.f32 %v10647_v38, %v10646_v15  ;;  %v10649_v24 = vpop.f32.mrb[80].mxu0  ;;  %v21637_v2 = vmov 0 }
 0x33c   :  { %vm6364_vm5 = vmand %vm21630_vm0, %vm6332_vm13  ;;  %v10650_v51 = vpop.f32.mrb[81].mxu0 }
 0x33d   :  { %vm15496_vm4 = vmand %vm2594_vm1, %vm2757_vm3  ;;  %v6589_v30 = vsel %vm6364_vm5, 1, %v21156_v25  ;;  %v15523_v43 = vadd.f32 %v10757_v21, %v10645_v18  ;;  %vm2592_vm5 = vcmp.eq.s32.totalorder %v15387_v39, %v11941_v60  ;;  %v15544_v20 = vadd.f32 %v10760_v32, %v10648_v7  ;;  %v10652_v21 = vpop.f32.mrb[82].mxu0 }
 0x33e   :  { %vm15503_vm12 = vmand %vm2591_vm14, %vm2756_vm11  ;;  %6624 = vperm.xlu1 %11340, %v6589_v30   ;;  %v10761_v30 = vpop.f32.mrb[80].mxu1  ;;  %v21639_v39 = vmov 0  ;;  %v10653_v38 = vpop.f32.mrb[83].mxu0 }
 0x33f   :  { %vm2883_vm13 = vmand %vm2595_vm15, %vm2757_vm3  ;;  %vm3137_vm15 = vcmp.gt.s32.totalorder %v14499_v13, %v15508_v54  ;;  %v10762_v1 = vpop.f32.mrb[81].mxu1  ;;  %v10654_v32 = vadd.f32 %v10653_v38, %v10652_v21  ;;  %v21688_v21 = vld [vmem:[#allocation65_spill] sm:$0xff] }
 0x340   :  { %vm3007_vm1 = vmand %vm15503_vm12, %vm21555_vm7  ;;  %v10763_v15 = vadd.f32 %v10762_v1, %v10761_v30  ;;  %v21666_v30 = vld [vmem:[#allocation56_spill] sm:$0xff]  ;;  %v21694_v38 = vld [vmem:[#allocation81_spill] sm:$0xff] }
 0x341   :  { %vm3011_vm0 = vmand %vm2883_vm13, %vm21555_vm7  ;;  %vm2596_vm13 = vcmp.eq.s32.totalorder %v15401_v27, %v11941_v60  ;;  %v10651_v60 = vadd.f32 %v10650_v51, %v10649_v24  ;;  %v10764_v27 = vpop.f32.mrb[82].mxu1  ;;  %vm1384_vm7 = vcmp.gt.s32.totalorder %v11910_v37, %v11925_v49  ;;  %v21671_v24 = vld [vmem:[#allocation57_spill] sm:$0xff]  ;;  %v21677_v1 = vld [vmem:[#allocation72_spill] sm:$0xff] }
 0x342   :  { %vm9641_vm14 = vmpackc.low %vm3011_vm0, %vm3007_vm1  ;;  %vm3141_vm0 = vcmp.gt.s32.totalorder %v14499_v13, %v15515_v22  ;;  %v10765_v53 = vpop.f32.mrb[83].mxu1  ;;  %v21681_v51 = vld [vmem:[#allocation64_spill] sm:$0xff] }
 0x343   :  { %vm15531_vm12 = vmand %vm2592_vm5, %vm2756_vm11  ;;  %9642 = vmatprep.subr.msk.bf16.mxu0 %vm9641_vm14, %v21159_v33  ;;  %v15569_v5 = vadd.f32 %v10763_v15, %v10651_v60  ;;  %v10766_v18 = vadd.f32 %v10765_v53, %v10764_v27  ;;  %v21679_v15 = vld [vmem:[#allocation5_spill] sm:$0xff]  ;;  %v21686_v27 = vld [vmem:[#allocation6_spill] sm:$0xff] }
 0x344   :  { %v21638_v2 = vsel %vm15531_vm12, 4294967295, %v21637_v2  ;;  %vm20952_vm1 = vmand %vm15458_vm8, %vm21510_vm9  ;;  %v21793_v53 = vld [vmem:[#allocation105_spill] sm:$0xff] }
 0x345   :  { %vm15548_vm11 = vmand %vm2596_vm13, %vm2757_vm3  ;;  %v15587_v7 = vadd.f32 %v10766_v18, %v10654_v32  ;;  %v21693_v18 = vld [vmem:[#allocation80_spill] sm:$0xff] }
 0x346   :  { %v21640_v39 = vsel %vm15548_vm11, 4294967295, %v21639_v39  ;;  %vm20954_vm5 = vmand %vm15473_vm6, %vm21510_vm9 }
 0x347   :  { %vm3265_vm3 = vmand %vm20952_vm1, %vm3137_vm15  ;;  %vm3713_vm1 = vcmp.gt.s32.totalorder %v15508_v54, %v14499_v13  ;;  %v21725_v54 = vld [vmem:[#allocation8_spill] sm:$0xff] }
 0x348   :  { %vm3269_vm14 = vmand %vm20954_vm5, %vm3141_vm0  ;;  %vm1392_vm5 = vcmp.gt.s32.totalorder %v12111_v23, %v11925_v49 }
 0x349   :  { %vm9579_vm13 = vmpackc.low %vm3269_vm14, %vm3265_vm3  ;;  %vm3717_vm3 = vcmp.gt.s32.totalorder %v15515_v22, %v14499_v13  ;;  %v21723_v22 = vmov 0 }
 0x34a   :  { %9580 = vmatprep.mubr.msk.bf16.mxu1 %vm9579_vm13, %v21159_v33  ;;  %vm3006_vm15 = vmand %vm15480_vm10, %vm21467_vm2  ;;  %vm1380_vm10 = vcmp.gt.s32.totalorder %v11742_v63, %v11925_v49  ;;  %vm1388_vm13 = vcmp.gt.s32.totalorder %v12102_v48, %v11925_v49 }
 0x34b   :  { %vm3010_vm0 = vmand %vm15496_vm4, %vm21467_vm2  ;;  %4480 = vmatmul.mubr.bf16.gmra.mrb[124].mxu1 %v21290_v61 }
 0x34c   :  { %vm9643_vm14 = vmpackc.low %vm3010_vm0, %vm3006_vm15  ;;  %4561 = vmatprep.mubr.bf16.mxu1 %v21165_v45  ;;  %vm21642_vm15 = vnez %v21147_v57  ;;  %v21650_v57 = vmov 0 }
 0x34d   :  { %9644 = vmatpush1.bf16.msk.msra.mxu0 %vm9643_vm14, %v21159_v33  ;;  %vm21641_vm4 = vmand %vm15458_vm8, %vm21510_vm9 }
 0x34e   :  { %vm3841_vm11 = vmand %vm21641_vm4, %vm3713_vm1  ;;  %4570 = vmatprep.subr.bf16.mxu0 %v21290_v61  ;;  %vm1396_vm1 = vcmp.gt.s32.totalorder %v12288_v50, %v11925_v49  ;;  %vm1400_vm4 = vcmp.gt.s32.totalorder %v12297_v19, %v11925_v49 }
 0x34f   :  { %vm21643_vm0 = vmand %vm21642_vm15, %vm21467_vm2  ;;  %vm21648_vm15 = vnez %v21153_v4 }
 0x350   :  { %vm15607_vm12 = vmand %vm21643_vm0, %vm1384_vm7  ;;  %vm21647_vm7 = vnez %v21142_v52  ;;  %v21660_v52 = vmov 0  ;;  %4521 = vmatmul.mubr.bf16.vlgmr.msra.gmra.mrb[128].mxu0 %v21165_v45 }
 0x351   :  { %v21645_v0 = vsel %vm15607_vm12, 4294967295, %v21644_v0  ;;  %vm21646_vm14 = vmand %vm15473_vm6, %vm21510_vm9  ;;  %vm21653_vm9 = vnez %v21652_v62  ;;  %4602 = vmatprep.mubr.bf16.mxu0 %v21165_v45  ;;  %v21695_v62 = vld [vmem:[#allocation70_spill] sm:$0xff] }
 0x352   :  { %vm3845_vm8 = vmand %vm21646_vm14, %vm3717_vm3 }
 0x353   :  { %vm9689_vm2 = vmpackc.low %vm3845_vm8, %vm3841_vm11  ;;  %vm21658_vm11 = vnez %v21657_v29  ;;  %v21818_v29 = vld [vmem:[#allocation22_spill] sm:$0xff] }
 0x354   :  { %vm21649_vm0 = vmand %vm21647_vm7, %vm21648_vm15  ;;  %9690 = vmatprep.subr.msk.bf16.mxu1 %vm9689_vm2, %v21159_v33  ;;  %vm21663_vm7 = vnez %v21638_v2  ;;  %vm21667_vm2 = vnez %v21666_v30  ;;  %v21678_v2 = vld [vmem:[#allocation73_spill] sm:$0xff]  ;;  %v21700_v30 = vld [vmem:[#allocation71_spill] sm:$0xff] }
 0x355   :  { %vm15626_vm12 = vmand %vm21649_vm0, %vm1380_vm10  ;;  %vm21662_vm10 = vnez %v21158_v31  ;;  %v21674_v31 = vmov 0 }
 0x356   :  { %v21651_v57 = vsel %vm15626_vm12, 4294967295, %v21650_v57  ;;  %vm21654_vm6 = vmand %vm21653_vm9, %vm21648_vm15  ;;  %vm1404_vm9 = vcmp.gt.s32.totalorder %v21664_v59, %v11925_v49 }
 0x357   :  { %vm15635_vm3 = vmand %vm21654_vm6, %vm1388_vm13  ;;  %vm6333_vm13 = vcmp.lt.f32.partialorder %v14377_v36, 0.5  ;;  %v21669_v36 = vmov 0 }
 0x358   :  { %v21656_v56 = vsel %vm15635_vm3, 4294967295, %v21655_v56  ;;  %vm21659_vm14 = vmand %vm21658_vm11, %vm21648_vm15  ;;  %vm6334_vm11 = vcmp.lt.f32.partialorder %v14389_v9, 0.5  ;;  %v21676_v9 = vld [vmem:[#allocation67_spill] sm:$0xff] }
 0x359   :  { %vm15644_vm8 = vmand %vm21659_vm14, %vm1392_vm5  ;;  %vm21665_vm5 = vnez %v21640_v39 }
 0x35a   :  { %v21661_v52 = vsel %vm15644_vm8, 4294967295, %v21660_v52  ;;  %vm3008_vm0 = vmand %vm21663_vm7, %vm21662_vm10  ;;  %vm21672_vm8 = vnez %v21671_v24 }
 0x35b   :  { %vm3012_vm6 = vmand %vm21665_vm5, %vm21662_vm10  ;;  %vm1408_vm10 = vcmp.gt.s32.totalorder %v21676_v9, %v11925_v49 }
 0x35c   :  { %vm21668_vm14 = vmand %vm21667_vm2, %vm21648_vm15  ;;  %vm1412_vm2 = vcmp.gt.s32.totalorder %v21677_v1, %v11925_v49 }
 0x35d   :  { %vm15668_vm7 = vmand %vm21668_vm14, %vm1396_vm1  ;;  %vm1416_vm1 = vcmp.gt.s32.totalorder %v21678_v2, %v11925_v49  ;;  %vm21680_vm14 = vcmp.ne.s32.totalorder %v21679_v15, 0  ;;  %v21706_v15 = vld [vmem:[#allocation7_spill] sm:$0xff] }
 0x35e   :  { %v21670_v36 = vsel %vm15668_vm7, 4294967295, %v21669_v36  ;;  %vm21673_vm3 = vmand %vm21672_vm8, %vm21648_vm15 }
 0x35f   :  { %vm15677_vm12 = vmand %vm21673_vm3, %vm1400_vm4  ;;  %vm21682_vm3 = vnez %v21681_v51  ;;  %v10767_v51 = vpop.f32.mrb[84].mxu1 }
 0x360   :  { %v21675_v31 = vsel %vm15677_vm12, 4294967295, %v21674_v31  ;;  %vm9691_vm5 = vmpackc.low %vm3012_vm6, %vm3008_vm0  ;;  %vm6337_vm0 = vcmp.lt.f32.partialorder %v14642_v41, 0.5  ;;  %vm21687_vm6 = vcmp.ne.s32.totalorder %v21686_v27, 0  ;;  %v21708_v27 = vld [vmem:[#allocation86_spill] sm:$0xff]  ;;  %v21718_v41 = vmov 0 }
 0x361   :  { %9692 = vmatpush1.bf16.msk.msra.mxu1 %vm9691_vm5, %v21159_v33  ;;  %vm6365_vm7 = vmand %vm21680_vm14, %vm6333_vm13  ;;  %vm21689_vm13 = vnez %v21688_v21  ;;  %v21709_v21 = vld [vmem:[#allocation87_spill] sm:$0xff] }
 0x362   :  { %vm21683_vm8 = vmand %vm21682_vm3, %vm21648_vm15  ;;  %v6590_v60 = vsel %vm6365_vm7, 1, %v21156_v25  ;;  %4611 = vmatprep.subr.bf16.mxu1 %v21290_v61  ;;  %vm1424_vm7 = vcmp.gt.s32.totalorder %v21694_v38, %v11925_v49  ;;  %vm21696_vm3 = vnez %v21695_v62  ;;  %v21710_v62 = vld [vmem:[#allocation9_spill] sm:$0xff] }
 0x363   :  { %vm15696_vm12 = vmand %vm21683_vm8, %vm1404_vm9  ;;  %vm1420_vm9 = vcmp.gt.s32.totalorder %v21693_v18, %v11925_v49  ;;  %6627 = vperm.xlu0 %11339, %v6590_v60   ;;  %v10655_v60 = vpop.f32.mrb[84].mxu0 }
 0x364   :  { %vm6366_vm5 = vmand %vm21687_vm6, %vm6334_vm11  ;;  %vm6336_vm11 = vcmp.lt.f32.partialorder %v14515_v8, 0.5  ;;  %vm21701_vm6 = vnez %v21700_v30  ;;  %4562 = vmatmul.mubr.bf16.vlgmr.msra.gmra.mrb[128].mxu1 %v21165_v45  ;;  %v10768_v30 = vpop.f32.mrb[85].mxu1  ;;  %v10656_v38 = vpop.f32.mrb[85].mxu0  ;;  %v21730_v8 = vld [vmem:[#allocation83_spill] sm:$0xff] }
 0x365   :  { %vm21690_vm14 = vmand %vm21689_vm13, %vm21648_vm15  ;;  %v6591_v32 = vsel %vm6366_vm5, 1, %v21156_v25  ;;  %4612 = vmatpush1.bf16.msra.mxu1 %v21290_v61  ;;  %4643 = vmatprep.mubr.bf16.mxu1 %v21165_v45  ;;  %v10769_v13 = vadd.f32 %v10768_v30, %v10767_v51  ;;  %v10770_v18 = vpop.f32.mrb[86].mxu1  ;;  %v21742_v51 = vld [vmem:[#allocation10_spill] sm:$0xff] }
 0x366   :  { %vm15710_vm4 = vmand %vm21690_vm14, %vm1408_vm10  ;;  %6630 = vperm.xlu1 %11340, %v6591_v32   ;;  %vm21705_vm14 = vcmp.lt.f32.partialorder %v14504_v6, 0.5  ;;  %v21714_v6 = vld [vmem:[#allocation181_spill] sm:$0xff]  ;;  %10833 = vmatprep.subr.bf16.mxu1 %v21165_v45 }
 0x367   :  { %vm21697_vm10 = vmand %vm21696_vm3, %vm21648_vm15 }
 0x368   :  { %vm15728_vm8 = vmand %vm21697_vm10, %vm1412_vm2  ;;  %vm21707_vm2 = vcmp.ne.s32.totalorder %v21706_v15, 0  ;;  %v21715_v15 = vld [vmem:[#allocation76_spill] sm:$0xff] }
 0x369   :  { %vm21702_vm5 = vmand %vm21701_vm6, %vm21648_vm15 }
 0x36a   :  { %vm15740_vm13 = vmand %vm21702_vm5, %vm1416_vm1  ;;  %vm21711_vm1 = vcmp.ne.s32.totalorder %v21710_v62, 0  ;;  %v21720_v62 = vld [vmem:[#allocation77_spill] sm:$0xff] }
 0x36b   :  { %vm6367_vm3 = vmand %vm21707_vm2, %vm21705_vm14  ;;  %vm21716_vm2 = vnez %v21715_v15 }
 0x36c   :  { %vm15757_vm5 = vmand %vm21711_vm1, %vm6337_vm0  ;;  %vm21721_vm0 = vnez %v21720_v62  ;;  %v6592_v15 = vsel %vm6367_vm3, 1, %v21156_v25  ;;  %vm21729_vm3 = vcmp.gt.s32.totalorder %v21708_v27, %v11925_v49 }
 0x36d   :  { %vm21717_vm6 = vmand %vm21716_vm2, %vm21648_vm15  ;;  %6633 = vperm.xlu0 %11339, %v6592_v15   ;;  %v10657_v15 = vadd.f32 %v10656_v38, %v10655_v60  ;;  %v6594_v60 = vsel %vm15757_vm5, 1, %v21156_v25 }
 0x36e   :  { %vm15772_vm10 = vmand %vm21717_vm6, %vm1420_vm9  ;;  %vm21726_vm9 = vcmp.ne.s32.totalorder %v21725_v54, 0  ;;  %v21733_v54 = vmov 0 }
 0x36f   :  { %v21719_v41 = vsel %vm15772_vm10, 4294967295, %v21718_v41  ;;  %vm21722_vm1 = vmand %vm21721_vm0, %vm21648_vm15  ;;  %vm21728_vm0 = vnez %v21645_v0  ;;  %v21739_v0 = vmov 0  ;;  %vm21741_vm10 = vcmp.lt.f32.partialorder %v21714_v6, 0.5 }
 0x370   :  { %vm15784_vm14 = vmand %vm21722_vm1, %vm1424_vm7  ;;  %vm21727_vm7 = vnez %v21651_v57  ;;  %v21736_v57 = vld [vmem:[#allocation85_spill] sm:$0xff]  ;;  %4644 = vmatmul.mubr.bf16.vlgmr.msra.gmra.mrb[128].mxu1 %v21165_v45 }
 0x371   :  { %v21724_v22 = vsel %vm15784_vm14, 4294967295, %v21723_v22  ;;  %vm6368_vm6 = vmand %vm21726_vm9, %vm6336_vm11  ;;  %vm21731_vm11 = vnez %v21730_v8  ;;  %vm21737_vm2 = vnez %v21736_v57  ;;  %v10658_v8 = vpop.f32.mrb[86].mxu0  ;;  %v10771_v57 = vpop.f32.mrb[87].mxu1  ;;  %6639 = vperm.xlu0 %11339, %v6594_v60   ;;  %10834 = vmatpush3.bf16.msra.mxu1 %v21165_v45 }
 0x372   :  { %v6593_v62 = vsel %vm6368_vm6, 1, %v21156_v25  ;;  %vm9693_vm1 = vmpackc.low %vm21728_vm0, %vm21727_vm7  ;;  %vm21735_vm6 = vcmp.gt.s32.totalorder %v21709_v21, %v11925_v49  ;;  %v21746_v21 = vld [vmem:[#allocation92_spill] sm:$0xff]  ;;  %v10772_v6 = vadd.f32 %v10771_v57, %v10770_v18  ;;  %v21757_v18 = vld [vmem:[#allocation90_spill] sm:$0xff]  ;;  %v10773_v30 = vpop.f32.mrb[88].mxu1  ;;  %10835 = vmatprep.subr.bf16.mxu1 %v21165_v45 }
 0x373   :  { %vm21732_vm9 = vmand %vm21731_vm11, %vm21648_vm15  ;;  %vm21743_vm11 = vcmp.ne.s32.totalorder %v21742_v51, 0  ;;  %6636 = vperm.xlu1 %11340, %v6593_v62   ;;  %9694 = vmatpush1.bf16.msk.msra.mxu0 %vm9693_vm1, %v21159_v33  ;;  %v10659_v51 = vpop.f32.mrb[87].mxu0  ;;  %v21750_v62 = vld [vmem:[#allocation11_spill] sm:$0xff] }
 0x374   :  { %vm15808_vm14 = vmand %vm21732_vm9, %vm21729_vm3  ;;  %4572 = vmatprep.subr.bf16.mxu0 %v21290_v61  ;;  %vm21747_vm9 = vnez %v21656_v56  ;;  %v10660_v56 = vadd.f32 %v10659_v51, %v10658_v8  ;;  %v10774_v8 = vpop.f32.mrb[89].mxu1  ;;  %v21762_v57 = vld [vmem:[#allocation91_spill] sm:$0xff]  ;;  %v21767_v51 = vld [vmem:[#allocation94_spill] sm:$0xff] }
 0x375   :  { %v21734_v54 = vsel %vm15808_vm14, 4294967295, %v21733_v54  ;;  %vm21738_vm7 = vmand %vm21737_vm2, %vm21648_vm15  ;;  %vm1436_vm2 = vcmp.gt.s32.totalorder %v21746_v21, %v11925_v49  ;;  %v15851_v21 = vadd.f32 %v10769_v13, %v10657_v15  ;;  %v21760_v13 = vmov 0  ;;  %v10661_v15 = vpop.f32.mrb[88].mxu0  ;;  %10836 = vmatpush3.bf16.msra.mxu1 %v21165_v45 }
 0x376   :  { %vm15820_vm0 = vmand %vm21738_vm7, %vm21735_vm6  ;;  %vm21748_vm6 = vnez %v21661_v52  ;;  %v21754_v52 = vld [vmem:[#allocation93_spill] sm:$0xff]  ;;  %v15872_v32 = vadd.f32 %v10772_v6, %v10660_v56  ;;  %v21765_v6 = vmov 0  ;;  %v10775_v60 = vadd.f32 %v10774_v8, %v10773_v30  ;;  %v21768_v56 = vld [vmem:[#allocation98_spill] sm:$0xff]  ;;  %v10662_v38 = vpop.f32.mrb[89].mxu0  ;;  %10837 = vmatprep.subr.bf16.mxu1 %v21165_v45 }
 0x377   :  { %v21740_v0 = vsel %vm15820_vm0, 4294967295, %v21739_v0  ;;  %vm15828_vm3 = vmand %vm21743_vm11, %vm21741_vm10  ;;  %vm21749_vm10 = vcmp.lt.f32.partialorder %v14787_v35, 0.5  ;;  %vm21751_vm11 = vcmp.ne.s32.totalorder %v21750_v62, 0  ;;  %vm21758_vm0 = vnez %v21757_v18  ;;  %v21772_v18 = vld [vmem:[#allocation96_spill] sm:$0xff]  ;;  %v21773_v30 = vld [vmem:[#allocation99_spill] sm:$0xff] }
 0x378   :  { %vm9695_vm7 = vmpackc.low %vm21748_vm6, %vm21747_vm9  ;;  %vm1440_vm9 = vcmp.gt.s32.totalorder %v21754_v52, %v11925_v49  ;;  %v6595_v35 = vsel %vm15828_vm3, 1, %v21156_v25  ;;  %vm21755_vm6 = vnez %v21670_v36  ;;  %vm21769_vm3 = vcmp.eq.s32.totalorder %v21768_v56, 1  ;;  %v10664_v56 = vpop.f32.mrb[90].mxu0 }
 0x379   :  { %vm15844_vm1 = vmand %vm21751_vm11, %vm21749_vm10  ;;  %vm21756_vm10 = vnez %v21675_v31  ;;  %6642 = vperm.xlu1 %11340, %v6595_v35   ;;  %9696 = vmatpush1.bf16.msk.msra.mxu0 %vm9695_vm7, %v21159_v33  ;;  %vm303_vm11 = vcmp.eq.s32.totalorder %v21767_v51, %v11797_v28  ;;  %v21775_v8 = vmov 0  ;;  %v21779_v51 = vld [vmem:[#allocation19_spill] sm:$0xff]  ;;  %v10665_v31 = vpop.f32.mrb[91].mxu0 }
 0x37a   :  { %vm21759_vm5 = vmand %vm21758_vm0, %vm21648_vm15  ;;  %4574 = vmatprep.subr.bf16.mxu0 %v21290_v61  ;;  %v6596_v62 = vsel %vm15844_vm1, 1, %v21156_v25  ;;  %vm21774_vm1 = vcmp.eq.s32.totalorder %v21773_v30, 1  ;;  %v10667_v52 = vpop.f32.mrb[92].mxu0  ;;  %10838 = vmatpush3.bf16.msra.mxu1 %v21165_v45 }
 0x37b   :  { %vm15867_vm14 = vmand %vm21759_vm5, %vm1436_vm2  ;;  %vm21763_vm2 = vnez %v21762_v57  ;;  %6645 = vperm.xlu0 %11339, %v6596_v62   ;;  %v10776_v57 = vpop.f32.mrb[90].mxu1  ;;  %v10663_v62 = vadd.f32 %v10662_v38, %v10661_v15  ;;  %v21784_v15 = vld [vmem:[#allocation20_spill] sm:$0xff]  ;;  %10839 = vmatprep.subr.bf16.mxu1 %v21165_v45 }
 0x37c   :  { %v21761_v13 = vsel %vm15867_vm14, 4294967295, %v21760_v13  ;;  %vm21764_vm5 = vmand %vm21763_vm2, %vm21648_vm15  ;;  %vm21780_vm2 = vcmp.ne.s32.totalorder %v21779_v51, 0  ;;  %v10666_v51 = vadd.f32 %v10665_v31, %v10664_v56  ;;  %v21792_v56 = vld [vmem:[#allocation102_spill] sm:$0xff] }
 0x37d   :  { %vm15885_vm7 = vmand %vm21764_vm5, %vm1440_vm9  ;;  %vm307_vm9 = vcmp.eq.s32.totalorder %v21772_v18, %v11797_v28  ;;  %v10777_v18 = vpop.f32.mrb[91].mxu1  ;;  %v15936_v38 = vadd.f32 %v10775_v60, %v10663_v62  ;;  %v21789_v60 = vld [vmem:[#allocation21_spill] sm:$0xff]  ;;  %v21791_v62 = vld [vmem:[#allocation103_spill] sm:$0xff] }
 0x37e   :  { %v21766_v6 = vsel %vm15885_vm7, 4294967295, %v21765_v6  ;;  %vm15896_vm0 = vmand %vm303_vm11, %vm21769_vm3  ;;  %vm21778_vm3 = vcmp.lt.f32.partialorder %v15055_v34, 0.5  ;;  %v10778_v34 = vadd.f32 %v10777_v18, %v10776_v57  ;;  %v10779_v30 = vpop.f32.mrb[92].mxu1  ;;  %10840 = vmatpush3.bf16.msra.mxu1 %v21165_v45 }
 0x37f   :  { %vm15909_vm15 = vmand %vm307_vm9, %vm21774_vm1  ;;  %vm21782_vm1 = vnez %v21724_v22  ;;  %v10780_v27 = vpop.f32.mrb[93].mxu1  ;;  %v21833_v22 = vld [vmem:[#allocation114_spill] sm:$0xff]  ;;  %10841 = vmatprep.subr.bf16.mxu1 %v21165_v45 }
 0x380   :  { %v21776_v8 = vsel %vm15909_vm15, 4294967295, %v21775_v8  ;;  %vm21777_vm11 = vmpackc.low %vm21756_vm10, %vm21755_vm6  ;;  %vm6349_vm6 = vcmp.lt.f32.partialorder %v15091_v3, 0.5  ;;  %vm21783_vm10 = vcmp.lt.f32.partialorder %v15068_v17, 0.5  ;;  %v10781_v18 = vadd.f32 %v10780_v27, %v10779_v30  ;;  %v10668_v17 = vpop.f32.mrb[93].mxu0  ;;  %v10782_v2 = vpop.f32.mrb[94].mxu1  ;;  %v21794_v3 = vld [vmem:[#allocation104_spill] sm:$0xff] }
 0x381   :  { %9698 = vmatpush1.bf16.msk.msra.mxu0 %vm21777_vm11, %v21159_v33  ;;  %vm6379_vm5 = vmand %vm21780_vm2, %vm21778_vm3  ;;  %vm21785_vm2 = vcmp.ne.s32.totalorder %v21784_v15, 0  ;;  %vm21787_vm3 = vnez %v21740_v0  ;;  %vm1445_vm15 = vcmp.gt.s32.totalorder %v21792_v56, %v21791_v62  ;;  %v10669_v27 = vadd.f32 %v10668_v17, %v10667_v52  ;;  %v10670_v31 = vpop.f32.mrb[94].mxu0  ;;  %v10783_v30 = vpop.f32.mrb[95].mxu1  ;;  %v21795_v52 = vld [vmem:[#allocation107_spill] sm:$0xff] }
 0x382   :  { %4576 = vmatprep.subr.bf16.mxu0 %v21290_v61  ;;  %v6604_v36 = vsel %vm6379_vm5, 1, %v21156_v25  ;;  %vm6380_vm11 = vmand %vm21785_vm2, %vm21783_vm10  ;;  %vm21786_vm5 = vnez %v21734_v54  ;;  %vm21790_vm2 = vcmp.ne.s32.totalorder %v21789_v60, 0  ;;  %v10671_v15 = vpop.f32.mrb[95].mxu0  ;;  %10842 = vmatpush3.bf16.msra.mxu1 %v21165_v45 }
 0x383   :  { %6669 = vperm.xlu1 %11340, %v6604_v36   ;;  %v6605_v57 = vsel %vm6380_vm11, 1, %v21156_v25  ;;  %vm21788_vm10 = vmpackc.low %vm15710_vm4, %vm15696_vm12  ;;  %v15956_v36 = vadd.f32 %v10778_v34, %v10666_v51  ;;  %vm311_vm11 = vcmp.eq.s32.totalorder %v21793_v53, %v11797_v28  ;;  %v10784_v34 = vadd.f32 %v10783_v30, %v10782_v2  ;;  %v10673_v53 = vpop.f32.mrb[96].mxu0  ;;  %v21800_v2 = vld [vmem:[#allocation108_spill] sm:$0xff]  ;;  %10843 = vmatprep.subr.bf16.mxu1 %v21165_v45 }
 0x384   :  { %vm6381_vm9 = vmand %vm21790_vm2, %vm6349_vm6  ;;  %6672 = vperm.xlu0 %11339, %v6605_v57   ;;  %vm21796_vm6 = vcmp.eq.s32.totalorder %v21795_v52, 1  ;;  %v21797_v51 = vmov 0  ;;  %v21799_v57 = vld [vmem:[#allocation106_spill] sm:$0xff]  ;;  %v15978_v17 = vadd.f32 %v10781_v18, %v10669_v27  ;;  %v10672_v60 = vadd.f32 %v10671_v15, %v10670_v31  ;;  %v21804_v52 = vld [vmem:[#allocation100_spill] sm:$0xff]  ;;  %v10785_v27 = vpop.f32.mrb[96].mxu1  ;;  %v10674_v31 = vpop.f32.mrb[97].mxu0 }
 0x385   :  { %9700 = vmatpush1.bf16.msk.msra.mxu0 %vm21788_vm10, %v21159_v33  ;;  %v6606_v39 = vsel %vm6381_vm9, 1, %v21156_v25  ;;  %vm15971_vm10 = vmand %vm311_vm11, %vm21796_vm6  ;;  %vm315_vm2 = vcmp.eq.s32.totalorder %v21799_v57, %v11797_v28  ;;  %vm21801_vm9 = vcmp.eq.s32.totalorder %v21800_v2, 1  ;;  %v21802_v30 = vmov 0  ;;  %v10786_v24 = vpop.f32.mrb[97].mxu1 }
 0x386   :  { %4578 = vmatprep.subr.bf16.mxu0 %v21290_v61  ;;  %v21798_v51 = vsel %vm15971_vm10, 4294967295, %v21797_v51  ;;  %vm15983_vm4 = vmand %vm315_vm2, %vm21801_vm9  ;;  %vm21805_vm11 = vnez %v21804_v52  ;;  %vm21806_vm6 = vnez %v21138_v40  ;;  %vm21811_vm9 = vcmp.gt.s32.totalorder %v21794_v3, %v21791_v62  ;;  %v10676_v52 = vpop.f32.mrb[98].mxu0  ;;  %v10788_v3 = vpop.f32.mrb[98].mxu1  ;;  %10844 = vmatpush3.bf16.msra.mxu1 %v21165_v45 }
 0x387   :  { %6675 = vperm.xlu1 %11340, %v6606_v39   ;;  %v21803_v30 = vsel %vm15983_vm4, 4294967295, %v21802_v30  ;;  %vm21807_vm12 = vmand %vm21805_vm11, %vm21806_vm6  ;;  %v21812_v39 = vld [vmem:[#allocation101_spill] sm:$0xff]  ;;  %v16017_v57 = vadd.f32 %v10784_v34, %v10672_v60  ;;  %v10675_v2 = vadd.f32 %v10674_v31, %v10673_v53  ;;  %v10677_v56 = vpop.f32.mrb[99].mxu0  ;;  %v10789_v53 = vpop.f32.mrb[99].mxu1  ;;  %10845 = vmatprep.subr.bf16.mxu1 %v21165_v45 }
 0x388   :  { %vm15995_vm14 = vmand %vm21807_vm12, %vm1445_vm15  ;;  %vm21813_vm7 = vnez %v21812_v39  ;;  %v10787_v39 = vadd.f32 %v10786_v24, %v10785_v27  ;;  %v10678_v60 = vadd.f32 %v10677_v56, %v10676_v52  ;;  %v10679_v31 = vpop.f32.mrb[100].mxu0  ;;  %v10790_v35 = vadd.f32 %v10789_v53, %v10788_v3  ;;  %v21828_v56 = vld [vmem:[#allocation112_spill] sm:$0xff]  ;;  %v21829_v52 = vld [vmem:[#allocation115_spill] sm:$0xff] }
 0x389   :  { %vm21810_vm2 = vmpackc.low %vm15740_vm13, %vm15728_vm8  ;;  %vm21817_vm8 = vcmp.lt.f32.partialorder %v15111_v14, 0.5  ;;  %vm21819_vm13 = vcmp.ne.s32.totalorder %v21818_v29, 0  ;;  %v21822_v14 = vld [vmem:[#allocation111_spill] sm:$0xff]  ;;  %v10680_v24 = vpop.f32.mrb[101].mxu0  ;;  %v21823_v29 = vld [vmem:[#allocation113_spill] sm:$0xff] }
 0x38a   :  { %9702 = vmatpush1.bf16.msk.msra.mxu0 %vm21810_vm2, %v21159_v33  ;;  %vm21814_vm15 = vmand %vm21813_vm7, %vm21806_vm6  ;;  %vm21820_vm7 = vnez %v21153_v4  ;;  %v16037_v27 = vadd.f32 %v10787_v39, %v10675_v2  ;;  %v16053_v2 = vadd.f32 %v10680_v24, %v10679_v31  ;;  %v10682_v3 = vpop.f32.mrb[102].mxu0  ;;  %v21831_v39 = vmov 0  ;;  %v21834_v53 = vld [vmem:[#allocation116_spill] sm:$0xff]  ;;  %v21839_v24 = vld [vmem:[#allocation109_spill] sm:$0xff]  ;;  %10846 = vmatpush3.bf16.msra.mxu1 %v21165_v45 }
 0x38b   :  { %vm16013_vm12 = vmand %vm21814_vm15, %vm21811_vm9  ;;  %4580 = vmatprep.subr.bf16.mxu0 %v21290_v61  ;;  %vm21821_vm9 = vnez %v21776_v8  ;;  %v21836_v31 = vmov 0  ;;  %v21888_v8 = vld [vmem:[#allocation128_spill] sm:$0xff]  ;;  %10847 = vmatprep.subr.bf16.mxu1 %v21165_v45 }
 0x38c   :  { %vm6382_vm11 = vmand %vm21819_vm13, %vm21817_vm8  ;;  %vm21824_vm13 = vnez %v21719_v41  ;;  %vm21830_vm8 = vcmp.eq.s32.totalorder %v21829_v52, 1  ;;  %v16069_v41 = vadd.f32 %v10790_v35, %v10678_v60 }
 0x38d   :  { %vm740_vm2 = vmand %vm15896_vm0, %vm21820_vm7  ;;  %v6607_v34 = vsel %vm6382_vm11, 1, %v21156_v25  ;;  %vm319_vm0 = vcmp.eq.s32.totalorder %v21823_v29, %v11797_v28  ;;  %v21845_v29 = vld [vmem:[#allocation110_spill] sm:$0xff] }
 0x38e   :  { %vm744_vm15 = vmand %vm21821_vm9, %vm21820_vm7  ;;  %6678 = vperm.xlu0 %11339, %v6607_v34   ;;  %v10683_v34 = vpop.f32.mrb[103].mxu0  ;;  %10848 = vmatpush3.bf16.msra.mxu1 %v21165_v45 }
 0x38f   :  { %vm21825_vm11 = vmpackc.low %vm21782_vm1, %vm21824_vm13  ;;  %vm323_vm1 = vcmp.eq.s32.totalorder %v21833_v22, %v11797_v28  ;;  %vm21838_vm13 = vcmp.gt.s32.totalorder %v21822_v14, %v21791_v62  ;;  %v16090_v60 = vadd.f32 %v10683_v34, %v10682_v3  ;;  %v10685_v35 = vpop.f32.mrb[104].mxu0  ;;  %v21851_v3 = vld [vmem:[#allocation23_spill] sm:$0xff]  ;;  %11057 = vmatprep.subr.bf16.mxu1 %v21165_v45 }
 0x390   :  { %9704 = vmatpush1.bf16.msk.msra.mxu0 %vm21825_vm11, %v21159_v33  ;;  %vm16047_vm4 = vmpackc.low %vm744_vm15, %vm740_vm2  ;;  %vm6351_vm15 = vcmp.lt.f32.partialorder %v15139_v58, 0.5  ;;  %vm21840_vm11 = vnez %v21839_v24  ;;  %v10686_v22 = vpop.f32.mrb[105].mxu0  ;;  %v21854_v24 = vld [vmem:[#allocation119_spill] sm:$0xff] }
 0x391   :  { %vm16057_vm10 = vmand %vm319_vm0, %vm21830_vm8  ;;  %4582 = vmatprep.subr.bf16.mxu0 %v21290_v61  ;;  %vm21835_vm8 = vcmp.eq.s32.totalorder %v21834_v53, 1  ;;  %v16113_v34 = vadd.f32 %v10686_v22, %v10685_v35  ;;  %v10688_v53 = vpop.f32.mrb[106].mxu0  ;;  %v21856_v35 = vld [vmem:[#allocation121_spill] sm:$0xff]  ;;  %v21886_v58 = vld [vmem:[#allocation127_spill] sm:$0xff] }
 0x392   :  { %v21832_v39 = vsel %vm16057_vm10, 4294967295, %v21831_v39  ;;  %vm16074_vm0 = vmand %vm323_vm1, %vm21835_vm8  ;;  %vm21844_vm1 = vcmp.gt.s32.totalorder %v21828_v56, %v21791_v62  ;;  %vm21846_vm8 = vnez %v21845_v29  ;;  %v10689_v0 = vpop.f32.mrb[107].mxu0  ;;  %v21857_v29 = vmov 0 }
 0x393   :  { %v21837_v31 = vsel %vm16074_vm0, 4294967295, %v21836_v31  ;;  %vm21841_vm2 = vmand %vm21840_vm11, %vm21806_vm6 }
 0x394   :  { %vm16086_vm9 = vmand %vm21841_vm2, %vm21838_vm13  ;;  %vm21852_vm13 = vcmp.ne.s32.totalorder %v21851_v3, 0  ;;  %v21859_v3 = vld [vmem:[#allocation123_spill] sm:$0xff] }
 0x395   :  { %vm21847_vm0 = vmand %vm21846_vm8, %vm21806_vm6  ;;  %vm21865_vm8 = vnez %v21761_v13  ;;  %v21921_v13 = vld [vmem:[#allocation133_spill] sm:$0xff] }
 0x396   :  { %vm16101_vm10 = vmand %vm21847_vm0, %vm21844_vm1  ;;  %vm21853_vm0 = vnez %v21798_v51  ;;  %v10691_v51 = vpop.f32.mrb[108].mxu0 }
 0x397   :  { %vm21850_vm2 = vmpackc.low %vm21787_vm3, %vm21786_vm5  ;;  %vm21855_vm5 = vnez %v21803_v30  ;;  %v10692_v22 = vpop.f32.mrb[109].mxu0  ;;  %v21861_v30 = vmov 0 }
 0x398   :  { %9706 = vmatpush1.bf16.msk.msra.mxu0 %vm21850_vm2, %v21159_v33  ;;  %vm6383_vm11 = vmand %vm21852_vm13, %vm6351_vm15  ;;  %vm327_vm2 = vcmp.eq.s32.totalorder %v21856_v35, %v11797_v28  ;;  %vm21864_vm15 = vnez %v21766_v6  ;;  %v16165_v35 = vadd.f32 %v10692_v22, %v10691_v51  ;;  %v21873_v6 = vld [vmem:[#allocation124_spill] sm:$0xff] }
 0x399   :  { %4584 = vmatprep.subr.bf16.mxu0 %v21290_v61  ;;  %vm748_vm1 = vmand %vm21853_vm0, %vm21820_vm7  ;;  %v6608_v54 = vsel %vm6383_vm11, 1, %v21156_v25  ;;  %v16130_v61 = vadd.f32 %v10689_v0, %v10688_v53  ;;  %vm21860_vm11 = vcmp.eq.s32.totalorder %v21859_v3, 1  ;;  %v21863_v53 = vld [vmem:[#allocation122_spill] sm:$0xff]  ;;  %v10694_v3 = vpop.f32.mrb[110].mxu0  ;;  %v21914_v0 = vld [vmem:[#allocation135_spill] sm:$0xff] }
 0x39a   :  { %vm752_vm3 = vmand %vm21855_vm5, %vm21820_vm7  ;;  %6681 = vperm.xlu1 %11340, %v6608_v54   ;;  %vm331_vm5 = vcmp.eq.s32.totalorder %v21863_v53, %v11797_v28  ;;  %v21868_v54 = vld [vmem:[#allocation117_spill] sm:$0xff]  ;;  %v21879_v53 = vld [vmem:[#allocation118_spill] sm:$0xff]  ;;  %v10695_v22 = vpop.f32.mrb[111].mxu0 }
 0x39b   :  { %vm16135_vm13 = vmpackc.low %vm752_vm3, %vm748_vm1  ;;  %vm21867_vm1 = vcmp.gt.s32.totalorder %v21854_v24, %v21791_v62  ;;  %vm21869_vm3 = vnez %v21868_v54  ;;  %v16196_v18 = vadd.f32 %v10695_v22, %v10694_v3  ;;  %v10697_v15 = vpop.f32.mrb[112].mxu0  ;;  %v21908_v24 = vld [vmem:[#allocation132_spill] sm:$0xff] }
 0x39c   :  { %v21858_v29 = vsel %vm16135_vm13, 4294967295, %v21857_v29  ;;  %vm16141_vm0 = vmand %vm327_vm2, %vm21860_vm11  ;;  %v10698_v54 = vpop.f32.mrb[113].mxu0 }
 0x39d   :  { %v21862_v30 = vsel %vm16141_vm0, 4294967295, %v21861_v30  ;;  %vm21866_vm7 = vmpackc.low %vm21864_vm15, %vm21865_vm8  ;;  %vm21874_vm0 = vcmp.eq.s32.totalorder %v21873_v6, 1  ;;  %vm21878_vm8 = vcmp.gt.s32.totalorder %v13127_v42, %v21791_v62  ;;  %vm21880_vm15 = vnez %v21879_v53  ;;  %v10700_v3 = vpop.f32.mrb[114].mxu0  ;;  %v21917_v53 = vld [vmem:[#allocation139_spill] sm:$0xff] }
 0x39e   :  { %9708 = vmatpush1.bf16.msk.msra.mxu0 %vm21866_vm7, %v21159_v33  ;;  %vm21870_vm2 = vmand %vm21869_vm3, %vm21806_vm6  ;;  %v16212_v52 = vadd.f32 %v10698_v54, %v10697_v15  ;;  %v10701_v6 = vpop.f32.mrb[115].mxu0  ;;  %v21894_v54 = vmov 0 }
 0x39f   :  { %vm16161_vm11 = vmand %vm21870_vm2, %vm21867_vm1  ;;  %vm21887_vm2 = vnez %v21837_v31  ;;  %v16228_v22 = vadd.f32 %v10701_v6, %v10700_v3  ;;  %v10703_v15 = vpop.f32.mrb[116].mxu0  ;;  %v21892_v31 = vld [vmem:[#allocation131_spill] sm:$0xff]  ;;  %v21901_v6 = vld [vmem:[#allocation130_spill] sm:$0xff] }
 0x3a0   :  { %vm16169_vm13 = vmand %vm331_vm5, %vm21874_vm0  ;;  %vm21884_vm0 = vnez %v21153_v4  ;;  %vm21885_vm5 = vnez %v21832_v39  ;;  %v21889_v39 = vld [vmem:[#allocation129_spill] sm:$0xff]  ;;  %v10704_v3 = vpop.f32.mrb[117].mxu0  ;;  %v21977_v4 = vld [vmem:[#allocation39_spill] sm:$0xff] }
 0x3a1   :  { %vm21877_vm7 = vmpackc.low %vm16013_vm12, %vm15995_vm14  ;;  %vm21902_vm12 = vnez %v21858_v29  ;;  %v10706_v42 = vpop.f32.mrb[118].mxu0 }
 0x3a2   :  { %9710 = vmatprep.subr.msk.bf16.mxu0 %vm21877_vm7, %v21159_v33  ;;  %vm21881_vm1 = vmand %vm21880_vm15, %vm21806_vm6  ;;  %v10707_v29 = vpop.f32.mrb[119].mxu0 }
 0x3a3   :  { %vm16187_vm3 = vmand %vm21881_vm1, %vm21878_vm8  ;;  %9712 = vmatpush1.bf16.msk.msra.mxu0 %vm16047_vm4, %v21159_v33  ;;  %vm1473_vm4 = vcmp.gt.s32.totalorder %v21888_v8, %v21791_v62  ;;  %vm335_vm8 = vcmp.eq.s32.totalorder %v21889_v39, %v11797_v28  ;;  %vm21893_vm1 = vcmp.eq.s32.totalorder %v21892_v31, 1  ;;  %v21896_v8 = vld [vmem:[#allocation125_spill] sm:$0xff]  ;;  %v21903_v31 = vld [vmem:[#allocation126_spill] sm:$0xff]  ;;  %v10791_v39 = vpop.f32.mrb[100].mxu1 }
 0x3a4   :  { %vm9713_vm14 = vmpackc.low %vm16101_vm10, %vm16086_vm9  ;;  %vm1469_vm9 = vcmp.gt.s32.totalorder %v21886_v58, %v21791_v62  ;;  %v16260_v58 = vadd.f32 %v10704_v3, %v10703_v15  ;;  %v10709_v15 = vpop.f32.mrb[120].mxu0 }
 0x3a5   :  { %vm756_vm10 = vmand %vm21885_vm5, %vm21884_vm0  ;;  %9714 = vmatprep.subr.msk.bf16.mxu0 %vm9713_vm14, %v21159_v33  ;;  %vm21897_vm5 = vnez %v21896_v8  ;;  %v10710_v51 = vpop.f32.mrb[121].mxu0  ;;  %v21956_v8 = vmov 0 }
 0x3a6   :  { %vm760_vm7 = vmand %vm21887_vm2, %vm21884_vm0  ;;  %v16297_v3 = vadd.f32 %v10710_v51, %v10709_v15  ;;  %v21924_v51 = vld [vmem:[#allocation134_spill] sm:$0xff] }
 0x3a7   :  { %vm16224_vm15 = vmpackc.low %vm760_vm7, %vm756_vm10  ;;  %vm339_vm7 = vcmp.eq.s32.totalorder %v21901_v6, %v11797_v28  ;;  %9716 = vmatpush1.bf16.msk.msra.mxu0 %vm21902_vm12, %v21159_v33  ;;  %v21939_v6 = vld [vmem:[#allocation141_spill] sm:$0xff] }
 0x3a8   :  { %vm16233_vm14 = vmand %vm335_vm8, %vm21893_vm1  ;;  %vm21904_vm8 = vnez %v21903_v31  ;;  %v10792_v31 = vpop.f32.mrb[101].mxu1 }
 0x3a9   :  { %v21895_v54 = vsel %vm16233_vm14, 4294967295, %v21894_v54  ;;  %vm21898_vm2 = vmand %vm21897_vm5, %vm21806_vm6  ;;  %v10794_v15 = vpop.f32.mrb[102].mxu1 }
 0x3aa   :  { %vm16242_vm10 = vmand %vm21898_vm2, %vm1469_vm9  ;;  %vm21909_vm9 = vcmp.eq.s32.totalorder %v21908_v24, 1  ;;  %v16279_v24 = vadd.f32 %v10707_v29, %v10706_v42  ;;  %vm21913_vm2 = vnez %v21862_v30  ;;  %v21915_v42 = vld [vmem:[#allocation136_spill] sm:$0xff]  ;;  %v21916_v30 = vld [vmem:[#allocation137_spill] sm:$0xff]  ;;  %v10793_v29 = vadd.f32 %v10792_v31, %v10791_v39  ;;  %v10712_v31 = vpop.f32.mrb[122].mxu0 }
 0x3ab   :  { %vm21905_vm1 = vmand %vm21904_vm8, %vm21806_vm6  ;;  %v21930_v39 = vmov 0 }
 0x3ac   :  { %vm16256_vm14 = vmand %vm21905_vm1, %vm1473_vm4 }
 0x3ad   :  { %vm16264_vm5 = vmand %vm339_vm7, %vm21909_vm9 }
 0x3ae   :  { %vm21912_vm12 = vmpackc.low %vm16187_vm3, %vm16161_vm11  ;;  %vm1477_vm11 = vcmp.gt.s32.totalorder %v21914_v0, %v21791_v62  ;;  %v21928_v0 = vld [vmem:[#allocation140_spill] sm:$0xff] }
 0x3af   :  { %9718 = vmatprep.subr.msk.bf16.mxu0 %vm21912_vm12, %v21159_v33  ;;  %vm9721_vm4 = vmpackc.low %vm16256_vm14, %vm16242_vm10  ;;  %vm1481_vm14 = vcmp.gt.s32.totalorder %v21915_v42, %v21791_v62  ;;  %vm343_vm10 = vcmp.eq.s32.totalorder %v21916_v30, %v11797_v28  ;;  %v10795_v30 = vpop.f32.mrb[103].mxu1 }
 0x3b0   :  { %vm764_vm7 = vmand %vm21913_vm2, %vm21884_vm0  ;;  %9720 = vmatpush1.bf16.msk.msra.mxu0 %vm16224_vm15, %v21159_v33  ;;  %vm21918_vm15 = vcmp.eq.s32.totalorder %v21917_v53, 1  ;;  %vm21925_vm2 = vnez %v21924_v51  ;;  %v21927_v53 = vld [vmem:[#allocation138_spill] sm:$0xff]  ;;  %v10796_v42 = vadd.f32 %v10795_v30, %v10794_v15  ;;  %v21934_v15 = vld [vmem:[#allocation144_spill] sm:$0xff] }
 0x3b1   :  { %vm768_vm3 = vmand %vm16169_vm13, %vm21884_vm0  ;;  %9722 = vmatprep.subr.msk.bf16.mxu0 %vm9721_vm4, %v21159_v33  ;;  %vm21922_vm13 = vnez %v21921_v13  ;;  %v16322_v13 = vadd.f32 %v10793_v29, %v16053_v2  ;;  %v10713_v29 = vpop.f32.mrb[123].mxu0  ;;  %v21935_v30 = vld [vmem:[#allocation146_spill] sm:$0xff] }
 0x3b2   :  { %vm9723_vm8 = vmpackc.low %vm768_vm3, %vm764_vm7  ;;  %vm347_vm3 = vcmp.eq.s32.totalorder %v21927_v53, %v11797_v28  ;;  %v16338_v2 = vadd.f32 %v10796_v42, %v16090_v60  ;;  %v10715_v51 = vpop.f32.mrb[124].mxu0  ;;  %v21937_v60 = vmov 0  ;;  %v21942_v42 = vld [vmem:[#allocation142_spill] sm:$0xff]  ;;  %v21945_v53 = vld [vmem:[#allocation145_spill] sm:$0xff] }
 0x3b3   :  { %vm16304_vm1 = vmand %vm343_vm10, %vm21918_vm15 }
 0x3b4   :  { %vm21923_vm9 = vmand %vm21922_vm13, %vm21806_vm6  ;;  %9724 = vmatpush1.bf16.msk.msra.mxu0 %vm9723_vm8, %v21159_v33  ;;  %vm1485_vm8 = vcmp.gt.s32.totalorder %v13392_v11, %v21791_v62 }
 0x3b5   :  { %vm1605_vm12 = vmand %vm21923_vm9, %vm1477_vm11  ;;  %vm21929_vm11 = vcmp.eq.s32.totalorder %v21928_v0, 1  ;;  %v21933_v0 = vld [vmem:[#allocation143_spill] sm:$0xff] }
 0x3b6   :  { %vm21926_vm4 = vmand %vm21925_vm2, %vm21806_vm6  ;;  %vm351_vm2 = vcmp.eq.s32.totalorder %v21934_v15, %v11797_v28  ;;  %v21950_v15 = vld [vmem:[#allocation150_spill] sm:$0xff] }
 0x3b7   :  { %vm1609_vm7 = vmand %vm21926_vm4, %vm1481_vm14  ;;  %vm21932_vm14 = vnez %v21895_v54  ;;  %v16348_v54 = vadd.f32 %v10713_v29, %v10712_v31  ;;  %v21946_v31 = vld [vmem:[#allocation147_spill] sm:$0xff]  ;;  %v10797_v29 = vpop.f32.mrb[104].mxu1 }
 0x3b8   :  { %vm9725_vm10 = vmpackc.low %vm1609_vm7, %vm1605_vm12  ;;  %vm1489_vm12 = vcmp.gt.s32.totalorder %v21933_v0, %v21791_v62  ;;  %vm21936_vm7 = vcmp.eq.s32.totalorder %v21935_v30, 1  ;;  %v21952_v30 = vld [vmem:[#allocation151_spill] sm:$0xff] }
 0x3b9   :  { %vm16326_vm15 = vmand %vm347_vm3, %vm21929_vm11  ;;  %9726 = vmatprep.subr.msk.bf16.mxu0 %vm9725_vm10, %v21159_v33 }
 0x3ba   :  { %v21931_v39 = vsel %vm16326_vm15, 4294967295, %v21930_v39  ;;  %vm772_vm13 = vmand %vm21932_vm14, %vm21884_vm0  ;;  %vm21943_vm14 = vnez %v21942_v42  ;;  %v21954_v42 = vld [vmem:[#allocation154_spill] sm:$0xff] }
 0x3bb   :  { %vm776_vm9 = vmand %vm16264_vm5, %vm21884_vm0  ;;  %vm21940_vm5 = vnez %v21939_v6  ;;  %v21953_v6 = vld [vmem:[#allocation152_spill] sm:$0xff] }
 0x3bc   :  { %vm9727_vm4 = vmpackc.low %vm776_vm9, %vm772_vm13 }
 0x3bd   :  { %vm16352_vm3 = vmand %vm351_vm2, %vm21936_vm7  ;;  %9728 = vmatpush1.bf16.msk.msra.mxu0 %vm9727_vm4, %v21159_v33  ;;  %vm355_vm2 = vcmp.eq.s32.totalorder %v21945_v53, %v11797_v28  ;;  %vm21951_vm4 = vnez %v21931_v39  ;;  %v21958_v53 = vld [vmem:[#allocation148_spill] sm:$0xff]  ;;  %v21961_v39 = vld [vmem:[#allocation149_spill] sm:$0xff] }
 0x3be   :  { %v21938_v60 = vsel %vm16352_vm3, 4294967295, %v21937_v60  ;;  %vm21941_vm10 = vmand %vm21940_vm5, %vm21806_vm6  ;;  %vm21947_vm3 = vcmp.eq.s32.totalorder %v21946_v31, 1  ;;  %v21964_v31 = vld [vmem:[#allocation153_spill] sm:$0xff] }
 0x3bf   :  { %vm1613_vm11 = vmand %vm21941_vm10, %vm1485_vm8  ;;  %vm359_vm10 = vcmp.eq.s32.totalorder %v21953_v6, %v11797_v28  ;;  %v21965_v6 = vld [vmem:[#allocation155_spill] sm:$0xff] }
 0x3c0   :  { %vm21944_vm13 = vmand %vm21943_vm14, %vm21806_vm6  ;;  %vm21955_vm14 = vcmp.eq.s32.totalorder %v21954_v42, 1  ;;  %v21983_v42 = vld [vmem:[#allocation42_spill] sm:$0xff] }
 0x3c1   :  { %vm1617_vm9 = vmand %vm21944_vm13, %vm1489_vm12  ;;  %vm1493_vm12 = vcmp.gt.s32.totalorder %v21950_v15, %v21791_v62 }
 0x3c2   :  { %vm9729_vm7 = vmpackc.low %vm1617_vm9, %vm1613_vm11 }
 0x3c3   :  { %vm16371_vm15 = vmand %vm355_vm2, %vm21947_vm3  ;;  %9730 = vmatprep.subr.msk.bf16.mxu0 %vm9729_vm7, %v21159_v33  ;;  %vm1497_vm3 = vcmp.gt.s32.totalorder %v21952_v30, %v21791_v62  ;;  %vm21962_vm7 = vnez %v21961_v39 }
 0x3c4   :  { %vm780_vm8 = vmand %vm16304_vm1, %vm21884_vm0  ;;  %vm21959_vm1 = vnez %v21958_v53  ;;  %v10798_v53 = vpop.f32.mrb[105].mxu1 }
 0x3c5   :  { %vm784_vm5 = vmand %vm21951_vm4, %vm21884_vm0  ;;  %v10799_v39 = vadd.f32 %v10798_v53, %v10797_v29 }
 0x3c6   :  { %vm9731_vm11 = vmpackc.low %vm784_vm5, %vm780_vm8  ;;  %vm363_vm5 = vcmp.eq.s32.totalorder %v21964_v31, %v11797_v28  ;;  %v21970_v28 = vld [vmem:[#allocation156_spill] sm:$0xff]  ;;  %v10800_v31 = vpop.f32.mrb[106].mxu1 }
 0x3c7   :  { %vm16392_vm13 = vmand %vm359_vm10, %vm21955_vm14  ;;  %9732 = vmatpush1.bf16.msk.msra.mxu0 %vm9731_vm11, %v21159_v33  ;;  %vm21966_vm14 = vcmp.eq.s32.totalorder %v21965_v6, 1  ;;  %v10801_v40 = vpop.f32.mrb[107].mxu1  ;;  %v10716_v6 = vpop.f32.mrb[125].mxu0 }
 0x3c8   :  { %v21957_v8 = vsel %vm16392_vm13, 4294967295, %v21956_v8  ;;  %vm21960_vm9 = vmand %vm21959_vm1, %vm21806_vm6 }
 0x3c9   :  { %vm1621_vm2 = vmand %vm21960_vm9, %vm1493_vm12  ;;  %vm21969_vm12 = vnez %v21938_v60  ;;  %vm1505_vm9 = vcmp.gt.s32.totalorder %v13585_v10, %v21791_v62  ;;  %v21973_v60 = vld [vmem:[#allocation157_spill] sm:$0xff]  ;;  %v16451_v10 = vadd.f32 %v10716_v6, %v10715_v51  ;;  %v21991_v6 = vld [vmem:[#allocation47_spill] sm:$0xff] }
 0x3ca   :  { %vm21963_vm4 = vmand %vm21962_vm7, %vm21806_vm6  ;;  %vm21971_vm7 = vnez %v21970_v28  ;;  %v16449_v28 = vadd.f32 %v10799_v39, %v16113_v34  ;;  %v10718_v34 = vpop.f32.mrb[126].mxu0  ;;  %v21981_v51 = vld [vmem:[#allocation41_spill] sm:$0xff] }
 0x3cb   :  { %vm1625_vm8 = vmand %vm21963_vm4, %vm1497_vm3  ;;  %vm1501_vm3 = vcmp.gt.s32.totalorder %v13580_v47, %v21791_v62  ;;  %v21987_v39 = vld [vmem:[#allocation45_spill] sm:$0xff] }
 0x3cc   :  { %vm9733_vm10 = vmpackc.low %vm1625_vm8, %vm1621_vm2 }
 0x3cd   :  { %vm16411_vm13 = vmand %vm363_vm5, %vm21966_vm14  ;;  %9734 = vmatprep.subr.msk.bf16.mxu0 %vm9733_vm10, %v21159_v33  ;;  %vm21974_vm5 = vnez %v21973_v60  ;;  %v10802_v60 = vadd.f32 %v10801_v40, %v10800_v31  ;;  %v21989_v31 = vld [vmem:[#allocation46_spill] sm:$0xff] }
 0x3ce   :  { %vm788_vm11 = vmand %vm21969_vm12, %vm21884_vm0 }
 0x3cf   :  { %vm792_vm1 = vmand %vm16371_vm15, %vm21884_vm0  ;;  %vm21976_vm15 = vnez %v21957_v8  ;;  %v16455_v8 = vadd.f32 %v10802_v60, %v16130_v61  ;;  %v21979_v61 = vld [vmem:[#allocation40_spill] sm:$0xff] }
 0x3d0   :  { %vm9735_vm2 = vmpackc.low %vm792_vm1, %vm788_vm11  ;;  %vm8463_vm1 = vcmp.lt.f32.partialorder %v15424_v12, 0.5 }
 0x3d1   :  { %9736 = vmatpush1.bf16.msk.msra.mxu0 %vm9735_vm2, %v21159_v33  ;;  %vm21972_vm4 = vmand %vm21971_vm7, %vm21806_vm6  ;;  %vm8466_vm7 = vcmp.lt.f32.partialorder %v15454_v46, 0.5 }
 0x3d2   :  { %vm1629_vm8 = vmand %vm21972_vm4, %vm1501_vm3  ;;  %vm21980_vm4 = vcmp.ne.s32.totalorder %v21979_v61, 0 }
 0x3d3   :  { %vm21975_vm10 = vmand %vm21974_vm5, %vm21806_vm6  ;;  %vm8467_vm5 = vcmp.lt.f32.partialorder %v15467_v26, 0.5  ;;  %v21985_v26 = vld [vmem:[#allocation44_spill] sm:$0xff] }
 0x3d4   :  { %vm1633_vm14 = vmand %vm21975_vm10, %vm1505_vm9  ;;  %vm21978_vm9 = vcmp.ne.s32.totalorder %v21977_v4, 0  ;;  %vm21982_vm10 = vcmp.ne.s32.totalorder %v21981_v51, 0  ;;  %v21995_v4 = vld [vmem:[#allocation51_spill] sm:$0xff] }
 0x3d5   :  { %vm9737_vm12 = vmpackc.low %vm1633_vm14, %vm1629_vm8 }
 0x3d6   :  { %9738 = vmatprep.subr.msk.bf16.mxu0 %vm9737_vm12, %v21159_v33  ;;  %vm796_vm11 = vmand %vm21976_vm15, %vm21884_vm0  ;;  %vm8468_vm12 = vcmp.lt.f32.partialorder %v15510_v16, 0.5  ;;  %vm21984_vm15 = vcmp.ne.s32.totalorder %v21983_v42, 0 }
 0x3d7   :  { %vm800_vm3 = vmand %vm16411_vm13, %vm21884_vm0  ;;  %vm8464_vm0 = vcmp.lt.f32.partialorder %v15434_v44, 0.5  ;;  %vm8465_vm13 = vcmp.lt.f32.partialorder %v15446_v55, 0.5  ;;  %v10719_v44 = vpop.f32.mrb[127].mxu0 }
 0x3d8   :  { %vm9739_vm6 = vmpackc.low %vm800_vm3, %vm796_vm11  ;;  %v16475_v46 = vadd.f32 %v10719_v44, %v10718_v34  ;;  %vm21986_vm3 = vcmp.ne.s32.totalorder %v21985_v26, 0  ;;  %v21997_v34 = vld [vmem:[#allocation52_spill] sm:$0xff]  ;;  %v21999_v44 = vld [vmem:[#allocation53_spill] sm:$0xff] }
 0x3d9   :  { %9740 = vmatpush1.bf16.msk.msra.mxu0 %vm9739_vm6, %v21159_v33  ;;  %vm8495_vm2 = vmand %vm21978_vm9, %vm8463_vm1  ;;  %vm21988_vm1 = vcmp.ne.s32.totalorder %v21987_v39, 0  ;;  %vm8470_vm9 = vcmp.lt.f32.partialorder %v15544_v20, 0.5  ;;  %v21993_v20 = vld [vmem:[#allocation50_spill] sm:$0xff] }
 0x3da   :  { %10945 = vmatprep.subr.bf16.mxu0 %v21165_v45  ;;  %vm8496_vm8 = vmand %vm21980_vm4, %vm8464_vm0  ;;  %v8719_v12 = vsel %vm8495_vm2, 1, %v21156_v25  ;;  %vm21990_vm2 = vcmp.ne.s32.totalorder %v21989_v31, 0  ;;  %vm21992_vm4 = vcmp.ne.s32.totalorder %v21991_v6, 0  ;;  %v22001_v26 = vld [vmem:[#allocation54_spill] sm:$0xff]  ;;  %v22007_v31 = vld [vmem:[#allocation59_spill] sm:$0xff] }
 0x3db   :  { %vm8497_vm14 = vmand %vm21982_vm10, %vm8465_vm13  ;;  %8752 = vperm.xlu1 %11340, %v8719_v12   ;;  %v8720_v55 = vsel %vm8496_vm8, 1, %v21156_v25  ;;  %vm8469_vm13 = vcmp.lt.f32.partialorder %v15523_v43, 0.5  ;;  %vm8472_vm10 = vcmp.lt.f32.partialorder %v15587_v7, 0.5  ;;  %v10803_v7 = vpop.f32.mrb[108].mxu1  ;;  %v22005_v39 = vld [vmem:[#allocation58_spill] sm:$0xff] }
 0x3dc   :  { %4603 = vmatmul.mubr.bf16.vlgmr.msra.gmra.mrb[128].mxu0 %v21165_v45  ;;  %vm8498_vm11 = vmand %vm21984_vm15, %vm8466_vm7  ;;  %8755 = vperm.xlu0 %11339, %v8720_v55   ;;  %v8721_v29 = vsel %vm8497_vm14, 1, %v21156_v25  ;;  %vm21994_vm14 = vcmp.ne.s32.totalorder %v21993_v20, 0  ;;  %vm21996_vm15 = vcmp.ne.s32.totalorder %v21995_v4, 0  ;;  %v10804_v12 = vpop.f32.mrb[109].mxu1  ;;  %v16565_v4 = vpop.permute.xlu1 %4747 }
 0x3dd   :  { %10946 = vmatpush3.bf16.msra.mxu0 %v21165_v45  ;;  %vm8499_vm6 = vmand %vm21986_vm3, %vm8467_vm5  ;;  %v8722_v53 = vsel %vm8498_vm11, 1, %v21156_v25  ;;  %vm8471_vm5 = vcmp.lt.f32.partialorder %v15569_v5, 0.5  ;;  %vm8473_vm3 = vcmp.lt.f32.partialorder %v15851_v21, 0.5  ;;  %v10805_v21 = vadd.f32 %v10804_v12, %v10803_v7 }
 0x3de   :  { %10947 = vmatprep.subr.bf16.mxu0 %v21165_v45  ;;  %vm8500_vm0 = vmand %vm21988_vm1, %vm8468_vm12  ;;  %v8723_v16 = vsel %vm8499_vm6, 1, %v21156_v25  ;;  %vm8474_vm6 = vcmp.lt.f32.partialorder %v15872_v32, 0.5  ;;  %vm21998_vm1 = vcmp.ne.s32.totalorder %v21997_v34, 0  ;;  %v10806_v32 = vpop.f32.mrb[110].mxu1 }
 0x3df   :  { %8758 = vperm.xlu1 %11340, %v8721_v29   ;;  %vm8501_vm7 = vmand %vm21990_vm2, %vm8469_vm13  ;;  %v8724_v40 = vsel %vm8500_vm0, 1, %v21156_v25  ;;  %vm22000_vm13 = vcmp.ne.s32.totalorder %v21999_v44, 0  ;;  %vm8475_vm2 = vcmp.lt.f32.partialorder %v15936_v38, 0.5  ;;  %v10807_v51 = vpop.f32.mrb[111].mxu1  ;;  %v4450_v42 = vadd.f32 %v10805_v21, %v16165_v35  ;;  %v22003_v38 = vld [vmem:[#allocation55_spill] sm:$0xff] }
 0x3e0   :  { %8761 = vperm.xlu0 %11339, %v8722_v53   ;;  %vm8502_vm8 = vmand %vm21992_vm4, %vm8470_vm9  ;;  %v8725_v43 = vsel %vm8501_vm7, 1, %v21156_v25  ;;  %vm8476_vm7 = vcmp.lt.f32.partialorder %v15956_v36, 0.5  ;;  %v10808_v29 = vadd.f32 %v10807_v51, %v10806_v32  ;;  %vm22002_vm4 = vcmp.ne.s32.totalorder %v22001_v26, 0  ;;  %v10809_v34 = vpop.f32.mrb[112].mxu1 }
 0x3e1   :  { %10948 = vmatpush3.bf16.msra.mxu0 %v21165_v45  ;;  %vm8503_vm12 = vmand %vm21994_vm14, %vm8471_vm5  ;;  %v8726_v60 = vsel %vm8502_vm8, 1, %v21156_v25  ;;  %vm22004_vm5 = vcmp.ne.s32.totalorder %v22003_v38, 0  ;;  %vm8477_vm14 = vcmp.lt.f32.partialorder %v15978_v17, 0.5  ;;  %v10810_v12 = vpop.f32.mrb[113].mxu1 }
 0x3e2   :  { %10949 = vmatprep.subr.bf16.mxu0 %v21165_v45  ;;  %vm8504_vm11 = vmand %vm21996_vm15, %vm8472_vm10  ;;  %v8727_v5 = vsel %vm8503_vm12, 1, %v21156_v25  ;;  %v4453_v36 = vadd.f32 %v10808_v29, %v16196_v18  ;;  %vm8478_vm12 = vcmp.lt.f32.partialorder %v16017_v57, 0.5  ;;  %vm22006_vm15 = vcmp.ne.s32.totalorder %v22005_v39, 0  ;;  %v22009_v57 = vld [vmem:[#allocation60_spill] sm:$0xff]  ;;  %v10812_v21 = vpop.f32.mrb[114].mxu1  ;;  %v22027_v39 = vld [vmem:[#allocation79_spill] sm:$0xff] }
 0x3e3   :  { %8764 = vperm.xlu1 %11340, %v8723_v16   ;;  %vm8505_vm0 = vmand %vm21998_vm1, %vm8473_vm3  ;;  %v8728_v61 = vsel %vm8504_vm11, 1, %v21156_v25  ;;  %vm22008_vm3 = vcmp.ne.s32.totalorder %v22007_v31, 0  ;;  %vm8479_vm1 = vcmp.lt.f32.partialorder %v16037_v27, 0.5  ;;  %v10811_v44 = vadd.f32 %v10810_v12, %v10809_v34  ;;  %v10813_v51 = vpop.f32.mrb[115].mxu1 }
 0x3e4   :  { %8767 = vperm.xlu0 %11339, %v8724_v40   ;;  %vm8506_vm9 = vmand %vm22000_vm13, %vm8474_vm6  ;;  %v8729_v55 = vsel %vm8505_vm0, 1, %v21156_v25  ;;  %vm8480_vm0 = vcmp.lt.f32.partialorder %v16069_v41, 0.5  ;;  %vm22010_vm13 = vcmp.ne.s32.totalorder %v22009_v57, 0  ;;  %v22011_v40 = vld [vmem:[#allocation61_spill] sm:$0xff]  ;;  %v22013_v41 = vld [vmem:[#allocation62_spill] sm:$0xff]  ;;  %v10814_v26 = vadd.f32 %v10813_v51, %v10812_v21 }
 0x3e5   :  { %10950 = vmatpush3.bf16.msra.mxu0 %v21165_v45  ;;  %vm8507_vm8 = vmand %vm22002_vm4, %vm8475_vm2  ;;  %v8730_v53 = vsel %vm8506_vm9, 1, %v21156_v25  ;;  %vm22012_vm2 = vcmp.ne.s32.totalorder %v22011_v40, 0  ;;  %vm8481_vm4 = vcmp.lt.f32.partialorder %v16322_v13, 0.5  ;;  %v22033_v21 = vld [vmem:[#allocation88_spill] sm:$0xff] }
 0x3e6   :  { %10951 = vmatprep.subr.bf16.mxu0 %v21165_v45  ;;  %vm8508_vm10 = vmand %vm22004_vm5, %vm8476_vm7  ;;  %v8731_v35 = vsel %vm8507_vm8, 1, %v21156_v25  ;;  %vm8482_vm8 = vcmp.lt.f32.partialorder %v16338_v2, 0.5  ;;  %vm22014_vm5 = vcmp.ne.s32.totalorder %v22013_v41, 0  ;;  %v22017_v2 = vld [vmem:[#allocation68_spill] sm:$0xff]  ;;  %v4461_v38 = vadd.f32 %v10814_v26, %v16228_v22 }
 0x3e7   :  { %8770 = vperm.xlu1 %11340, %v8725_v43   ;;  %vm8509_vm11 = vmand %vm22006_vm15, %vm8477_vm14  ;;  %v8732_v16 = vsel %vm8508_vm10, 1, %v21156_v25  ;;  %v22015_v43 = vld [vmem:[#allocation63_spill] sm:$0xff]  ;;  %vm8483_vm15 = vcmp.lt.f32.partialorder %v16449_v28, 0.5  ;;  %v16567_v28 = vpop.permute.xlu0 %4742 }
 0x3e8   :  { %8773 = vperm.xlu0 %11339, %v8726_v60   ;;  %vm8510_vm6 = vmand %vm22008_vm3, %vm8478_vm12  ;;  %v8733_v17 = vsel %vm8509_vm11, 1, %v21156_v25  ;;  %vm22016_vm14 = vcmp.ne.s32.totalorder %v22015_v43, 0  ;;  %vm8484_vm11 = vcmp.lt.f32.partialorder %v16455_v8, 0.5  ;;  %vm22018_vm3 = vcmp.ne.s32.totalorder %v22017_v2, 0  ;;  %v22019_v60 = vld [vmem:[#allocation69_spill] sm:$0xff]  ;;  %v22029_v43 = vld [vmem:[#allocation82_spill] sm:$0xff] }
 0x3e9   :  { %10952 = vmatpush3.bf16.msra.mxu0 %v21165_v45  ;;  %vm8511_vm9 = vmand %vm22010_vm13, %vm8479_vm1  ;;  %v8734_v18 = vsel %vm8510_vm6, 1, %v21156_v25  ;;  %vm22020_vm1 = vcmp.ne.s32.totalorder %v22019_v60, 0  ;;  %vm8485_vm13 = vcmp.lt.f32.partialorder %v4450_v42, 0.5  ;;  %v4458_v42 = vadd.f32 %v10811_v44, %v16212_v52 }
 0x3ea   :  { %10953 = vmatprep.subr.bf16.mxu0 %v21165_v45  ;;  %vm8512_vm7 = vmand %vm22012_vm2, %vm8480_vm0  ;;  %v8735_v27 = vsel %vm8511_vm9, 1, %v21156_v25  ;;  %vm8486_vm9 = vcmp.lt.f32.partialorder %v4453_v36, 0.5  ;;  %v22025_v36 = vld [vmem:[#allocation78_spill] sm:$0xff] }
 0x3eb   :  { %8776 = vperm.xlu1 %11340, %v8727_v5   ;;  %vm8513_vm10 = vmand %vm22014_vm5, %vm8481_vm4  ;;  %v8736_v6 = vsel %vm8512_vm7, 1, %v21156_v25  ;;  %v22021_v5 = vld [vmem:[#allocation74_spill] sm:$0xff]  ;;  %vm8487_vm5 = vcmp.lt.f32.partialorder %v4458_v42, 0.5  ;;  %v22035_v42 = vld [vmem:[#allocation89_spill] sm:$0xff] }
 0x3ec   :  { %8779 = vperm.xlu0 %11339, %v8728_v61   ;;  %vm8514_vm12 = vmand %vm22016_vm14, %vm8482_vm8  ;;  %v8737_v13 = vsel %vm8513_vm10, 1, %v21156_v25  ;;  %vm22022_vm2 = vcmp.ne.s32.totalorder %v22021_v5, 0  ;;  %v22023_v61 = vld [vmem:[#allocation75_spill] sm:$0xff]  ;;  %vm22026_vm10 = vcmp.ne.s32.totalorder %v22025_v36, 0 }
 0x3ed   :  { %10954 = vmatpush3.bf16.msra.mxu0 %v21165_v45  ;;  %vm8515_vm6 = vmand %vm22018_vm3, %vm8483_vm15  ;;  %v8738_v20 = vsel %vm8514_vm12, 1, %v21156_v25  ;;  %vm22024_vm4 = vcmp.ne.s32.totalorder %v22023_v61, 0  ;;  %vm8488_vm12 = vcmp.lt.f32.partialorder %v4461_v38, 0.5  ;;  %vm22028_vm15 = vcmp.ne.s32.totalorder %v22027_v39, 0 }
 0x3ee   :  { %10955 = vmatprep.subr.bf16.mxu0 %v21165_v45  ;;  %vm8516_vm0 = vmand %vm22020_vm1, %vm8484_vm11  ;;  %v8739_v8 = vsel %vm8515_vm6, 1, %v21156_v25  ;;  %vm22030_vm6 = vcmp.ne.s32.totalorder %v22029_v43, 0 }
 0x3ef   :  { %8782 = vperm.xlu1 %11340, %v8729_v55   ;;  %vm8517_vm7 = vmand %vm22022_vm2, %vm8485_vm13  ;;  %v8740_v7 = vsel %vm8516_vm0, 1, %v21156_v25  ;;  %v16576_v55 = vpop.permute.xlu1 %4757 }
 0x3f0   :  { %8785 = vperm.xlu0 %11339, %v8730_v53   ;;  %vm8518_vm8 = vmand %vm22024_vm4, %vm8486_vm9  ;;  %v8741_v32 = vsel %vm8517_vm7, 1, %v21156_v25  ;;  %v16580_v53 = vpop.permute.xlu0 %4752  ;;  %vm22034_vm7 = vcmp.ne.s32.totalorder %v22033_v21, 0 }
 0x3f1   :  { %10956 = vmatpush3.bf16.msra.mxu0 %v21165_v45  ;;  %v8742_v29 = vsel %vm8518_vm8, 1, %v21156_v25  ;;  %vm8519_vm14 = vmand %vm22026_vm10, %vm8487_vm5  ;;  %vm22036_vm5 = vcmp.ne.s32.totalorder %v22035_v42, 0 }
 0x3f2   :  { %10957 = vmatprep.subr.bf16.mxu0 %v21165_v45  ;;  %vm8520_vm11 = vmand %vm22028_vm15, %vm8488_vm12 }
 0x3f3   :  { %8788 = vperm.xlu1 %11340, %v8731_v35   ;;  %v8743_v35 = vsel %vm8519_vm14, 1, %v21156_v25  ;;  %v16588_v52 = vpop.permute.xlu1 %4767 }
 0x3f4   :  { %8791 = vperm.xlu0 %11339, %v8732_v16   ;;  %v8744_v16 = vsel %vm8520_vm11, 1, %v21156_v25  ;;  %v16591_v31 = vpop.permute.xlu0 %4762 }
 0x3f5   :  { %10958 = vmatpush3.bf16.msra.mxu0 %v21165_v45 }
 0x3f6   :  { %10959 = vmatprep.subr.bf16.mxu0 %v21165_v45 }
 0x3f7   :  { %8794 = vperm.xlu1 %11340, %v8733_v17   ;;  %v10815_v17 = vpop.f32.mrb[116].mxu1  ;;  %v16598_v2 = vpop.permute.xlu1 %4777 }
 0x3f8   :  { %8797 = vperm.xlu0 %11339, %v8734_v18   ;;  %v10816_v22 = vpop.f32.mrb[117].mxu1 }
 0x3f9   :  { %10960 = vmatpush3.bf16.msra.mxu0 %v21165_v45  ;;  %v10817_v57 = vadd.f32 %v10816_v22, %v10815_v17  ;;  %v10818_v18 = vpop.f32.mrb[118].mxu1  ;;  %v22037_v22 = vld [vmem:[#allocation95_spill] sm:$0xff] }
 0x3fa   :  { %11169 = vmatprep.subr.bf16.mxu0 %v21165_v45  ;;  %v10819_v40 = vpop.f32.mrb[119].mxu1  ;;  %vm22038_vm12 = vcmp.ne.s32.totalorder %v22037_v22, 0  ;;  %v22043_v22 = vld [vmem:[#allocation33_spill] sm:$0xff] }
 0x3fb   :  { %8800 = vperm.xlu1 %11340, %v8735_v27   ;;  %v4466_v27 = vadd.f32 %v10817_v57, %v16260_v58  ;;  %v10820_v41 = vadd.f32 %v10819_v40, %v10818_v18  ;;  %v16610_v51 = vpop.permute.xlu1 %4787  ;;  %v22039_v40 = vld [vmem:[#allocation97_spill] sm:$0xff] }
 0x3fc   :  { %8803 = vperm.xlu0 %11339, %v8736_v6  }
 0x3fd   :  { %vm8489_vm3 = vcmp.lt.f32.partialorder %v4466_v27, 0.5  ;;  %v4469_v6 = vadd.f32 %v10820_v41, %v16279_v24 }
 0x3fe   :  { %vm8521_vm1 = vmand %vm22030_vm6, %vm8489_vm3  ;;  %vm22040_vm3 = vcmp.ne.s32.totalorder %v22039_v40, 0 }
 0x3ff   :  { %8806 = vperm.xlu1 %11340, %v8737_v13   ;;  %vm8490_vm0 = vcmp.lt.f32.partialorder %v4469_v6, 0.5  ;;  %v8745_v13 = vsel %vm8521_vm1, 1, %v21156_v25  ;;  %v16622_v18 = vpop.permute.xlu1 %4797 }
 0x400   :  { %8809 = vperm.xlu0 %11339, %v8738_v20   ;;  %v22031_v20 = vld [vmem:[#allocation84_spill] sm:$0xff] }
 0x401   :  { %vm22032_vm13 = vcmp.ne.s32.totalorder %v22031_v20, 0  ;;  %v10821_v58 = vpop.f32.mrb[120].mxu1 }
 0x402   :  { %vm8522_vm9 = vmand %vm22032_vm13, %vm8490_vm0  ;;  %v10822_v5 = vpop.f32.mrb[121].mxu1 }
 0x403   :  { %8812 = vperm.xlu1 %11340, %v8739_v8   ;;  %v8746_v60 = vsel %vm8522_vm9, 1, %v21156_v25  ;;  %v16603_v8 = vpop.permute.xlu0 %4772  ;;  %v10823_v24 = vadd.f32 %v10822_v5, %v10821_v58  ;;  %v11373_v58 = vmov 1966171168  }
 0x404   :  { %8815 = vperm.xlu0 %11339, %v8740_v7   ;;  %v10824_v7 = vpop.f32.mrb[122].mxu1  ;;  %v4663_v5 = vunpack.c.l.s4 %v11373_v58  ;;  %v22059_v58 = vmov 0 }
 0x405   :  { %v10825_v34 = vpop.f32.mrb[123].mxu1  ;;  %v4474_v61 = vadd.f32 %v10823_v24, %v16297_v3 }
 0x406   :  { %v10826_v12 = vadd.f32 %v10825_v34, %v10824_v7  ;;  %v4664_v24 = vunpack.c.0.s8 %v4663_v5  ;;  %v4718_v34 = vld [vmem:[%s20516_s3] sm:$0xf] }
 0x407   :  { %8818 = vperm.xlu1 %11340, %v8741_v32   ;;  %vm8491_vm2 = vcmp.lt.f32.partialorder %v4474_v61, 0.5  ;;  %v16615_v26 = vpop.permute.xlu0 %4782 }
 0x408   :  { %8821 = vperm.xlu0 %11339, %v8742_v29   ;;  %v4477_v44 = vadd.f32 %v10826_v12, %v16348_v54  ;;  %vm8523_vm4 = vmand %vm22034_vm7, %vm8491_vm2  ;;  %v4667_v12 = vsub.s32 %v4664_v24, %v11742_v63  ;;  %vm5156_vm7 = vcmp.lt.s32.totalorder %v11925_v49, %v11742_v63  ;;  %v22061_v24 = vmov 0 }
 0x409   :  { %v8747_v32 = vsel %vm8523_vm4, 1, %v21156_v25 }
 0x40a   :  { %vm8492_vm8 = vcmp.lt.f32.partialorder %v4477_v44, 0.5 }
 0x40b   :  { %8824 = vperm.xlu1 %11340, %v8743_v35   ;;  %vm8524_vm10 = vmand %vm22036_vm5, %vm8492_vm8  ;;  %v16627_v41 = vpop.permute.xlu0 %4792  ;;  %vm5160_vm8 = vcmp.lt.s32.totalorder %v11925_v49, %v11910_v37 }
 0x40c   :  { %8827 = vperm.xlu0 %11339, %v8744_v16   ;;  %v8748_v29 = vsel %vm8524_vm10, 1, %v21156_v25 }
 0x40f   :  { %8830 = vperm.xlu1 %11340, %v8745_v13  }
 0x410   :  { %8833 = vperm.xlu0 %11339, %v8746_v60  }
 0x413   :  { %8836 = vperm.xlu1 %11340, %v8747_v32  }
 0x414   :  { %8839 = vperm.xlu0 %11339, %v8748_v29   ;;  %v22041_v29 = vld [vmem:[#allocation37_spill] sm:$0xff] }
 0x41e   :  { %v10827_v3 = vpop.f32.mrb[124].mxu1 }
 0x41f   :  { %v10828_v38 = vpop.f32.mrb[125].mxu1 }
 0x420   :  { %v10829_v54 = vadd.f32 %v10828_v38, %v10827_v3  ;;  %v10830_v36 = vpop.f32.mrb[126].mxu1  ;;  %v16638_v3 = vrot.slane %v4718_v34, %v22041_v29 }
 0x421   :  { %v10831_v35 = vpop.f32.mrb[127].mxu1 }
 0x422   :  { %v4482_v39 = vadd.f32 %v10829_v54, %v16451_v10  ;;  %v10832_v16 = vadd.f32 %v10831_v35, %v10830_v36  ;;  %vm5028_vm2 = vcmp.eq.f32.partialorder %v16638_v3, %v16567_v28  ;;  %vm5032_vm4 = vcmp.eq.f32.partialorder %v16638_v3, %v16565_v4 }
 0x423   :  { %vm5284_vm5 = vmand %vm5028_vm2, %vm5156_vm7 }
 0x424   :  { %vm8493_vm14 = vcmp.lt.f32.partialorder %v4482_v39, 0.5  ;;  %v4485_v17 = vadd.f32 %v10832_v16, %v16475_v46  ;;  %v22042_v16 = vld [vmem:[#allocation36_spill] sm:$0xff] }
 0x425   :  { %vm8525_vm15 = vmand %vm22038_vm12, %vm8493_vm14  ;;  %vm4900_vm14 = vcmp.gt.f32.partialorder %v16638_v3, %v16567_v28 }
 0x426   :  { %vm8494_vm11 = vcmp.lt.f32.partialorder %v4485_v17, 0.5  ;;  %v8749_v57 = vsel %vm8525_vm15, 1, %v21156_v25  ;;  %vm5288_vm12 = vmand %vm5032_vm4, %vm5160_vm8  ;;  %v16651_v17 = vrot.slane %v4718_v34, %v22042_v16  ;;  %vm22044_vm15 = vcmp.ne.s32.totalorder %v22043_v22, 0 }
 0x427   :  { %vm8526_vm6 = vmand %vm22040_vm3, %vm8494_vm11  ;;  %8842 = vperm.xlu1 %11340, %v8749_v57   ;;  %vm4904_vm3 = vcmp.gt.f32.partialorder %v16638_v3, %v16565_v4  ;;  %v22045_v57 = vld [vmem:[#allocation38_spill] sm:$0xff]  ;;  %v22224_v22 = vmov 0 }
 0x428   :  { %v8750_v27 = vsel %vm8526_vm6, 1, %v21156_v25  ;;  %vm5036_vm6 = vcmp.eq.f32.partialorder %v16638_v3, %v16580_v53  ;;  %vm16675_vm2 = vmor %vm4904_vm3, %vm5288_vm12  ;;  %vm4901_vm8 = vcmp.gt.f32.partialorder %v16651_v17, %v16567_v28 }
 0x429   :  { %8845 = vperm.xlu0 %11339, %v8750_v27   ;;  %v22137_v27 = vld [vmem:[#allocation104_spill] sm:$0xff] }
 0x443   :  { %v4645_v10 = vpop.f32.mrb[128].mxu1 }
 0x444   :  { %vm4654_vm1 = vcmp.lt.f32.partialorder %v4645_v10, 0.5  ;;  %v4647_v46 = vpop.f32.mrb[129].mxu1  ;;  %v16673_v10 = vrot.slane %v4718_v34, %v22045_v57 }
 0x445   :  { %v4658_v6 = vsel %vm4654_vm1, 1, %v21156_v25  ;;  %vm4655_vm0 = vcmp.lt.f32.partialorder %v4647_v46, 0.5  ;;  %v4649_v43 = vpop.f32.mrb[130].mxu1  ;;  %vm5164_vm1 = vcmp.lt.s32.totalorder %v11925_v49, %v12102_v48  ;;  %v22252_v46 = vmov 0 }
 0x446   :  { %v4659_v13 = vsel %vm4655_vm0, 1, %v21156_v25  ;;  %v4650_v20 = vpop.f32.mrb[131].mxu1  ;;  %vm5040_vm0 = vcmp.eq.f32.partialorder %v16638_v3, %v16576_v55  ;;  %vm16679_vm7 = vmand %vm5036_vm6, %vm5164_vm1  ;;  %vm4903_vm3 = vcmp.gt.f32.partialorder %v16673_v10, %v16567_v28  ;;  %vm4907_vm1 = vcmp.gt.f32.partialorder %v16673_v10, %v16565_v4 }
 0x447   :  { %v4661_v60 = vcombine.low %v4658_v6, %v4659_v13  ;;  %v22052_v6 = vmov 0  ;;  %v22056_v13 = vmov 0  ;;  %v22058_v20 = vld [vmem:[#allocation43_spill] sm:$0xff] }
 0x448   :  { %v16717_v5 = vrot.slane %v4718_v34, %v22058_v20  ;;  %v22186_v34 = vmov 0 }
 0x449   :  { %v4675_v54 = vrot.slane %v4661_v60, %v4667_v12 }
 0x4af   :  { %v4604_v7 = vpop.f32.mrb[128].mxu0 }
 0x4b0   :  { %vm4652_vm13 = vcmp.lt.f32.partialorder %v4604_v7, 0.5  ;;  %v4606_v61 = vpop.f32.mrb[129].mxu0  ;;  %v22085_v7 = vld [vmem:[#allocation73_spill] sm:$0xff] }
 0x4b1   :  { %v4656_v44 = vsel %vm4652_vm13, 1, %v21156_v25  ;;  %vm4653_vm9 = vcmp.lt.f32.partialorder %v4606_v61, 0.5  ;;  %v4608_v21 = vpop.f32.mrb[130].mxu0  ;;  %vm5168_vm13 = vcmp.lt.s32.totalorder %v11925_v49, %v12111_v23  ;;  %v22099_v61 = vld [vmem:[#allocation81_spill] sm:$0xff] }
 0x4b2   :  { %v4657_v32 = vsel %vm4653_vm9, 1, %v21156_v25  ;;  %v4609_v42 = vpop.f32.mrb[131].mxu0  ;;  %vm16668_vm9 = vmor %vm4900_vm14, %vm5284_vm5  ;;  %vm4905_vm14 = vcmp.gt.f32.partialorder %v16651_v17, %v16565_v4  ;;  %v17043_v21 = vpop.permute.xlu0 %4802 }
 0x4b3   :  { %v4660_v38 = vcombine.low %v4656_v44, %v4657_v32  ;;  %vm16690_vm5 = vmand %vm5040_vm0, %vm5168_vm13  ;;  %v17047_v32 = vpop.permute.xlu1 %4807  ;;  %v22112_v42 = vld [vmem:[#allocation86_spill] sm:$0xff] }
 0x4b5   :  { %v4668_v36 = vrot.slane %v4660_v38, %v4667_v12 }
 0x4b7   :  { %v4676_v35 = vcombine.low %v4668_v36, %v4675_v54  ;;  %v17115_v36 = vpop.permute.xlu0 %4812  ;;  %v22213_v54 = vld [vmem:[#allocation135_spill] sm:$0xff] }
 0x4b9   :  { %v4683_v39 = vrot.slane %v4676_v35, %v4667_v12  ;;  %v17119_v35 = vpop.permute.xlu1 %4817 }
 0x4bb   :  { %vm4684_vm10 = vcmp.ne.s32.totalorder %v4683_v39, 0  ;;  %v22125_v39 = vld [vmem:[#allocation92_spill] sm:$0xff] }
 0x4bc   :  { %vm4685_vm11 = vmand %vm22044_vm15, %vm4684_vm10 }
 0x4bd   :  { %v5540_v63 = vsel %vm4685_vm11, 1, %v21156_v25 }
 0x4be   :  { %v5548_v37 = vrot.slane %v5540_v63, %v22042_v16  ;;  %v5556_v40 = vrot.slane %v5540_v63, %v22045_v57  ;;  %v5544_v23 = vrot.slane %v5540_v63, %v22041_v29  ;;  %v5552_v60 = vrot.slane %v5540_v63, %v22058_v20  ;;  %v22113_v29 = vld [vmem:[#allocation87_spill] sm:$0xff]  ;;  %v22126_v16 = vld [vmem:[#allocation93_spill] sm:$0xff] }
 0x4bf   :  { %v22133_v57 = vmov 0  ;;  %v22149_v20 = vmov 0 }
 0x4c0   :  { %vm16684_vm4 = vcmp.eq.s32.totalorder %v5548_v37, 1  ;;  %vm16694_vm10 = vcmp.eq.s32.totalorder %v5556_v40, 1  ;;  %vm16707_vm6 = vcmp.eq.s32.totalorder %v5544_v23, 1  ;;  %v17169_v37 = vpop.permute.xlu1 %4827  ;;  %v22136_v40 = vld [vmem:[#allocation102_spill] sm:$0xff]  ;;  %v22146_v23 = vmov 0 }
 0x4c1   :  { %v22053_v6 = vsel %vm16684_vm4, 4294967295, %v22052_v6  ;;  %v22057_v13 = vsel %vm16694_vm10, 4294967295, %v22056_v13  ;;  %vm5562_vm12 = vmand %vm16684_vm4, %vm4901_vm8  ;;  %v22060_v58 = vsel %vm16707_vm6, 4294967295, %v22059_v58 }
 0x4c2   :  { %vm5566_vm15 = vmand %vm16684_vm4, %vm4905_vm14  ;;  %vm16721_vm14 = vcmp.eq.s32.totalorder %v5552_v60, 1 }
 0x4c3   :  { %vm9869_vm11 = vmpackc.low %vm5566_vm15, %vm5562_vm12  ;;  %v22062_v24 = vsel %vm16721_vm14, 4294967295, %v22061_v24  ;;  %vm4908_vm15 = vcmp.gt.f32.partialorder %v16638_v3, %v16580_v53 }
 0x4c4   :  { %9870 = vmatprep.mubr.msk.bf16.mxu1 %vm9869_vm11, %v21159_v33  ;;  %vm5564_vm0 = vmand %vm16694_vm10, %vm4903_vm3  ;;  %vm4912_vm3 = vcmp.gt.f32.partialorder %v16638_v3, %v16576_v55  ;;  %v17245_v60 = vpop.permute.xlu1 %4837 }
 0x4c5   :  { %vm5568_vm13 = vmand %vm16694_vm10, %vm4907_vm1  ;;  %vm5044_vm1 = vcmp.eq.f32.partialorder %v16638_v3, %v16591_v31  ;;  %vm5176_vm10 = vcmp.lt.s32.totalorder %v11925_v49, %v12297_v19  ;;  %v22158_v19 = vmov 0 }
 0x4c6   :  { %vm9933_vm8 = vmpackc.low %vm5568_vm13, %vm5564_vm0  ;;  %vm5172_vm0 = vcmp.lt.s32.totalorder %v11925_v49, %v12288_v50  ;;  %v22156_v50 = vmov 0 }
 0x4c7   :  { %9934 = vmatprep.mubr.msk.bf16.mxu0 %vm9933_vm8, %v21159_v33  ;;  %vm5561_vm12 = vmand %vm16707_vm6, %vm16668_vm9  ;;  %vm4902_vm9 = vcmp.gt.f32.partialorder %v16717_v5, %v16567_v28  ;;  %vm5048_vm8 = vcmp.eq.f32.partialorder %v16638_v3, %v16588_v52 }
 0x4c8   :  { %vm5565_vm11 = vmand %vm16707_vm6, %vm16675_vm2  ;;  %vm4906_vm2 = vcmp.gt.f32.partialorder %v16717_v5, %v16565_v4  ;;  %v22164_v4 = vmov 0 }
 0x4c9   :  { %vm9871_vm13 = vmpackc.low %vm5565_vm11, %vm5561_vm12 }
 0x4ca   :  { %9872 = vmatmul.mubr.msk.bf16.vlgmr.msra.gmra.mrb[132].mxu1 %vm9871_vm13, %v21159_v33  ;;  %vm5563_vm6 = vmand %vm16721_vm14, %vm4902_vm9 }
 0x4cb   :  { %vm16755_vm12 = vmor %vm4908_vm15, %vm16679_vm7  ;;  %11058 = vmatpush3.bf16.msra.mxu1 %v21165_v45  ;;  %vm4909_vm7 = vcmp.gt.f32.partialorder %v16651_v17, %v16580_v53 }
 0x4cc   :  { %vm5567_vm11 = vmand %vm16721_vm14, %vm4906_vm2  ;;  %11059 = vmatprep.subr.bf16.mxu1 %v21165_v45  ;;  %vm22072_vm2 = vnez %v22057_v13 }
 0x4cd   :  { %vm16763_vm4 = vmor %vm4912_vm3, %vm16690_vm5  ;;  %vm4913_vm5 = vcmp.gt.f32.partialorder %v16651_v17, %v16576_v55  ;;  %vm22071_vm3 = vnez %v22053_v6 }
 0x4ce   :  { %vm16767_vm13 = vmand %vm5044_vm1, %vm5172_vm0 }
 0x4cf   :  { %vm9935_vm9 = vmpackc.low %vm5567_vm11, %vm5563_vm6  ;;  %11060 = vmatpush3.bf16.msra.mxu1 %v21165_v45 }
 0x4d0   :  { %vm16774_vm15 = vmand %vm5048_vm8, %vm5176_vm10  ;;  %9936 = vmatmul.mubr.msk.bf16.vlgmr.msra.gmra.mrb[132].mxu0 %vm9935_vm9, %v21159_v33  ;;  %vm4911_vm10 = vcmp.gt.f32.partialorder %v16673_v10, %v16580_v53  ;;  %vm4915_vm8 = vcmp.gt.f32.partialorder %v16673_v10, %v16576_v55  ;;  %11061 = vmatprep.subr.bf16.mxu1 %v21165_v45 }
 0x4d1   :  { %vm5570_vm1 = vmand %vm22071_vm3, %vm4909_vm7  ;;  %11170 = vmatpush3.bf16.msra.mxu0 %v21165_v45 }
 0x4d2   :  { %vm5574_vm6 = vmand %vm22071_vm3, %vm4913_vm5  ;;  %11171 = vmatprep.subr.bf16.mxu0 %v21165_v45  ;;  %vm22073_vm5 = vnez %v22060_v58 }
 0x4d3   :  { %vm9873_vm0 = vmpackc.low %vm5574_vm6, %vm5570_vm1  ;;  %vm4916_vm6 = vcmp.gt.f32.partialorder %v16638_v3, %v16591_v31  ;;  %11062 = vmatpush3.bf16.msra.mxu1 %v21165_v45 }
 0x4d4   :  { %9874 = vmatprep.mubr.msk.bf16.mxu1 %vm9873_vm0, %v21159_v33  ;;  %vm5572_vm11 = vmand %vm22072_vm2, %vm4911_vm10  ;;  %11063 = vmatprep.subr.bf16.mxu1 %v21165_v45 }
 0x4d5   :  { %vm5576_vm9 = vmand %vm22072_vm2, %vm4915_vm8  ;;  %11172 = vmatpush3.bf16.msra.mxu0 %v21165_v45  ;;  %vm4914_vm8 = vcmp.gt.f32.partialorder %v16717_v5, %v16576_v55  ;;  %v22169_v55 = vld [vmem:[#allocation119_spill] sm:$0xff] }
 0x4d6   :  { %vm9937_vm7 = vmpackc.low %vm5576_vm9, %vm5572_vm11  ;;  %11173 = vmatprep.subr.bf16.mxu0 %v21165_v45  ;;  %vm5180_vm11 = vcmp.lt.s32.totalorder %v11925_v49, %v21664_v59  ;;  %vm4910_vm9 = vcmp.gt.f32.partialorder %v16717_v5, %v16580_v53  ;;  %v22166_v59 = vmov 0  ;;  %v22170_v53 = vld [vmem:[#allocation120_spill] sm:$0xff] }
 0x4d7   :  { %9938 = vmatprep.mubr.msk.bf16.mxu0 %vm9937_vm7, %v21159_v33  ;;  %vm5569_vm1 = vmand %vm22073_vm5, %vm16755_vm12  ;;  %vm5056_vm7 = vcmp.eq.f32.partialorder %v16638_v3, %v16598_v2  ;;  %11064 = vmatpush3.bf16.msra.mxu1 %v21165_v45 }
 0x4d8   :  { %vm5573_vm0 = vmand %vm22073_vm5, %vm16763_vm4  ;;  %vm5184_vm4 = vcmp.lt.s32.totalorder %v11925_v49, %v21676_v9  ;;  %11065 = vmatprep.subr.bf16.mxu1 %v21165_v45  ;;  %v17333_v9 = vpop.permute.xlu1 %4847 }
 0x4d9   :  { %vm9875_vm12 = vmpackc.low %vm5573_vm0, %vm5569_vm1  ;;  %11174 = vmatpush3.bf16.msra.mxu0 %v21165_v45 }
 0x4da   :  { %9876 = vmatmul.mubr.msk.bf16.gmra.mrb[136].mxu1 %vm9875_vm12, %v21159_v33  ;;  %vm5571_vm10 = vmand %vm16721_vm14, %vm4910_vm9  ;;  %vm22076_vm12 = vcmp.gt.f32.partialorder %v16638_v3, %v16588_v52  ;;  %11175 = vmatprep.subr.bf16.mxu0 %v21165_v45 }
 0x4db   :  { %vm16836_vm1 = vmor %vm4916_vm6, %vm16767_vm13  ;;  %vm22079_vm13 = vcmp.eq.f32.partialorder %v16638_v3, %v16603_v8  ;;  %11066 = vmatpush3.bf16.msra.mxu1 %v21165_v45 }
 0x4dc   :  { %vm5575_vm0 = vmand %vm16721_vm14, %vm4914_vm8  ;;  %vm4917_vm8 = vcmp.gt.f32.partialorder %v16651_v17, %v16591_v31  ;;  %11067 = vmatprep.subr.bf16.mxu1 %v21165_v45  ;;  %v17421_v12 = vpop.permute.xlu1 %4857 }
 0x4dd   :  { %vm16848_vm9 = vmor %vm22076_vm12, %vm16774_vm15  ;;  %vm4921_vm15 = vcmp.gt.f32.partialorder %v16651_v17, %v16588_v52  ;;  %11176 = vmatpush3.bf16.msra.mxu0 %v21165_v45 }
 0x4de   :  { %vm16855_vm6 = vmand %vm22079_vm13, %vm5180_vm11  ;;  %11177 = vmatprep.subr.bf16.mxu0 %v21165_v45 }
 0x4df   :  { %vm9939_vm5 = vmpackc.low %vm5575_vm0, %vm5571_vm10  ;;  %11068 = vmatpush3.bf16.msra.mxu1 %v21165_v45 }
 0x4e0   :  { %vm16862_vm14 = vmand %vm5056_vm7, %vm5184_vm4  ;;  %9940 = vmatmul.mubr.msk.bf16.gmra.mrb[136].mxu0 %vm9939_vm5, %v21159_v33  ;;  %vm4919_vm4 = vcmp.gt.f32.partialorder %v16673_v10, %v16591_v31  ;;  %vm4923_vm5 = vcmp.gt.f32.partialorder %v16673_v10, %v16588_v52  ;;  %11069 = vmatprep.subr.bf16.mxu1 %v21165_v45 }
 0x4e1   :  { %vm5578_vm11 = vmand %vm22071_vm3, %vm4917_vm8  ;;  %11178 = vmatpush3.bf16.msra.mxu0 %v21165_v45  ;;  %vm22084_vm8 = vnez %v22060_v58 }
 0x4e2   :  { %vm5582_vm10 = vmand %vm22071_vm3, %vm4921_vm15  ;;  %11179 = vmatprep.subr.bf16.mxu0 %v21165_v45 }
 0x4e3   :  { %vm9877_vm7 = vmpackc.low %vm5582_vm10, %vm5578_vm11  ;;  %vm4924_vm11 = vcmp.gt.f32.partialorder %v16638_v3, %v16603_v8  ;;  %11070 = vmatpush3.bf16.msra.mxu1 %v21165_v45 }
 0x4e4   :  { %9878 = vmatprep.mubr.msk.bf16.mxu1 %vm9877_vm7, %v21159_v33  ;;  %vm5580_vm0 = vmand %vm22072_vm2, %vm4919_vm4  ;;  %vm22086_vm4 = vnez %v22062_v24  ;;  %11071 = vmatprep.subr.bf16.mxu1 %v21165_v45 }
 0x4e5   :  { %vm5584_vm12 = vmand %vm22072_vm2, %vm4923_vm5  ;;  %vm5188_vm5 = vcmp.lt.s32.totalorder %v11925_v49, %v21677_v1  ;;  %11180 = vmatpush3.bf16.msra.mxu0 %v21165_v45 }
 0x4e6   :  { %vm9941_vm13 = vmpackc.low %vm5584_vm12, %vm5580_vm0  ;;  %vm4918_vm0 = vcmp.gt.f32.partialorder %v16717_v5, %v16591_v31  ;;  %vm5064_vm12 = vcmp.eq.f32.partialorder %v16638_v3, %v16610_v51  ;;  %11181 = vmatprep.subr.bf16.mxu0 %v21165_v45  ;;  %v22180_v31 = vmov 0 }
 0x4e7   :  { %9942 = vmatprep.mubr.msk.bf16.mxu0 %vm9941_vm13, %v21159_v33  ;;  %vm5577_vm15 = vmand %vm22084_vm8, %vm16836_vm1  ;;  %vm4922_vm13 = vcmp.gt.f32.partialorder %v16717_v5, %v16588_v52  ;;  %11072 = vmatpush3.bf16.msra.mxu1 %v21165_v45  ;;  %v22178_v52 = vmov 0 }
 0x4e8   :  { %vm5581_vm10 = vmand %vm22084_vm8, %vm16848_vm9  ;;  %vm5192_vm9 = vcmp.lt.s32.totalorder %v11925_v49, %v22085_v7 }
 0x4e9   :  { %vm9879_vm1 = vmpackc.low %vm5581_vm10, %vm5577_vm15  ;;  %11182 = vmatpush3.bf16.msra.mxu0 %v21165_v45 }
 0x4ea   :  { %9880 = vmatmul.mubr.msk.bf16.gmra.mrb[140].mxu1 %vm9879_vm1, %v21159_v33  ;;  %vm5579_vm7 = vmand %vm22086_vm4, %vm4918_vm0  ;;  %vm22089_vm1 = vcmp.gt.f32.partialorder %v16638_v3, %v16598_v2  ;;  %11183 = vmatprep.subr.bf16.mxu0 %v21165_v45 }
 0x4eb   :  { %vm16925_vm15 = vmor %vm4924_vm11, %vm16855_vm6  ;;  %vm22092_vm6 = vcmp.eq.f32.partialorder %v16638_v3, %v16615_v26 }
 0x4ec   :  { %vm5583_vm10 = vmand %vm22086_vm4, %vm4922_vm13  ;;  %vm4925_vm13 = vcmp.gt.f32.partialorder %v16651_v17, %v16603_v8 }
 0x4ed   :  { %vm16937_vm0 = vmor %vm22089_vm1, %vm16862_vm14  ;;  %vm4929_vm14 = vcmp.gt.f32.partialorder %v16651_v17, %v16598_v2  ;;  %11184 = vmatpush3.bf16.msra.mxu0 %v21165_v45  ;;  %v22098_v45 = vld [vmem:[#allocation80_spill] sm:$0xff] }
 0x4ee   :  { %vm16944_vm11 = vmand %vm22092_vm6, %vm5188_vm5 }
 0x4ef   :  { %vm9943_vm8 = vmpackc.low %vm5583_vm10, %vm5579_vm7 }
 0x4f0   :  { %vm16951_vm4 = vmand %vm5064_vm12, %vm5192_vm9  ;;  %9944 = vmatmul.mubr.msk.bf16.gmra.mrb[140].mxu0 %vm9943_vm8, %v21159_v33  ;;  %vm4927_vm9 = vcmp.gt.f32.partialorder %v16673_v10, %v16603_v8  ;;  %vm4931_vm8 = vcmp.gt.f32.partialorder %v16673_v10, %v16598_v2 }
 0x4f1   :  { %vm5586_vm5 = vmand %vm22071_vm3, %vm4925_vm13  ;;  %vm22097_vm13 = vnez %v22060_v58 }
 0x4f2   :  { %vm5590_vm7 = vmand %vm22071_vm3, %vm4929_vm14 }
 0x4f3   :  { %vm9881_vm12 = vmpackc.low %vm5590_vm7, %vm5586_vm5  ;;  %vm4932_vm5 = vcmp.gt.f32.partialorder %v16638_v3, %v16615_v26 }
 0x4f4   :  { %9882 = vmatprep.mubr.msk.bf16.mxu1 %vm9881_vm12, %v21159_v33  ;;  %vm5588_vm10 = vmand %vm22072_vm2, %vm4927_vm9  ;;  %vm4936_vm12 = vcmp.gt.f32.partialorder %v16638_v3, %v16610_v51  ;;  %vm5068_vm9 = vcmp.eq.f32.partialorder %v16638_v3, %v16627_v41 }
 0x4f5   :  { %vm5592_vm1 = vmand %vm22072_vm2, %vm4931_vm8  ;;  %vm5196_vm8 = vcmp.lt.s32.totalorder %v11925_v49, %v22098_v45 }
 0x4f6   :  { %vm9945_vm6 = vmpackc.low %vm5592_vm1, %vm5588_vm10  ;;  %vm5072_vm1 = vcmp.eq.f32.partialorder %v16638_v3, %v16622_v18 }
 0x4f7   :  { %9946 = vmatprep.mubr.msk.bf16.mxu0 %vm9945_vm6, %v21159_v33  ;;  %vm5585_vm14 = vmand %vm22097_vm13, %vm16925_vm15  ;;  %vm4926_vm15 = vcmp.gt.f32.partialorder %v16717_v5, %v16603_v8  ;;  %vm5200_vm6 = vcmp.lt.s32.totalorder %v11925_v49, %v22099_v61  ;;  %v22188_v61 = vmov 0  ;;  %v22191_v8 = vld [vmem:[#allocation127_spill] sm:$0xff] }
 0x4f8   :  { %vm5589_vm7 = vmand %vm22097_vm13, %vm16937_vm0  ;;  %vm4930_vm0 = vcmp.gt.f32.partialorder %v16717_v5, %v16598_v2  ;;  %vm22100_vm13 = vnez %v22062_v24  ;;  %v22192_v2 = vld [vmem:[#allocation128_spill] sm:$0xff] }
 0x4f9   :  { %vm9883_vm10 = vmpackc.low %vm5589_vm7, %vm5585_vm14 }
 0x4fa   :  { %9884 = vmatmul.mubr.msk.bf16.gmra.mrb[144].mxu1 %vm9883_vm10, %v21159_v33  ;;  %vm5587_vm2 = vmand %vm22100_vm13, %vm4926_vm15 }
 0x4fb   :  { %vm17007_vm14 = vmor %vm4932_vm5, %vm16944_vm11  ;;  %vm4933_vm11 = vcmp.gt.f32.partialorder %v16651_v17, %v16615_v26 }
 0x4fc   :  { %vm5591_vm7 = vmand %vm22100_vm13, %vm4930_vm0 }
 0x4fd   :  { %vm17015_vm3 = vmor %vm4936_vm12, %vm16951_vm4  ;;  %vm4937_vm4 = vcmp.gt.f32.partialorder %v16651_v17, %v16610_v51  ;;  %vm22109_vm12 = vnez %v22053_v6 }
 0x4fe   :  { %vm17019_vm10 = vmand %vm5068_vm9, %vm5196_vm8 }
 0x4ff   :  { %vm9947_vm15 = vmpackc.low %vm5591_vm7, %vm5587_vm2  ;;  %vm4935_vm2 = vcmp.gt.f32.partialorder %v16673_v10, %v16615_v26 }
 0x500   :  { %vm17025_vm5 = vmand %vm5072_vm1, %vm5200_vm6  ;;  %9948 = vmatmul.mubr.msk.bf16.gmra.mrb[144].mxu0 %vm9947_vm15, %v21159_v33  ;;  %vm4939_vm1 = vcmp.gt.f32.partialorder %v16673_v10, %v16610_v51  ;;  %vm22110_vm6 = vnez %v22057_v13 }
 0x501   :  { %vm5594_vm0 = vmand %vm22109_vm12, %vm4933_vm11 }
 0x502   :  { %vm5598_vm9 = vmand %vm22109_vm12, %vm4937_vm4  ;;  %vm22111_vm4 = vnez %v22060_v58 }
 0x503   :  { %vm9885_vm8 = vmpackc.low %vm5598_vm9, %vm5594_vm0  ;;  %vm4940_vm9 = vcmp.gt.f32.partialorder %v16638_v3, %v16627_v41 }
 0x504   :  { %9886 = vmatprep.mubr.msk.bf16.mxu1 %vm9885_vm8, %v21159_v33  ;;  %vm5596_vm7 = vmand %vm22110_vm6, %vm4935_vm2  ;;  %vm4944_vm2 = vcmp.gt.f32.partialorder %v16638_v3, %v16622_v18 }
 0x505   :  { %vm5600_vm15 = vmand %vm22110_vm6, %vm4939_vm1  ;;  %vm5076_vm1 = vcmp.eq.f32.partialorder %v16638_v3, %v17043_v21  ;;  %vm5208_vm6 = vcmp.lt.s32.totalorder %v11925_v49, %v22113_v29  ;;  %v22208_v29 = vmov 0 }
 0x506   :  { %vm9949_vm11 = vmpackc.low %vm5600_vm15, %vm5596_vm7  ;;  %vm5204_vm7 = vcmp.lt.s32.totalorder %v11925_v49, %v22112_v42  ;;  %v22202_v42 = vmov 0 }
 0x507   :  { %9950 = vmatprep.mubr.msk.bf16.mxu0 %vm9949_vm11, %v21159_v33  ;;  %vm5593_vm0 = vmand %vm22111_vm4, %vm17007_vm14  ;;  %vm4934_vm14 = vcmp.gt.f32.partialorder %v16717_v5, %v16615_v26  ;;  %vm5080_vm11 = vcmp.eq.f32.partialorder %v16638_v3, %v17047_v32  ;;  %v22210_v26 = vmov 0 }
 0x508   :  { %vm5597_vm8 = vmand %vm22111_vm4, %vm17015_vm3  ;;  %vm4938_vm3 = vcmp.gt.f32.partialorder %v16717_v5, %v16610_v51  ;;  %v17509_v51 = vpop.permute.xlu1 %4867 }
 0x509   :  { %vm9887_vm15 = vmpackc.low %vm5597_vm8, %vm5593_vm0 }
 0x50a   :  { %9888 = vmatmul.mubr.msk.bf16.gmra.mrb[148].mxu1 %vm9887_vm15, %v21159_v33  ;;  %vm5595_vm4 = vmand %vm22100_vm13, %vm4934_vm14 }
 0x50b   :  { %vm17079_vm0 = vmor %vm4940_vm9, %vm17019_vm10  ;;  %vm4941_vm10 = vcmp.gt.f32.partialorder %v16651_v17, %v16627_v41 }
 0x50c   :  { %vm5599_vm8 = vmand %vm22100_vm13, %vm4938_vm3 }
 0x50d   :  { %vm17087_vm12 = vmor %vm4944_vm2, %vm17025_vm5  ;;  %vm4945_vm5 = vcmp.gt.f32.partialorder %v16651_v17, %v16622_v18  ;;  %vm22122_vm2 = vnez %v22053_v6 }
 0x50e   :  { %vm17091_vm15 = vmand %vm5076_vm1, %vm5204_vm7 }
 0x50f   :  { %vm9951_vm14 = vmpackc.low %vm5599_vm8, %vm5595_vm4  ;;  %vm4943_vm4 = vcmp.gt.f32.partialorder %v16673_v10, %v16627_v41 }
 0x510   :  { %vm17097_vm9 = vmand %vm5080_vm11, %vm5208_vm6  ;;  %9952 = vmatmul.mubr.msk.bf16.gmra.mrb[148].mxu0 %vm9951_vm14, %v21159_v33  ;;  %vm4947_vm6 = vcmp.gt.f32.partialorder %v16673_v10, %v16622_v18  ;;  %vm22123_vm11 = vnez %v22057_v13 }
 0x511   :  { %vm5602_vm3 = vmand %vm22122_vm2, %vm4941_vm10 }
 0x512   :  { %vm5606_vm1 = vmand %vm22122_vm2, %vm4945_vm5  ;;  %vm22124_vm5 = vnez %v22060_v58 }
 0x513   :  { %vm9889_vm7 = vmpackc.low %vm5606_vm1, %vm5602_vm3  ;;  %vm4948_vm1 = vcmp.gt.f32.partialorder %v16638_v3, %v17043_v21 }
 0x514   :  { %9890 = vmatprep.mubr.msk.bf16.mxu1 %vm9889_vm7, %v21159_v33  ;;  %vm5604_vm8 = vmand %vm22123_vm11, %vm4943_vm4  ;;  %vm4952_vm4 = vcmp.gt.f32.partialorder %v16638_v3, %v17047_v32 }
 0x515   :  { %vm5608_vm14 = vmand %vm22123_vm11, %vm4947_vm6  ;;  %vm5084_vm6 = vcmp.eq.f32.partialorder %v16638_v3, %v17115_v36  ;;  %vm5216_vm11 = vcmp.lt.s32.totalorder %v11925_v49, %v22126_v16  ;;  %v22222_v16 = vmov 0 }
 0x516   :  { %vm9953_vm10 = vmpackc.low %vm5608_vm14, %vm5604_vm8  ;;  %vm5212_vm8 = vcmp.lt.s32.totalorder %v11925_v49, %v22125_v39 }
 0x517   :  { %9954 = vmatprep.mubr.msk.bf16.mxu0 %vm9953_vm10, %v21159_v33  ;;  %vm5601_vm3 = vmand %vm22124_vm5, %vm17079_vm0  ;;  %vm4942_vm0 = vcmp.gt.f32.partialorder %v16717_v5, %v16627_v41  ;;  %vm5088_vm10 = vcmp.eq.f32.partialorder %v16638_v3, %v17119_v35  ;;  %v17155_v41 = vpop.permute.xlu0 %4822 }
 0x518   :  { %vm5605_vm7 = vmand %vm22124_vm5, %vm17087_vm12  ;;  %vm4946_vm12 = vcmp.gt.f32.partialorder %v16717_v5, %v16622_v18  ;;  %v22131_v18 = vmov 0 }
 0x519   :  { %vm9891_vm14 = vmpackc.low %vm5605_vm7, %vm5601_vm3 }
 0x51a   :  { %9892 = vmatmul.mubr.msk.bf16.gmra.mrb[152].mxu1 %vm9891_vm14, %v21159_v33  ;;  %vm5603_vm5 = vmand %vm22100_vm13, %vm4942_vm0 }
 0x51b   :  { %vm17151_vm3 = vmor %vm4948_vm1, %vm17091_vm15  ;;  %vm4949_vm1 = vcmp.gt.f32.partialorder %v16651_v17, %v17043_v21  ;;  %v17235_v43 = vpop.permute.xlu0 %4832 }
 0x51c   :  { %vm5607_vm7 = vmand %vm22100_vm13, %vm4946_vm12  ;;  %vm4951_vm12 = vcmp.gt.f32.partialorder %v16673_v10, %v17043_v21 }
 0x51d   :  { %vm17161_vm14 = vmor %vm4952_vm4, %vm17097_vm9  ;;  %vm4953_vm9 = vcmp.gt.f32.partialorder %v16651_v17, %v17047_v32  ;;  %vm22135_vm4 = vnez %v22053_v6 }
 0x51e   :  { %vm17165_vm2 = vmand %vm5084_vm6, %vm5212_vm8 }
 0x51f   :  { %v22132_v18 = vsel %vm17165_vm2, 4294967295, %v22131_v18  ;;  %vm9955_vm15 = vmpackc.low %vm5607_vm7, %vm5603_vm5  ;;  %vm5093_vm5 = vcmp.eq.f32.partialorder %v16651_v17, %v17155_v41  ;;  %vm5097_vm7 = vcmp.eq.f32.partialorder %v16651_v17, %v17169_v37  ;;  %v17325_v28 = vpop.permute.xlu0 %4842 }
 0x520   :  { %vm17173_vm0 = vmand %vm5088_vm10, %vm5216_vm11  ;;  %9956 = vmatmul.mubr.msk.bf16.gmra.mrb[152].mxu0 %vm9955_vm15, %v21159_v33  ;;  %vm5221_vm11 = vcmp.lt.s32.totalorder %v21791_v62, %v22136_v40  ;;  %vm5225_vm15 = vcmp.lt.s32.totalorder %v21791_v62, %v22137_v27  ;;  %v22244_v40 = vmov 0  ;;  %v22250_v27 = vmov 0 }
 0x521   :  { %v22134_v57 = vsel %vm17173_vm0, 4294967295, %v22133_v57  ;;  %vm5610_vm6 = vmand %vm22135_vm4, %vm4949_vm1  ;;  %vm4955_vm1 = vcmp.gt.f32.partialorder %v16673_v10, %v17047_v32 }
 0x522   :  { %vm5614_vm8 = vmand %vm22135_vm4, %vm4953_vm9  ;;  %vm22138_vm9 = vnez %v22057_v13 }
 0x523   :  { %vm9893_vm10 = vmpackc.low %vm5614_vm8, %vm5610_vm6  ;;  %v17413_v45 = vpop.permute.xlu0 %4852 }
 0x524   :  { %9894 = vmatprep.mubr.msk.bf16.mxu1 %vm9893_vm10, %v21159_v33  ;;  %vm5612_vm4 = vmand %vm22138_vm9, %vm4951_vm12  ;;  %vm22143_vm10 = vnez %v22060_v58  ;;  %vm4956_vm12 = vcmp.gt.f32.partialorder %v16638_v3, %v17115_v36 }
 0x525   :  { %vm5616_vm6 = vmand %vm22138_vm9, %vm4955_vm1  ;;  %vm22145_vm1 = vnez %v22132_v18  ;;  %v22232_v18 = vmov 0 }
 0x526   :  { %vm17201_vm8 = vmand %vm5093_vm5, %vm5221_vm11 }
 0x527   :  { %vm9957_vm0 = vmpackc.low %vm5616_vm6, %vm5612_vm4  ;;  %vm4960_vm4 = vcmp.gt.f32.partialorder %v16638_v3, %v17119_v35  ;;  %v17501_v38 = vpop.permute.xlu0 %4862 }
 0x528   :  { %vm17205_vm2 = vmand %vm5097_vm7, %vm5225_vm15  ;;  %9958 = vmatprep.mubr.msk.bf16.mxu0 %vm9957_vm0, %v21159_v33  ;;  %vm4950_vm0 = vcmp.gt.f32.partialorder %v16717_v5, %v17043_v21  ;;  %vm22144_vm7 = vnez %v22062_v24 }
 0x529   :  { %vm5609_vm13 = vmand %vm22143_vm10, %vm17151_vm3  ;;  %vm4954_vm3 = vcmp.gt.f32.partialorder %v16717_v5, %v17047_v32  ;;  %v22200_v32 = vmov 0 }
 0x52a   :  { %vm5613_vm5 = vmand %vm22143_vm10, %vm17161_vm14  ;;  %vm22148_vm14 = vnez %v22134_v57  ;;  %vm5233_vm10 = vcmp.lt.s32.totalorder %v21791_v62, %v21828_v56  ;;  %v22242_v57 = vmov 0  ;;  %v22272_v56 = vmov 0 }
 0x52b   :  { %vm9895_vm11 = vmpackc.low %vm5613_vm5, %vm5609_vm13  ;;  %v17589_v63 = vpop.permute.xlu0 %4872 }
 0x52c   :  { %9896 = vmatmul.mubr.msk.bf16.gmra.mrb[156].mxu1 %vm9895_vm11, %v21159_v33  ;;  %vm5611_vm15 = vmand %vm22144_vm7, %vm4950_vm0  ;;  %vm4961_vm0 = vcmp.gt.f32.partialorder %v16651_v17, %v17119_v35 }
 0x52d   :  { %vm17231_vm6 = vmor %vm4956_vm12, %vm22145_vm1  ;;  %vm4957_vm12 = vcmp.gt.f32.partialorder %v16651_v17, %v17115_v36  ;;  %vm22151_vm1 = vnez %v22053_v6 }
 0x52e   :  { %v22147_v23 = vsel %vm17231_vm6, 4294967295, %v22146_v23  ;;  %vm5615_vm13 = vmand %vm22144_vm7, %vm4954_vm3 }
 0x52f   :  { %vm17241_vm5 = vmor %vm4960_vm4, %vm22148_vm14  ;;  %vm4965_vm4 = vcmp.gt.f32.partialorder %v16651_v17, %v17155_v41  ;;  %v17677_v48 = vpop.permute.xlu0 %4882 }
 0x530   :  { %v22150_v20 = vsel %vm17241_vm5, 4294967295, %v22149_v20  ;;  %vm9959_vm11 = vmpackc.low %vm5615_vm13, %vm5611_vm15  ;;  %vm4969_vm15 = vcmp.gt.f32.partialorder %v16651_v17, %v17169_v37  ;;  %vm5101_vm13 = vcmp.eq.f32.partialorder %v16651_v17, %v17235_v43  ;;  %vm4959_vm5 = vcmp.gt.f32.partialorder %v16673_v10, %v17115_v36 }
 0x531   :  { %9960 = vmatmul.mubr.msk.bf16.gmra.mrb[156].mxu0 %vm9959_vm11, %v21159_v33  ;;  %vm5618_vm3 = vmand %vm22151_vm1, %vm4957_vm12  ;;  %vm5229_vm11 = vcmp.lt.s32.totalorder %v21791_v62, %v21822_v14  ;;  %vm5105_vm12 = vcmp.eq.f32.partialorder %v16651_v17, %v17245_v60 }
 0x532   :  { %vm5622_vm14 = vmand %vm22151_vm1, %vm4961_vm0  ;;  %vm4963_vm0 = vcmp.gt.f32.partialorder %v16673_v10, %v17119_v35 }
 0x533   :  { %vm9897_vm7 = vmpackc.low %vm5622_vm14, %vm5618_vm3  ;;  %v17765_v14 = vpop.permute.xlu0 %4892 }
 0x534   :  { %9898 = vmatprep.mubr.msk.bf16.mxu1 %vm9897_vm7, %v21159_v33  ;;  %vm5620_vm1 = vmand %vm22138_vm9, %vm4959_vm5 }
 0x535   :  { %vm17277_vm3 = vmor %vm4965_vm4, %vm17201_vm8  ;;  %vm22160_vm8 = vnez %v22147_v23 }
 0x536   :  { %vm5624_vm14 = vmand %vm22138_vm9, %vm4963_vm0  ;;  %vm22161_vm0 = vnez %v22060_v58 }
 0x537   :  { %vm17285_vm6 = vmor %vm4969_vm15, %vm17205_vm2  ;;  %vm4964_vm2 = vcmp.gt.f32.partialorder %v16638_v3, %v17155_v41  ;;  %vm5092_vm15 = vcmp.eq.f32.partialorder %v16638_v3, %v17155_v41  ;;  %v17902_v7 = vpop.permute.xlu0 %6895 }
 0x538   :  { %vm17289_vm7 = vmand %vm5101_vm13, %vm5229_vm11  ;;  %vm22162_vm13 = vnez %v22150_v20  ;;  %vm5096_vm11 = vcmp.eq.f32.partialorder %v16638_v3, %v17169_v37  ;;  %v22264_v20 = vmov 0 }
 0x539   :  { %v22157_v50 = vsel %vm17289_vm7, 4294967295, %v22156_v50  ;;  %vm9961_vm5 = vmpackc.low %vm5624_vm14, %vm5620_vm1  ;;  %vm4968_vm1 = vcmp.gt.f32.partialorder %v16638_v3, %v17169_v37  ;;  %vm4958_vm14 = vcmp.gt.f32.partialorder %v16717_v5, %v17115_v36  ;;  %v22214_v36 = vld [vmem:[#allocation136_spill] sm:$0xff] }
 0x53a   :  { %vm17293_vm4 = vmand %vm5105_vm12, %vm5233_vm10  ;;  %9962 = vmatprep.mubr.msk.bf16.mxu0 %vm9961_vm5, %v21159_v33  ;;  %vm4962_vm5 = vcmp.gt.f32.partialorder %v16717_v5, %v17119_v35  ;;  %v22339_v35 = vmov 0 }
 0x53b   :  { %v22159_v19 = vsel %vm17293_vm4, 4294967295, %v22158_v19  ;;  %vm5617_vm9 = vmand %vm22161_vm0, %vm22160_vm8  ;;  %vm22163_vm8 = vnez %v22062_v24  ;;  %v17990_v21 = vpop.permute.xlu0 %6905 }
 0x53c   :  { %vm5621_vm10 = vmand %vm22161_vm0, %vm22162_vm13  ;;  %vm22175_vm0 = vnez %v22159_v19  ;;  %v22275_v19 = vld [vmem:[#allocation158_spill] sm:$0xff] }
 0x53d   :  { %vm9899_vm12 = vmpackc.low %vm5621_vm10, %vm5617_vm9 }
 0x53e   :  { %9900 = vmatmul.mubr.msk.bf16.gmra.mrb[160].mxu1 %vm9899_vm12, %v21159_v33  ;;  %vm5619_vm4 = vmand %vm22163_vm8, %vm4958_vm14  ;;  %vm4973_vm12 = vcmp.gt.f32.partialorder %v16651_v17, %v17235_v43  ;;  %vm5237_vm14 = vcmp.lt.s32.totalorder %v21791_v62, %v22169_v55 }
 0x53f   :  { %vm17321_vm7 = vmor %vm4964_vm2, %vm5092_vm15  ;;  %vm22168_vm2 = vnez %v22053_v6 }
 0x540   :  { %v22165_v4 = vsel %vm17321_vm7, 4294967295, %v22164_v4  ;;  %vm5623_vm9 = vmand %vm22163_vm8, %vm4962_vm5 }
 0x541   :  { %vm17329_vm13 = vmor %vm4968_vm1, %vm5096_vm11  ;;  %vm4977_vm11 = vcmp.gt.f32.partialorder %v16651_v17, %v17245_v60 }
 0x542   :  { %v22167_v59 = vsel %vm17329_vm13, 4294967295, %v22166_v59  ;;  %vm9963_vm10 = vmpackc.low %vm5623_vm9, %vm5619_vm4  ;;  %vm5109_vm4 = vcmp.eq.f32.partialorder %v16651_v17, %v17325_v28  ;;  %vm5113_vm9 = vcmp.eq.f32.partialorder %v16651_v17, %v17333_v9  ;;  %vm22172_vm13 = vnez %v22157_v50 }
 0x543   :  { %9964 = vmatmul.mubr.msk.bf16.gmra.mrb[160].mxu0 %vm9963_vm10, %v21159_v33  ;;  %vm5626_vm15 = vmand %vm22168_vm2, %vm17277_vm3  ;;  %vm4967_vm3 = vcmp.gt.f32.partialorder %v16673_v10, %v17155_v41  ;;  %vm5241_vm10 = vcmp.lt.s32.totalorder %v21791_v62, %v22170_v53  ;;  %v22301_v53 = vmov 0 }
 0x544   :  { %vm5630_vm1 = vmand %vm22168_vm2, %vm17285_vm6  ;;  %vm4971_vm6 = vcmp.gt.f32.partialorder %v16673_v10, %v17169_v37  ;;  %vm22171_vm2 = vnez %v22057_v13 }
 0x545   :  { %vm9901_vm5 = vmpackc.low %vm5630_vm1, %vm5626_vm15 }
 0x546   :  { %9902 = vmatprep.mubr.msk.bf16.mxu1 %vm9901_vm5, %v21159_v33  ;;  %vm5628_vm8 = vmand %vm22171_vm2, %vm4967_vm3 }
 0x547   :  { %vm17365_vm15 = vmor %vm4973_vm12, %vm22172_vm13  ;;  %vm22182_vm13 = vnez %v22165_v4  ;;  %v22283_v4 = vmov 0 }
 0x548   :  { %vm5632_vm1 = vmand %vm22171_vm2, %vm4971_vm6  ;;  %vm22183_vm6 = vnez %v22060_v58 }
 0x549   :  { %vm17373_vm7 = vmor %vm4977_vm11, %vm22175_vm0  ;;  %vm4972_vm0 = vcmp.gt.f32.partialorder %v16638_v3, %v17235_v43  ;;  %vm5100_vm11 = vcmp.eq.f32.partialorder %v16638_v3, %v17235_v43 }
 0x54a   :  { %vm17377_vm5 = vmand %vm5109_vm4, %vm5237_vm14  ;;  %vm22184_vm4 = vnez %v22167_v59  ;;  %vm4976_vm14 = vcmp.gt.f32.partialorder %v16638_v3, %v17245_v60 }
 0x54b   :  { %v22179_v52 = vsel %vm17377_vm5, 4294967295, %v22178_v52  ;;  %vm9965_vm3 = vmpackc.low %vm5632_vm1, %vm5628_vm8  ;;  %vm4966_vm1 = vcmp.gt.f32.partialorder %v16717_v5, %v17155_v41  ;;  %v22230_v41 = vmov 0 }
 0x54c   :  { %vm17381_vm12 = vmand %vm5113_vm9, %vm5241_vm10  ;;  %9966 = vmatprep.mubr.msk.bf16.mxu0 %vm9965_vm3, %v21159_v33  ;;  %vm5104_vm9 = vcmp.eq.f32.partialorder %v16638_v3, %v17245_v60  ;;  %vm4970_vm3 = vcmp.gt.f32.partialorder %v16717_v5, %v17169_v37  ;;  %v17597_v37 = vpop.permute.xlu1 %4877 }
 0x54d   :  { %v22181_v31 = vsel %vm17381_vm12, 4294967295, %v22180_v31  ;;  %vm5625_vm2 = vmand %vm22183_vm6, %vm22182_vm13  ;;  %vm22185_vm13 = vnez %v22062_v24 }
 0x54e   :  { %vm5629_vm8 = vmand %vm22183_vm6, %vm22184_vm4  ;;  %vm22197_vm6 = vnez %v22181_v31  ;;  %v22306_v31 = vmov 0 }
 0x54f   :  { %vm9903_vm10 = vmpackc.low %vm5629_vm8, %vm5625_vm2 }
 0x550   :  { %9904 = vmatmul.mubr.msk.bf16.gmra.mrb[164].mxu1 %vm9903_vm10, %v21159_v33  ;;  %vm5627_vm12 = vmand %vm22185_vm13, %vm4966_vm1  ;;  %vm4981_vm10 = vcmp.gt.f32.partialorder %v16651_v17, %v17325_v28  ;;  %vm5245_vm1 = vcmp.lt.s32.totalorder %v21791_v62, %v22191_v8  ;;  %v17685_v23 = vpop.permute.xlu1 %4887  ;;  %v22314_v8 = vmov 0 }
 0x551   :  { %vm17409_vm5 = vmor %vm4972_vm0, %vm5100_vm11  ;;  %vm22190_vm0 = vnez %v22053_v6 }
 0x552   :  { %v22187_v34 = vsel %vm17409_vm5, 4294967295, %v22186_v34  ;;  %vm5631_vm2 = vmand %vm22185_vm13, %vm4970_vm3 }
 0x553   :  { %vm17417_vm4 = vmor %vm4976_vm14, %vm5104_vm9  ;;  %vm4985_vm9 = vcmp.gt.f32.partialorder %v16651_v17, %v17333_v9 }
 0x554   :  { %v22189_v61 = vsel %vm17417_vm4, 4294967295, %v22188_v61  ;;  %vm9967_vm8 = vmpackc.low %vm5631_vm2, %vm5627_vm12  ;;  %vm5117_vm12 = vcmp.eq.f32.partialorder %v16651_v17, %v17413_v45  ;;  %vm5121_vm2 = vcmp.eq.f32.partialorder %v16651_v17, %v17421_v12  ;;  %vm22194_vm4 = vnez %v22179_v52  ;;  %v17773_v50 = vpop.permute.xlu1 %4897 }
 0x555   :  { %9968 = vmatmul.mubr.msk.bf16.gmra.mrb[164].mxu0 %vm9967_vm8, %v21159_v33  ;;  %vm5634_vm11 = vmand %vm22190_vm0, %vm17365_vm15  ;;  %vm4975_vm15 = vcmp.gt.f32.partialorder %v16673_v10, %v17235_v43  ;;  %vm5249_vm8 = vcmp.lt.s32.totalorder %v21791_v62, %v22192_v2  ;;  %v22304_v52 = vmov 0  ;;  %v22413_v2 = vld [vmem:[#allocation168_spill] sm:$0xff] }
 0x556   :  { %vm5638_vm14 = vmand %vm22190_vm0, %vm17373_vm7  ;;  %vm4979_vm7 = vcmp.gt.f32.partialorder %v16673_v10, %v17245_v60  ;;  %vm22193_vm0 = vnez %v22057_v13 }
 0x557   :  { %vm9905_vm3 = vmpackc.low %vm5638_vm14, %vm5634_vm11 }
 0x558   :  { %9906 = vmatprep.mubr.msk.bf16.mxu1 %vm9905_vm3, %v21159_v33  ;;  %vm5636_vm13 = vmand %vm22193_vm0, %vm4975_vm15  ;;  %v17912_v1 = vpop.permute.xlu1 %6900 }
 0x559   :  { %vm17453_vm11 = vmor %vm4981_vm10, %vm22194_vm4  ;;  %vm22204_vm10 = vnez %v22187_v34  ;;  %v22308_v34 = vld [vmem:[#allocation160_spill] sm:$0xff] }
 0x55a   :  { %vm5640_vm14 = vmand %vm22193_vm0, %vm4979_vm7  ;;  %vm22205_vm7 = vnez %v22060_v58 }
 0x55b   :  { %vm17461_vm5 = vmor %vm4985_vm9, %vm22197_vm6  ;;  %vm4980_vm6 = vcmp.gt.f32.partialorder %v16638_v3, %v17325_v28  ;;  %vm5108_vm9 = vcmp.eq.f32.partialorder %v16638_v3, %v17325_v28 }
 0x55c   :  { %vm17465_vm3 = vmand %vm5117_vm12, %vm5245_vm1  ;;  %vm22206_vm12 = vnez %v22189_v61  ;;  %vm4984_vm1 = vcmp.gt.f32.partialorder %v16638_v3, %v17333_v9  ;;  %v22310_v61 = vld [vmem:[#allocation161_spill] sm:$0xff] }
 0x55d   :  { %v22201_v32 = vsel %vm17465_vm3, 4294967295, %v22200_v32  ;;  %vm9969_vm15 = vmpackc.low %vm5640_vm14, %vm5636_vm13  ;;  %vm4974_vm14 = vcmp.gt.f32.partialorder %v16717_v5, %v17235_v43  ;;  %v22262_v43 = vmov 0 }
 0x55e   :  { %vm17469_vm4 = vmand %vm5121_vm2, %vm5249_vm8  ;;  %9970 = vmatprep.mubr.msk.bf16.mxu0 %vm9969_vm15, %v21159_v33  ;;  %vm5112_vm2 = vcmp.eq.f32.partialorder %v16638_v3, %v17333_v9  ;;  %vm4978_vm15 = vcmp.gt.f32.partialorder %v16717_v5, %v17245_v60  ;;  %v22270_v60 = vmov 0 }
 0x55f   :  { %v22203_v42 = vsel %vm17469_vm4, 4294967295, %v22202_v42  ;;  %vm5633_vm0 = vmand %vm22205_vm7, %vm22204_vm10  ;;  %vm22207_vm10 = vnez %v22062_v24 }
 0x560   :  { %vm5637_vm13 = vmand %vm22205_vm7, %vm22206_vm12  ;;  %vm22219_vm7 = vnez %v22203_v42  ;;  %v22325_v42 = vmov 0 }
 0x561   :  { %vm9907_vm8 = vmpackc.low %vm5637_vm13, %vm5633_vm0 }
 0x562   :  { %9908 = vmatmul.mubr.msk.bf16.gmra.mrb[168].mxu1 %vm9907_vm8, %v21159_v33  ;;  %vm5635_vm4 = vmand %vm22207_vm10, %vm4974_vm14  ;;  %vm4989_vm8 = vcmp.gt.f32.partialorder %v16651_v17, %v17413_v45  ;;  %vm5253_vm14 = vcmp.lt.s32.totalorder %v21791_v62, %v22213_v54  ;;  %v22335_v54 = vmov 0 }
 0x563   :  { %vm17497_vm3 = vmor %vm4980_vm6, %vm5108_vm9  ;;  %vm22212_vm6 = vnez %v22053_v6 }
 0x564   :  { %v22209_v29 = vsel %vm17497_vm3, 4294967295, %v22208_v29  ;;  %vm5639_vm0 = vmand %vm22207_vm10, %vm4978_vm15 }
 0x565   :  { %vm17505_vm12 = vmor %vm4984_vm1, %vm5112_vm2  ;;  %vm4993_vm2 = vcmp.gt.f32.partialorder %v16651_v17, %v17421_v12 }
 0x566   :  { %v22211_v26 = vsel %vm17505_vm12, 4294967295, %v22210_v26  ;;  %vm9971_vm13 = vmpackc.low %vm5639_vm0, %vm5635_vm4  ;;  %vm5125_vm4 = vcmp.eq.f32.partialorder %v16651_v17, %v17501_v38  ;;  %vm5129_vm0 = vcmp.eq.f32.partialorder %v16651_v17, %v17509_v51  ;;  %vm22216_vm12 = vnez %v22201_v32  ;;  %v18000_v32 = vpop.permute.xlu1 %6910 }
 0x567   :  { %9972 = vmatmul.mubr.msk.bf16.gmra.mrb[168].mxu0 %vm9971_vm13, %v21159_v33  ;;  %vm5642_vm9 = vmand %vm22212_vm6, %vm17453_vm11  ;;  %vm4983_vm11 = vcmp.gt.f32.partialorder %v16673_v10, %v17325_v28  ;;  %vm5257_vm13 = vcmp.lt.s32.totalorder %v21791_v62, %v22214_v36  ;;  %v22426_v36 = vmov 0 }
 0x568   :  { %vm5646_vm1 = vmand %vm22212_vm6, %vm17461_vm5  ;;  %vm4987_vm5 = vcmp.gt.f32.partialorder %v16673_v10, %v17333_v9  ;;  %vm22215_vm6 = vnez %v22057_v13 }
 0x569   :  { %vm9909_vm15 = vmpackc.low %vm5646_vm1, %vm5642_vm9 }
 0x56a   :  { %9910 = vmatprep.mubr.msk.bf16.mxu1 %vm9909_vm15, %v21159_v33  ;;  %vm5644_vm10 = vmand %vm22215_vm6, %vm4983_vm11 }
 0x56b   :  { %vm17541_vm9 = vmor %vm4989_vm8, %vm22216_vm12  ;;  %vm22226_vm12 = vnez %v22209_v29  ;;  %v22327_v29 = vmov 0 }
 0x56c   :  { %vm5648_vm1 = vmand %vm22215_vm6, %vm4987_vm5  ;;  %vm22227_vm5 = vnez %v22060_v58 }
 0x56d   :  { %vm17549_vm3 = vmor %vm4993_vm2, %vm22219_vm7  ;;  %vm4988_vm7 = vcmp.gt.f32.partialorder %v16638_v3, %v17413_v45  ;;  %vm5116_vm2 = vcmp.eq.f32.partialorder %v16638_v3, %v17413_v45 }
 0x56e   :  { %vm17553_vm15 = vmand %vm5125_vm4, %vm5253_vm14  ;;  %vm22228_vm4 = vnez %v22211_v26  ;;  %vm4992_vm14 = vcmp.gt.f32.partialorder %v16638_v3, %v17421_v12  ;;  %v22330_v26 = vld [vmem:[#allocation163_spill] sm:$0xff] }
 0x56f   :  { %v22223_v16 = vsel %vm17553_vm15, 4294967295, %v22222_v16  ;;  %vm9973_vm11 = vmpackc.low %vm5648_vm1, %vm5644_vm10  ;;  %vm4982_vm1 = vcmp.gt.f32.partialorder %v16717_v5, %v17325_v28  ;;  %v22285_v28 = vmov 0 }
 0x570   :  { %vm17557_vm8 = vmand %vm5129_vm0, %vm5257_vm13  ;;  %9974 = vmatprep.mubr.msk.bf16.mxu0 %vm9973_vm11, %v21159_v33  ;;  %vm5120_vm0 = vcmp.eq.f32.partialorder %v16638_v3, %v17421_v12  ;;  %vm4986_vm11 = vcmp.gt.f32.partialorder %v16717_v5, %v17333_v9 }
 0x571   :  { %v22225_v22 = vsel %vm17557_vm8, 4294967295, %v22224_v22  ;;  %vm5641_vm6 = vmand %vm22227_vm5, %vm22226_vm12  ;;  %vm22229_vm12 = vnez %v22062_v24 }
 0x572   :  { %vm5645_vm10 = vmand %vm22227_vm5, %vm22228_vm4  ;;  %vm22239_vm5 = vnez %v22225_v22  ;;  %v18094_v22 = vpop.permute.xlu0 %6915 }
 0x573   :  { %vm9911_vm13 = vmpackc.low %vm5645_vm10, %vm5641_vm6 }
 0x574   :  { %9912 = vmatmul.mubr.msk.bf16.gmra.mrb[172].mxu1 %vm9911_vm13, %v21159_v33  ;;  %vm5643_vm8 = vmand %vm22229_vm12, %vm4982_vm1  ;;  %vm4997_vm13 = vcmp.gt.f32.partialorder %v16651_v17, %v17501_v38  ;;  %vm5261_vm1 = vcmp.lt.s32.totalorder %v21791_v62, %v13392_v11  ;;  %v22357_v11 = vld [vmem:[#allocation165_spill] sm:$0xff] }
 0x575   :  { %vm17585_vm15 = vmor %vm4988_vm7, %vm5116_vm2  ;;  %vm22234_vm7 = vnez %v22053_v6 }
 0x576   :  { %v22231_v41 = vsel %vm17585_vm15, 4294967295, %v22230_v41  ;;  %vm5647_vm6 = vmand %vm22229_vm12, %vm4986_vm11 }
 0x577   :  { %vm17593_vm4 = vmor %vm4992_vm14, %vm5120_vm0  ;;  %vm5001_vm0 = vcmp.gt.f32.partialorder %v16651_v17, %v17509_v51 }
 0x578   :  { %v22233_v18 = vsel %vm17593_vm4, 4294967295, %v22232_v18  ;;  %vm9975_vm10 = vmpackc.low %vm5647_vm6, %vm5643_vm8  ;;  %vm5133_vm8 = vcmp.eq.f32.partialorder %v16651_v17, %v17589_v63  ;;  %vm5137_vm6 = vcmp.eq.f32.partialorder %v16651_v17, %v17597_v37  ;;  %vm22236_vm4 = vnez %v22223_v16 }
 0x579   :  { %9976 = vmatmul.mubr.msk.bf16.gmra.mrb[172].mxu0 %vm9975_vm10, %v21159_v33  ;;  %vm5650_vm2 = vmand %vm22234_vm7, %vm17541_vm9  ;;  %vm4991_vm9 = vcmp.gt.f32.partialorder %v16673_v10, %v17413_v45  ;;  %vm5265_vm10 = vcmp.lt.s32.totalorder %v21791_v62, %v21933_v0  ;;  %v22344_v16 = vmov 0  ;;  %v22359_v0 = vmov 0 }
 0x57a   :  { %vm5654_vm14 = vmand %vm22234_vm7, %vm17549_vm3  ;;  %vm4995_vm3 = vcmp.gt.f32.partialorder %v16673_v10, %v17421_v12  ;;  %vm22235_vm7 = vnez %v22057_v13 }
 0x57b   :  { %vm9913_vm11 = vmpackc.low %vm5654_vm14, %vm5650_vm2 }
 0x57c   :  { %9914 = vmatprep.mubr.msk.bf16.mxu1 %vm9913_vm11, %v21159_v33  ;;  %vm5652_vm12 = vmand %vm22235_vm7, %vm4991_vm9 }
 0x57d   :  { %vm17629_vm2 = vmor %vm4997_vm13, %vm22236_vm4  ;;  %vm22246_vm13 = vnez %v22231_v41  ;;  %v18104_v41 = vpop.permute.xlu1 %6920 }
 0x57e   :  { %vm5656_vm14 = vmand %vm22235_vm7, %vm4995_vm3  ;;  %vm22247_vm3 = vnez %v22060_v58 }
 0x57f   :  { %vm17637_vm15 = vmor %vm5001_vm0, %vm22239_vm5  ;;  %vm4996_vm5 = vcmp.gt.f32.partialorder %v16638_v3, %v17501_v38  ;;  %vm5124_vm0 = vcmp.eq.f32.partialorder %v16638_v3, %v17501_v38 }
 0x580   :  { %vm17641_vm11 = vmand %vm5133_vm8, %vm5261_vm1  ;;  %vm22248_vm8 = vnez %v22233_v18  ;;  %vm5000_vm1 = vcmp.gt.f32.partialorder %v16638_v3, %v17509_v51  ;;  %v22354_v18 = vmov 0 }
 0x581   :  { %v22243_v57 = vsel %vm17641_vm11, 4294967295, %v22242_v57  ;;  %vm9977_vm9 = vmpackc.low %vm5656_vm14, %vm5652_vm12  ;;  %vm4990_vm14 = vcmp.gt.f32.partialorder %v16717_v5, %v17413_v45  ;;  %v22309_v45 = vld [vmem:[#allocation159_spill] sm:$0xff] }
 0x582   :  { %vm17645_vm4 = vmand %vm5137_vm6, %vm5265_vm10  ;;  %9978 = vmatprep.mubr.msk.bf16.mxu0 %vm9977_vm9, %v21159_v33  ;;  %vm5128_vm6 = vcmp.eq.f32.partialorder %v16638_v3, %v17509_v51  ;;  %vm4994_vm9 = vcmp.gt.f32.partialorder %v16717_v5, %v17421_v12 }
 0x583   :  { %v22245_v40 = vsel %vm17645_vm4, 4294967295, %v22244_v40  ;;  %vm5649_vm7 = vmand %vm22247_vm3, %vm22246_vm13  ;;  %vm22249_vm13 = vnez %v22062_v24 }
 0x584   :  { %vm5653_vm12 = vmand %vm22247_vm3, %vm22248_vm8  ;;  %vm22259_vm3 = vnez %v22245_v40 }
 0x585   :  { %vm9915_vm10 = vmpackc.low %vm5653_vm12, %vm5649_vm7 }
 0x586   :  { %9916 = vmatmul.mubr.msk.bf16.gmra.mrb[176].mxu1 %vm9915_vm10, %v21159_v33  ;;  %vm5651_vm4 = vmand %vm22249_vm13, %vm4990_vm14  ;;  %vm5005_vm10 = vcmp.gt.f32.partialorder %v16651_v17, %v17589_v63  ;;  %vm5269_vm14 = vcmp.lt.s32.totalorder %v21791_v62, %v21950_v15  ;;  %v18208_v15 = vpop.permute.xlu1 %6930 }
 0x587   :  { %vm17673_vm11 = vmor %vm4996_vm5, %vm5124_vm0  ;;  %vm22254_vm5 = vnez %v22053_v6 }
 0x588   :  { %v22251_v27 = vsel %vm17673_vm11, 4294967295, %v22250_v27  ;;  %vm5655_vm7 = vmand %vm22249_vm13, %vm4994_vm9 }
 0x589   :  { %vm17681_vm8 = vmor %vm5000_vm1, %vm5128_vm6  ;;  %vm5009_vm6 = vcmp.gt.f32.partialorder %v16651_v17, %v17597_v37 }
 0x58a   :  { %v22253_v46 = vsel %vm17681_vm8, 4294967295, %v22252_v46  ;;  %vm9979_vm12 = vmpackc.low %vm5655_vm7, %vm5651_vm4  ;;  %vm5141_vm4 = vcmp.eq.f32.partialorder %v16651_v17, %v17677_v48  ;;  %vm5145_vm7 = vcmp.eq.f32.partialorder %v16651_v17, %v17685_v23  ;;  %vm22256_vm8 = vnez %v22243_v57 }
 0x58b   :  { %9980 = vmatmul.mubr.msk.bf16.gmra.mrb[176].mxu0 %vm9979_vm12, %v21159_v33  ;;  %vm5658_vm0 = vmand %vm22254_vm5, %vm17629_vm2  ;;  %vm4999_vm2 = vcmp.gt.f32.partialorder %v16673_v10, %v17501_v38  ;;  %vm5273_vm12 = vcmp.lt.s32.totalorder %v21791_v62, %v21952_v30  ;;  %v22363_v57 = vmov 0  ;;  %v22379_v30 = vmov 0 }
 0x58c   :  { %vm5662_vm1 = vmand %vm22254_vm5, %vm17637_vm15  ;;  %vm5003_vm15 = vcmp.gt.f32.partialorder %v16673_v10, %v17509_v51  ;;  %vm22255_vm5 = vnez %v22057_v13 }
 0x58d   :  { %vm9917_vm9 = vmpackc.low %vm5662_vm1, %vm5658_vm0 }
 0x58e   :  { %9918 = vmatprep.mubr.msk.bf16.mxu1 %vm9917_vm9, %v21159_v33  ;;  %vm5660_vm13 = vmand %vm22255_vm5, %vm4999_vm2 }
 0x58f   :  { %vm17717_vm0 = vmor %vm5005_vm10, %vm22256_vm8  ;;  %vm22266_vm10 = vnez %v22251_v27  ;;  %v22367_v27 = vmov 0 }
 0x590   :  { %vm5664_vm1 = vmand %vm22255_vm5, %vm5003_vm15  ;;  %vm22267_vm15 = vnez %v22060_v58 }
 0x591   :  { %vm17725_vm11 = vmor %vm5009_vm6, %vm22259_vm3  ;;  %vm5004_vm3 = vcmp.gt.f32.partialorder %v16638_v3, %v17589_v63  ;;  %vm5132_vm6 = vcmp.eq.f32.partialorder %v16638_v3, %v17589_v63 }
 0x592   :  { %vm17729_vm9 = vmand %vm5141_vm4, %vm5269_vm14  ;;  %vm22268_vm4 = vnez %v22253_v46  ;;  %vm5008_vm14 = vcmp.gt.f32.partialorder %v16638_v3, %v17597_v37  ;;  %v22372_v46 = vmov 0 }
 0x593   :  { %v22263_v43 = vsel %vm17729_vm9, 4294967295, %v22262_v43  ;;  %vm9981_vm2 = vmpackc.low %vm5664_vm1, %vm5660_vm13  ;;  %vm4998_vm1 = vcmp.gt.f32.partialorder %v16717_v5, %v17501_v38  ;;  %v22329_v38 = vld [vmem:[#allocation162_spill] sm:$0xff] }
 0x594   :  { %vm17733_vm8 = vmand %vm5145_vm7, %vm5273_vm12  ;;  %9982 = vmatprep.mubr.msk.bf16.mxu0 %vm9981_vm2, %v21159_v33  ;;  %vm5136_vm7 = vcmp.eq.f32.partialorder %v16638_v3, %v17597_v37  ;;  %vm5002_vm2 = vcmp.gt.f32.partialorder %v16717_v5, %v17509_v51  ;;  %v22332_v51 = vmov 0 }
 0x595   :  { %v22265_v20 = vsel %vm17733_vm8, 4294967295, %v22264_v20  ;;  %vm5657_vm5 = vmand %vm22267_vm15, %vm22266_vm10  ;;  %vm22269_vm10 = vnez %v22062_v24 }
 0x596   :  { %vm5661_vm13 = vmand %vm22267_vm15, %vm22268_vm4  ;;  %vm22280_vm15 = vnez %v22265_v20  ;;  %v22384_v20 = vld [vmem:[#allocation166_spill] sm:$0xff] }
 0x597   :  { %vm9919_vm12 = vmpackc.low %vm5661_vm13, %vm5657_vm5 }
 0x598   :  { %9920 = vmatmul.mubr.msk.bf16.gmra.mrb[180].mxu1 %vm9919_vm12, %v21159_v33  ;;  %vm5659_vm8 = vmand %vm22269_vm10, %vm4998_vm1  ;;  %vm5013_vm12 = vcmp.gt.f32.partialorder %v16651_v17, %v17677_v48  ;;  %vm5277_vm1 = vcmp.lt.s32.totalorder %v21791_v62, %v13580_v47  ;;  %v22450_v47 = vmov 0 }
 0x599   :  { %vm17761_vm9 = vmor %vm5004_vm3, %vm5132_vm6  ;;  %vm22274_vm3 = vnez %v22053_v6 }
 0x59a   :  { %v22271_v60 = vsel %vm17761_vm9, 4294967295, %v22270_v60  ;;  %vm5663_vm5 = vmand %vm22269_vm10, %vm5002_vm2 }
 0x59b   :  { %vm17769_vm4 = vmor %vm5008_vm14, %vm5136_vm7  ;;  %vm5017_vm7 = vcmp.gt.f32.partialorder %v16651_v17, %v17685_v23 }
 0x59c   :  { %v22273_v56 = vsel %vm17769_vm4, 4294967295, %v22272_v56  ;;  %vm9983_vm13 = vmpackc.low %vm5663_vm5, %vm5659_vm8  ;;  %vm5149_vm8 = vcmp.eq.f32.partialorder %v16651_v17, %v17765_v14  ;;  %vm5153_vm5 = vcmp.eq.f32.partialorder %v16651_v17, %v17773_v50  ;;  %vm22277_vm4 = vnez %v22263_v43 }
 0x59d   :  { %9984 = vmatmul.mubr.msk.bf16.gmra.mrb[180].mxu0 %vm9983_vm13, %v21159_v33  ;;  %vm5666_vm6 = vmand %vm22274_vm3, %vm17717_vm0  ;;  %vm5007_vm0 = vcmp.gt.f32.partialorder %v16673_v10, %v17589_v63  ;;  %vm5281_vm13 = vcmp.lt.s32.totalorder %v21791_v62, %v22275_v19  ;;  %v22382_v43 = vmov 0  ;;  %v22448_v19 = vmov 0 }
 0x59e   :  { %vm5670_vm14 = vmand %vm22274_vm3, %vm17725_vm11  ;;  %vm5011_vm11 = vcmp.gt.f32.partialorder %v16673_v10, %v17597_v37  ;;  %vm22276_vm3 = vnez %v22057_v13 }
 0x59f   :  { %vm9921_vm2 = vmpackc.low %vm5670_vm14, %vm5666_vm6 }
 0x5a0   :  { %9922 = vmatprep.mubr.msk.bf16.mxu1 %vm9921_vm2, %v21159_v33  ;;  %vm5668_vm10 = vmand %vm22276_vm3, %vm5007_vm0 }
 0x5a1   :  { %vm17805_vm6 = vmor %vm5013_vm12, %vm22277_vm4  ;;  %vm22287_vm12 = vnez %v22271_v60  ;;  %v22385_v60 = vld [vmem:[#allocation167_spill] sm:$0xff] }
 0x5a2   :  { %vm5672_vm14 = vmand %vm22276_vm3, %vm5011_vm11  ;;  %vm22288_vm11 = vnez %v22060_v58 }
 0x5a3   :  { %vm17813_vm9 = vmor %vm5017_vm7, %vm22280_vm15  ;;  %vm5012_vm15 = vcmp.gt.f32.partialorder %v16638_v3, %v17677_v48  ;;  %vm5140_vm7 = vcmp.eq.f32.partialorder %v16638_v3, %v17677_v48 }
 0x5a4   :  { %vm17817_vm2 = vmand %vm5149_vm8, %vm5277_vm1  ;;  %vm22289_vm8 = vnez %v22273_v56  ;;  %vm5016_vm1 = vcmp.gt.f32.partialorder %v16638_v3, %v17685_v23  ;;  %v22391_v56 = vmov 0 }
 0x5a5   :  { %v22284_v4 = vsel %vm17817_vm2, 4294967295, %v22283_v4  ;;  %vm9985_vm0 = vmpackc.low %vm5672_vm14, %vm5668_vm10  ;;  %vm5006_vm14 = vcmp.gt.f32.partialorder %v16717_v5, %v17589_v63  ;;  %v22351_v63 = vmov 0 }
 0x5a6   :  { %vm17821_vm4 = vmand %vm5153_vm5, %vm5281_vm13  ;;  %9986 = vmatprep.mubr.msk.bf16.mxu0 %vm9985_vm0, %v21159_v33  ;;  %vm5144_vm5 = vcmp.eq.f32.partialorder %v16638_v3, %v17685_v23  ;;  %vm5010_vm0 = vcmp.gt.f32.partialorder %v16717_v5, %v17597_v37  ;;  %v22356_v37 = vld [vmem:[#allocation164_spill] sm:$0xff] }
 0x5a7   :  { %v22286_v28 = vsel %vm17821_vm4, 4294967295, %v22285_v28  ;;  %vm5665_vm3 = vmand %vm22288_vm11, %vm22287_vm12  ;;  %vm22290_vm12 = vnez %v22062_v24 }
 0x5a8   :  { %vm5669_vm10 = vmand %vm22288_vm11, %vm22289_vm8 }
 0x5a9   :  { %vm9923_vm13 = vmpackc.low %vm5669_vm10, %vm5665_vm3  ;;  %vm22295_vm10 = vnez %v22053_v6 }
 0x5aa   :  { %9924 = vmatmul.mubr.msk.bf16.gmra.mrb[184].mxu1 %vm9923_vm13, %v21159_v33  ;;  %vm5667_vm4 = vmand %vm22290_vm12, %vm5006_vm14  ;;  %vm22296_vm14 = vnez %v22057_v13 }
 0x5ab   :  { %vm17849_vm2 = vmor %vm5012_vm15, %vm5140_vm7  ;;  %vm5021_vm15 = vcmp.gt.f32.partialorder %v16651_v17, %v17765_v14 }
 0x5ac   :  { %vm5671_vm8 = vmand %vm22290_vm12, %vm5010_vm0 }
 0x5ad   :  { %vm17855_vm11 = vmor %vm5016_vm1, %vm5144_vm5  ;;  %vm5025_vm1 = vcmp.gt.f32.partialorder %v16651_v17, %v17773_v50 }
 0x5ae   :  { %vm9987_vm3 = vmpackc.low %vm5671_vm8, %vm5667_vm4  ;;  %vm5015_vm4 = vcmp.gt.f32.partialorder %v16673_v10, %v17677_v48  ;;  %vm22297_vm8 = vnez %v22284_v4  ;;  %v10849_v4 = vpop.f32.mrb[132].mxu1 }
 0x5af   :  { %9988 = vmatmul.mubr.msk.bf16.gmra.mrb[184].mxu0 %vm9987_vm3, %v21159_v33  ;;  %vm5674_vm13 = vmand %vm22295_vm10, %vm17805_vm6  ;;  %vm5019_vm6 = vcmp.gt.f32.partialorder %v16673_v10, %v17685_v23 }
 0x5b0   :  { %vm5678_vm7 = vmand %vm22295_vm10, %vm17813_vm9 }
 0x5b1   :  { %vm9925_vm5 = vmpackc.low %vm5678_vm7, %vm5674_vm13  ;;  %vm22300_vm13 = vnez %v22286_v28  ;;  %v10850_v28 = vpop.f32.mrb[133].mxu1 }
 0x5b2   :  { %9926 = vmatprep.mubr.msk.bf16.mxu1 %vm9925_vm5, %v21159_v33  ;;  %vm5676_vm0 = vmand %vm22296_vm14, %vm5015_vm4  ;;  %vm22303_vm4 = vnez %v22060_v58  ;;  %v10851_v9 = vadd.f32 %v10850_v28, %v10849_v4  ;;  %v10852_v55 = vpop.f32.mrb[134].mxu1  ;;  %v22453_v4 = vmov 0 }
 0x5b3   :  { %vm17881_vm3 = vmor %vm5021_vm15, %vm22297_vm8  ;;  %vm5020_vm8 = vcmp.gt.f32.partialorder %v16638_v3, %v17765_v14 }
 0x5b4   :  { %vm5680_vm9 = vmand %vm22296_vm14, %vm5019_vm6  ;;  %vm5148_vm6 = vcmp.eq.f32.partialorder %v16638_v3, %v17765_v14 }
 0x5b5   :  { %vm17889_vm7 = vmor %vm5025_vm1, %vm22300_vm13  ;;  %vm5014_vm13 = vcmp.gt.f32.partialorder %v16717_v5, %v17677_v48 }
 0x5b6   :  { %v22302_v53 = vsel %vm17889_vm7, 4294967295, %v22301_v53  ;;  %vm9989_vm5 = vmpackc.low %vm5680_vm9, %vm5676_vm0  ;;  %vm5024_vm0 = vcmp.gt.f32.partialorder %v16638_v3, %v17773_v50  ;;  %vm5152_vm9 = vcmp.eq.f32.partialorder %v16638_v3, %v17773_v50 }
 0x5b7   :  { %9990 = vmatprep.mubr.msk.bf16.mxu0 %vm9989_vm5, %v21159_v33  ;;  %vm5673_vm15 = vmand %vm22303_vm4, %vm17849_vm2  ;;  %vm5018_vm5 = vcmp.gt.f32.partialorder %v16717_v5, %v17685_v23  ;;  %v18198_v23 = vpop.permute.xlu0 %6925 }
 0x5b8   :  { %vm5677_vm1 = vmand %vm22303_vm4, %vm17855_vm11 }
 0x5b9   :  { %vm9927_vm2 = vmpackc.low %vm5677_vm1, %vm5673_vm15  ;;  %vm7183_vm15 = vcmp.eq.f32.partialorder %v16717_v5, %v17902_v7  ;;  %vm7311_vm1 = vcmp.lt.s32.totalorder %v22309_v45, %v22308_v34  ;;  %v22407_v34 = vmov 0 }
 0x5ba   :  { %9928 = vmatmul.mubr.msk.bf16.gmra.mrb[188].mxu1 %vm9927_vm2, %v21159_v33  ;;  %vm5675_vm11 = vmand %vm22290_vm12, %vm5014_vm13  ;;  %vm7182_vm13 = vcmp.eq.f32.partialorder %v16651_v17, %v17902_v7 }
 0x5bb   :  { %vm17921_vm4 = vmor %vm5020_vm8, %vm5148_vm6  ;;  %vm7187_vm8 = vcmp.eq.f32.partialorder %v16717_v5, %v17912_v1  ;;  %vm7315_vm6 = vcmp.lt.s32.totalorder %v22309_v45, %v22310_v61  ;;  %v18293_v59 = vpop.permute.xlu0 %6935 }
 0x5bc   :  { %v22305_v52 = vsel %vm17921_vm4, 4294967295, %v22304_v52  ;;  %vm5679_vm14 = vmand %vm22290_vm12, %vm5018_vm5 }
 0x5bd   :  { %vm17927_vm7 = vmor %vm5024_vm0, %vm5152_vm9  ;;  %vm7054_vm9 = vcmp.gt.f32.partialorder %v16651_v17, %v17902_v7 }
 0x5be   :  { %v22307_v31 = vsel %vm17927_vm7, 4294967295, %v22306_v31  ;;  %vm9991_vm2 = vmpackc.low %vm5679_vm14, %vm5675_vm11  ;;  %vm22311_vm14 = vnez %v22302_v53  ;;  %vm7058_vm11 = vcmp.gt.f32.partialorder %v16651_v17, %v17912_v1  ;;  %vm5023_vm7 = vcmp.gt.f32.partialorder %v16673_v10, %v17765_v14  ;;  %v10961_v53 = vpop.f32.mrb[132].mxu0 }
 0x5bf   :  { %9992 = vmatmul.mubr.msk.bf16.gmra.mrb[188].mxu0 %vm9991_vm2, %v21159_v33  ;;  %vm5682_vm0 = vmand %vm22295_vm10, %vm17881_vm3  ;;  %vm7186_vm2 = vcmp.eq.f32.partialorder %v16651_v17, %v17912_v1 }
 0x5c0   :  { %vm5686_vm5 = vmand %vm22295_vm10, %vm22311_vm14  ;;  %vm5027_vm14 = vcmp.gt.f32.partialorder %v16673_v10, %v17773_v50  ;;  %vm22316_vm10 = vnez %v22057_v13 }
 0x5c1   :  { %vm17956_vm12 = vmand %vm7183_vm15, %vm7311_vm1 }
 0x5c2   :  { %vm9929_vm3 = vmpackc.low %vm5686_vm5, %vm5682_vm0 }
 0x5c3   :  { %vm17962_vm4 = vmand %vm7187_vm8, %vm7315_vm6  ;;  %9930 = vmatprep.mubr.msk.bf16.mxu1 %vm9929_vm3, %v21159_v33  ;;  %vm22321_vm6 = vnez %v22305_v52  ;;  %vm22322_vm3 = vnez %v22060_v58  ;;  %v10962_v52 = vpop.f32.mrb[133].mxu0 }
 0x5c4   :  { %v22315_v8 = vsel %vm17962_vm4, 4294967295, %v22314_v8  ;;  %vm5684_vm1 = vmand %vm22316_vm10, %vm5023_vm7  ;;  %vm7053_vm7 = vcmp.gt.f32.partialorder %v16638_v3, %v17902_v7  ;;  %v10963_v61 = vadd.f32 %v10962_v52, %v10961_v53  ;;  %v10964_v12 = vpop.f32.mrb[134].mxu0  ;;  %v22470_v52 = vld [vmem:[#allocation173_spill] sm:$0xff] }
 0x5c5   :  { %vm17971_vm15 = vmor %vm7054_vm9, %vm7182_vm13  ;;  %vm7181_vm9 = vcmp.eq.f32.partialorder %v16638_v3, %v17902_v7  ;;  %vm22323_vm13 = vnez %v22307_v31  ;;  %v10965_v44 = vpop.f32.mrb[135].mxu0 }
 0x5c6   :  { %vm5688_vm0 = vmand %vm22316_vm10, %vm5027_vm14  ;;  %vm7185_vm14 = vcmp.eq.f32.partialorder %v16638_v3, %v17912_v1  ;;  %vm7055_vm10 = vcmp.gt.f32.partialorder %v16717_v5, %v17902_v7 }
 0x5c7   :  { %vm17977_vm5 = vmor %vm7058_vm11, %vm7186_vm2  ;;  %vm7057_vm2 = vcmp.gt.f32.partialorder %v16638_v3, %v17912_v1 }
 0x5c8   :  { %vm9993_vm8 = vmpackc.low %vm5688_vm0, %vm5684_vm1  ;;  %vm5022_vm0 = vcmp.gt.f32.partialorder %v16717_v5, %v17765_v14  ;;  %v22387_v14 = vmov 0 }
 0x5c9   :  { %9994 = vmatprep.mubr.msk.bf16.mxu0 %vm9993_vm8, %v21159_v33  ;;  %vm5681_vm4 = vmand %vm22322_vm3, %vm22321_vm6  ;;  %vm5026_vm8 = vcmp.gt.f32.partialorder %v16717_v5, %v17773_v50  ;;  %vm22324_vm6 = vnez %v22062_v24 }
 0x5ca   :  { %vm5685_vm11 = vmand %vm22322_vm3, %vm22323_vm13 }
 0x5cb   :  { %vm9931_vm1 = vmpackc.low %vm5685_vm11, %vm5681_vm4 }
 0x5cc   :  { %9932 = vmatmul.mubr.msk.bf16.gmra.mrb[192].mxu1 %vm9931_vm1, %v21159_v33  ;;  %vm5683_vm13 = vmand %vm22324_vm6, %vm5022_vm0  ;;  %vm7059_vm1 = vcmp.gt.f32.partialorder %v16717_v5, %v17912_v1  ;;  %vm7191_vm0 = vcmp.eq.f32.partialorder %v16717_v5, %v17990_v21 }
 0x5cd   :  { %vm18009_vm3 = vmor %vm7053_vm7, %vm7181_vm9  ;;  %vm7319_vm7 = vcmp.lt.s32.totalorder %v22309_v45, %v22329_v38 }
 0x5ce   :  { %v22326_v42 = vsel %vm18009_vm3, 4294967295, %v22325_v42  ;;  %vm5687_vm4 = vmand %vm22324_vm6, %vm5026_vm8  ;;  %vm7195_vm3 = vcmp.eq.f32.partialorder %v16717_v5, %v18000_v32  ;;  %vm7323_vm8 = vcmp.lt.s32.totalorder %v22309_v45, %v22330_v26  ;;  %v22419_v26 = vmov 0 }
 0x5cf   :  { %vm18017_vm11 = vmor %vm7057_vm2, %vm7185_vm14  ;;  %vm22331_vm2 = vnez %v22053_v6 }
 0x5d0   :  { %v22328_v29 = vsel %vm18017_vm11, 4294967295, %v22327_v29  ;;  %vm9995_vm9 = vmpackc.low %vm5687_vm4, %vm5683_vm13  ;;  %vm7062_vm13 = vcmp.gt.f32.partialorder %v16651_v17, %v17990_v21  ;;  %vm7190_vm4 = vcmp.eq.f32.partialorder %v16651_v17, %v17990_v21  ;;  %vm22334_vm11 = vnez %v22315_v8 }
 0x5d1   :  { %9996 = vmatmul.mubr.msk.bf16.gmra.mrb[192].mxu0 %vm9995_vm9, %v21159_v33  ;;  %vm7694_vm14 = vmand %vm22331_vm2, %vm17971_vm15  ;;  %v22479_v8 = vmov 0 }
 0x5d2   :  { %vm18038_vm6 = vmor %vm7055_vm10, %vm17956_vm12  ;;  %vm7066_vm12 = vcmp.gt.f32.partialorder %v16651_v17, %v18000_v32  ;;  %vm7194_vm10 = vcmp.eq.f32.partialorder %v16651_v17, %v18000_v32 }
 0x5d3   :  { %v22333_v51 = vsel %vm18038_vm6, 4294967295, %v22332_v51  ;;  %vm7698_vm9 = vmand %vm22331_vm2, %vm17977_vm5  ;;  %vm7056_vm5 = vcmp.gt.f32.partialorder %v16673_v10, %v17902_v7  ;;  %v10853_v7 = vpop.f32.mrb[135].mxu1 }
 0x5d4   :  { %vm18052_vm15 = vmor %vm7059_vm1, %vm22334_vm11  ;;  %vm7060_vm11 = vcmp.gt.f32.partialorder %v16673_v10, %v17912_v1  ;;  %v18312_v1 = vpop.permute.xlu1 %6940  ;;  %v10854_v31 = vadd.f32 %v10853_v7, %v10852_v55 }
 0x5d5   :  { %v22336_v54 = vsel %vm18052_vm15, 4294967295, %v22335_v54  ;;  %vm18060_vm6 = vmand %vm7191_vm0, %vm7319_vm7  ;;  %vm22341_vm15 = vnez %v22057_v13 }
 0x5d6   :  { %vm10157_vm2 = vmpackc.low %vm7698_vm9, %vm7694_vm14 }
 0x5d7   :  { %vm18066_vm1 = vmand %vm7195_vm3, %vm7323_vm8  ;;  %10158 = vmatprep.mubr.msk.bf16.mxu1 %vm10157_vm2, %v21159_v33  ;;  %vm22346_vm8 = vnez %v22326_v42  ;;  %vm22347_vm2 = vnez %v22060_v58  ;;  %v10966_v42 = vadd.f32 %v10965_v44, %v10964_v12 }
 0x5d8   :  { %v22340_v35 = vsel %vm18066_vm1, 4294967295, %v22339_v35  ;;  %vm7696_vm0 = vmand %vm22341_vm15, %vm7056_vm5  ;;  %vm7065_vm5 = vcmp.gt.f32.partialorder %v16638_v3, %v18000_v32 }
 0x5d9   :  { %vm18075_vm7 = vmor %vm7062_vm13, %vm7190_vm4  ;;  %vm7061_vm13 = vcmp.gt.f32.partialorder %v16638_v3, %v17990_v21  ;;  %vm7189_vm4 = vcmp.eq.f32.partialorder %v16638_v3, %v17990_v21 }
 0x5da   :  { %vm7700_vm14 = vmand %vm22341_vm15, %vm7060_vm11  ;;  %vm7193_vm11 = vcmp.eq.f32.partialorder %v16638_v3, %v18000_v32 }
 0x5db   :  { %vm18081_vm9 = vmor %vm7066_vm12, %vm7194_vm10  ;;  %vm22348_vm12 = vnez %v22328_v29  ;;  %v18349_v29 = vpop.permute.xlu0 %6945 }
 0x5dc   :  { %v22345_v16 = vsel %vm18081_vm9, 4294967295, %v22344_v16  ;;  %vm10221_vm3 = vmpackc.low %vm7700_vm14, %vm7696_vm0  ;;  %vm22349_vm14 = vnez %v22333_v51 }
 0x5dd   :  { %10222 = vmatprep.mubr.msk.bf16.mxu0 %vm10221_vm3, %v21159_v33  ;;  %vm7693_vm1 = vmand %vm22347_vm2, %vm22346_vm8  ;;  %vm22350_vm3 = vnez %v22062_v24 }
 0x5de   :  { %vm7697_vm10 = vmand %vm22347_vm2, %vm22348_vm12  ;;  %vm7063_vm12 = vcmp.gt.f32.partialorder %v16717_v5, %v17990_v21  ;;  %vm22353_vm2 = vnez %v22336_v54  ;;  %v6208_v54 = vadd.f32 %v10966_v42, %v10854_v31 }
 0x5df   :  { %vm10159_vm0 = vmpackc.low %vm7697_vm10, %vm7693_vm1  ;;  %vm7067_vm10 = vcmp.gt.f32.partialorder %v16717_v5, %v18000_v32 }
 0x5e0   :  { %10160 = vmatmul.mubr.msk.bf16.vlgmr.msra.gmra.mrb[196].mxu1 %vm10159_vm0, %v21159_v33  ;;  %vm7695_vm8 = vmand %vm22350_vm3, %vm22349_vm14  ;;  %vm7203_vm14 = vcmp.eq.f32.partialorder %v16717_v5, %v18104_v41  ;;  %6403 = vperm.xlu1 %11340, %v6208_v54  }
 0x5e1   :  { %vm18111_vm15 = vmor %vm7061_vm13, %vm7189_vm4  ;;  %vm7199_vm13 = vcmp.eq.f32.partialorder %v16717_v5, %v18094_v22  ;;  %vm7327_vm4 = vcmp.lt.s32.totalorder %v22309_v45, %v22356_v37 }
 0x5e2   :  { %v22352_v63 = vsel %vm18111_vm15, 4294967295, %v22351_v63  ;;  %vm7699_vm9 = vmand %vm22350_vm3, %vm22353_vm2  ;;  %vm7331_vm2 = vcmp.lt.s32.totalorder %v22309_v45, %v22357_v11  ;;  %vm22362_vm15 = vnez %v22340_v35  ;;  %v10967_v11 = vpop.f32.mrb[136].mxu0 }
 0x5e3   :  { %vm18121_vm1 = vmor %vm7065_vm5, %vm7193_vm11  ;;  %vm22358_vm5 = vnez %v22053_v6 }
 0x5e4   :  { %v22355_v18 = vsel %vm18121_vm1, 4294967295, %v22354_v18  ;;  %vm10223_vm0 = vmpackc.low %vm7699_vm9, %vm7695_vm8  ;;  %vm7070_vm9 = vcmp.gt.f32.partialorder %v16651_v17, %v18094_v22  ;;  %vm7198_vm8 = vcmp.eq.f32.partialorder %v16651_v17, %v18094_v22  ;;  %vm22361_vm1 = vnez %v22345_v16  ;;  %v10855_v16 = vpop.f32.mrb[136].mxu1 }
 0x5e5   :  { %10224 = vmatmul.mubr.msk.bf16.vlgmr.msra.gmra.mrb[196].mxu0 %vm10223_vm0, %v21159_v33  ;;  %vm7702_vm11 = vmand %vm22358_vm5, %vm18075_vm7 }
 0x5e6   :  { %vm18142_vm3 = vmor %vm7063_vm12, %vm18060_vm6  ;;  %vm7074_vm6 = vcmp.gt.f32.partialorder %v16651_v17, %v18104_v41  ;;  %vm7202_vm12 = vcmp.eq.f32.partialorder %v16651_v17, %v18104_v41 }
 0x5e7   :  { %v22360_v0 = vsel %vm18142_vm3, 4294967295, %v22359_v0  ;;  %vm7706_vm0 = vmand %vm22358_vm5, %vm22361_vm1  ;;  %vm7064_vm5 = vcmp.gt.f32.partialorder %v16673_v10, %v17990_v21  ;;  %v22414_v21 = vld [vmem:[#allocation169_spill] sm:$0xff] }
 0x5e8   :  { %vm18156_vm7 = vmor %vm7067_vm10, %vm22362_vm15  ;;  %vm7068_vm15 = vcmp.gt.f32.partialorder %v16673_v10, %v18000_v32  ;;  %v6205_v32 = vadd.f32 %v10963_v61, %v10851_v9 }
 0x5e9   :  { %v22364_v57 = vsel %vm18156_vm7, 4294967295, %v22363_v57  ;;  %vm18164_vm3 = vmand %vm7199_vm13, %vm7327_vm4  ;;  %vm22369_vm7 = vnez %v22057_v13 }
 0x5ea   :  { %vm10161_vm1 = vmpackc.low %vm7706_vm0, %vm7702_vm11  ;;  %6398 = vperm.xlu0 %11339, %v6205_v32  }
 0x5eb   :  { %vm18170_vm10 = vmand %vm7203_vm14, %vm7331_vm2  ;;  %10162 = vmatprep.mubr.msk.bf16.mxu1 %vm10161_vm1, %v21159_v33  ;;  %vm22374_vm2 = vnez %v22352_v63  ;;  %vm22375_vm1 = vnez %v22060_v58  ;;  %v18428_v63 = vpop.permute.xlu0 %6955 }
 0x5ec   :  { %v22368_v27 = vsel %vm18170_vm10, 4294967295, %v22367_v27  ;;  %vm7704_vm4 = vmand %vm22369_vm7, %vm7064_vm5  ;;  %vm7069_vm5 = vcmp.gt.f32.partialorder %v16638_v3, %v18094_v22 }
 0x5ed   :  { %vm18179_vm13 = vmor %vm7070_vm9, %vm7198_vm8  ;;  %vm7197_vm9 = vcmp.eq.f32.partialorder %v16638_v3, %v18094_v22  ;;  %vm22376_vm8 = vnez %v22355_v18 }
 0x5ee   :  { %vm7708_vm11 = vmand %vm22369_vm7, %vm7068_vm15  ;;  %vm7201_vm15 = vcmp.eq.f32.partialorder %v16638_v3, %v18104_v41 }
 0x5ef   :  { %vm18185_vm0 = vmor %vm7074_vm6, %vm7202_vm12  ;;  %vm7073_vm12 = vcmp.gt.f32.partialorder %v16638_v3, %v18104_v41  ;;  %v18496_v50 = vpop.permute.xlu0 %6965 }
 0x5f0   :  { %v22373_v46 = vsel %vm18185_vm0, 4294967295, %v22372_v46  ;;  %vm10225_vm14 = vmpackc.low %vm7708_vm11, %vm7704_vm4  ;;  %vm22377_vm11 = vnez %v22360_v0 }
 0x5f1   :  { %10226 = vmatprep.mubr.msk.bf16.mxu0 %vm10225_vm14, %v21159_v33  ;;  %vm7701_vm10 = vmand %vm22375_vm1, %vm22374_vm2  ;;  %vm22378_vm14 = vnez %v22062_v24 }
 0x5f2   :  { %vm7705_vm6 = vmand %vm22375_vm1, %vm22376_vm8  ;;  %vm7071_vm8 = vcmp.gt.f32.partialorder %v16717_v5, %v18094_v22  ;;  %vm22381_vm1 = vnez %v22364_v57  ;;  %v10968_v57 = vpop.f32.mrb[137].mxu0 }
 0x5f3   :  { %vm10163_vm4 = vmpackc.low %vm7705_vm6, %vm7701_vm10  ;;  %vm7075_vm6 = vcmp.gt.f32.partialorder %v16717_v5, %v18104_v41  ;;  %v10969_v48 = vadd.f32 %v10968_v57, %v10967_v11  ;;  %v18569_v55 = vpop.permute.xlu0 %6975  ;;  %v22497_v11 = vmov 0 }
 0x5f4   :  { %10164 = vmatmul.mubr.msk.bf16.gmra.mrb[200].mxu1 %vm10163_vm4, %v21159_v33  ;;  %vm7703_vm2 = vmand %vm22378_vm14, %vm22377_vm11  ;;  %vm7211_vm11 = vcmp.eq.f32.partialorder %v16717_v5, %v18208_v15 }
 0x5f5   :  { %vm18215_vm7 = vmor %vm7069_vm5, %vm7197_vm9  ;;  %vm7207_vm5 = vcmp.eq.f32.partialorder %v16717_v5, %v18198_v23  ;;  %vm7335_vm9 = vcmp.lt.s32.totalorder %v22309_v45, %v22384_v20 }
 0x5f6   :  { %v22380_v30 = vsel %vm18215_vm7, 4294967295, %v22379_v30  ;;  %vm7707_vm0 = vmand %vm22378_vm14, %vm22381_vm1  ;;  %vm7339_vm1 = vcmp.lt.s32.totalorder %v22309_v45, %v22385_v60  ;;  %vm22390_vm7 = vnez %v22368_v27  ;;  %v22500_v27 = vld [vmem:[#allocation175_spill] sm:$0xff] }
 0x5f7   :  { %vm18225_vm10 = vmor %vm7073_vm12, %vm7201_vm15  ;;  %vm22386_vm12 = vnez %v22053_v6  ;;  %v18625_v61 = vpop.permute.xlu0 %6985 }
 0x5f8   :  { %v22383_v43 = vsel %vm18225_vm10, 4294967295, %v22382_v43  ;;  %vm10227_vm4 = vmpackc.low %vm7707_vm0, %vm7703_vm2  ;;  %vm7078_vm0 = vcmp.gt.f32.partialorder %v16651_v17, %v18198_v23  ;;  %vm7206_vm2 = vcmp.eq.f32.partialorder %v16651_v17, %v18198_v23  ;;  %vm22389_vm10 = vnez %v22373_v46  ;;  %v10970_v46 = vpop.f32.mrb[138].mxu0 }
 0x5f9   :  { %10228 = vmatmul.mubr.msk.bf16.gmra.mrb[200].mxu0 %vm10227_vm4, %v21159_v33  ;;  %vm7710_vm15 = vmand %vm22386_vm12, %vm18179_vm13 }
 0x5fa   :  { %vm18246_vm14 = vmor %vm7071_vm8, %vm18164_vm3  ;;  %vm7082_vm3 = vcmp.gt.f32.partialorder %v16651_v17, %v18208_v15  ;;  %vm7210_vm8 = vcmp.eq.f32.partialorder %v16651_v17, %v18208_v15 }
 0x5fb   :  { %v22388_v14 = vsel %vm18246_vm14, 4294967295, %v22387_v14  ;;  %vm7714_vm4 = vmand %vm22386_vm12, %vm22389_vm10  ;;  %vm7072_vm12 = vcmp.gt.f32.partialorder %v16673_v10, %v18094_v22  ;;  %v18426_v22 = vpop.permute.xlu1 %6950 }
 0x5fc   :  { %vm18260_vm13 = vmor %vm7075_vm6, %vm22390_vm7  ;;  %vm7076_vm7 = vcmp.gt.f32.partialorder %v16673_v10, %v18104_v41  ;;  %v10856_v41 = vpop.f32.mrb[137].mxu1 }
 0x5fd   :  { %v22392_v56 = vsel %vm18260_vm13, 4294967295, %v22391_v56  ;;  %vm18268_vm14 = vmand %vm7207_vm5, %vm7335_vm9  ;;  %vm22397_vm13 = vnez %v22057_v13  ;;  %v10857_v18 = vadd.f32 %v10856_v41, %v10855_v16  ;;  %v10858_v37 = vpop.f32.mrb[138].mxu1 }
 0x5fe   :  { %vm10165_vm10 = vmpackc.low %vm7714_vm4, %vm7710_vm15  ;;  %v10859_v0 = vpop.f32.mrb[139].mxu1 }
 0x5ff   :  { %vm18274_vm6 = vmand %vm7211_vm11, %vm7339_vm1  ;;  %10166 = vmatprep.mubr.msk.bf16.mxu1 %vm10165_vm10, %v21159_v33  ;;  %vm22402_vm1 = vnez %v22380_v30  ;;  %v10860_v40 = vadd.f32 %v10859_v0, %v10858_v37  ;;  %v10971_v30 = vpop.f32.mrb[139].mxu0  ;;  %v6213_v20 = vadd.f32 %v10969_v48, %v10857_v18  ;;  %v10861_v44 = vpop.f32.mrb[140].mxu1  ;;  %v22495_v37 = vmov 0  ;;  %v22499_v0 = vld [vmem:[#allocation174_spill] sm:$0xff] }
 0x600   :  { %vm7712_vm5 = vmand %vm22397_vm13, %vm7072_vm12  ;;  %vm22403_vm12 = vnez %v22060_v58  ;;  %v10972_v60 = vadd.f32 %v10971_v30, %v10970_v46  ;;  %v10862_v42 = vpop.f32.mrb[141].mxu1  ;;  %v22502_v48 = vmov 0  ;;  %v22506_v46 = vmov 0  ;;  %v22519_v30 = vld [vmem:[#allocation177_spill] sm:$0xff] }
 0x601   :  { %vm18283_vm9 = vmor %vm7078_vm0, %vm7206_vm2  ;;  %vm7077_vm2 = vcmp.gt.f32.partialorder %v16638_v3, %v18198_v23  ;;  %6408 = vperm.xlu0 %11339, %v6213_v20   ;;  %v10864_v54 = vpop.f32.mrb[142].mxu1 }
 0x602   :  { %vm7716_vm15 = vmand %vm22397_vm13, %vm7076_vm7  ;;  %v6216_v62 = vadd.f32 %v10972_v60, %v10860_v40  ;;  %v10865_v35 = vpop.f32.mrb[143].mxu1  ;;  %v18734_v40 = vpop.permute.xlu0 %6995 }
 0x603   :  { %vm18289_vm4 = vmor %vm7082_vm3, %vm7210_vm8  ;;  %vm7205_vm3 = vcmp.eq.f32.partialorder %v16638_v3, %v18198_v23  ;;  %vm22404_vm8 = vnez %v22383_v43  ;;  %v22442_v43 = vld [vmem:[#allocation171_spill] sm:$0xff]  ;;  %v10867_v53 = vpop.f32.mrb[144].mxu1 }
 0x604   :  { %vm10229_vm11 = vmpackc.low %vm7716_vm15, %vm7712_vm5  ;;  %vm7209_vm5 = vcmp.eq.f32.partialorder %v16638_v3, %v18208_v15  ;;  %6413 = vperm.xlu1 %11340, %v6216_v62  }
 0x605   :  { %10230 = vmatprep.mubr.msk.bf16.mxu0 %vm10229_vm11, %v21159_v33  ;;  %vm7709_vm0 = vmand %vm22403_vm12, %vm22402_vm1  ;;  %vm22405_vm11 = vnez %v22388_v14  ;;  %vm22406_vm1 = vnez %v22062_v24  ;;  %v22521_v14 = vld [vmem:[#allocation178_spill] sm:$0xff] }
 0x606   :  { %vm7713_vm10 = vmand %vm22403_vm12, %vm22404_vm8  ;;  %vm7343_vm12 = vcmp.lt.s32.totalorder %v22309_v45, %v22413_v2  ;;  %v22482_v2 = vmov 0  ;;  %v18809_v60 = vpop.permute.xlu0 %7005 }
 0x607   :  { %vm10167_vm15 = vmpackc.low %vm7713_vm10, %vm7709_vm0  ;;  %vm22409_vm0 = vnez %v22392_v56  ;;  %v18494_v56 = vpop.permute.xlu1 %6960 }
 0x608   :  { %10168 = vmatmul.mubr.msk.bf16.gmra.mrb[204].mxu1 %vm10167_vm15, %v21159_v33  ;;  %vm7711_vm8 = vmand %vm22406_vm1, %vm22405_vm11  ;;  %vm22410_vm15 = vcmp.gt.f32.partialorder %v16638_v3, %v18208_v15 }
 0x609   :  { %vm18322_vm7 = vmor %vm7077_vm2, %vm7205_vm3  ;;  %vm7083_vm2 = vcmp.gt.f32.partialorder %v16717_v5, %v18208_v15 }
 0x60a   :  { %v22408_v34 = vsel %vm18322_vm7, 4294967295, %v22407_v34  ;;  %vm7715_vm10 = vmand %vm22406_vm1, %vm22409_vm0  ;;  %vm7218_vm0 = vcmp.eq.f32.partialorder %v16651_v17, %v18312_v1  ;;  %v18863_v28 = vpop.permute.xlu0 %7015 }
 0x60b   :  { %vm18335_vm11 = vmor %vm22410_vm15, %vm7209_vm5  ;;  %vm22415_vm15 = vnez %v22053_v6  ;;  %v18567_v9 = vpop.permute.xlu1 %6970 }
 0x60c   :  { %vm10231_vm7 = vmpackc.low %vm7715_vm10, %vm7711_vm8  ;;  %vm22416_vm8 = vcmp.gt.f32.partialorder %v16717_v5, %v18198_v23 }
 0x60d   :  { %10232 = vmatmul.mubr.msk.bf16.gmra.mrb[204].mxu0 %vm10231_vm7, %v21159_v33  ;;  %vm7718_vm3 = vmand %vm22415_vm15, %vm18283_vm9  ;;  %vm7214_vm7 = vcmp.eq.f32.partialorder %v16651_v17, %v18293_v59 }
 0x60e   :  { %vm18361_vm10 = vmor %vm22416_vm8, %vm18268_vm14  ;;  %vm7090_vm8 = vcmp.gt.f32.partialorder %v16651_v17, %v18312_v1 }
 0x60f   :  { %vm7722_vm9 = vmand %vm22415_vm15, %vm18289_vm4  ;;  %vm22421_vm4 = vcmp.eq.f32.partialorder %v16717_v5, %v18293_v59  ;;  %vm22424_vm15 = vcmp.lt.s32.totalorder %v22309_v45, %v22414_v21  ;;  %v10973_v21 = vpop.f32.mrb[140].mxu0 }
 0x610   :  { %vm18378_vm14 = vmor %vm7083_vm2, %vm18274_vm6  ;;  %vm7080_vm2 = vcmp.gt.f32.partialorder %v16673_v10, %v18198_v23  ;;  %v22510_v23 = vmov 0 }
 0x611   :  { %v22420_v26 = vsel %vm18378_vm14, 4294967295, %v22419_v26  ;;  %vm18392_vm5 = vmand %vm22421_vm4, %vm7343_vm12  ;;  %vm22425_vm14 = vcmp.eq.f32.partialorder %v16717_v5, %v18312_v1  ;;  %vm7084_vm12 = vcmp.gt.f32.partialorder %v16673_v10, %v18208_v15  ;;  %v22441_v15 = vld [vmem:[#allocation170_spill] sm:$0xff] }
 0x612   :  { %vm10169_vm6 = vmpackc.low %vm7722_vm9, %vm7718_vm3  ;;  %vm22428_vm9 = vcmp.gt.f32.partialorder %v16651_v17, %v18293_v59 }
 0x613   :  { %vm18404_vm1 = vmand %vm22425_vm14, %vm22424_vm15  ;;  %10170 = vmatprep.mubr.msk.bf16.mxu1 %vm10169_vm6, %v21159_v33 }
 0x614   :  { %v22427_v36 = vsel %vm18404_vm1, 4294967295, %v22426_v36  ;;  %vm7720_vm3 = vmand %vm22397_vm13, %vm7080_vm2  ;;  %vm22434_vm2 = vnez %v22060_v58 }
 0x615   :  { %vm18416_vm4 = vmor %vm22428_vm9, %vm7214_vm7  ;;  %vm22433_vm7 = vnez %v22408_v34  ;;  %v18623_v34 = vpop.permute.xlu1 %6980 }
 0x616   :  { %vm7724_vm15 = vmand %vm22397_vm13, %vm7084_vm12 }
 0x617   :  { %vm18422_vm14 = vmor %vm7090_vm8, %vm7218_vm0  ;;  %vm7085_vm0 = vcmp.gt.f32.partialorder %v16638_v3, %v18293_v59  ;;  %vm7213_vm8 = vcmp.eq.f32.partialorder %v16638_v3, %v18293_v59 }
 0x618   :  { %vm10233_vm6 = vmpackc.low %vm7724_vm15, %vm7720_vm3  ;;  %vm7089_vm3 = vcmp.gt.f32.partialorder %v16638_v3, %v18312_v1  ;;  %vm7217_vm15 = vcmp.eq.f32.partialorder %v16638_v3, %v18312_v1 }
 0x619   :  { %10234 = vmatprep.mubr.msk.bf16.mxu0 %vm10233_vm6, %v21159_v33  ;;  %vm7717_vm9 = vmand %vm22434_vm2, %vm22433_vm7  ;;  %vm22435_vm7 = vnez %v22062_v24  ;;  %v18732_v57 = vpop.permute.xlu1 %6990 }
 0x61a   :  { %vm7721_vm12 = vmand %vm22434_vm2, %vm18335_vm11  ;;  %vm7098_vm2 = vcmp.gt.f32.partialorder %v16651_v17, %v18426_v22 }
 0x61b   :  { %vm10171_vm6 = vmpackc.low %vm7721_vm12, %vm7717_vm9  ;;  %vm22438_vm9 = vnez %v22420_v26  ;;  %v10863_v26 = vadd.f32 %v10862_v42, %v10861_v44  ;;  %v22554_v42 = vmov 0 }
 0x61c   :  { %10172 = vmatmul.mubr.msk.bf16.gmra.mrb[208].mxu1 %vm10171_vm6, %v21159_v33  ;;  %vm7719_vm13 = vmand %vm22435_vm7, %vm18361_vm10  ;;  %vm7091_vm10 = vcmp.gt.f32.partialorder %v16717_v5, %v18312_v1 }
 0x61d   :  { %vm18452_vm1 = vmor %vm7085_vm0, %vm7213_vm8  ;;  %vm7223_vm0 = vcmp.eq.f32.partialorder %v16717_v5, %v18349_v29  ;;  %vm7351_vm8 = vcmp.lt.s32.totalorder %v22309_v45, %v22441_v15  ;;  %v22512_v15 = vmov 0  ;;  %v18807_v20 = vpop.permute.xlu1 %7000 }
 0x61e   :  { %vm7723_vm12 = vmand %vm22435_vm7, %vm22438_vm9 }
 0x61f   :  { %vm18462_vm6 = vmor %vm7089_vm3, %vm7217_vm15  ;;  %vm7355_vm3 = vcmp.lt.s32.totalorder %v22309_v45, %v22442_v43  ;;  %vm22443_vm15 = vnez %v22053_v6  ;;  %v22520_v43 = vld [vmem:[#allocation176_spill] sm:$0xff] }
 0x620   :  { %vm10235_vm11 = vmpackc.low %vm7723_vm12, %vm7719_vm13  ;;  %vm22444_vm13 = vcmp.gt.f32.partialorder %v16717_v5, %v18293_v59 }
 0x621   :  { %10236 = vmatmul.mubr.msk.bf16.gmra.mrb[208].mxu0 %vm10235_vm11, %v21159_v33  ;;  %vm7726_vm9 = vmand %vm22443_vm15, %vm18416_vm4  ;;  %vm7226_vm11 = vcmp.eq.f32.partialorder %v16651_v17, %v18426_v22 }
 0x622   :  { %vm18486_vm12 = vmor %vm22444_vm13, %vm18392_vm5  ;;  %vm22447_vm5 = vnez %v22427_v36 }
 0x623   :  { %vm7730_vm4 = vmand %vm22443_vm15, %vm18422_vm14  ;;  %vm22452_vm15 = vcmp.eq.f32.partialorder %v16717_v5, %v18426_v22 }
 0x624   :  { %vm18507_vm13 = vmor %vm7091_vm10, %vm22447_vm5  ;;  %vm7088_vm5 = vcmp.gt.f32.partialorder %v16673_v10, %v18293_v59 }
 0x625   :  { %v22449_v19 = vsel %vm18507_vm13, 4294967295, %v22448_v19  ;;  %vm18521_vm14 = vmand %vm7223_vm0, %vm7351_vm8  ;;  %vm7092_vm0 = vcmp.gt.f32.partialorder %v16673_v10, %v18312_v1  ;;  %vm22455_vm8 = vnez %v22057_v13  ;;  %v22469_v1 = vld [vmem:[#allocation172_spill] sm:$0xff] }
 0x626   :  { %v22451_v47 = vsel %vm18521_vm14, 4294967295, %v22450_v47  ;;  %vm10173_vm10 = vmpackc.low %vm7730_vm4, %vm7726_vm9  ;;  %vm22456_vm4 = vcmp.eq.f32.partialorder %v16651_v17, %v18349_v29  ;;  %vm22457_vm14 = vcmp.gt.f32.partialorder %v16651_v17, %v18349_v29 }
 0x627   :  { %vm18533_vm13 = vmand %vm22452_vm15, %vm7355_vm3  ;;  %10174 = vmatprep.mubr.msk.bf16.mxu1 %vm10173_vm10, %v21159_v33 }
 0x628   :  { %v22454_v4 = vsel %vm18533_vm13, 4294967295, %v22453_v4  ;;  %vm7728_vm9 = vmand %vm22455_vm8, %vm7088_vm5  ;;  %vm22462_vm5 = vnez %v22060_v58 }
 0x629   :  { %vm18548_vm7 = vmor %vm22457_vm14, %vm22456_vm4  ;;  %vm7093_vm14 = vcmp.gt.f32.partialorder %v16638_v3, %v18349_v29  ;;  %vm7221_vm4 = vcmp.eq.f32.partialorder %v16638_v3, %v18349_v29 }
 0x62a   :  { %vm7732_vm3 = vmand %vm22455_vm8, %vm7092_vm0 }
 0x62b   :  { %vm18554_vm15 = vmor %vm7098_vm2, %vm7226_vm11  ;;  %vm7097_vm11 = vcmp.gt.f32.partialorder %v16638_v3, %v18426_v22 }
 0x62c   :  { %vm10237_vm10 = vmpackc.low %vm7732_vm3, %vm7728_vm9  ;;  %vm22463_vm9 = vnez %v22062_v24 }
 0x62d   :  { %10238 = vmatprep.mubr.msk.bf16.mxu0 %vm10237_vm10, %v21159_v33  ;;  %vm7725_vm13 = vmand %vm22462_vm5, %vm18452_vm1  ;;  %vm7225_vm1 = vcmp.eq.f32.partialorder %v16638_v3, %v18426_v22 }
 0x62e   :  { %vm7729_vm2 = vmand %vm22462_vm5, %vm18462_vm6  ;;  %vm7095_vm6 = vcmp.gt.f32.partialorder %v16717_v5, %v18349_v29  ;;  %vm22466_vm5 = vnez %v22449_v19 }
 0x62f   :  { %vm10175_vm0 = vmpackc.low %vm7729_vm2, %vm7725_vm13  ;;  %vm7099_vm2 = vcmp.gt.f32.partialorder %v16717_v5, %v18426_v22 }
 0x630   :  { %10176 = vmatmul.mubr.msk.bf16.gmra.mrb[212].mxu1 %vm10175_vm0, %v21159_v33  ;;  %vm7727_vm3 = vmand %vm22463_vm9, %vm18486_vm12 }
 0x631   :  { %vm18584_vm10 = vmor %vm7093_vm14, %vm7221_vm4  ;;  %vm7359_vm14 = vcmp.lt.s32.totalorder %v22309_v45, %v22469_v1  ;;  %v22616_v1 = vmov 0 }
 0x632   :  { %vm7731_vm8 = vmand %vm22463_vm9, %vm22466_vm5  ;;  %vm7363_vm5 = vcmp.lt.s32.totalorder %v22309_v45, %v22470_v52  ;;  %vm22472_vm9 = vnez %v22451_v47  ;;  %v10868_v52 = vpop.f32.mrb[145].mxu1 }
 0x633   :  { %vm18594_vm13 = vmor %vm7097_vm11, %vm7225_vm1  ;;  %vm22471_vm11 = vnez %v22053_v6  ;;  %v10869_v12 = vadd.f32 %v10868_v52, %v10867_v53 }
 0x634   :  { %vm10239_vm4 = vmpackc.low %vm7731_vm8, %vm7727_vm3  ;;  %vm7234_vm8 = vcmp.eq.f32.partialorder %v16651_v17, %v18494_v56  ;;  %vm22478_vm3 = vcmp.eq.f32.partialorder %v16717_v5, %v18428_v63 }
 0x635   :  { %10240 = vmatmul.mubr.msk.bf16.gmra.mrb[212].mxu0 %vm10239_vm4, %v21159_v33  ;;  %vm7734_vm1 = vmand %vm22471_vm11, %vm18548_vm7 }
 0x636   :  { %vm18615_vm12 = vmor %vm7095_vm6, %vm22472_vm9  ;;  %vm22475_vm9 = vnez %v22454_v4  ;;  %v18861_v4 = vpop.permute.xlu1 %7010 }
 0x637   :  { %vm7738_vm7 = vmand %vm22471_vm11, %vm18554_vm15 }
 0x638   :  { %vm18633_vm6 = vmor %vm7099_vm2, %vm22475_vm9  ;;  %vm7096_vm2 = vcmp.gt.f32.partialorder %v16673_v10, %v18349_v29  ;;  %vm22481_vm9 = vcmp.eq.f32.partialorder %v16717_v5, %v18494_v56  ;;  %v10974_v29 = vpop.f32.mrb[141].mxu0 }
 0x639   :  { %vm18647_vm0 = vmand %vm22478_vm3, %vm7359_vm14  ;;  %vm7100_vm14 = vcmp.gt.f32.partialorder %v16673_v10, %v18426_v22  ;;  %v10975_v51 = vadd.f32 %v10974_v29, %v10973_v21  ;;  %v10976_v36 = vpop.f32.mrb[142].mxu0  ;;  %v10866_v22 = vadd.f32 %v10865_v35, %v10864_v54  ;;  %v22556_v29 = vld [vmem:[#allocation179_spill] sm:$0xff]  ;;  %v22557_v54 = vld [vmem:[#allocation180_spill] sm:$0xff] }
 0x63a   :  { %v22480_v8 = vsel %vm18647_vm0, 4294967295, %v22479_v8  ;;  %vm10177_vm15 = vmpackc.low %vm7738_vm7, %vm7734_vm1  ;;  %vm22484_vm1 = vnez %v22057_v13  ;;  %vm22485_vm7 = vcmp.eq.f32.partialorder %v16651_v17, %v18428_v63  ;;  %vm22486_vm0 = vcmp.gt.f32.partialorder %v16651_v17, %v18428_v63  ;;  %v10977_v39 = vpop.f32.mrb[143].mxu0 }
 0x63b   :  { %vm18659_vm4 = vmand %vm22481_vm9, %vm7363_vm5  ;;  %10178 = vmatprep.mubr.msk.bf16.mxu1 %vm10177_vm15, %v21159_v33  ;;  %vm22489_vm9 = vcmp.gt.f32.partialorder %v16651_v17, %v18494_v56  ;;  %v6221_v16 = vadd.f32 %v10975_v51, %v10863_v26  ;;  %v10978_v41 = vadd.f32 %v10977_v39, %v10976_v36  ;;  %v10979_v7 = vpop.f32.mrb[144].mxu0  ;;  %v22560_v36 = vmov 0 }
 0x63c   :  { %v22483_v2 = vsel %vm18659_vm4, 4294967295, %v22482_v2  ;;  %vm7736_vm3 = vmand %vm22484_vm1, %vm7096_vm2  ;;  %v10980_v31 = vpop.f32.mrb[145].mxu0  ;;  %v22563_v39 = vmov 0 }
 0x63d   :  { %vm18674_vm5 = vmor %vm22486_vm0, %vm22485_vm7  ;;  %vm7229_vm7 = vcmp.eq.f32.partialorder %v16638_v3, %v18428_v63  ;;  %v6224_v18 = vadd.f32 %v10978_v41, %v10866_v22  ;;  %6418 = vperm.xlu0 %11339, %v6221_v16   ;;  %v10982_v44 = vpop.f32.mrb[146].mxu0  ;;  %v22567_v16 = vmov 0  ;;  %v22570_v22 = vmov 0  ;;  %v18993_v41 = vpop.permute.xlu1 %7020 }
 0x63e   :  { %vm7740_vm15 = vmand %vm22484_vm1, %vm7100_vm14  ;;  %vm22492_vm14 = vnez %v22060_v58  ;;  %vm22494_vm1 = vcmp.gt.f32.partialorder %v16638_v3, %v18428_v63  ;;  %v10983_v32 = vpop.f32.mrb[147].mxu0 }
 0x63f   :  { %vm18683_vm4 = vmor %vm22489_vm9, %vm7234_vm8  ;;  %vm7233_vm9 = vcmp.eq.f32.partialorder %v16638_v3, %v18494_v56  ;;  %6423 = vperm.xlu1 %11340, %v6224_v18   ;;  %v10984_v51 = vadd.f32 %v10983_v32, %v10982_v44  ;;  %v18995_v18 = vpop.permute.xlu0 %7025  ;;  %v10985_v53 = vpop.f32.mrb[148].mxu0 }
 0x640   :  { %vm10241_vm0 = vmpackc.low %vm7740_vm15, %vm7736_vm3  ;;  %vm7105_vm15 = vcmp.gt.f32.partialorder %v16638_v3, %v18494_v56 }
 0x641   :  { %10242 = vmatprep.mubr.msk.bf16.mxu0 %vm10241_vm0, %v21159_v33  ;;  %vm7733_vm8 = vmand %vm22492_vm14, %vm18584_vm10  ;;  %vm22493_vm10 = vnez %v22062_v24 }
 0x642   :  { %vm7737_vm3 = vmand %vm22492_vm14, %vm18594_vm13  ;;  %vm7103_vm14 = vcmp.gt.f32.partialorder %v16717_v5, %v18428_v63 }
 0x643   :  { %vm10179_vm0 = vmpackc.low %vm7737_vm3, %vm7733_vm8 }
 0x644   :  { %10180 = vmatmul.mubr.msk.bf16.gmra.mrb[216].mxu1 %vm10179_vm0, %v21159_v33  ;;  %vm7735_vm2 = vmand %vm22493_vm10, %vm18615_vm12  ;;  %vm22504_vm12 = vnez %v22483_v2  ;;  %v10870_v2 = vpop.f32.mrb[146].mxu1 }
 0x645   :  { %vm18712_vm13 = vmor %vm22494_vm1, %vm7229_vm7  ;;  %vm22501_vm1 = vnez %v22480_v8  ;;  %v10981_v8 = vadd.f32 %v10980_v31, %v10979_v7 }
 0x646   :  { %v22496_v37 = vsel %vm18712_vm13, 4294967295, %v22495_v37  ;;  %vm7739_vm8 = vmand %vm22493_vm10, %vm18633_vm6  ;;  %vm7243_vm6 = vcmp.eq.f32.partialorder %v16717_v5, %v18567_v9  ;;  %vm7242_vm10 = vcmp.eq.f32.partialorder %v16651_v17, %v18567_v9  ;;  %vm22514_vm13 = vnez %v22057_v13 }
 0x647   :  { %vm18722_vm3 = vmor %vm7105_vm15, %vm7233_vm9  ;;  %vm7371_vm15 = vcmp.lt.s32.totalorder %v22309_v45, %v22500_v27  ;;  %v6229_v38 = vadd.f32 %v10981_v8, %v10869_v12  ;;  %v19055_v27 = vpop.permute.xlu0 %7035 }
 0x648   :  { %v22498_v11 = vsel %vm18722_vm3, 4294967295, %v22497_v11  ;;  %vm10243_vm0 = vmpackc.low %vm7739_vm8, %vm7735_vm2  ;;  %vm7110_vm2 = vcmp.gt.f32.partialorder %v16651_v17, %v18496_v50  ;;  %vm7238_vm8 = vcmp.eq.f32.partialorder %v16651_v17, %v18496_v50  ;;  %vm7108_vm3 = vcmp.gt.f32.partialorder %v16673_v10, %v18494_v56 }
 0x649   :  { %10244 = vmatmul.mubr.msk.bf16.gmra.mrb[216].mxu0 %vm10243_vm0, %v21159_v33  ;;  %vm7742_vm9 = vmand %vm22471_vm11, %vm18674_vm5  ;;  %vm22505_vm5 = vcmp.gt.f32.partialorder %v16717_v5, %v18494_v56  ;;  %6428 = vperm.xlu0 %11339, %v6229_v38  }
 0x64a   :  { %vm18747_vm7 = vmor %vm7103_vm14, %vm22501_vm1  ;;  %vm7114_vm1 = vcmp.gt.f32.partialorder %v16651_v17, %v18567_v9 }
 0x64b   :  { %v22503_v48 = vsel %vm18747_vm7, 4294967295, %v22502_v48  ;;  %vm7746_vm0 = vmand %vm22471_vm11, %vm18683_vm4  ;;  %vm22508_vm7 = vcmp.lt.s32.totalorder %v22309_v45, %v22499_v0  ;;  %vm22509_vm4 = vcmp.eq.f32.partialorder %v16717_v5, %v18496_v50  ;;  %v22515_v45 = vmov 0  ;;  %v19053_v0 = vpop.permute.xlu1 %7030  ;;  %v19125_v19 = vpop.permute.xlu0 %7045 }
 0x64c   :  { %vm18764_vm14 = vmor %vm22505_vm5, %vm22504_vm12  ;;  %vm7104_vm5 = vcmp.gt.f32.partialorder %v16673_v10, %v18428_v63  ;;  %v22517_v63 = vmov 0 }
 0x64d   :  { %v22507_v46 = vsel %vm18764_vm14, 4294967295, %v22506_v46  ;;  %vm18778_vm11 = vmand %vm22509_vm4, %vm22508_vm7 }
 0x64e   :  { %v22511_v23 = vsel %vm18778_vm11, 4294967295, %v22510_v23  ;;  %vm10181_vm12 = vmpackc.low %vm7746_vm0, %vm7742_vm9 }
 0x64f   :  { %vm18784_vm14 = vmand %vm7243_vm6, %vm7371_vm15  ;;  %10182 = vmatprep.mubr.msk.bf16.mxu1 %vm10181_vm12, %v21159_v33  ;;  %vm7248_vm6 = vcmp.eq.f32.partialorder %v16673_v10, %v18569_v55  ;;  %vm7376_vm15 = vcmp.lt.s32.totalorder %v22520_v43, %v22519_v30  ;;  %v19123_v56 = vpop.permute.xlu1 %7040 }
 0x650   :  { %v22513_v15 = vsel %vm18784_vm14, 4294967295, %v22512_v15  ;;  %vm7744_vm4 = vmand %vm22514_vm13, %vm7104_vm5  ;;  %vm7109_vm5 = vcmp.gt.f32.partialorder %v16638_v3, %v18496_v50  ;;  %vm7113_vm14 = vcmp.gt.f32.partialorder %v16638_v3, %v18567_v9 }
 0x651   :  { %vm18793_vm7 = vmor %vm7110_vm2, %vm7238_vm8  ;;  %vm7252_vm8 = vcmp.eq.f32.partialorder %v16673_v10, %v18623_v34 }
 0x652   :  { %v22516_v45 = vsel %vm18793_vm7, 4294967295, %v22515_v45  ;;  %vm7748_vm9 = vmand %vm22514_vm13, %vm7108_vm3  ;;  %vm22522_vm3 = vnez %v22496_v37  ;;  %vm7237_vm13 = vcmp.eq.f32.partialorder %v16638_v3, %v18496_v50  ;;  %vm22529_vm7 = vnez %v22503_v48 }
 0x653   :  { %vm18799_vm0 = vmor %vm7114_vm1, %vm7242_vm10  ;;  %vm7380_vm10 = vcmp.lt.s32.totalorder %v22520_v43, %v22521_v14  ;;  %vm22523_vm1 = vnez %v22060_v58  ;;  %v22575_v37 = vmov 0  ;;  %v22588_v48 = vmov 0 }
 0x654   :  { %v22518_v63 = vsel %vm18799_vm0, 4294967295, %v22517_v63  ;;  %vm10245_vm2 = vmpackc.low %vm7748_vm9, %vm7744_vm4  ;;  %vm22524_vm4 = vnez %v22498_v11 }
 0x655   :  { %10246 = vmatprep.mubr.msk.bf16.mxu0 %vm10245_vm2, %v21159_v33  ;;  %vm7741_vm12 = vmand %vm22523_vm1, %vm22522_vm3  ;;  %vm7241_vm2 = vcmp.eq.f32.partialorder %v16638_v3, %v18567_v9 }
 0x656   :  { %vm7745_vm9 = vmand %vm22523_vm1, %vm22524_vm4  ;;  %vm22530_vm4 = vnez %v22062_v24 }
 0x657   :  { %vm18832_vm0 = vmand %vm7248_vm6, %vm7376_vm15  ;;  %vm7111_vm15 = vcmp.gt.f32.partialorder %v16717_v5, %v18496_v50 }
 0x658   :  { %vm10183_vm3 = vmpackc.low %vm7745_vm9, %vm7741_vm12  ;;  %vm22533_vm12 = vnez %v22507_v46  ;;  %vm7115_vm9 = vcmp.gt.f32.partialorder %v16717_v5, %v18567_v9  ;;  %v22591_v46 = vmov 0 }
 0x659   :  { %vm18836_vm11 = vmand %vm7252_vm8, %vm7380_vm10  ;;  %10184 = vmatmul.mubr.msk.bf16.gmra.mrb[220].mxu1 %vm10183_vm3, %v21159_v33 }
 0x65a   :  { %vm7743_vm1 = vmand %vm22530_vm4, %vm22529_vm7  ;;  %vm22536_vm7 = vnez %v22516_v45  ;;  %v22598_v45 = vmov 0 }
 0x65b   :  { %vm18845_vm6 = vmor %vm7109_vm5, %vm7237_vm13  ;;  %vm22537_vm5 = vnez %v22053_v6 }
 0x65c   :  { %vm7747_vm8 = vmand %vm22530_vm4, %vm22533_vm12  ;;  %vm7112_vm4 = vcmp.gt.f32.partialorder %v16673_v10, %v18496_v50  ;;  %v22550_v50 = vmov 0 }
 0x65d   :  { %vm18855_vm10 = vmor %vm7113_vm14, %vm7241_vm2  ;;  %vm22538_vm14 = vnez %v22511_v23  ;;  %v22593_v23 = vld [vmem:[#allocation182_spill] sm:$0xff] }
 0x65e   :  { %vm10247_vm13 = vmpackc.low %vm7747_vm8, %vm7743_vm1  ;;  %vm22541_vm1 = vnez %v22518_v63  ;;  %v22601_v63 = vmov 0 }
 0x65f   :  { %10248 = vmatmul.mubr.msk.bf16.gmra.mrb[220].mxu0 %vm10247_vm13, %v21159_v33  ;;  %vm7750_vm3 = vmand %vm22537_vm5, %vm22536_vm7  ;;  %vm22542_vm13 = vnez %v22513_v15  ;;  %v22594_v15 = vld [vmem:[#allocation183_spill] sm:$0xff] }
 0x660   :  { %vm18872_vm2 = vmor %vm7111_vm15, %vm22538_vm14  ;;  %vm22559_vm14 = vcmp.gt.f32.partialorder %v16673_v10, %v18569_v55 }
 0x661   :  { %vm7754_vm8 = vmand %vm22537_vm5, %vm22541_vm1  ;;  %vm22545_vm1 = vnez %v22057_v13 }
 0x662   :  { %vm18886_vm7 = vmor %vm7115_vm9, %vm22542_vm13  ;;  %vm7116_vm9 = vcmp.gt.f32.partialorder %v16673_v10, %v18567_v9  ;;  %v10871_v9 = vpop.f32.mrb[147].mxu1 }
 0x663   :  { %vm10185_vm12 = vmpackc.low %vm7754_vm8, %vm7750_vm3  ;;  %vm22548_vm3 = vcmp.eq.f32.partialorder %v16651_v17, %v18569_v55  ;;  %vm22549_vm8 = vcmp.gt.f32.partialorder %v16651_v17, %v18569_v55  ;;  %v10872_v26 = vadd.f32 %v10871_v9, %v10870_v2  ;;  %v10873_v59 = vpop.f32.mrb[148].mxu1  ;;  %v22621_v2 = vmov 0 }
 0x664   :  { %10186 = vmatprep.mubr.msk.bf16.mxu1 %vm10185_vm12, %v21159_v33  ;;  %vm18901_vm13 = vmand %vm22545_vm1, %vm7112_vm4  ;;  %vm7388_vm12 = vcmp.lt.s32.totalorder %v22520_v43, %v22557_v54  ;;  %v10874_v7 = vpop.f32.mrb[149].mxu1 }
 0x665   :  { %vm18911_vm15 = vmor %vm22549_vm8, %vm22548_vm3  ;;  %vm22552_vm3 = vcmp.eq.f32.partialorder %v16651_v17, %v18623_v34  ;;  %vm22553_vm8 = vcmp.gt.f32.partialorder %v16651_v17, %v18623_v34  ;;  %v6232_v35 = vadd.f32 %v10984_v51, %v10872_v26  ;;  %v10875_v52 = vadd.f32 %v10874_v7, %v10873_v59  ;;  %v10876_v12 = vpop.f32.mrb[150].mxu1  ;;  %v19225_v26 = vpop.permute.xlu1 %7050 }
 0x666   :  { %v22551_v50 = vsel %vm18911_vm15, 4294967295, %v22550_v50  ;;  %vm7756_vm5 = vmand %vm22545_vm1, %vm7116_vm9  ;;  %v10877_v44 = vpop.f32.mrb[151].mxu1  ;;  %v19227_v51 = vpop.permute.xlu0 %6621 }
 0x667   :  { %vm18929_vm15 = vmor %vm22553_vm8, %vm22552_vm3  ;;  %vm22558_vm3 = vnez %v22060_v58  ;;  %6433 = vperm.xlu1 %11340, %v6232_v35   ;;  %v10878_v9 = vadd.f32 %v10877_v44, %v10876_v12 }
 0x668   :  { %v22555_v42 = vsel %vm18929_vm15, 4294967295, %v22554_v42  ;;  %vm10249_vm4 = vmpackc.low %vm7756_vm5, %vm18901_vm13  ;;  %vm7249_vm5 = vcmp.eq.f32.partialorder %v16638_v3, %v18623_v34  ;;  %vm22565_vm13 = vcmp.lt.s32.totalorder %v22520_v43, %v22556_v29 }
 0x669   :  { %10250 = vmatprep.mubr.msk.bf16.mxu0 %vm10249_vm4, %v21159_v33  ;;  %vm7749_vm8 = vmand %vm22558_vm3, %vm18845_vm6  ;;  %vm7121_vm4 = vcmp.gt.f32.partialorder %v16638_v3, %v18623_v34 }
 0x66a   :  { %vm18951_vm1 = vmor %vm22559_vm14, %vm18832_vm0  ;;  %vm22562_vm0 = vcmp.gt.f32.partialorder %v16673_v10, %v18623_v34 }
 0x66b   :  { %v22561_v36 = vsel %vm18951_vm1, 4294967295, %v22560_v36  ;;  %vm7753_vm6 = vmand %vm22558_vm3, %vm18855_vm10  ;;  %vm22566_vm10 = vcmp.eq.f32.partialorder %v16673_v10, %v18625_v61 }
 0x66c   :  { %vm18968_vm14 = vmor %vm22562_vm0, %vm18836_vm11  ;;  %vm22569_vm0 = vcmp.eq.f32.partialorder %v16673_v10, %v18732_v57 }
 0x66d   :  { %v22564_v39 = vsel %vm18968_vm14, 4294967295, %v22563_v39  ;;  %vm18982_vm9 = vmand %vm22566_vm10, %vm22565_vm13  ;;  %vm22572_vm13 = vnez %v22062_v24  ;;  %vm22580_vm14 = vnez %v22053_v6 }
 0x66e   :  { %v22568_v16 = vsel %vm18982_vm9, 4294967295, %v22567_v16  ;;  %vm10187_vm11 = vmpackc.low %vm7753_vm6, %vm7749_vm8  ;;  %vm22573_vm8 = vcmp.eq.f32.partialorder %v16638_v3, %v18569_v55 }
 0x66f   :  { %vm18989_vm3 = vmand %vm22569_vm0, %vm7388_vm12  ;;  %10188 = vmatmul.mubr.msk.bf16.gmra.mrb[224].mxu1 %vm10187_vm11, %v21159_v33  ;;  %vm22574_vm12 = vcmp.gt.f32.partialorder %v16638_v3, %v18569_v55  ;;  %vm7119_vm0 = vcmp.gt.f32.partialorder %v16717_v5, %v18569_v55  ;;  %vm7247_vm11 = vcmp.eq.f32.partialorder %v16717_v5, %v18569_v55  ;;  %v22581_v55 = vmov 0 }
 0x670   :  { %v22571_v22 = vsel %vm18989_vm3, 4294967295, %v22570_v22  ;;  %vm7751_vm10 = vmand %vm22572_vm13, %vm18872_vm2 }
 0x671   :  { %vm19008_vm6 = vmor %vm22574_vm12, %vm22573_vm8  ;;  %vm7123_vm8 = vcmp.gt.f32.partialorder %v16717_v5, %v18623_v34  ;;  %vm7251_vm12 = vcmp.eq.f32.partialorder %v16717_v5, %v18623_v34  ;;  %v22584_v34 = vmov 0 }
 0x672   :  { %v22576_v37 = vsel %vm19008_vm6, 4294967295, %v22575_v37  ;;  %vm7755_vm2 = vmand %vm22572_vm13, %vm18886_vm7  ;;  %vm22579_vm6 = vnez %v22551_v50  ;;  %vm7126_vm7 = vcmp.gt.f32.partialorder %v16651_v17, %v18625_v61 }
 0x673   :  { %vm19020_vm3 = vmor %vm7121_vm4, %vm7249_vm5  ;;  %vm7254_vm5 = vcmp.eq.f32.partialorder %v16651_v17, %v18625_v61  ;;  %vm22583_vm4 = vnez %v22555_v42 }
 0x674   :  { %vm10251_vm9 = vmpackc.low %vm7755_vm2, %vm7751_vm10  ;;  %vm22586_vm2 = vnez %v22561_v36  ;;  %v10879_v36 = vpop.f32.mrb[152].mxu1 }
 0x675   :  { %10252 = vmatmul.mubr.msk.bf16.gmra.mrb[224].mxu0 %vm10251_vm9, %v21159_v33  ;;  %vm7758_vm1 = vmand %vm22580_vm14, %vm22579_vm6  ;;  %vm7130_vm6 = vcmp.gt.f32.partialorder %v16651_v17, %v18732_v57 }
 0x676   :  { %vm19033_vm15 = vmor %vm7119_vm0, %vm7247_vm11  ;;  %vm7258_vm0 = vcmp.eq.f32.partialorder %v16651_v17, %v18732_v57 }
 0x677   :  { %v22582_v55 = vsel %vm19033_vm15, 4294967295, %v22581_v55  ;;  %vm7762_vm9 = vmand %vm22580_vm14, %vm22583_vm4  ;;  %vm7128_vm14 = vcmp.gt.f32.partialorder %v16673_v10, %v18625_v61  ;;  %vm22600_vm15 = vnez %v22571_v22 }
 0x678   :  { %vm19045_vm10 = vmor %vm7123_vm8, %vm7251_vm12  ;;  %vm22587_vm8 = vnez %v22057_v13 }
 0x679   :  { %v22585_v34 = vsel %vm19045_vm10, 4294967295, %v22584_v34  ;;  %vm10189_vm11 = vmpackc.low %vm7762_vm9, %vm7758_vm1  ;;  %vm22590_vm1 = vnez %v22564_v39 }
 0x67a   :  { %10190 = vmatprep.mubr.msk.bf16.mxu1 %vm10189_vm11, %v21159_v33  ;;  %vm7760_vm12 = vmand %vm22587_vm8, %vm22586_vm2  ;;  %vm7132_vm11 = vcmp.gt.f32.partialorder %v16673_v10, %v18732_v57 }
 0x67b   :  { %vm19062_vm4 = vmor %vm7126_vm7, %vm7254_vm5  ;;  %vm7264_vm7 = vcmp.eq.f32.partialorder %v16673_v10, %v18734_v40  ;;  %vm7392_vm5 = vcmp.lt.s32.totalorder %v22520_v43, %v22593_v23 }
 0x67c   :  { %v22589_v48 = vsel %vm19062_vm4, 4294967295, %v22588_v48  ;;  %vm7764_vm9 = vmand %vm22587_vm8, %vm22590_vm1  ;;  %vm7268_vm4 = vcmp.eq.f32.partialorder %v16673_v10, %v18807_v20  ;;  %vm7396_vm1 = vcmp.lt.s32.totalorder %v22520_v43, %v22594_v15 }
 0x67d   :  { %vm19072_vm10 = vmor %vm7130_vm6, %vm7258_vm0  ;;  %vm22595_vm6 = vnez %v22576_v37  ;;  %vm22596_vm0 = vnez %v22060_v58 }
 0x67e   :  { %v22592_v46 = vsel %vm19072_vm10, 4294967295, %v22591_v46  ;;  %vm10253_vm2 = vmpackc.low %vm7764_vm9, %vm7760_vm12  ;;  %vm22597_vm10 = vnez %v22568_v16  ;;  %vm7125_vm12 = vcmp.gt.f32.partialorder %v16638_v3, %v18625_v61  ;;  %vm7253_vm9 = vcmp.eq.f32.partialorder %v16638_v3, %v18625_v61  ;;  %v10880_v16 = vpop.f32.mrb[153].mxu1 }
 0x67f   :  { %10254 = vmatprep.mubr.msk.bf16.mxu0 %vm10253_vm2, %v21159_v33  ;;  %vm7757_vm8 = vmand %vm22596_vm0, %vm22595_vm6  ;;  %v10881_v11 = vadd.f32 %v10880_v16, %v10879_v36 }
 0x680   :  { %vm19093_vm13 = vmor %vm7128_vm14, %vm22597_vm10  ;;  %vm7129_vm14 = vcmp.gt.f32.partialorder %v16638_v3, %v18732_v57  ;;  %vm7257_vm10 = vcmp.eq.f32.partialorder %v16638_v3, %v18732_v57 }
 0x681   :  { %v22599_v45 = vsel %vm19093_vm13, 4294967295, %v22598_v45  ;;  %vm7761_vm2 = vmand %vm22596_vm0, %vm19020_vm3 }
 0x682   :  { %vm19107_vm6 = vmor %vm7132_vm11, %vm22600_vm15  ;;  %vm22607_vm15 = vnez %v22582_v55  ;;  %vm22608_vm11 = vnez %v22062_v24 }
 0x683   :  { %v22602_v63 = vsel %vm19107_vm6, 4294967295, %v22601_v63  ;;  %vm19115_vm13 = vmand %vm7264_vm7, %vm7392_vm5  ;;  %vm22611_vm5 = vnez %v22585_v34  ;;  %v10882_v34 = vpop.f32.mrb[154].mxu1 }
 0x684   :  { %vm10191_vm0 = vmpackc.low %vm7761_vm2, %vm7757_vm8  ;;  %vm7127_vm8 = vcmp.gt.f32.partialorder %v16717_v5, %v18625_v61 }
 0x685   :  { %vm19119_vm3 = vmand %vm7268_vm4, %vm7396_vm1  ;;  %10192 = vmatmul.mubr.msk.bf16.gmra.mrb[228].mxu1 %vm10191_vm0, %v21159_v33  ;;  %vm7255_vm4 = vcmp.eq.f32.partialorder %v16717_v5, %v18625_v61  ;;  %v10986_v61 = vpop.f32.mrb[149].mxu0 }
 0x686   :  { %vm7759_vm6 = vmand %vm22608_vm11, %vm22607_vm15  ;;  %vm22614_vm15 = vnez %v22589_v48  ;;  %v10987_v31 = vadd.f32 %v10986_v61, %v10985_v53  ;;  %v10988_v8 = vpop.f32.mrb[150].mxu0 }
 0x687   :  { %vm19132_vm7 = vmor %vm7125_vm12, %vm7253_vm9  ;;  %vm7266_vm12 = vcmp.eq.f32.partialorder %v16651_v17, %v18807_v20  ;;  %v10989_v21 = vpop.f32.mrb[151].mxu0 }
 0x688   :  { %vm7763_vm1 = vmand %vm22608_vm11, %vm22611_vm5  ;;  %v6237_v50 = vadd.f32 %v10987_v31, %v10875_v52  ;;  %v10990_v32 = vadd.f32 %v10989_v21, %v10988_v8  ;;  %v10991_v35 = vpop.f32.mrb[152].mxu0 }
 0x689   :  { %vm19144_vm0 = vmor %vm7129_vm14, %vm7257_vm10  ;;  %vm22615_vm14 = vnez %v22053_v6  ;;  %v10992_v22 = vpop.f32.mrb[153].mxu0 }
 0x68a   :  { %vm10255_vm2 = vmpackc.low %vm7763_vm1, %vm7759_vm6  ;;  %vm22618_vm6 = vnez %v22592_v46  ;;  %v6240_v29 = vadd.f32 %v10990_v32, %v10878_v9  ;;  %6438 = vperm.xlu0 %11339, %v6237_v50   ;;  %v10993_v55 = vadd.f32 %v10992_v22, %v10991_v35  ;;  %v10994_v48 = vpop.f32.mrb[154].mxu0  ;;  %v10883_v46 = vpop.f32.mrb[155].mxu1 }
 0x68b   :  { %10256 = vmatmul.mubr.msk.bf16.gmra.mrb[228].mxu0 %vm10255_vm2, %v21159_v33  ;;  %vm7766_vm10 = vmand %vm22615_vm14, %vm22614_vm15  ;;  %vm7138_vm15 = vcmp.gt.f32.partialorder %v16651_v17, %v18807_v20  ;;  %v10995_v23 = vpop.f32.mrb[155].mxu0  ;;  %v10885_v30 = vpop.f32.mrb[156].mxu1 }
 0x68c   :  { %vm19157_vm5 = vmor %vm7127_vm8, %vm7255_vm4  ;;  %vm22619_vm8 = vcmp.eq.f32.partialorder %v16717_v5, %v18732_v57  ;;  %vm22620_vm4 = vcmp.gt.f32.partialorder %v16717_v5, %v18732_v57  ;;  %v22627_v57 = vmov 0  ;;  %6443 = vperm.xlu1 %11340, %v6240_v29   ;;  %v6245_v15 = vadd.f32 %v10993_v55, %v10881_v11  ;;  %v10997_v14 = vpop.f32.mrb[156].mxu0  ;;  %v10886_v47 = vpop.f32.mrb[157].mxu1 }
 0x68d   :  { %v22617_v1 = vsel %vm19157_vm5, 4294967295, %v22616_v1  ;;  %vm7770_vm1 = vmand %vm22615_vm14, %vm22618_vm6  ;;  %vm22623_vm6 = vnez %v22599_v45  ;;  %vm22625_vm14 = vcmp.eq.f32.partialorder %v16651_v17, %v18734_v40  ;;  %v10884_v45 = vadd.f32 %v10883_v46, %v10882_v34  ;;  %v10998_v62 = vpop.f32.mrb[157].mxu0  ;;  %v10888_v61 = vpop.f32.mrb[158].mxu1 }
 0x68e   :  { %vm19175_vm2 = vmor %vm22620_vm4, %vm22619_vm8  ;;  %vm22624_vm8 = vnez %v22057_v13  ;;  %6448 = vperm.xlu0 %11339, %v6245_v15   ;;  %v10887_v53 = vadd.f32 %v10886_v47, %v10885_v30  ;;  %v10999_v7 = vadd.f32 %v10998_v62, %v10997_v14  ;;  %v10889_v52 = vpop.f32.mrb[159].mxu1  ;;  %v19329_v62 = vpop.permute.xlu1 %6624 }
 0x68f   :  { %v22622_v2 = vsel %vm19175_vm2, 4294967295, %v22621_v2  ;;  %vm10193_vm9 = vmpackc.low %vm7770_vm1, %vm7766_vm10  ;;  %vm22626_vm2 = vcmp.gt.f32.partialorder %v16651_v17, %v18734_v40  ;;  %vm7136_vm10 = vcmp.gt.f32.partialorder %v16673_v10, %v18734_v40  ;;  %v10890_v8 = vadd.f32 %v10889_v52, %v10888_v61  ;;  %v10891_v44 = vpop.f32.mrb[160].mxu1  ;;  %v22653_v61 = vld [vmem:[#allocation185_spill] sm:$0xff]  ;;  %v22654_v52 = vld [vmem:[#allocation186_spill] sm:$0xff] }
 0x690   :  { %10194 = vmatprep.mubr.msk.bf16.mxu1 %vm10193_vm9, %v21159_v33  ;;  %vm7768_vm4 = vmand %vm22624_vm8, %vm22623_vm6  ;;  %vm22629_vm9 = vnez %v22602_v63  ;;  %vm7140_vm6 = vcmp.gt.f32.partialorder %v16673_v10, %v18807_v20  ;;  %v10996_v63 = vadd.f32 %v10995_v23, %v10994_v48  ;;  %v6253_v12 = vadd.f32 %v10999_v7, %v10887_v53  ;;  %v10892_v50 = vpop.f32.mrb[161].mxu1  ;;  %v19336_v7 = vpop.permute.xlu0 %6627 }
 0x691   :  { %vm19194_vm11 = vmor %vm22626_vm2, %vm22625_vm14  ;;  %vm22632_vm2 = vnez %v22060_v58  ;;  %v10894_v29 = vpop.f32.mrb[162].mxu1 }
 0x692   :  { %v22628_v57 = vsel %vm19194_vm11, 4294967295, %v22627_v57  ;;  %vm7772_vm1 = vmand %vm22624_vm8, %vm22629_vm9  ;;  %v6248_v59 = vadd.f32 %v10996_v63, %v10884_v45  ;;  %6458 = vperm.xlu0 %11339, %v6253_v12   ;;  %v10895_v54 = vpop.f32.mrb[163].mxu1 }
 0x693   :  { %vm19204_vm5 = vmor %vm7138_vm15, %vm7266_vm12  ;;  %vm7133_vm12 = vcmp.gt.f32.partialorder %v16638_v3, %v18734_v40  ;;  %vm7261_vm15 = vcmp.eq.f32.partialorder %v16638_v3, %v18734_v40  ;;  %v10896_v39 = vadd.f32 %v10895_v54, %v10894_v29  ;;  %v10897_v22 = vpop.f32.mrb[164].mxu1 }
 0x694   :  { %vm10257_vm14 = vmpackc.low %vm7772_vm1, %vm7768_vm4  ;;  %vm7137_vm4 = vcmp.gt.f32.partialorder %v16638_v3, %v18807_v20  ;;  %6453 = vperm.xlu1 %11340, %v6248_v59   ;;  %v10898_v55 = vpop.f32.mrb[165].mxu1  ;;  %v22658_v59 = vld [vmem:[#allocation193_spill] sm:$0xff] }
 0x695   :  { %10258 = vmatprep.mubr.msk.bf16.mxu0 %vm10257_vm14, %v21159_v33  ;;  %vm7765_vm11 = vmand %vm22632_vm2, %vm19132_vm7  ;;  %vm22637_vm14 = vnez %v22617_v1  ;;  %v11000_v1 = vpop.f32.mrb[158].mxu0  ;;  %v10899_v23 = vadd.f32 %v10898_v55, %v10897_v22  ;;  %v10900_v45 = vpop.f32.mrb[166].mxu1 }
 0x696   :  { %vm19217_vm9 = vmor %vm7136_vm10, %vm19115_vm13  ;;  %vm7265_vm10 = vcmp.eq.f32.partialorder %v16638_v3, %v18807_v20  ;;  %v11001_v31 = vpop.f32.mrb[159].mxu0 }
 0x697   :  { %vm7769_vm7 = vmand %vm22632_vm2, %vm19144_vm0  ;;  %vm22638_vm0 = vnez %v22062_v24  ;;  %v11003_v21 = vpop.f32.mrb[160].mxu0  ;;  %v22706_v24 = vmov 0 }
 0x698   :  { %vm19235_vm13 = vmor %vm7140_vm6, %vm19119_vm3  ;;  %vm22641_vm6 = vnez %v22622_v2  ;;  %v11002_v2 = vadd.f32 %v11001_v31, %v11000_v1  ;;  %v11004_v9 = vpop.f32.mrb[161].mxu0 }
 0x699   :  { %vm10195_vm1 = vmpackc.low %vm7769_vm7, %vm7765_vm11  ;;  %v11005_v42 = vadd.f32 %v11004_v9, %v11003_v21  ;;  %v11006_v38 = vpop.f32.mrb[162].mxu0  ;;  %v19360_v21 = vpop.permute.xlu1 %6630 }
 0x69a   :  { %10196 = vmatmul.mubr.msk.bf16.gmra.mrb[232].mxu1 %vm10195_vm1, %v21159_v33  ;;  %vm7767_vm2 = vmand %vm22638_vm0, %vm22637_vm14  ;;  %v6256_v32 = vadd.f32 %v11002_v2, %v10890_v8  ;;  %v11007_v36 = vpop.f32.mrb[163].mxu0 }
 0x69b   :  { %vm19248_vm3 = vmor %vm7133_vm12, %vm7261_vm15  ;;  %vm22644_vm12 = vnez %v22628_v57  ;;  %vm22645_vm15 = vnez %v22053_v6  ;;  %v10893_v57 = vadd.f32 %v10892_v50, %v10891_v44  ;;  %v11008_v16 = vadd.f32 %v11007_v36, %v11006_v38  ;;  %v11009_v11 = vpop.f32.mrb[164].mxu0 }
 0x69c   :  { %vm7771_vm11 = vmand %vm22638_vm0, %vm22641_vm6  ;;  %6463 = vperm.xlu1 %11340, %v6256_v32   ;;  %v11010_v34 = vpop.f32.mrb[165].mxu0  ;;  %v19362_v32 = vpop.permute.xlu0 %6633 }
 0x69d   :  { %vm19256_vm7 = vmor %vm7137_vm4, %vm7265_vm10  ;;  %v6261_v35 = vadd.f32 %v11005_v42, %v10893_v57  ;;  %v6264_v46 = vadd.f32 %v11008_v16, %v10896_v39  ;;  %v11011_v15 = vadd.f32 %v11010_v34, %v11009_v11  ;;  %v11012_v63 = vpop.f32.mrb[166].mxu0 }
 0x69e   :  { %vm10259_vm1 = vmpackc.low %vm7771_vm11, %vm7767_vm2  ;;  %vm7135_vm11 = vcmp.gt.f32.partialorder %v16717_v5, %v18734_v40 }
 0x69f   :  { %10260 = vmatmul.mubr.msk.bf16.gmra.mrb[232].mxu0 %vm10259_vm1, %v21159_v33  ;;  %vm7774_vm14 = vmand %vm22645_vm15, %vm22644_vm12  ;;  %6468 = vperm.xlu0 %11339, %v6261_v35   ;;  %v6269_v30 = vadd.f32 %v11011_v15, %v10899_v23  ;;  %v19376_v35 = vpop.permute.xlu1 %6636 }
 0x6a0   :  { %vm7778_vm4 = vmand %vm22645_vm15, %vm19204_vm5  ;;  %6473 = vperm.xlu1 %11340, %v6264_v46   ;;  %v19379_v39 = vpop.permute.xlu0 %6639 }
 0x6a1   :  { %vm10197_vm2 = vmpackc.low %vm7778_vm4, %vm7774_vm14  ;;  %vm7139_vm14 = vcmp.gt.f32.partialorder %v16717_v5, %v18807_v20  ;;  %vm7267_vm4 = vcmp.eq.f32.partialorder %v16717_v5, %v18807_v20  ;;  %v11013_v20 = vpop.f32.mrb[167].mxu0 }
 0x6a2   :  { %10198 = vmatprep.mubr.msk.bf16.mxu1 %vm10197_vm2, %v21159_v33  ;;  %vm7776_vm10 = vmand %vm22624_vm8, %vm19217_vm9  ;;  %vm7263_vm9 = vcmp.eq.f32.partialorder %v16717_v5, %v18734_v40  ;;  %v10901_v40 = vpop.f32.mrb[167].mxu1  ;;  %v11014_v47 = vadd.f32 %v11013_v20, %v11012_v63  ;;  %v11015_v2 = vpop.f32.mrb[168].mxu0 }
 0x6a3   :  { %vm7780_vm5 = vmand %vm22624_vm8, %vm19235_vm13  ;;  %vm22646_vm13 = vnez %v22060_v58  ;;  %v10902_v14 = vadd.f32 %v10901_v40, %v10900_v45  ;;  %6478 = vperm.xlu0 %11339, %v6269_v30   ;;  %v10903_v1 = vpop.f32.mrb[168].mxu1  ;;  %v11016_v50 = vpop.f32.mrb[169].mxu0 }
 0x6a4   :  { %vm10261_vm6 = vmpackc.low %vm7780_vm5, %vm7776_vm10  ;;  %vm7142_vm5 = vcmp.gt.f32.partialorder %v16651_v17, %v18809_v60  ;;  %v10904_v31 = vpop.f32.mrb[169].mxu1  ;;  %v11017_v57 = vadd.f32 %v11016_v50, %v11015_v2  ;;  %v11018_v42 = vpop.f32.mrb[170].mxu0 }
 0x6a5   :  { %10262 = vmatprep.mubr.msk.bf16.mxu0 %vm10261_vm6, %v21159_v33  ;;  %vm7773_vm1 = vmand %vm22646_vm13, %vm19248_vm3  ;;  %vm7146_vm6 = vcmp.gt.f32.partialorder %v16651_v17, %v18861_v4  ;;  %v6272_v53 = vadd.f32 %v11014_v47, %v10902_v14  ;;  %v10905_v12 = vadd.f32 %v10904_v31, %v10903_v1  ;;  %v10906_v8 = vpop.f32.mrb[170].mxu1  ;;  %v11019_v29 = vpop.f32.mrb[171].mxu0 }
 0x6a6   :  { %vm7777_vm12 = vmand %vm22646_vm13, %vm19256_vm7  ;;  %v10907_v44 = vpop.f32.mrb[171].mxu1  ;;  %v11020_v54 = vadd.f32 %v11019_v29, %v11018_v42  ;;  %v19398_v48 = vpop.permute.xlu1 %6642 }
 0x6a7   :  { %vm10199_vm3 = vmpackc.low %vm7777_vm12, %vm7773_vm1  ;;  %vm7274_vm1 = vcmp.eq.f32.partialorder %v16651_v17, %v18861_v4  ;;  %6483 = vperm.xlu1 %11340, %v6272_v53   ;;  %v10908_v9 = vadd.f32 %v10907_v44, %v10906_v8  ;;  %v6277_v38 = vadd.f32 %v11017_v57, %v10905_v12  ;;  %v10909_v16 = vpop.f32.mrb[172].mxu1  ;;  %v19400_v15 = vpop.permute.xlu0 %6645  ;;  %v22659_v53 = vld [vmem:[#allocation194_spill] sm:$0xff] }
 0x6a8   :  { %10200 = vmatmul.mubr.msk.bf16.gmra.mrb[236].mxu1 %vm10199_vm3, %v21159_v33  ;;  %vm19302_vm7 = vmor %vm7135_vm11, %vm7263_vm9  ;;  %vm7270_vm11 = vcmp.eq.f32.partialorder %v16651_v17, %v18809_v60  ;;  %v10910_v22 = vpop.f32.mrb[173].mxu1  ;;  %22657 = vst [vmem:[#allocation48_spill] sm:$0xff] %v19400_v15 }
 0x6a9   :  { %vm19309_vm2 = vmor %vm7139_vm14, %vm7267_vm4  ;;  %v6280_v36 = vadd.f32 %v11020_v54, %v10908_v9  ;;  %6488 = vperm.xlu0 %11339, %v6277_v38   ;;  %v10911_v11 = vadd.f32 %v10910_v22, %v10909_v16  ;;  %v10912_v37 = vpop.f32.mrb[174].mxu1 }
 0x6aa   :  { %vm7775_vm10 = vmand %vm22638_vm0, %vm19302_vm7  ;;  %vm7272_vm7 = vcmp.eq.f32.partialorder %v16673_v10, %v18809_v60  ;;  %v10913_v34 = vpop.f32.mrb[175].mxu1  ;;  %v19416_v30 = vpop.permute.xlu1 %6669 }
 0x6ab   :  { %vm7779_vm9 = vmand %vm22638_vm0, %vm19309_vm2  ;;  %vm7400_vm2 = vcmp.lt.s32.totalorder %v22520_v43, %v22653_v61  ;;  %6493 = vperm.xlu1 %11340, %v6280_v36   ;;  %v10914_v23 = vadd.f32 %v10913_v34, %v10912_v37  ;;  %v19419_v14 = vpop.permute.xlu0 %6672  ;;  %v10915_v1 = vpop.f32.mrb[176].mxu1 }
 0x6ac   :  { %vm10263_vm12 = vmpackc.low %vm7779_vm9, %vm7775_vm10  ;;  %vm7144_vm9 = vcmp.gt.f32.partialorder %v16673_v10, %v18809_v60  ;;  %v10916_v31 = vpop.f32.mrb[177].mxu1 }
 0x6ad   :  { %10264 = vmatmul.mubr.msk.bf16.gmra.mrb[236].mxu0 %vm10263_vm12, %v21159_v33  ;;  %vm19332_vm14 = vmor %vm7142_vm5, %vm7270_vm11  ;;  %vm7276_vm5 = vcmp.eq.f32.partialorder %v16673_v10, %v18861_v4  ;;  %v10917_v12 = vadd.f32 %v10916_v31, %v10915_v1  ;;  %v10918_v8 = vpop.f32.mrb[178].mxu1 }
 0x6ae   :  { %vm7658_vm4 = vmor %vm7146_vm6, %vm7274_vm1  ;;  %vm7404_vm6 = vcmp.lt.s32.totalorder %v22520_v43, %v22654_v52  ;;  %vm7148_vm1 = vcmp.gt.f32.partialorder %v16673_v10, %v18861_v4  ;;  %v19433_v61 = vpop.permute.xlu1 %6675  ;;  %v10919_v50 = vpop.f32.mrb[179].mxu1 }
 0x6af   :  { %vm7782_vm3 = vmand %vm22645_vm15, %vm19332_vm14  ;;  %v19437_v52 = vpop.permute.xlu0 %6678  ;;  %v10920_v42 = vadd.f32 %v10919_v50, %v10918_v8  ;;  %v10921_v34 = vpop.f32.mrb[180].mxu1 }
 0x6b0   :  { %vm7786_vm10 = vmand %vm22645_vm15, %vm7658_vm4 }
 0x6b1   :  { %vm10201_vm11 = vmpackc.low %vm7786_vm10, %vm7782_vm3 }
 0x6b2   :  { %10202 = vmatprep.mubr.msk.bf16.mxu1 %vm10201_vm11, %v21159_v33  ;;  %vm7528_vm12 = vmand %vm7272_vm7, %vm7400_vm2  ;;  %vm7141_vm7 = vcmp.gt.f32.partialorder %v16638_v3, %v18809_v60  ;;  %vm7269_vm2 = vcmp.eq.f32.partialorder %v16638_v3, %v18809_v60  ;;  %vm7273_vm11 = vcmp.eq.f32.partialorder %v16638_v3, %v18861_v4  ;;  %v19446_v9 = vpop.permute.xlu1 %6681 }
 0x6b3   :  { %vm7532_vm14 = vmand %vm7276_vm5, %vm7404_vm6  ;;  %vm7145_vm6 = vcmp.gt.f32.partialorder %v16638_v3, %v18861_v4  ;;  %22662 = vst [vmem:[#allocation49_spill] sm:$0xff] %v19446_v9  ;;  %v19448_v29 = vpop.permute.xlu0 %8755 }
 0x6b4   :  { %vm7656_vm4 = vmor %vm7144_vm9, %vm7528_vm12 }
 0x6b5   :  { %vm7660_vm3 = vmor %vm7148_vm1, %vm7532_vm14 }
 0x6b6   :  { %vm7784_vm10 = vmand %vm22624_vm8, %vm7656_vm4  ;;  %vm7143_vm4 = vcmp.gt.f32.partialorder %v16717_v5, %v18809_v60 }
 0x6b7   :  { %vm7788_vm5 = vmand %vm22624_vm8, %vm7660_vm3  ;;  %vm7271_vm3 = vcmp.eq.f32.partialorder %v16717_v5, %v18809_v60  ;;  %v11021_v60 = vpop.f32.mrb[172].mxu0  ;;  %v19467_v37 = vpop.permute.xlu0 %8761 }
 0x6b8   :  { %vm10265_vm9 = vmpackc.low %vm7788_vm5, %vm7784_vm10  ;;  %v11022_v46 = vpop.f32.mrb[173].mxu0 }
 0x6b9   :  { %10266 = vmatprep.mubr.msk.bf16.mxu0 %vm10265_vm9, %v21159_v33  ;;  %vm7653_vm1 = vmor %vm7141_vm7, %vm7269_vm2  ;;  %vm7147_vm7 = vcmp.gt.f32.partialorder %v16717_v5, %v18861_v4  ;;  %vm7275_vm2 = vcmp.eq.f32.partialorder %v16717_v5, %v18861_v4  ;;  %v11023_v4 = vadd.f32 %v11022_v46, %v11021_v60  ;;  %v11024_v45 = vpop.f32.mrb[174].mxu0 }
 0x6ba   :  { %vm7657_vm12 = vmor %vm7145_vm6, %vm7273_vm11  ;;  %v11025_v63 = vpop.f32.mrb[175].mxu0 }
 0x6bb   :  { %vm7781_vm14 = vmand %vm22646_vm13, %vm7653_vm1  ;;  %vm7150_vm1 = vcmp.gt.f32.partialorder %v16651_v17, %v18863_v28  ;;  %v6285_v40 = vadd.f32 %v11023_v4, %v10911_v11  ;;  %v11026_v20 = vadd.f32 %v11025_v63, %v11024_v45  ;;  %v11027_v44 = vpop.f32.mrb[176].mxu0  ;;  %v19464_v11 = vpop.permute.xlu1 %8752 }
 0x6bc   :  { %vm7785_vm10 = vmand %vm22646_vm13, %vm7657_vm12  ;;  %vm7278_vm12 = vcmp.eq.f32.partialorder %v16651_v17, %v18863_v28  ;;  %v11028_v57 = vpop.f32.mrb[177].mxu0  ;;  %v19483_v46 = vpop.permute.xlu0 %8767 }
 0x6bd   :  { %vm10203_vm5 = vmpackc.low %vm7785_vm10, %vm7781_vm14  ;;  %v6288_v47 = vadd.f32 %v11026_v20, %v10914_v23  ;;  %6498 = vperm.xlu0 %11339, %v6285_v40   ;;  %v11029_v38 = vadd.f32 %v11028_v57, %v11027_v44  ;;  %v11030_v54 = vpop.f32.mrb[178].mxu0  ;;  %v10922_v23 = vpop.f32.mrb[181].mxu1  ;;  %v22669_v57 = vld [vmem:[#allocation196_spill] sm:$0xff] }
 0x6be   :  { %10204 = vmatmul.mubr.msk.bf16.gmra.mrb[240].mxu1 %vm10203_vm5, %v21159_v33  ;;  %vm19394_vm6 = vmor %vm7143_vm4, %vm7271_vm3  ;;  %vm7154_vm4 = vcmp.gt.f32.partialorder %v16651_v17, %v18993_v41  ;;  %vm7282_vm3 = vcmp.eq.f32.partialorder %v16651_v17, %v18993_v41  ;;  %v11031_v36 = vpop.f32.mrb[179].mxu0  ;;  %v10923_v45 = vadd.f32 %v10922_v23, %v10921_v34 }
 0x6bf   :  { %vm7659_vm11 = vmor %vm7147_vm7, %vm7275_vm2  ;;  %6503 = vperm.xlu1 %11340, %v6288_v47   ;;  %v6293_v16 = vadd.f32 %v11029_v38, %v10917_v12  ;;  %v11032_v22 = vadd.f32 %v11031_v36, %v11030_v54  ;;  %v19481_v60 = vpop.permute.xlu1 %8758  ;;  %v11033_v63 = vpop.f32.mrb[180].mxu0  ;;  %v22670_v38 = vld [vmem:[#allocation198_spill] sm:$0xff] }
 0x6c0   :  { %vm7783_vm9 = vmand %vm22638_vm0, %vm19394_vm6  ;;  %vm7280_vm6 = vcmp.eq.f32.partialorder %v16673_v10, %v18863_v28  ;;  %v11034_v47 = vpop.f32.mrb[181].mxu0 }
 0x6c1   :  { %vm7787_vm14 = vmand %vm22638_vm0, %vm7659_vm11  ;;  %vm7408_vm11 = vcmp.lt.s32.totalorder %v22520_v43, %v22658_v59  ;;  %v6296_v55 = vadd.f32 %v11032_v22, %v10920_v42  ;;  %6508 = vperm.xlu0 %11339, %v6293_v16   ;;  %v11035_v1 = vadd.f32 %v11034_v47, %v11033_v63  ;;  %v11036_v31 = vpop.f32.mrb[182].mxu0 }
 0x6c2   :  { %vm10267_vm10 = vmpackc.low %vm7787_vm14, %vm7783_vm9  ;;  %v11037_v8 = vpop.f32.mrb[183].mxu0 }
 0x6c3   :  { %10268 = vmatmul.mubr.msk.bf16.gmra.mrb[240].mxu0 %vm10267_vm10, %v21159_v33  ;;  %vm7662_vm7 = vmor %vm7150_vm1, %vm7278_vm12  ;;  %vm7284_vm1 = vcmp.eq.f32.partialorder %v16673_v10, %v18993_v41  ;;  %vm7412_vm12 = vcmp.lt.s32.totalorder %v22520_v43, %v22659_v53  ;;  %6513 = vperm.xlu1 %11340, %v6296_v55   ;;  %v19502_v20 = vpop.permute.xlu1 %8764  ;;  %v19512_v53 = vpop.permute.xlu0 %8773  ;;  %v6301_v2 = vadd.f32 %v11035_v1, %v10923_v45 }
 0x6c4   :  { %vm7666_vm2 = vmor %vm7154_vm4, %vm7282_vm3  ;;  %vm7152_vm4 = vcmp.gt.f32.partialorder %v16673_v10, %v18863_v28  ;;  %vm7156_vm3 = vcmp.gt.f32.partialorder %v16673_v10, %v18993_v41  ;;  %v11038_v44 = vadd.f32 %v11037_v8, %v11036_v31  ;;  %v11039_v45 = vpop.f32.mrb[184].mxu0 }
 0x6c5   :  { %vm7790_vm5 = vmand %vm22645_vm15, %vm7662_vm7  ;;  %6518 = vperm.xlu0 %11339, %v6301_v2  }
 0x6c6   :  { %vm7794_vm9 = vmand %vm22645_vm15, %vm7666_vm2 }
 0x6c7   :  { %vm10205_vm14 = vmpackc.low %vm7794_vm9, %vm7790_vm5  ;;  %vm7277_vm9 = vcmp.eq.f32.partialorder %v16638_v3, %v18863_v28  ;;  %v19522_v50 = vpop.permute.xlu1 %8770  ;;  %v19532_v42 = vpop.permute.xlu0 %8779 }
 0x6c8   :  { %10206 = vmatprep.mubr.msk.bf16.mxu1 %vm10205_vm14, %v21159_v33  ;;  %vm7536_vm10 = vmand %vm7280_vm6, %vm7408_vm11  ;;  %vm7149_vm11 = vcmp.gt.f32.partialorder %v16638_v3, %v18863_v28  ;;  %vm7281_vm14 = vcmp.eq.f32.partialorder %v16638_v3, %v18993_v41 }
 0x6c9   :  { %vm7540_vm7 = vmand %vm7284_vm1, %vm7412_vm12  ;;  %vm7153_vm12 = vcmp.gt.f32.partialorder %v16638_v3, %v18993_v41 }
 0x6ca   :  { %vm19442_vm2 = vmor %vm7152_vm4, %vm7536_vm10 }
 0x6cb   :  { %vm7668_vm5 = vmor %vm7156_vm3, %vm7540_vm7  ;;  %v19545_v36 = vpop.permute.xlu1 %8776  ;;  %v19547_v22 = vpop.permute.xlu0 %8785 }
 0x6cc   :  { %vm7792_vm6 = vmand %vm22624_vm8, %vm19442_vm2  ;;  %vm7151_vm2 = vcmp.gt.f32.partialorder %v16717_v5, %v18863_v28 }
 0x6cd   :  { %vm7796_vm1 = vmand %vm22624_vm8, %vm7668_vm5  ;;  %vm7279_vm5 = vcmp.eq.f32.partialorder %v16717_v5, %v18863_v28 }
 0x6ce   :  { %vm10269_vm4 = vmpackc.low %vm7796_vm1, %vm7792_vm6 }
 0x6cf   :  { %10270 = vmatprep.mubr.msk.bf16.mxu0 %vm10269_vm4, %v21159_v33  ;;  %vm7661_vm3 = vmor %vm7149_vm11, %vm7277_vm9  ;;  %vm7155_vm11 = vcmp.gt.f32.partialorder %v16717_v5, %v18993_v41  ;;  %vm7283_vm9 = vcmp.eq.f32.partialorder %v16717_v5, %v18993_v41  ;;  %v10924_v41 = vpop.f32.mrb[182].mxu1  ;;  %v19565_v63 = vpop.permute.xlu1 %8782 }
 0x6d0   :  { %vm7665_vm10 = vmor %vm7153_vm12, %vm7281_vm14  ;;  %v10925_v40 = vpop.f32.mrb[183].mxu1 }
 0x6d1   :  { %vm7789_vm7 = vmand %vm22646_vm13, %vm7661_vm3  ;;  %vm7158_vm3 = vcmp.gt.f32.partialorder %v16651_v17, %v18995_v18  ;;  %v10926_v59 = vadd.f32 %v10925_v40, %v10924_v41  ;;  %v10927_v16 = vpop.f32.mrb[184].mxu1  ;;  %v11040_v40 = vpop.f32.mrb[185].mxu0 }
 0x6d2   :  { %vm7793_vm6 = vmand %vm22646_vm13, %vm7665_vm10  ;;  %vm7286_vm10 = vcmp.eq.f32.partialorder %v16651_v17, %v18995_v18  ;;  %v10928_v34 = vpop.f32.mrb[185].mxu1  ;;  %v11041_v1 = vadd.f32 %v11040_v40, %v11039_v45  ;;  %v11042_v31 = vpop.f32.mrb[186].mxu0 }
 0x6d3   :  { %vm10207_vm1 = vmpackc.low %vm7793_vm6, %vm7789_vm7  ;;  %v6304_v54 = vadd.f32 %v11038_v44, %v10926_v59  ;;  %v10929_v23 = vadd.f32 %v10928_v34, %v10927_v16  ;;  %v10930_v4 = vpop.f32.mrb[186].mxu1  ;;  %v19575_v59 = vpop.permute.xlu0 %8791 }
 0x6d4   :  { %10208 = vmatmul.mubr.msk.bf16.gmra.mrb[244].mxu1 %vm10207_vm1, %v21159_v33  ;;  %vm19486_vm12 = vmor %vm7151_vm2, %vm7279_vm5  ;;  %vm7162_vm2 = vcmp.gt.f32.partialorder %v16651_v17, %v19053_v0  ;;  %vm7290_vm5 = vcmp.eq.f32.partialorder %v16651_v17, %v19053_v0  ;;  %v10931_v41 = vpop.f32.mrb[187].mxu1  ;;  %v11043_v8 = vpop.f32.mrb[187].mxu0 }
 0x6d5   :  { %vm19490_vm14 = vmor %vm7155_vm11, %vm7283_vm9  ;;  %6523 = vperm.xlu1 %11340, %v6304_v54   ;;  %v10932_v47 = vadd.f32 %v10931_v41, %v10930_v4  ;;  %v6309_v2 = vadd.f32 %v11041_v1, %v10929_v23  ;;  %v11044_v44 = vadd.f32 %v11043_v8, %v11042_v31  ;;  %v10933_v55 = vpop.f32.mrb[188].mxu1  ;;  %v11045_v4 = vpop.f32.mrb[188].mxu0 }
 0x6d6   :  { %vm7791_vm4 = vmand %vm22638_vm0, %vm19486_vm12  ;;  %vm7288_vm12 = vcmp.eq.f32.partialorder %v16673_v10, %v18995_v18 }
 0x6d7   :  { %vm7795_vm7 = vmand %vm22638_vm0, %vm19490_vm14  ;;  %vm7416_vm14 = vcmp.lt.s32.totalorder %v22520_v43, %v22669_v57  ;;  %v19585_v57 = vpop.permute.xlu1 %8788  ;;  %v6312_v54 = vadd.f32 %v11044_v44, %v10932_v47  ;;  %6528 = vperm.xlu0 %11339, %v6309_v2   ;;  %v11046_v47 = vpop.f32.mrb[189].mxu0  ;;  %v22681_v2 = vld [vmem:[#allocation203_spill] sm:$0xff] }
 0x6d8   :  { %vm10271_vm6 = vmpackc.low %vm7795_vm7, %vm7791_vm4  ;;  %v11047_v12 = vadd.f32 %v11046_v47, %v11045_v4  ;;  %v11048_v8 = vpop.f32.mrb[190].mxu0 }
 0x6d9   :  { %10272 = vmatmul.mubr.msk.bf16.gmra.mrb[244].mxu0 %vm10271_vm6, %v21159_v33  ;;  %vm19518_vm11 = vmor %vm7158_vm3, %vm7286_vm10  ;;  %vm7292_vm3 = vcmp.eq.f32.partialorder %v16673_v10, %v19053_v0  ;;  %vm7420_vm10 = vcmp.lt.s32.totalorder %v22520_v43, %v22670_v38  ;;  %v19595_v38 = vpop.permute.xlu0 %8797  ;;  %6533 = vperm.xlu1 %11340, %v6312_v54   ;;  %v11049_v44 = vpop.f32.mrb[191].mxu0  ;;  %v22682_v54 = vld [vmem:[#allocation204_spill] sm:$0xff] }
 0x6da   :  { %vm7674_vm9 = vmor %vm7162_vm2, %vm7290_vm5  ;;  %vm7160_vm2 = vcmp.gt.f32.partialorder %v16673_v10, %v18995_v18  ;;  %vm7164_vm5 = vcmp.gt.f32.partialorder %v16673_v10, %v19053_v0 }
 0x6db   :  { %vm7798_vm1 = vmand %vm22645_vm15, %vm19518_vm11 }
 0x6dc   :  { %vm7802_vm4 = vmand %vm22645_vm15, %vm7674_vm9 }
 0x6dd   :  { %vm10209_vm7 = vmpackc.low %vm7802_vm4, %vm7798_vm1  ;;  %vm7285_vm4 = vcmp.eq.f32.partialorder %v16638_v3, %v18995_v18  ;;  %v19610_v34 = vpop.permute.xlu0 %8803 }
 0x6de   :  { %10210 = vmatprep.mubr.msk.bf16.mxu1 %vm10209_vm7, %v21159_v33  ;;  %vm7544_vm6 = vmand %vm7288_vm12, %vm7416_vm14  ;;  %vm7157_vm14 = vcmp.gt.f32.partialorder %v16638_v3, %v18995_v18  ;;  %vm7289_vm7 = vcmp.eq.f32.partialorder %v16638_v3, %v19053_v0 }
 0x6df   :  { %vm7548_vm11 = vmand %vm7292_vm3, %vm7420_vm10  ;;  %vm7161_vm10 = vcmp.gt.f32.partialorder %v16638_v3, %v19053_v0 }
 0x6e0   :  { %vm19549_vm9 = vmor %vm7160_vm2, %vm7544_vm6 }
 0x6e1   :  { %vm19553_vm1 = vmor %vm7164_vm5, %vm7548_vm11  ;;  %v19633_v31 = vpop.permute.xlu0 %8809 }
 0x6e2   :  { %vm7800_vm12 = vmand %vm22624_vm8, %vm19549_vm9  ;;  %vm7159_vm9 = vcmp.gt.f32.partialorder %v16717_v5, %v18995_v18 }
 0x6e3   :  { %vm7804_vm3 = vmand %vm22624_vm8, %vm19553_vm1  ;;  %vm7287_vm1 = vcmp.eq.f32.partialorder %v16717_v5, %v18995_v18  ;;  %v19608_v18 = vpop.permute.xlu1 %8794 }
 0x6e4   :  { %vm10273_vm2 = vmpackc.low %vm7804_vm3, %vm7800_vm12 }
 0x6e5   :  { %10274 = vmatprep.mubr.msk.bf16.mxu0 %vm10273_vm2, %v21159_v33  ;;  %vm19581_vm5 = vmor %vm7157_vm14, %vm7285_vm4  ;;  %vm7163_vm14 = vcmp.gt.f32.partialorder %v16717_v5, %v19053_v0  ;;  %vm7291_vm4 = vcmp.eq.f32.partialorder %v16717_v5, %v19053_v0  ;;  %v10934_v0 = vpop.f32.mrb[189].mxu1 }
 0x6e6   :  { %vm7673_vm6 = vmor %vm7161_vm10, %vm7289_vm7  ;;  %v10935_v28 = vadd.f32 %v10934_v0, %v10933_v55  ;;  %v10936_v23 = vpop.f32.mrb[190].mxu1  ;;  %v11050_v55 = vadd.f32 %v11049_v44, %v11048_v8 }
 0x6e7   :  { %vm7797_vm11 = vmand %vm22646_vm13, %vm19581_vm5  ;;  %vm7166_vm5 = vcmp.gt.f32.partialorder %v16651_v17, %v19055_v27  ;;  %v10937_v45 = vpop.f32.mrb[191].mxu1  ;;  %v19626_v41 = vpop.permute.xlu1 %8800 }
 0x6e8   :  { %vm7801_vm12 = vmand %vm22646_vm13, %vm7673_vm6  ;;  %vm7294_vm6 = vcmp.eq.f32.partialorder %v16651_v17, %v19055_v27  ;;  %v10938_v1 = vadd.f32 %v10937_v45, %v10936_v23  ;;  %v6317_v16 = vadd.f32 %v11047_v12, %v10935_v28  ;;  %v19653_v23 = vpop.permute.xlu0 %8815  ;;  %v10939_v40 = vpop.f32.mrb[192].mxu1 }
 0x6e9   :  { %vm10211_vm3 = vmpackc.low %vm7801_vm12, %vm7797_vm11 }
 0x6ea   :  { %10212 = vmatmul.mubr.msk.bf16.gmra.mrb[248].mxu1 %vm10211_vm3, %v21159_v33  ;;  %vm19604_vm10 = vmor %vm7159_vm9, %vm7287_vm1  ;;  %vm7170_vm9 = vcmp.gt.f32.partialorder %v16651_v17, %v19123_v56  ;;  %vm7298_vm1 = vcmp.eq.f32.partialorder %v16651_v17, %v19123_v56  ;;  %v6320_v4 = vadd.f32 %v11050_v55, %v10938_v1  ;;  %6538 = vperm.xlu0 %11339, %v6317_v16   ;;  %v10940_v1 = vpop.f32.mrb[193].mxu1 }
 0x6eb   :  { %vm7675_vm7 = vmor %vm7163_vm14, %vm7291_vm4  ;;  %v19649_v0 = vpop.permute.xlu1 %8806  ;;  %v10941_v12 = vadd.f32 %v10940_v1, %v10939_v40  ;;  %v10942_v8 = vpop.f32.mrb[194].mxu1 }
 0x6ec   :  { %vm7799_vm2 = vmand %vm22638_vm0, %vm19604_vm10  ;;  %vm7296_vm10 = vcmp.eq.f32.partialorder %v16673_v10, %v19055_v27  ;;  %6543 = vperm.xlu1 %11340, %v6320_v4   ;;  %v19664_v47 = vpop.permute.xlu0 %8821  ;;  %v10943_v44 = vpop.f32.mrb[195].mxu1 }
 0x6ed   :  { %vm7803_vm11 = vmand %vm22638_vm0, %vm7675_vm7  ;;  %vm7424_vm7 = vcmp.lt.s32.totalorder %v22520_v43, %v22681_v2  ;;  %v11051_v2 = vpop.f32.mrb[192].mxu0  ;;  %v10944_v4 = vadd.f32 %v10943_v44, %v10942_v8 }
 0x6ee   :  { %vm10275_vm12 = vmpackc.low %vm7803_vm11, %vm7799_vm2  ;;  %v11052_v55 = vpop.f32.mrb[193].mxu0 }
 0x6ef   :  { %10276 = vmatmul.mubr.msk.bf16.gmra.mrb[248].mxu0 %vm10275_vm12, %v21159_v33  ;;  %vm19629_vm14 = vmor %vm7166_vm5, %vm7294_vm6  ;;  %vm7300_vm5 = vcmp.eq.f32.partialorder %v16673_v10, %v19123_v56  ;;  %vm7428_vm6 = vcmp.lt.s32.totalorder %v22520_v43, %v22682_v54  ;;  %v19662_v45 = vpop.permute.xlu1 %8812  ;;  %v11053_v9 = vadd.f32 %v11052_v55, %v11051_v2  ;;  %v11054_v15 = vpop.f32.mrb[194].mxu0  ;;  %v22697_v55 = vld [vmem:[#allocation211_spill] sm:$0xff] }
 0x6f0   :  { %vm7682_vm4 = vmor %vm7170_vm9, %vm7298_vm1  ;;  %vm7168_vm9 = vcmp.gt.f32.partialorder %v16673_v10, %v19055_v27  ;;  %vm7172_vm1 = vcmp.gt.f32.partialorder %v16673_v10, %v19123_v56  ;;  %v19687_v28 = vpop.permute.xlu0 %8827  ;;  %v11055_v40 = vpop.f32.mrb[195].mxu0 }
 0x6f1   :  { %vm7806_vm3 = vmand %vm22645_vm15, %vm19629_vm14  ;;  %v6325_v1 = vadd.f32 %v11053_v9, %v10941_v12  ;;  %v11056_v8 = vadd.f32 %v11055_v40, %v11054_v15  ;;  %v11073_v15 = vpop.f32.mrb[196].mxu1 }
 0x6f2   :  { %vm7810_vm2 = vmand %vm22645_vm15, %vm7682_vm4  ;;  %v11074_v12 = vpop.f32.mrb[197].mxu1 }
 0x6f3   :  { %vm10213_vm11 = vmpackc.low %vm7810_vm2, %vm7806_vm3  ;;  %v19680_v54 = vpop.permute.xlu1 %8818  ;;  %v6328_v16 = vadd.f32 %v11056_v8, %v10944_v4  ;;  %6548 = vperm.xlu0 %11339, %v6325_v1   ;;  %v11075_v4 = vadd.f32 %v11074_v12, %v11073_v15  ;;  %v11076_v40 = vpop.f32.mrb[198].mxu1 }
 0x6f4   :  { %10214 = vmatprep.mubr.msk.bf16.mxu1 %vm10213_vm11, %v21159_v33  ;;  %vm7552_vm12 = vmand %vm7296_vm10, %vm7424_vm7  ;;  %vm7165_vm10 = vcmp.gt.f32.partialorder %v16638_v3, %v19055_v27  ;;  %vm7293_vm7 = vcmp.eq.f32.partialorder %v16638_v3, %v19055_v27  ;;  %vm7297_vm11 = vcmp.eq.f32.partialorder %v16638_v3, %v19123_v56  ;;  %v19705_v44 = vpop.permute.xlu0 %8833  ;;  %v11185_v8 = vpop.f32.mrb[196].mxu0 }
 0x6f5   :  { %vm7556_vm14 = vmand %vm7300_vm5, %vm7428_vm6  ;;  %vm7169_vm6 = vcmp.gt.f32.partialorder %v16638_v3, %v19123_v56  ;;  %22687 = vst [vmem:[#allocation66_spill] sm:$0xff] %v19705_v44  ;;  %6553 = vperm.xlu1 %11340, %v6328_v16   ;;  %v22696_v16 = vld [vmem:[#allocation210_spill] sm:$0xff]  ;;  %v11186_v15 = vpop.f32.mrb[197].mxu0 }
 0x6f6   :  { %vm19658_vm4 = vmor %vm7168_vm9, %vm7552_vm12  ;;  %v11188_v44 = vpop.f32.mrb[198].mxu0 }
 0x6f7   :  { %vm7684_vm3 = vmor %vm7172_vm1, %vm7556_vm14  ;;  %v19703_v2 = vpop.permute.xlu1 %8824 }
 0x6f8   :  { %vm7808_vm2 = vmand %vm22624_vm8, %vm19658_vm4  ;;  %vm7167_vm4 = vcmp.gt.f32.partialorder %v16717_v5, %v19055_v27  ;;  %v19728_v9 = vpop.permute.xlu0 %8839 }
 0x6f9   :  { %vm7812_vm5 = vmand %vm22624_vm8, %vm7684_vm3  ;;  %vm7295_vm3 = vcmp.eq.f32.partialorder %v16717_v5, %v19055_v27  ;;  %22690 = vst [vmem:[#allocation56_spill] sm:$0xff] %v19728_v9  ;;  %v11077_v27 = vpop.f32.mrb[199].mxu1 }
 0x6fa   :  { %vm10277_vm9 = vmpackc.low %vm7812_vm5, %vm7808_vm2  ;;  %v11078_v12 = vadd.f32 %v11077_v27, %v11076_v40  ;;  %v11189_v40 = vpop.f32.mrb[199].mxu0 }
 0x6fb   :  { %10278 = vmatprep.mubr.msk.bf16.mxu0 %vm10277_vm9, %v21159_v33  ;;  %vm19683_vm1 = vmor %vm7165_vm10, %vm7293_vm7  ;;  %vm7171_vm10 = vcmp.gt.f32.partialorder %v16717_v5, %v19123_v56  ;;  %vm7299_vm7 = vcmp.eq.f32.partialorder %v16717_v5, %v19123_v56  ;;  %v19720_v56 = vpop.permute.xlu1 %8830  ;;  %v11190_v1 = vadd.f32 %v11189_v40, %v11188_v44  ;;  %v11079_v44 = vpop.f32.mrb[200].mxu1 }
 0x6fc   :  { %vm7681_vm12 = vmor %vm7169_vm6, %vm7297_vm11  ;;  %v19749_v9 = vpop.permute.xlu0 %8845  ;;  %v11191_v40 = vpop.f32.mrb[200].mxu0 }
 0x6fd   :  { %vm7805_vm14 = vmand %vm22646_vm13, %vm19683_vm1  ;;  %vm7174_vm1 = vcmp.gt.f32.partialorder %v16651_v17, %v19125_v19 }
 0x6fe   :  { %vm7809_vm2 = vmand %vm22646_vm13, %vm7681_vm12  ;;  %vm7302_vm12 = vcmp.eq.f32.partialorder %v16651_v17, %v19125_v19 }
 0x6ff   :  { %vm10215_vm5 = vmpackc.low %vm7809_vm2, %vm7805_vm14 }
 0x700   :  { %10216 = vmatmul.mubr.msk.bf16.gmra.mrb[252].mxu1 %vm10215_vm5, %v21159_v33  ;;  %vm19708_vm6 = vmor %vm7167_vm4, %vm7295_vm3  ;;  %vm7178_vm4 = vcmp.gt.f32.partialorder %v16651_v17, %v19225_v26  ;;  %vm7306_vm3 = vcmp.eq.f32.partialorder %v16651_v17, %v19225_v26  ;;  %v19739_v17 = vpop.permute.xlu1 %8836 }
 0x701   :  { %vm7683_vm11 = vmor %vm7171_vm10, %vm7299_vm7  ;;  %22695 = vst [vmem:[#allocation57_spill] sm:$0xff] %v19739_v17  ;;  %v11187_v17 = vadd.f32 %v11186_v15, %v11185_v8  ;;  %v8340_v8 = vadd.f32 %v11190_v1, %v11078_v12 }
 0x702   :  { %vm7807_vm9 = vmand %vm22638_vm0, %vm19708_vm6  ;;  %vm7304_vm6 = vcmp.eq.f32.partialorder %v16673_v10, %v19125_v19 }
 0x703   :  { %vm7811_vm14 = vmand %vm22638_vm0, %vm7683_vm11  ;;  %vm7432_vm11 = vcmp.lt.s32.totalorder %v22520_v43, %v22696_v16  ;;  %v8337_v6 = vadd.f32 %v11187_v17, %v11075_v4  ;;  %v6399_v16 = vpop.permute.xlu0 %6398  ;;  %8534 = vperm.xlu0 %11339, %v8340_v8   ;;  %v11080_v4 = vpop.f32.mrb[201].mxu1  ;;  %v19813_v8 = vcvt.s32.f32 %v11925_v49 }
 0x704   :  { %vm10279_vm2 = vmpackc.low %vm7811_vm14, %vm7807_vm9  ;;  %v19767_v27 = vpop.permute.xlu1 %8842  ;;  %v11081_v12 = vadd.f32 %v11080_v4, %v11079_v44  ;;  %v11082_v13 = vpop.f32.mrb[202].mxu1 }
 0x705   :  { %10280 = vmatmul.mubr.msk.bf16.gmra.mrb[252].mxu0 %vm10279_vm2, %v21159_v33  ;;  %vm19731_vm10 = vmor %vm7174_vm1, %vm7302_vm12  ;;  %vm7308_vm1 = vcmp.eq.f32.partialorder %v16673_v10, %v19225_v26  ;;  %vm7436_vm12 = vcmp.lt.s32.totalorder %v22520_v43, %v22697_v55  ;;  %8529 = vperm.xlu1 %11340, %v8337_v6   ;;  %v11083_v6 = vpop.f32.mrb[203].mxu1 }
 0x706   :  { %vm19735_vm7 = vmor %vm7178_vm4, %vm7306_vm3  ;;  %vm7176_vm4 = vcmp.gt.f32.partialorder %v16673_v10, %v19125_v19  ;;  %vm7180_vm3 = vcmp.gt.f32.partialorder %v16673_v10, %v19225_v26  ;;  %v11084_v1 = vadd.f32 %v11083_v6, %v11082_v13 }
 0x707   :  { %vm7814_vm5 = vmand %vm22645_vm15, %vm19731_vm10  ;;  %v6409_v17 = vpop.permute.xlu0 %6408 }
 0x708   :  { %vm7818_vm9 = vmand %vm22645_vm15, %vm19735_vm7  ;;  %v6404_v10 = vpop.permute.xlu1 %6403 }
 0x709   :  { %vm10217_vm14 = vmpackc.low %vm7818_vm9, %vm7814_vm5 }
 0x70a   :  { %10218 = vmatprep.mubr.msk.bf16.mxu1 %vm10217_vm14, %v21159_v33  ;;  %vm7560_vm15 = vmand %vm7304_vm6, %vm7432_vm11  ;;  %vm7173_vm6 = vcmp.gt.f32.partialorder %v16638_v3, %v19125_v19  ;;  %vm7301_vm11 = vcmp.eq.f32.partialorder %v16638_v3, %v19125_v19 }
 0x70b   :  { %vm7564_vm2 = vmand %vm7308_vm1, %vm7436_vm12  ;;  %vm7177_vm1 = vcmp.gt.f32.partialorder %v16638_v3, %v19225_v26  ;;  %vm7305_vm12 = vcmp.eq.f32.partialorder %v16638_v3, %v19225_v26  ;;  %v11192_v3 = vpop.f32.mrb[201].mxu0  ;;  %v6419_v15 = vpop.permute.xlu0 %6418 }
 0x70c   :  { %vm19769_vm10 = vmor %vm7176_vm4, %vm7560_vm15  ;;  %vm7175_vm15 = vcmp.gt.f32.partialorder %v16717_v5, %v19125_v19  ;;  %v6414_v43 = vpop.permute.xlu1 %6413  ;;  %v11193_v44 = vadd.f32 %v11192_v3, %v11191_v40  ;;  %v11194_v4 = vpop.f32.mrb[202].mxu0 }
 0x70d   :  { %vm7692_vm7 = vmor %vm7180_vm3, %vm7564_vm2  ;;  %vm7303_vm2 = vcmp.eq.f32.partialorder %v16717_v5, %v19125_v19  ;;  %v11195_v13 = vpop.f32.mrb[203].mxu0  ;;  %v11085_v19 = vpop.f32.mrb[204].mxu1 }
 0x70e   :  { %vm7816_vm5 = vmand %vm22624_vm8, %vm19769_vm10  ;;  %v8345_v58 = vadd.f32 %v11193_v44, %v11081_v12  ;;  %v11196_v55 = vadd.f32 %v11195_v13, %v11194_v4  ;;  %v22708_v12 = vmov 0  ;;  %v11197_v40 = vpop.f32.mrb[204].mxu0 }
 0x70f   :  { %vm7820_vm9 = vmand %vm22624_vm8, %vm7692_vm7  ;;  %vm7179_vm7 = vcmp.gt.f32.partialorder %v16717_v5, %v19225_v26 }
 0x710   :  { %vm10281_vm14 = vmpackc.low %vm7820_vm9, %vm7816_vm5  ;;  %vm7307_vm5 = vcmp.eq.f32.partialorder %v16717_v5, %v19225_v26  ;;  %v6424_v6 = vpop.permute.xlu1 %6423  ;;  %v8348_v49 = vadd.f32 %v11196_v55, %v11084_v1  ;;  %8539 = vperm.xlu1 %11340, %v8345_v58   ;;  %v6429_v26 = vpop.permute.xlu0 %6428  ;;  %v22704_v5 = vmov 0  ;;  %v22711_v1 = vmov 0 }
 0x711   :  { %10282 = vmatprep.mubr.msk.bf16.mxu0 %vm10281_vm14, %v21159_v33  ;;  %vm19788_vm4 = vmor %vm7173_vm6, %vm7301_vm11  ;;  %vm6557_vm14 = vcmp.eq.f32.partialorder %v6404_v10, %v19813_v8  ;;  %v22716_v58 = vmov 0 }
 0x712   :  { %vm19792_vm8 = vmor %vm7177_vm1, %vm7305_vm12  ;;  %vm6556_vm1 = vcmp.eq.f32.partialorder %v6399_v16, %v19813_v8  ;;  %8544 = vperm.xlu0 %11339, %v8348_v49  }
 0x713   :  { %vm7813_vm3 = vmand %vm22646_vm13, %vm19788_vm4  ;;  %vm6716_vm4 = vcmp.eq.s32.totalorder %v19227_v51, 1  ;;  %v11086_v51 = vpop.f32.mrb[205].mxu1 }
 0x714   :  { %vm7817_vm10 = vmand %vm22646_vm13, %vm19792_vm8  ;;  %v6434_v16 = vpop.permute.xlu1 %6433  ;;  %v19838_v10 = vpop.permute.xlu0 %6438 }
 0x715   :  { %vm10219_vm6 = vmpackc.low %vm7817_vm10, %vm7813_vm3  ;;  %vm6717_vm3 = vcmp.eq.s32.totalorder %v19329_v62, 1  ;;  %v11087_v62 = vadd.f32 %v11086_v51, %v11085_v19 }
 0x716   :  { %10220 = vmatmul.mubr.msk.bf16.gmra.mrb[0].mxu1 %vm10219_vm6, %v21159_v33  ;;  %vm7687_vm13 = vmor %vm7175_vm15, %vm7303_vm2  ;;  %vm6558_vm2 = vcmp.eq.f32.partialorder %v6409_v17, %v19813_v8  ;;  %v11088_v17 = vpop.f32.mrb[206].mxu1  ;;  %vm6719_vm6 = vcmp.eq.s32.totalorder %v19360_v21, 1 }
 0x717   :  { %vm7691_vm11 = vmor %vm7179_vm7, %vm7307_vm5  ;;  %vm6718_vm7 = vcmp.eq.s32.totalorder %v19336_v7, 1  ;;  %v11089_v3 = vpop.f32.mrb[207].mxu1  ;;  %v11198_v7 = vpop.f32.mrb[205].mxu0 }
 0x718   :  { %vm7815_vm9 = vmand %vm22638_vm0, %vm7687_vm13  ;;  %v19856_v44 = vpop.permute.xlu1 %6443  ;;  %v11199_v21 = vadd.f32 %v11198_v7, %v11197_v40  ;;  %v11200_v4 = vpop.f32.mrb[206].mxu0 }
 0x719   :  { %vm7819_vm12 = vmand %vm22638_vm0, %vm7691_vm11  ;;  %vm6559_vm0 = vcmp.eq.f32.partialorder %v6414_v43, %v19813_v8  ;;  %vm6560_vm11 = vcmp.eq.f32.partialorder %v6419_v15, %v19813_v8  ;;  %v11090_v43 = vadd.f32 %v11089_v3, %v11088_v17  ;;  %22714 = vst [vmem:[#allocation5_spill] sm:$0xff] %v19856_v44  ;;  %v19863_v15 = vpop.permute.xlu0 %6448  ;;  %v11201_v13 = vpop.f32.mrb[207].mxu0 }
 0x71a   :  { %vm10283_vm8 = vmpackc.low %vm7819_vm12, %vm7815_vm9  ;;  %vm6720_vm12 = vcmp.eq.s32.totalorder %v19362_v32, 1  ;;  %22715 = vst [vmem:[#allocation64_spill] sm:$0xff] %v19863_v15  ;;  %v8353_v55 = vadd.f32 %v11199_v21, %v11087_v62  ;;  %v11202_v32 = vadd.f32 %v11201_v13, %v11200_v4  ;;  %v11203_v3 = vpop.f32.mrb[208].mxu0 }
 0x71b   :  { %10284 = vmatmul.mubr.msk.bf16.gmra.mrb[0].mxu0 %vm10283_vm8, %v21159_v33  ;;  %vm19828_vm15 = vmand %vm6556_vm1, %vm6716_vm4  ;;  %vm6561_vm1 = vcmp.eq.f32.partialorder %v6424_v6, %v19813_v8  ;;  %vm6721_vm4 = vcmp.eq.s32.totalorder %v19376_v35, 1  ;;  %v22719_v6 = vmov 0 }
 0x71c   :  { %v22705_v5 = vsel %vm19828_vm15, 4294967295, %v22704_v5  ;;  %vm19833_vm10 = vmand %vm6557_vm14, %vm6717_vm3  ;;  %vm6562_vm3 = vcmp.eq.f32.partialorder %v6429_v26, %v19813_v8  ;;  %v19881_v35 = vpop.permute.xlu1 %6453  ;;  %v8356_v49 = vadd.f32 %v11202_v32, %v11090_v43  ;;  %8549 = vperm.xlu1 %11340, %v8353_v55   ;;  %v22723_v26 = vmov 0  ;;  %v11204_v43 = vpop.f32.mrb[209].mxu0 }
 0x71d   :  { %v22707_v24 = vsel %vm19833_vm10, 4294967295, %v22706_v24  ;;  %vm19846_vm13 = vmand %vm6558_vm2, %vm6718_vm7  ;;  %vm6722_vm7 = vcmp.eq.s32.totalorder %v19379_v39, 1  ;;  %22722 = vst [vmem:[#allocation70_spill] sm:$0xff] %v19881_v35  ;;  %v19888_v19 = vpop.permute.xlu0 %6458  ;;  %v11091_v39 = vpop.f32.mrb[208].mxu1  ;;  %v11205_v13 = vadd.f32 %v11204_v43, %v11203_v3 }
 0x71e   :  { %v22709_v12 = vsel %vm19846_vm13, 4294967295, %v22708_v12  ;;  %vm19851_vm9 = vmand %vm6559_vm0, %vm6719_vm6  ;;  %vm6563_vm0 = vcmp.eq.f32.partialorder %v6434_v16, %v19813_v8  ;;  %22726 = vst [vmem:[#allocation7_spill] sm:$0xff] %v19888_v19  ;;  %v22727_v16 = vmov 0  ;;  %8554 = vperm.xlu0 %11339, %v8356_v49   ;;  %v11092_v51 = vpop.f32.mrb[209].mxu1  ;;  %v11206_v55 = vpop.f32.mrb[210].mxu0 }
 0x71f   :  { %22710 = vst [vmem:[#allocation67_spill] sm:$0xff] %v22709_v12  ;;  %v22712_v1 = vsel %vm19851_vm9, 4294967295, %v22711_v1  ;;  %vm19866_vm8 = vmand %vm6560_vm11, %vm6720_vm12  ;;  %vm6723_vm11 = vcmp.eq.s32.totalorder %v19398_v48, 1  ;;  %v11093_v17 = vadd.f32 %v11092_v51, %v11091_v39  ;;  %v11094_v40 = vpop.f32.mrb[210].mxu1  ;;  %v11207_v49 = vpop.f32.mrb[211].mxu0  ;;  %v22733_v51 = vmov 0 }
 0x720   :  { %22713 = vst [vmem:[#allocation72_spill] sm:$0xff] %v22712_v1  ;;  %v22717_v58 = vsel %vm19866_vm8, 4294967295, %v22716_v58  ;;  %vm19871_vm2 = vmand %vm6561_vm1, %vm6721_vm4  ;;  %v19898_v48 = vpop.permute.xlu1 %6463  ;;  %v11095_v7 = vpop.f32.mrb[211].mxu1 }
 0x721   :  { %22718 = vst [vmem:[#allocation6_spill] sm:$0xff] %v22717_v58  ;;  %v22720_v6 = vsel %vm19871_vm2, 4294967295, %v22719_v6  ;;  %vm19884_vm12 = vmand %vm6562_vm3, %vm6722_vm7  ;;  %v19900_v62 = vpop.permute.xlu0 %6468  ;;  %v11096_v21 = vadd.f32 %v11095_v7, %v11094_v40  ;;  %v8361_v19 = vadd.f32 %v11205_v13, %v11093_v17  ;;  %vm6733_vm7 = vcmp.eq.s32.totalorder %v19419_v14, 1  ;;  %v11209_v17 = vpop.f32.mrb[212].mxu0 }
 0x722   :  { %22721 = vst [vmem:[#allocation65_spill] sm:$0xff] %v22720_v6  ;;  %v22724_v26 = vsel %vm19884_vm12, 4294967295, %v22723_v26  ;;  %vm19890_vm1 = vmand %vm6563_vm0, %vm6723_vm11  ;;  %vm6732_vm0 = vcmp.eq.s32.totalorder %v19416_v30, 1  ;;  %v22735_v40 = vmov 0  ;;  %v11097_v30 = vpop.f32.mrb[212].mxu1  ;;  %v11210_v7 = vpop.f32.mrb[213].mxu0 }
 0x723   :  { %22725 = vst [vmem:[#allocation71_spill] sm:$0xff] %v22724_v26  ;;  %v22728_v16 = vsel %vm19890_vm1, 4294967295, %v22727_v16  ;;  %22730 = vst [vmem:[#allocation181_spill] sm:$0xff] %v19898_v48  ;;  %v11208_v26 = vadd.f32 %v11207_v49, %v11206_v55  ;;  %8559 = vperm.xlu1 %11340, %v8361_v19   ;;  %v11098_v14 = vpop.f32.mrb[213].mxu1  ;;  %v11212_v13 = vpop.f32.mrb[214].mxu0 }
 0x724   :  { %22729 = vst [vmem:[#allocation9_spill] sm:$0xff] %v22728_v16  ;;  %22731 = vst [vmem:[#allocation76_spill] sm:$0xff] %v19900_v62  ;;  %v19902_v4 = vpop.permute.xlu1 %6473  ;;  %v11100_v19 = vpop.f32.mrb[214].mxu1 }
 0x725   :  { %22732 = vst [vmem:[#allocation77_spill] sm:$0xff] %v19902_v4  ;;  %v6479_v32 = vpop.permute.xlu0 %6478  ;;  %v8364_v39 = vadd.f32 %v11208_v26, %v11096_v21  ;;  %v11099_v26 = vadd.f32 %v11098_v14, %v11097_v30  ;;  %v11101_v3 = vpop.f32.mrb[215].mxu1  ;;  %v22737_v30 = vmov 0  ;;  %v22739_v14 = vmov 0 }
 0x726   :  { %vm6572_vm3 = vcmp.eq.f32.partialorder %v6479_v32, %v19813_v8  ;;  %v11102_v43 = vadd.f32 %v11101_v3, %v11100_v19  ;;  %v11213_v55 = vpop.f32.mrb[215].mxu0 }
 0x727   :  { %vm19907_vm11 = vmand %vm6572_vm3, %vm6732_vm0  ;;  %8564 = vperm.xlu0 %11339, %v8364_v39   ;;  %vm6734_vm3 = vcmp.eq.s32.totalorder %v19433_v61, 1  ;;  %vm6735_vm0 = vcmp.eq.s32.totalorder %v19437_v52, 1  ;;  %v11214_v39 = vadd.f32 %v11213_v55, %v11212_v13  ;;  %v11103_v61 = vpop.f32.mrb[216].mxu1  ;;  %v11215_v3 = vpop.f32.mrb[216].mxu0 }
 0x728   :  { %v6484_v48 = vpop.permute.xlu1 %6483  ;;  %v22734_v51 = vsel %vm19907_vm11, 4294967295, %v22733_v51  ;;  %v11104_v52 = vpop.f32.mrb[217].mxu1 }
 0x729   :  { %vm6573_vm4 = vcmp.eq.f32.partialorder %v6484_v48, %v19813_v8  ;;  %v6489_v21 = vpop.permute.xlu0 %6488  ;;  %v11211_v48 = vadd.f32 %v11210_v7, %v11209_v17  ;;  %v8372_v19 = vadd.f32 %v11214_v39, %v11102_v43  ;;  %v11106_v17 = vpop.f32.mrb[218].mxu1 }
 0x72a   :  { %vm19912_vm6 = vmand %vm6573_vm4, %vm6733_vm7  ;;  %vm6574_vm4 = vcmp.eq.f32.partialorder %v6489_v21, %v19813_v8  ;;  %v11107_v7 = vpop.f32.mrb[219].mxu1  ;;  %v11216_v21 = vpop.f32.mrb[217].mxu0 }
 0x72b   :  { %v22736_v40 = vsel %vm19912_vm6, 4294967295, %v22735_v40  ;;  %v8369_v49 = vadd.f32 %v11211_v48, %v11099_v26  ;;  %vm19923_vm7 = vmand %vm6574_vm4, %vm6734_vm3  ;;  %8574 = vperm.xlu0 %11339, %v8372_v19   ;;  %v11105_v26 = vadd.f32 %v11104_v52, %v11103_v61  ;;  %v11108_v48 = vadd.f32 %v11107_v7, %v11106_v17  ;;  %v11218_v55 = vpop.f32.mrb[218].mxu0 }
 0x72c   :  { %v6494_v32 = vpop.permute.xlu1 %6493  ;;  %v22738_v30 = vsel %vm19923_vm7, 4294967295, %v22737_v30  ;;  %v11217_v13 = vadd.f32 %v11216_v21, %v11215_v3  ;;  %v11109_v39 = vpop.f32.mrb[220].mxu1  ;;  %vm8853_vm4 = vcmp.eq.s32.totalorder %v19522_v50, 1  ;;  %vm8854_vm3 = vcmp.eq.s32.totalorder %v19512_v53, 1 }
 0x72d   :  { %vm6575_vm5 = vcmp.eq.f32.partialorder %v6494_v32, %v19813_v8  ;;  %8569 = vperm.xlu1 %11340, %v8369_v49   ;;  %v11219_v32 = vpop.f32.mrb[219].mxu0  ;;  %v11110_v4 = vpop.f32.mrb[221].mxu1 }
 0x72e   :  { %vm19928_vm14 = vmand %vm6575_vm5, %vm6735_vm0  ;;  %v8377_v62 = vadd.f32 %v11217_v13, %v11105_v26  ;;  %v11220_v43 = vadd.f32 %v11219_v32, %v11218_v55  ;;  %v11111_v16 = vadd.f32 %v11110_v4, %v11109_v39  ;;  %v11112_v19 = vpop.f32.mrb[222].mxu1 }
 0x72f   :  { %v22740_v14 = vsel %vm19928_vm14, 4294967295, %v22739_v14  ;;  %v11113_v35 = vpop.f32.mrb[223].mxu1 }
 0x730   :  { %v8380_v49 = vadd.f32 %v11220_v43, %v11108_v48  ;;  %v11114_v52 = vadd.f32 %v11113_v35, %v11112_v19 }
 0x731   :  { %8579 = vperm.xlu1 %11340, %v8377_v62  }
 0x732   :  { %8584 = vperm.xlu0 %11339, %v8380_v49   ;;  %v11221_v15 = vpop.f32.mrb[220].mxu0 }
 0x733   :  { %v11222_v61 = vpop.f32.mrb[221].mxu0 }
 0x734   :  { %v11223_v58 = vadd.f32 %v11222_v61, %v11221_v15  ;;  %v11224_v6 = vpop.f32.mrb[222].mxu0 }
 0x735   :  { %v11225_v12 = vpop.f32.mrb[223].mxu0 }
 0x736   :  { %v8385_v17 = vadd.f32 %v11223_v58, %v11111_v16  ;;  %v11226_v3 = vadd.f32 %v11225_v12, %v11224_v6 }
 0x738   :  { %v8388_v7 = vadd.f32 %v11226_v3, %v11114_v52  ;;  %8589 = vperm.xlu1 %11340, %v8385_v17  }
 0x73a   :  { %8594 = vperm.xlu0 %11339, %v8388_v7  }
 0x742   :  { %v11115_v26 = vpop.f32.mrb[224].mxu1 }
 0x743   :  { %v11116_v21 = vpop.f32.mrb[225].mxu1 }
 0x744   :  { %v11117_v62 = vadd.f32 %v11116_v21, %v11115_v26  ;;  %v11118_v48 = vpop.f32.mrb[226].mxu1 }
 0x745   :  { %v11119_v55 = vpop.f32.mrb[227].mxu1 }
 0x746   :  { %v11120_v32 = vadd.f32 %v11119_v55, %v11118_v48 }
 0x748   :  { %v11227_v13 = vpop.f32.mrb[224].mxu0 }
 0x749   :  { %v11228_v4 = vpop.f32.mrb[225].mxu0 }
 0x74a   :  { %v11229_v43 = vadd.f32 %v11228_v4, %v11227_v13  ;;  %v11230_v49 = vpop.f32.mrb[226].mxu0 }
 0x74b   :  { %v11231_v39 = vpop.f32.mrb[227].mxu0 }
 0x74c   :  { %v8393_v35 = vadd.f32 %v11229_v43, %v11117_v62  ;;  %v11232_v15 = vadd.f32 %v11231_v39, %v11230_v49 }
 0x74e   :  { %v8396_v19 = vadd.f32 %v11232_v15, %v11120_v32  ;;  %8599 = vperm.xlu1 %11340, %v8393_v35  }
 0x750   :  { %8604 = vperm.xlu0 %11339, %v8396_v19  }
 0x758   :  { %v11121_v12 = vpop.f32.mrb[228].mxu1 }
 0x759   :  { %v11122_v58 = vpop.f32.mrb[229].mxu1 }
 0x75a   :  { %v11123_v6 = vadd.f32 %v11122_v58, %v11121_v12  ;;  %v11124_v16 = vpop.f32.mrb[230].mxu1 }
 0x75b   :  { %v11125_v52 = vpop.f32.mrb[231].mxu1 }
 0x75c   :  { %v11126_v3 = vadd.f32 %v11125_v52, %v11124_v16 }
 0x75e   :  { %v11233_v61 = vpop.f32.mrb[228].mxu0 }
 0x75f   :  { %v11234_v17 = vpop.f32.mrb[229].mxu0 }
 0x760   :  { %v11235_v7 = vadd.f32 %v11234_v17, %v11233_v61  ;;  %v11236_v26 = vpop.f32.mrb[230].mxu0 }
 0x761   :  { %v11237_v21 = vpop.f32.mrb[231].mxu0 }
 0x762   :  { %v8401_v48 = vadd.f32 %v11235_v7, %v11123_v6  ;;  %v11238_v13 = vadd.f32 %v11237_v21, %v11236_v26 }
 0x764   :  { %v8404_v55 = vadd.f32 %v11238_v13, %v11126_v3  ;;  %8609 = vperm.xlu1 %11340, %v8401_v48  }
 0x766   :  { %8614 = vperm.xlu0 %11339, %v8404_v55  }
 0x76d   :  { %v11127_v62 = vpop.f32.mrb[232].mxu1 }
 0x76e   :  { %v11128_v4 = vpop.f32.mrb[233].mxu1 }
 0x76f   :  { %v11129_v32 = vadd.f32 %v11128_v4, %v11127_v62  ;;  %v11130_v43 = vpop.f32.mrb[234].mxu1 }
 0x770   :  { %v11131_v39 = vpop.f32.mrb[235].mxu1 }
 0x771   :  { %v11132_v15 = vadd.f32 %v11131_v39, %v11130_v43 }
 0x772   :  { %v11239_v49 = vpop.f32.mrb[232].mxu0 }
 0x773   :  { %v11240_v35 = vpop.f32.mrb[233].mxu0 }
 0x774   :  { %v11241_v19 = vadd.f32 %v11240_v35, %v11239_v49  ;;  %v11242_v12 = vpop.f32.mrb[234].mxu0  ;;  %v19938_v35 = vpop.permute.xlu0 %6498 }
 0x775   :  { %v11243_v58 = vpop.f32.mrb[235].mxu0 }
 0x776   :  { %v8409_v16 = vadd.f32 %v11241_v19, %v11129_v32  ;;  %v11244_v61 = vadd.f32 %v11243_v58, %v11242_v12  ;;  %v19936_v32 = vpop.permute.xlu1 %6503 }
 0x778   :  { %v8412_v52 = vadd.f32 %v11244_v61, %v11132_v15  ;;  %8619 = vperm.xlu1 %11340, %v8409_v16   ;;  %v19942_v12 = vpop.permute.xlu0 %6508 }
 0x77a   :  { %8624 = vperm.xlu0 %11339, %v8412_v52   ;;  %v19940_v15 = vpop.permute.xlu1 %6513 }
 0x77b   :  { %v11133_v6 = vpop.f32.mrb[236].mxu1 }
 0x77c   :  { %v11134_v17 = vpop.f32.mrb[237].mxu1 }
 0x77d   :  { %v11135_v3 = vadd.f32 %v11134_v17, %v11133_v6  ;;  %v11136_v7 = vpop.f32.mrb[238].mxu1 }
 0x77e   :  { %v11137_v26 = vpop.f32.mrb[239].mxu1  ;;  %v19944_v52 = vpop.permute.xlu1 %6523 }
 0x77f   :  { %v11138_v21 = vadd.f32 %v11137_v26, %v11136_v7  ;;  %22741 = vst [vmem:[#allocation8_spill] sm:$0xff] %v19944_v52 }
 0x780   :  { %v11245_v48 = vpop.f32.mrb[236].mxu0 }
 0x781   :  { %v11246_v13 = vpop.f32.mrb[237].mxu0 }
 0x782   :  { %v11247_v55 = vadd.f32 %v11246_v13, %v11245_v48  ;;  %v11248_v62 = vpop.f32.mrb[238].mxu0 }
 0x783   :  { %v11249_v4 = vpop.f32.mrb[239].mxu0 }
 0x784   :  { %v8417_v43 = vadd.f32 %v11247_v55, %v11135_v3  ;;  %v11250_v49 = vadd.f32 %v11249_v4, %v11248_v62  ;;  %v19946_v3 = vpop.permute.xlu0 %6518 }
 0x786   :  { %v8420_v39 = vadd.f32 %v11250_v49, %v11138_v21  ;;  %8629 = vperm.xlu1 %11340, %v8417_v43   ;;  %v19948_v21 = vpop.permute.xlu1 %6533 }
 0x787   :  { %22742 = vst [vmem:[#allocation83_spill] sm:$0xff] %v19948_v21 }
 0x788   :  { %8634 = vperm.xlu0 %11339, %v8420_v39   ;;  %v19950_v62 = vpop.permute.xlu0 %6528 }
 0x789   :  { %22743 = vst [vmem:[#allocation85_spill] sm:$0xff] %v19950_v62 }
 0x78a   :  { %v19952_v49 = vpop.permute.xlu1 %6543 }
 0x78b   :  { %22744 = vst [vmem:[#allocation10_spill] sm:$0xff] %v19952_v49 }
 0x791   :  { %v11139_v19 = vpop.f32.mrb[240].mxu1 }
 0x792   :  { %v11140_v58 = vpop.f32.mrb[241].mxu1 }
 0x793   :  { %v11141_v16 = vadd.f32 %v11140_v58, %v11139_v19  ;;  %v11142_v61 = vpop.f32.mrb[242].mxu1  ;;  %v19954_v19 = vpop.permute.xlu0 %6538 }
 0x794   :  { %v11143_v6 = vpop.f32.mrb[243].mxu1  ;;  %22745 = vst [vmem:[#allocation11_spill] sm:$0xff] %v19954_v19  ;;  %v19956_v58 = vpop.permute.xlu1 %6553 }
 0x795   :  { %v11144_v17 = vadd.f32 %v11143_v6, %v11142_v61  ;;  %22746 = vst [vmem:[#allocation90_spill] sm:$0xff] %v19956_v58 }
 0x796   :  { %v11251_v7 = vpop.f32.mrb[240].mxu0 }
 0x797   :  { %v11252_v26 = vpop.f32.mrb[241].mxu0  ;;  %v19958_v61 = vpop.permute.xlu0 %6548 }
 0x798   :  { %v11253_v48 = vadd.f32 %v11252_v26, %v11251_v7  ;;  %v11254_v13 = vpop.f32.mrb[242].mxu0  ;;  %22747 = vst [vmem:[#allocation91_spill] sm:$0xff] %v19958_v61  ;;  %v19960_v6 = vpop.permute.xlu1 %8529 }
 0x799   :  { %v11255_v55 = vpop.f32.mrb[243].mxu0  ;;  %vm8687_vm6 = vcmp.eq.f32.partialorder %v19960_v6, %v19813_v8 }
 0x79a   :  { %v8425_v4 = vadd.f32 %v11253_v48, %v11141_v16  ;;  %v11256_v43 = vadd.f32 %v11255_v55, %v11254_v13 }
 0x79b   :  { %v19962_v7 = vpop.permute.xlu0 %8534 }
 0x79c   :  { %v8428_v39 = vadd.f32 %v11256_v43, %v11144_v17  ;;  %8639 = vperm.xlu1 %11340, %v8425_v4   ;;  %v19964_v21 = vpop.permute.xlu1 %8539 }
 0x79e   :  { %8644 = vperm.xlu0 %11339, %v8428_v39  }
 0x79f   :  { %v19966_v55 = vpop.permute.xlu0 %8544 }
 0x7a0   :  { %v19968_v43 = vpop.permute.xlu1 %8549 }
 0x7a3   :  { %v19970_v19 = vpop.permute.xlu0 %8554 }
 0x7a4   :  { %v8560_v1 = vpop.permute.xlu1 %8559 }
 0x7a5   :  { %vm8693_vm5 = vcmp.eq.f32.partialorder %v8560_v1, %v19813_v8 }
 0x7a6   :  { %vm19975_vm0 = vmand %vm8693_vm5, %vm8853_vm4  ;;  %vm8855_vm5 = vcmp.eq.s32.totalorder %v19545_v36, 1  ;;  %vm8856_vm4 = vcmp.eq.s32.totalorder %v19532_v42, 1 }
 0x7a7   :  { %v11145_v26 = vpop.f32.mrb[244].mxu1 }
 0x7a8   :  { %v11146_v16 = vpop.f32.mrb[245].mxu1 }
 0x7a9   :  { %v11147_v48 = vadd.f32 %v11146_v16, %v11145_v26  ;;  %v11148_v13 = vpop.f32.mrb[246].mxu1  ;;  %v8565_v26 = vpop.permute.xlu0 %8564 }
 0x7aa   :  { %v11149_v17 = vpop.f32.mrb[247].mxu1  ;;  %vm8694_vm12 = vcmp.eq.f32.partialorder %v8565_v26, %v19813_v8 }
 0x7ab   :  { %v11150_v4 = vadd.f32 %v11149_v17, %v11148_v13  ;;  %v22748_v13 = vmov 0  ;;  %vm19980_vm1 = vmand %vm8694_vm12, %vm8854_vm3 }
 0x7ac   :  { %v11257_v39 = vpop.f32.mrb[244].mxu0  ;;  %v22749_v13 = vsel %vm19975_vm0, 4294967295, %v22748_v13  ;;  %v8570_v50 = vpop.permute.xlu1 %8569 }
 0x7ad   :  { %v11258_v58 = vpop.f32.mrb[245].mxu0  ;;  %vm8695_vm2 = vcmp.eq.f32.partialorder %v8570_v50, %v19813_v8  ;;  %v8575_v1 = vpop.permute.xlu0 %8574 }
 0x7ae   :  { %v11259_v61 = vadd.f32 %v11258_v58, %v11257_v39  ;;  %v11260_v49 = vpop.f32.mrb[246].mxu0  ;;  %vm19991_vm12 = vmand %vm8695_vm2, %vm8855_vm5  ;;  %vm8696_vm3 = vcmp.eq.f32.partialorder %v8575_v1, %v19813_v8  ;;  %vm8857_vm5 = vcmp.eq.s32.totalorder %v19565_v63, 1 }
 0x7af   :  { %v11261_v62 = vpop.f32.mrb[247].mxu0  ;;  %vm19996_vm13 = vmand %vm8696_vm3, %vm8856_vm4  ;;  %vm8858_vm4 = vcmp.eq.s32.totalorder %v19547_v22, 1 }
 0x7b0   :  { %v8433_v52 = vadd.f32 %v11259_v61, %v11147_v48  ;;  %v11262_v44 = vadd.f32 %v11261_v62, %v11260_v49  ;;  %v22754_v61 = vmov 0 }
 0x7b1   :  { %v22755_v61 = vsel %vm19996_vm13, 4294967295, %v22754_v61 }
 0x7b2   :  { %v8436_v16 = vadd.f32 %v11262_v44, %v11150_v4  ;;  %8649 = vperm.xlu1 %11340, %v8433_v52   ;;  %v22752_v52 = vmov 0 }
 0x7b3   :  { %v22753_v52 = vsel %vm19991_vm12, 4294967295, %v22752_v52 }
 0x7b4   :  { %8654 = vperm.xlu0 %11339, %v8436_v16  }
 0x7bd   :  { %v11151_v53 = vpop.f32.mrb[248].mxu1 }
 0x7be   :  { %v11152_v44 = vpop.f32.mrb[249].mxu1 }
 0x7bf   :  { %v11153_v62 = vadd.f32 %v11152_v44, %v11151_v53  ;;  %v11154_v49 = vpop.f32.mrb[250].mxu1  ;;  %v8580_v53 = vpop.permute.xlu1 %8579 }
 0x7c0   :  { %v11155_v48 = vpop.f32.mrb[251].mxu1  ;;  %vm8697_vm2 = vcmp.eq.f32.partialorder %v8580_v53, %v19813_v8  ;;  %v8585_v44 = vpop.permute.xlu0 %8584 }
 0x7c1   :  { %v11156_v42 = vadd.f32 %v11155_v48, %v11154_v49  ;;  %vm20007_vm3 = vmand %vm8697_vm2, %vm8857_vm5  ;;  %v22756_v49 = vmov 0  ;;  %vm8698_vm8 = vcmp.eq.f32.partialorder %v8585_v44, %v19813_v8  ;;  %vm8859_vm2 = vcmp.eq.s32.totalorder %v19585_v57, 1 }
 0x7c2   :  { %v11263_v36 = vpop.f32.mrb[248].mxu0  ;;  %v22757_v49 = vsel %vm20007_vm3, 4294967295, %v22756_v49  ;;  %vm20012_vm9 = vmand %vm8698_vm8, %vm8858_vm4  ;;  %vm8860_vm8 = vcmp.eq.s32.totalorder %v19575_v59, 1 }
 0x7c3   :  { %v11264_v17 = vpop.f32.mrb[249].mxu0  ;;  %v8590_v48 = vpop.permute.xlu1 %8589 }
 0x7c4   :  { %v11265_v4 = vadd.f32 %v11264_v17, %v11263_v36  ;;  %v11266_v39 = vpop.f32.mrb[250].mxu0  ;;  %vm8699_vm14 = vcmp.eq.f32.partialorder %v8590_v48, %v19813_v8  ;;  %v8595_v17 = vpop.permute.xlu0 %8594 }
 0x7c5   :  { %v11267_v26 = vpop.f32.mrb[251].mxu0  ;;  %vm20023_vm5 = vmand %vm8699_vm14, %vm8859_vm2  ;;  %vm8700_vm4 = vcmp.eq.f32.partialorder %v8595_v17, %v19813_v8  ;;  %vm8861_vm2 = vcmp.eq.s32.totalorder %v19608_v18, 1  ;;  %v22764_v17 = vmov 0 }
 0x7c6   :  { %v8441_v16 = vadd.f32 %v11265_v4, %v11153_v62  ;;  %v11268_v50 = vadd.f32 %v11267_v26, %v11266_v39  ;;  %v22758_v62 = vmov 0  ;;  %v22760_v39 = vmov 0  ;;  %vm20028_vm7 = vmand %vm8700_vm4, %vm8860_vm8 }
 0x7c7   :  { %v22759_v62 = vsel %vm20012_vm9, 4294967295, %v22758_v62  ;;  %v22761_v39 = vsel %vm20023_vm5, 4294967295, %v22760_v39  ;;  %vm8862_vm8 = vcmp.eq.s32.totalorder %v19595_v38, 1  ;;  %vm8864_vm5 = vcmp.eq.s32.totalorder %v19610_v34, 1  ;;  %v22774_v34 = vld [vmem:[#allocation195_spill] sm:$0xff] }
 0x7c8   :  { %v8444_v1 = vadd.f32 %v11268_v50, %v11156_v42  ;;  %8659 = vperm.xlu1 %11340, %v8441_v16   ;;  %v22762_v16 = vmov 0 }
 0x7c9   :  { %v22763_v16 = vsel %vm20028_vm7, 4294967295, %v22762_v16 }
 0x7ca   :  { %8664 = vperm.xlu0 %11339, %v8444_v1  }
 0x7d3   :  { %v11157_v63 = vpop.f32.mrb[252].mxu1 }
 0x7d4   :  { %v11158_v42 = vpop.f32.mrb[253].mxu1 }
 0x7d5   :  { %v11159_v22 = vadd.f32 %v11158_v42, %v11157_v63  ;;  %v11160_v36 = vpop.f32.mrb[254].mxu1  ;;  %v8600_v42 = vpop.permute.xlu1 %8599 }
 0x7d6   :  { %v11161_v4 = vpop.f32.mrb[255].mxu1  ;;  %vm8701_vm14 = vcmp.eq.f32.partialorder %v8600_v42, %v19813_v8 }
 0x7d7   :  { %v11162_v26 = vadd.f32 %v11161_v4, %v11160_v36  ;;  %v8605_v36 = vpop.permute.xlu0 %8604  ;;  %vm20039_vm4 = vmand %vm8701_vm14, %vm8861_vm2  ;;  %vm8688_vm14 = vcmp.eq.f32.partialorder %v19962_v7, %v19813_v8  ;;  %vm8847_vm2 = vcmp.eq.s32.totalorder %v19464_v11, 1 }
 0x7d8   :  { %v11269_v50 = vpop.f32.mrb[252].mxu0  ;;  %v22765_v17 = vsel %vm20039_vm4, 4294967295, %v22764_v17  ;;  %vm8702_vm15 = vcmp.eq.f32.partialorder %v8605_v36, %v19813_v8  ;;  %vm8863_vm4 = vcmp.eq.s32.totalorder %v19626_v41, 1  ;;  %v22773_v41 = vld [vmem:[#allocation197_spill] sm:$0xff] }
 0x7d9   :  { %v11270_v57 = vpop.f32.mrb[253].mxu0  ;;  %vm20044_vm10 = vmand %vm8702_vm15, %vm8862_vm8  ;;  %vm8848_vm15 = vcmp.eq.s32.totalorder %v19448_v29, 1  ;;  %vm6353_vm12 = vcmp.lt.f32.partialorder %v22773_v41, 0.5 }
 0x7da   :  { %v11271_v59 = vadd.f32 %v11270_v57, %v11269_v50  ;;  %v11272_v53 = vpop.f32.mrb[254].mxu0  ;;  %vm20058_vm8 = vmand %vm8687_vm6, %vm8847_vm2 }
 0x7db   :  { %v11273_v1 = vpop.f32.mrb[255].mxu0 }
 0x7dc   :  { %v8449_v44 = vadd.f32 %v11271_v59, %v11159_v22  ;;  %v11274_v63 = vadd.f32 %v11273_v1, %v11272_v53  ;;  %v22766_v22 = vmov 0  ;;  %v22783_v53 = vld [vmem:[#allocation24_spill] sm:$0xff] }
 0x7dd   :  { %v22767_v22 = vsel %vm20044_vm10, 4294967295, %v22766_v22  ;;  %vm20064_vm10 = vmand %vm8688_vm14, %vm8848_vm15 }
 0x7de   :  { %v8452_v48 = vadd.f32 %v11274_v63, %v11162_v26  ;;  %8669 = vperm.xlu1 %11340, %v8449_v44   ;;  %v22772_v63 = vld [vmem:[#allocation184_spill] sm:$0xff]  ;;  %vm10319_vm14 = vmpackc.low %vm20064_vm10, %vm20058_vm8  ;;  %vm22784_vm8 = vcmp.ne.s32.totalorder %v22783_v53, 0  ;;  %v22810_v53 = vld [vmem:[#allocation206_spill] sm:$0xff] }
 0x7df   :  { %vm6340_vm9 = vcmp.lt.f32.partialorder %v22772_v63, 0.5 }
 0x7e0   :  { %8674 = vperm.xlu0 %11339, %v8452_v48  }
 0x7e3   :  { %v8610_v50 = vpop.permute.xlu1 %8609 }
 0x7e4   :  { %vm8703_vm11 = vcmp.eq.f32.partialorder %v8610_v50, %v19813_v8  ;;  %v22780_v50 = vld [vmem:[#allocation25_spill] sm:$0xff] }
 0x7e5   :  { %v8615_v11 = vpop.permute.xlu0 %8614  ;;  %vm8895_vm7 = vmand %vm8703_vm11, %vm8863_vm4  ;;  %vm6352_vm11 = vcmp.lt.f32.partialorder %v22774_v34, 0.5  ;;  %vm22781_vm4 = vcmp.ne.s32.totalorder %v22780_v50, 0  ;;  %v22800_v34 = vld [vmem:[#allocation28_spill] sm:$0xff]  ;;  %v22804_v50 = vld [vmem:[#allocation30_spill] sm:$0xff] }
 0x7e6   :  { %vm8704_vm3 = vcmp.eq.f32.partialorder %v8615_v11, %v19813_v8  ;;  %vm6385_vm15 = vmand %vm22781_vm4, %vm6353_vm12  ;;  %v22811_v11 = vld [vmem:[#allocation29_spill] sm:$0xff] }
 0x7e7   :  { %vm8896_vm6 = vmand %vm8704_vm3, %vm8864_vm5 }
 0x7e8   :  { %vm10335_vm2 = vmpackc.low %vm8896_vm6, %vm8895_vm7 }
 0x7e9   :  { %v11163_v4 = vpop.f32.mrb[0].mxu1  ;;  %11281 = vmatprep.subr.msk.bf16.mxu1 %vm10335_vm2, %v21159_v33  ;;  %vm6384_vm6 = vmand %vm22784_vm8, %vm6352_vm11  ;;  %vm8689_vm2 = vcmp.eq.f32.partialorder %v19964_v21, %v19813_v8  ;;  %vm8849_vm11 = vcmp.eq.s32.totalorder %v19481_v60, 1  ;;  %v6610_v21 = vsel %vm6385_vm15, 1, %v21156_v25  ;;  %vm8866_vm15 = vcmp.eq.s32.totalorder %v19633_v31, 1  ;;  %v20139_v31 = vld [vmem:[%s20517_s4 + $0x8] sm:$0xff] }
 0x7ea   :  { %v11164_v38 = vpop.f32.mrb[1].mxu1  ;;  %11282 = vmatpush3.bf16.msk.msra.mxu1 %vm10319_vm14, %v21159_v33  ;;  %vm20110_vm4 = vmand %vm8689_vm2, %vm8849_vm11 }
 0x7eb   :  { %v11165_v18 = vadd.f32 %v11164_v38, %v11163_v4  ;;  %v11166_v26 = vpop.f32.mrb[2].mxu1  ;;  %v22775_v4 = vld [vmem:[#allocation199_spill] sm:$0xff]  ;;  %v22776_v38 = vld [vmem:[#allocation12_spill] sm:$0xff] }
 0x7ec   :  { %v11167_v57 = vpop.f32.mrb[3].mxu1  ;;  %vm6354_vm7 = vcmp.lt.f32.partialorder %v22775_v4, 0.5  ;;  %vm22777_vm3 = vcmp.ne.s32.totalorder %v22776_v38, 0  ;;  %v22803_v38 = vld [vmem:[#allocation188_spill] sm:$0xff] }
 0x7ed   :  { %v11168_v6 = vadd.f32 %v11167_v57, %v11166_v26  ;;  %vm20082_vm5 = vmand %vm22777_vm3, %vm6340_vm9  ;;  %v22782_v57 = vld [vmem:[#allocation200_spill] sm:$0xff]  ;;  %vm8690_vm9 = vcmp.eq.f32.partialorder %v19966_v55, %v19813_v8  ;;  %v6609_v55 = vsel %vm6384_vm6, 1, %v21156_v25  ;;  %v22813_v26 = vld [vmem:[#allocation207_spill] sm:$0xff] }
 0x7ee   :  { %v11275_v7 = vpop.f32.mrb[0].mxu0  ;;  %vm6355_vm10 = vcmp.lt.f32.partialorder %v22782_v57, 0.5  ;;  %v6597_v4 = vsel %vm20082_vm5, 1, %v21156_v25  ;;  %v22806_v57 = vld [vmem:[#allocation13_spill] sm:$0xff] }
 0x7ef   :  { %v11276_v29 = vpop.f32.mrb[1].mxu0 }
 0x7f0   :  { %v11277_v1 = vadd.f32 %v11276_v29, %v11275_v7  ;;  %v11278_v44 = vpop.f32.mrb[2].mxu0  ;;  %v22789_v7 = vld [vmem:[#allocation27_spill] sm:$0xff] }
 0x7f1   :  { %v11279_v48 = vpop.f32.mrb[3].mxu0  ;;  %vm22790_vm12 = vcmp.ne.s32.totalorder %v22789_v7, 0  ;;  %v22814_v7 = vld [vmem:[#allocation14_spill] sm:$0xff] }
 0x7f2   :  { %v8457_v42 = vadd.f32 %v11277_v1, %v11165_v18  ;;  %v11280_v36 = vadd.f32 %v11279_v48, %v11278_v44  ;;  %v22785_v18 = vld [vmem:[#allocation26_spill] sm:$0xff]  ;;  %vm20103_vm3 = vmand %vm22790_vm12, %vm6355_vm10  ;;  %v22799_v48 = vld [vmem:[#allocation187_spill] sm:$0xff] }
 0x7f3   :  { %vm22786_vm14 = vcmp.ne.s32.totalorder %v22785_v18, 0  ;;  %v6612_v63 = vsel %vm20103_vm3, 1, %v21156_v25  ;;  %vm22801_vm3 = vcmp.ne.s32.totalorder %v22800_v34, 0  ;;  %v22820_v1 = vld [vmem:[#allocation32_spill] sm:$0xff]  ;;  %v22833_v34 = vld [vmem:[#allocation15_spill] sm:$0xff] }
 0x7f4   :  { %v8460_v59 = vadd.f32 %v11280_v36, %v11168_v6  ;;  %8679 = vperm.xlu1 %11340, %v8457_v42   ;;  %vm20095_vm13 = vmand %vm22786_vm14, %vm6354_vm7  ;;  %vm8850_vm7 = vcmp.eq.s32.totalorder %v19467_v37, 1  ;;  %vm8865_vm14 = vcmp.eq.s32.totalorder %v19649_v0, 1  ;;  %v22797_v37 = vld [vmem:[#allocation201_spill] sm:$0xff]  ;;  %v10318_v42 = vcombine.high %v20139_v31, %v20139_v31  ;;  %v22802_v36 = vld [vmem:[#allocation202_spill] sm:$0xff] }
 0x7f5   :  { %vm20117_vm10 = vmand %vm8690_vm9, %vm8850_vm7  ;;  %vm6356_vm11 = vcmp.lt.f32.partialorder %v22797_v37, 0.5  ;;  %v22798_v0 = vld [vmem:[#allocation205_spill] sm:$0xff]  ;;  %v6611_v41 = vsel %vm20095_vm13, 1, %v21156_v25  ;;  %vm6357_vm13 = vcmp.lt.f32.partialorder %v22802_v36, 0.5 }
 0x7f6   :  { %8684 = vperm.xlu0 %11339, %v8460_v59   ;;  %vm6358_vm9 = vcmp.lt.f32.partialorder %v22798_v0, 0.5  ;;  %vm10321_vm7 = vmpackc.low %vm20117_vm10, %vm20110_vm4  ;;  %vm6342_vm4 = vcmp.lt.f32.partialorder %v22803_v38, 0.5  ;;  %9031 = vmatprep.mubr.bf16.mxu1 %v10318_v42  ;;  %v22835_v42 = vld [vmem:[#allocation208_spill] sm:$0xff]  ;;  %v22841_v59 = vld [vmem:[#allocation191_spill] sm:$0xff] }
 0x7f7   :  { %v8620_v29 = vpop.permute.xlu1 %8619  ;;  %v22838_v38 = vld [vmem:[#allocation192_spill] sm:$0xff]  ;;  %v22898_v37 = vld [vmem:[#allocation85_spill] sm:$0xff] }
 0x7f8   :  { %6687 = vperm.xlu1 %11340, %v6610_v21   ;;  %vm8705_vm8 = vcmp.eq.f32.partialorder %v8620_v29, %v19813_v8  ;;  %v22816_v21 = vld [vmem:[#allocation31_spill] sm:$0xff] }
 0x7f9   :  { %v8625_v60 = vpop.permute.xlu0 %8624  ;;  %vm8897_vm12 = vmand %vm8705_vm8, %vm8865_vm14  ;;  %vm22805_vm14 = vcmp.ne.s32.totalorder %v22804_v50, 0 }
 0x7fa   :  { %6684 = vperm.xlu0 %11339, %v6609_v55   ;;  %vm8706_vm2 = vcmp.eq.f32.partialorder %v8625_v60, %v19813_v8  ;;  %vm6388_vm8 = vmand %vm22801_vm3, %vm6356_vm11  ;;  %vm22812_vm11 = vcmp.ne.s32.totalorder %v22811_v11, 0  ;;  %vm22817_vm3 = vcmp.ne.s32.totalorder %v22816_v21, 0  ;;  %v22897_v60 = vld [vmem:[#allocation83_spill] sm:$0xff] }
 0x7fb   :  { %vm8898_vm0 = vmand %vm8706_vm2, %vm8866_vm15  ;;  %vm22807_vm15 = vcmp.ne.s32.totalorder %v22806_v57, 0  ;;  %vm6359_vm2 = vcmp.lt.f32.partialorder %v22810_v53, 0.5  ;;  %v6613_v18 = vsel %vm6388_vm8, 1, %v21156_v25  ;;  %vm8692_vm8 = vcmp.eq.f32.partialorder %v19970_v19, %v19813_v8  ;;  %v22839_v57 = vld [vmem:[#allocation34_spill] sm:$0xff] }
 0x7fc   :  { %6693 = vperm.xlu1 %11340, %v6612_v63   ;;  %vm10337_vm6 = vmpackc.low %vm8898_vm0, %vm8897_vm12  ;;  %vm6341_vm0 = vcmp.lt.f32.partialorder %v22799_v48, 0.5 }
 0x7fd   :  { %11283 = vmatprep.subr.msk.bf16.mxu1 %vm10337_vm6, %v21159_v33  ;;  %vm6390_vm10 = vmand %vm22805_vm14, %vm6358_vm9  ;;  %vm6360_vm6 = vcmp.lt.f32.partialorder %v22813_v26, 0.5  ;;  %vm22815_vm9 = vcmp.ne.s32.totalorder %v22814_v7, 0  ;;  %v22844_v26 = vld [vmem:[#allocation17_spill] sm:$0xff] }
 0x7fe   :  { %6690 = vperm.xlu0 %11339, %v6611_v41   ;;  %11284 = vmatpush3.bf16.msk.msra.mxu1 %vm10321_vm7, %v21159_v33  ;;  %vm20156_vm12 = vmand %vm22807_vm15, %vm6341_vm0  ;;  %v6615_v6 = vsel %vm6390_vm10, 1, %v21156_v25  ;;  %vm8691_vm0 = vcmp.eq.f32.partialorder %v19968_v43, %v19813_v8  ;;  %vm8852_vm10 = vcmp.eq.s32.totalorder %v19483_v46, 1  ;;  %v22828_v46 = vld [vmem:[#allocation190_spill] sm:$0xff]  ;;  %v22832_v41 = vld [vmem:[#allocation209_spill] sm:$0xff] }
 0x7ff   :  { %vm6389_vm5 = vmand %vm22812_vm11, %vm6357_vm13  ;;  %vm22821_vm13 = vcmp.ne.s32.totalorder %v22820_v1, 0  ;;  %v6598_v63 = vsel %vm20156_vm12, 1, %v21156_v25  ;;  %vm6362_vm12 = vcmp.lt.f32.partialorder %v22832_v41, 0.5 }
 0x800   :  { %6648 = vperm.xlu1 %11340, %v6597_v4   ;;  %vm6374_vm7 = vmand %vm22815_vm9, %vm6342_vm4  ;;  %vm8851_vm4 = vcmp.eq.s32.totalorder %v19502_v20, 1  ;;  %v6614_v43 = vsel %vm6389_vm5, 1, %v21156_v25  ;;  %vm8867_vm9 = vcmp.eq.s32.totalorder %v19662_v45, 1  ;;  %vm8868_vm5 = vcmp.eq.s32.totalorder %v19653_v23, 1  ;;  %v22829_v45 = vld [vmem:[#allocation189_spill] sm:$0xff]  ;;  %v22830_v23 = vld [vmem:[#allocation16_spill] sm:$0xff] }
 0x801   :  { %vm20172_vm14 = vmand %vm22817_vm3, %vm6359_vm2  ;;  %v6599_v19 = vsel %vm6374_vm7, 1, %v21156_v25  ;;  %v22836_v4 = vld [vmem:[#allocation35_spill] sm:$0xff] }
 0x802   :  { %6696 = vperm.xlu0 %11339, %v6613_v18   ;;  %vm20180_vm15 = vmand %vm22821_vm13, %vm6360_vm6  ;;  %vm6344_vm13 = vcmp.lt.f32.partialorder %v22828_v46, 0.5  ;;  %v6616_v48 = vsel %vm20172_vm14, 1, %v21156_v25  ;;  %vm6345_vm14 = vcmp.lt.f32.partialorder %v22841_v59, 0.5  ;;  %v22842_v18 = vld [vmem:[#allocation18_spill] sm:$0xff]  ;;  %v22901_v46 = vld [vmem:[#allocation65_spill] sm:$0xff] }
 0x803   :  { %vm20187_vm2 = vmand %vm8691_vm0, %vm8851_vm4  ;;  %v6617_v0 = vsel %vm20180_vm15, 1, %v21156_v25  ;;  %vm22834_vm15 = vcmp.ne.s32.totalorder %v22833_v34, 0  ;;  %v22922_v59 = vld [vmem:[#allocation11_spill] sm:$0xff] }
 0x804   :  { %6702 = vperm.xlu1 %11340, %v6615_v6   ;;  %vm20194_vm6 = vmand %vm8692_vm8, %vm8852_vm10  ;;  %vm6343_vm8 = vcmp.lt.f32.partialorder %v22829_v45, 0.5 }
 0x805   :  { %v8630_v44 = vpop.permute.xlu1 %8629  ;;  %vm10323_vm10 = vmpackc.low %vm20194_vm6, %vm20187_vm2  ;;  %vm6361_vm2 = vcmp.lt.f32.partialorder %v22835_v42, 0.5  ;;  %vm22837_vm6 = vcmp.ne.s32.totalorder %v22836_v4, 0  ;;  %v22913_v42 = vld [vmem:[#allocation9_spill] sm:$0xff] }
 0x806   :  { %6699 = vperm.xlu0 %11339, %v6614_v43   ;;  %vm8707_vm11 = vcmp.eq.f32.partialorder %v8630_v44, %v19813_v8 }
 0x807   :  { %v8635_v20 = vpop.permute.xlu0 %8634  ;;  %vm8899_vm3 = vmand %vm8707_vm11, %vm8867_vm9  ;;  %vm22831_vm11 = vcmp.ne.s32.totalorder %v22830_v23, 0  ;;  %v22909_v23 = vld [vmem:[#allocation70_spill] sm:$0xff] }
 0x808   :  { %6654 = vperm.xlu1 %11340, %v6599_v19   ;;  %vm8708_vm0 = vcmp.eq.f32.partialorder %v8635_v20, %v19813_v8  ;;  %vm6376_vm9 = vmand %vm22831_vm11, %vm6344_vm13  ;;  %vm22840_vm13 = vcmp.ne.s32.totalorder %v22839_v57, 0 }
 0x809   :  { %vm8900_vm4 = vmand %vm8708_vm0, %vm8868_vm5  ;;  %v6601_v36 = vsel %vm6376_vm9, 1, %v21156_v25  ;;  %vm6346_vm0 = vcmp.lt.f32.partialorder %v22838_v38, 0.5 }
 0x80a   :  { %6651 = vperm.xlu0 %11339, %v6598_v63   ;;  %vm10339_vm7 = vmpackc.low %vm8900_vm4, %vm8899_vm3  ;;  %v22903_v63 = vld [vmem:[#allocation6_spill] sm:$0xff] }
 0x80b   :  { %11285 = vmatprep.subr.msk.bf16.mxu1 %vm10339_vm7, %v21159_v33  ;;  %vm6375_vm5 = vmand %vm22834_vm15, %vm6343_vm8  ;;  %vm22843_vm7 = vcmp.ne.s32.totalorder %v22842_v18, 0  ;;  %vm8870_vm15 = vcmp.eq.s32.totalorder %v19664_v47, 1 }
 0x80c   :  { %6708 = vperm.xlu1 %11340, %v6617_v0   ;;  %11286 = vmatpush3.bf16.msk.msra.mxu1 %vm10323_vm10, %v21159_v33  ;;  %vm6394_vm3 = vmand %vm22837_vm6, %vm6362_vm12  ;;  %v6600_v50 = vsel %vm6375_vm5, 1, %v21156_v25  ;;  %vm22845_vm10 = vcmp.ne.s32.totalorder %v22844_v26, 0  ;;  %vm8869_vm12 = vcmp.eq.s32.totalorder %v19680_v54, 1 }
 0x80d   :  { %vm6393_vm4 = vmand %vm22840_vm13, %vm6361_vm2  ;;  %v6619_v53 = vsel %vm6394_vm3, 1, %v21156_v25 }
 0x80e   :  { %6705 = vperm.xlu0 %11339, %v6616_v48   ;;  %vm6378_vm8 = vmand %vm22843_vm7, %vm6346_vm0  ;;  %v6618_v11 = vsel %vm6393_vm4, 1, %v21156_v25  ;;  %vm22846_vm0 = vnez %v22749_v13  ;;  %vm8872_vm7 = vcmp.eq.s32.totalorder %v19687_v28, 1  ;;  %v22910_v48 = vld [vmem:[#allocation64_spill] sm:$0xff] }
 0x80f   :  { %vm6377_vm11 = vmand %vm22845_vm10, %vm6345_vm14  ;;  %v6603_v7 = vsel %vm6378_vm8, 1, %v21156_v25  ;;  %vm8871_vm14 = vcmp.eq.s32.totalorder %v19703_v2, 1  ;;  %v22851_v2 = vld [vmem:[#allocation66_spill] sm:$0xff] }
 0x810   :  { %6660 = vperm.xlu1 %11340, %v6601_v36   ;;  %v6602_v6 = vsel %vm6377_vm11, 1, %v21156_v25  ;;  %vm22847_vm13 = vmpackc.low %vm19980_vm1, %vm22846_vm0  ;;  %vm22849_vm1 = vnez %v22753_v52  ;;  %v22856_v52 = vld [vmem:[#allocation56_spill] sm:$0xff]  ;;  %v22915_v36 = vld [vmem:[#allocation71_spill] sm:$0xff] }
 0x812   :  { %6657 = vperm.xlu0 %11339, %v6600_v50   ;;  %v22921_v50 = vld [vmem:[#allocation10_spill] sm:$0xff] }
 0x814   :  { %6714 = vperm.xlu1 %11340, %v6619_v53  }
 0x816   :  { %6711 = vperm.xlu0 %11339, %v6618_v11   ;;  %v22927_v11 = vld [vmem:[#allocation181_spill] sm:$0xff] }
 0x818   :  { %6666 = vperm.xlu1 %11340, %v6603_v7   ;;  %v22928_v7 = vld [vmem:[#allocation7_spill] sm:$0xff] }
 0x81a   :  { %6663 = vperm.xlu0 %11339, %v6602_v6  }
 0x81b   :  { %v8640_v21 = vpop.permute.xlu1 %8639 }
 0x81c   :  { %vm8709_vm9 = vcmp.eq.f32.partialorder %v8640_v21, %v19813_v8  ;;  %v22929_v21 = vld [vmem:[#allocation90_spill] sm:$0xff] }
 0x81d   :  { %v8645_v29 = vpop.permute.xlu0 %8644  ;;  %vm8901_vm5 = vmand %vm8709_vm9, %vm8869_vm12  ;;  %vm22848_vm12 = vnez %v22755_v61 }
 0x81e   :  { %vm8710_vm2 = vcmp.eq.f32.partialorder %v8645_v29, %v19813_v8 }
 0x81f   :  { %vm8902_vm6 = vmand %vm8710_vm2, %vm8870_vm15  ;;  %vm8873_vm2 = vcmp.eq.s32.totalorder %v19720_v56, 1  ;;  %v22855_v56 = vld [vmem:[#allocation57_spill] sm:$0xff] }
 0x820   :  { %vm10341_vm3 = vmpackc.low %vm8902_vm6, %vm8901_vm5  ;;  %vm8874_vm6 = vcmp.eq.s32.totalorder %v22851_v2, 1  ;;  %v22932_v2 = vld [vmem:[#allocation76_spill] sm:$0xff] }
 0x821   :  { %11287 = vmatprep.subr.msk.bf16.mxu1 %vm10341_vm3, %v21159_v33  ;;  %vm22850_vm15 = vmpackc.low %vm22848_vm12, %vm22849_vm1 }
 0x822   :  { %11288 = vmatpush3.bf16.msk.msra.mxu1 %vm22847_vm13, %v21159_v33 }
 0x831   :  { %v8650_v25 = vpop.permute.xlu1 %8649 }
 0x832   :  { %vm8711_vm4 = vcmp.eq.f32.partialorder %v8650_v25, %v19813_v8  ;;  %v22930_v25 = vld [vmem:[#allocation91_spill] sm:$0xff] }
 0x833   :  { %v8655_v47 = vpop.permute.xlu0 %8654  ;;  %vm8903_vm8 = vmand %vm8711_vm4, %vm8871_vm14  ;;  %vm22852_vm14 = vnez %v22759_v62 }
 0x834   :  { %vm8712_vm10 = vcmp.eq.f32.partialorder %v8655_v47, %v19813_v8 }
 0x835   :  { %vm8904_vm11 = vmand %vm8712_vm10, %vm8872_vm7  ;;  %vm22853_vm7 = vnez %v22757_v49 }
 0x836   :  { %vm10343_vm9 = vmpackc.low %vm8904_vm11, %vm8903_vm8  ;;  %vm8875_vm11 = vcmp.eq.s32.totalorder %v22855_v56, 1 }
 0x837   :  { %11289 = vmatprep.subr.msk.bf16.mxu1 %vm10343_vm9, %v21159_v33  ;;  %vm22854_vm8 = vmpackc.low %vm22852_vm14, %vm22853_vm7  ;;  %vm8876_vm9 = vcmp.eq.s32.totalorder %v22856_v52, 1  ;;  %vm6564_vm14 = vcmp.eq.f32.partialorder %v19838_v10, %v19813_v8 }
 0x838   :  { %11290 = vmatpush3.bf16.msk.msra.mxu1 %vm22850_vm15, %v21159_v33 }
 0x847   :  { %v8660_v54 = vpop.permute.xlu1 %8659 }
 0x848   :  { %vm8713_vm5 = vcmp.eq.f32.partialorder %v8660_v54, %v19813_v8  ;;  %v22931_v54 = vld [vmem:[#allocation77_spill] sm:$0xff] }
 0x849   :  { %v8665_v28 = vpop.permute.xlu0 %8664  ;;  %vm8905_vm3 = vmand %vm8713_vm5, %vm8873_vm2  ;;  %vm22857_vm2 = vnez %v22763_v16 }
 0x84a   :  { %vm8714_vm0 = vcmp.eq.f32.partialorder %v8665_v28, %v19813_v8 }
 0x84b   :  { %vm8906_vm13 = vmand %vm8714_vm0, %vm8874_vm6  ;;  %vm22858_vm6 = vnez %v22761_v39  ;;  %v20294_v39 = vld [vmem:[%s20517_s4] sm:$0xff]  ;;  %s11374_s4 = smov [#allocation2]  }
 0x84c   :  { %vm10345_vm4 = vmpackc.low %vm8906_vm13, %vm8905_vm3  ;;  %vm8877_vm13 = vcmp.eq.s32.totalorder %v19767_v27, 1  ;;  %v22860_v27 = vld [vmem:[#allocation48_spill] sm:$0xff]  ;;  %v10352_v55 = vcombine.high %v20294_v39, %v20294_v39  ;;  %s9093_s17 = sshll.u32 %s11374_s4, 4  ;;  %s9094_s17 = int_to_ptr.vmem [resolvable:$true] %s9093_s17 }
 0x84d   :  { %11291 = vmatprep.subr.msk.bf16.mxu1 %vm10345_vm4, %v21159_v33  ;;  %vm22859_vm3 = vmpackc.low %vm22857_vm2, %vm22858_vm6  ;;  %vm8878_vm4 = vcmp.eq.s32.totalorder %v19749_v9, 1  ;;  %v22861_v9 = vld [vmem:[#allocation49_spill] sm:$0xff]  ;;  %vm6577_vm2 = vcmp.eq.f32.partialorder %v19936_v32, %v19813_v8  ;;  %s11345_s18 = scalar_lea.vmem %s9094_s17, 128  ;;  %p11350_p1 = scmp.lt.s32.totalorder %s9094_s17, %s9094_s17 }
 0x84e   :  { %11292 = vmatpush3.bf16.msk.msra.mxu1 %vm22854_vm8, %v21159_v33  ;;  %p11346_p0 = scmp.ne.s32.totalorder %s9094_s17, %s11345_s18  ;;  %p11351_p2 = scmp.lt.s32.totalorder %s11345_s18, %s11345_s18 }
 0x850   :  { %p11352_p3 = por %p11351_p2, %p11350_p1 }
 0x852   :  { %p11353_p4 = pnand %p11352_p3, %p11346_p0 }
 0x85d   :  { %v8670_v13 = vpop.permute.xlu1 %8669 }
 0x85e   :  { %vm8715_vm10 = vcmp.eq.f32.partialorder %v8670_v13, %v19813_v8  ;;  %v10351_v13 = vcombine.low %v20294_v39, %v20294_v39 }
 0x85f   :  { %v8675_v58 = vpop.permute.xlu0 %8674  ;;  %vm8907_vm12 = vmand %vm8715_vm10, %vm8875_vm11  ;;  %vm6576_vm10 = vcmp.eq.f32.partialorder %v19938_v35, %v19813_v8  ;;  %v10317_v35 = vcombine.low %v20139_v31, %v20139_v31 }
 0x860   :  { %vm8716_vm1 = vcmp.eq.f32.partialorder %v8675_v58, %v19813_v8 }
 0x861   :  { %vm8908_vm15 = vmand %vm8716_vm1, %vm8876_vm9  ;;  %vm6724_vm9 = vcmp.eq.s32.totalorder %v22860_v27, 1  ;;  %vm6736_vm1 = vcmp.eq.s32.totalorder %v22861_v9, 1 }
 0x862   :  { %vm10347_vm5 = vmpackc.low %vm8908_vm15, %vm8907_vm12 }
 0x863   :  { %11293 = vmatprep.subr.msk.bf16.mxu1 %vm10347_vm5, %v21159_v33  ;;  %vm20298_vm15 = vmand %vm6564_vm14, %vm6724_vm9 }
 0x864   :  { %11294 = vmatpush3.bf16.msk.msra.mxu1 %vm22859_vm3, %v21159_v33  ;;  %vm20305_vm5 = vmand %vm6576_vm10, %vm6736_vm1  ;;  %vm6580_vm1 = vcmp.eq.f32.partialorder %v19946_v3, %v19813_v8  ;;  %v22886_v3 = vld [vmem:[#allocation5_spill] sm:$0xff] }
 0x873   :  { %v8680_v61 = vpop.permute.xlu1 %8679 }
 0x874   :  { %vm8717_vm0 = vcmp.eq.f32.partialorder %v8680_v61, %v19813_v8 }
 0x875   :  { %v8685_v49 = vpop.permute.xlu0 %8684  ;;  %vm8909_vm7 = vmand %vm8717_vm0, %vm8877_vm13  ;;  %vm22866_vm0 = vnez %v22767_v22  ;;  %vm22867_vm13 = vnez %v22765_v17  ;;  %v22892_v22 = vld [vmem:[#allocation67_spill] sm:$0xff] }
 0x876   :  { %vm8718_vm8 = vcmp.eq.f32.partialorder %v8685_v49, %v19813_v8 }
 0x877   :  { %vm8910_vm11 = vmand %vm8718_vm8, %vm8878_vm4  ;;  %v6688_v62 = vpop.permute.xlu1 %6687  ;;  %vm22872_vm8 = vnez %v22734_v51 }
 0x878   :  { %vm10349_vm12 = vmpackc.low %vm8910_vm11, %vm8909_vm7  ;;  %vm6738_vm6 = vcmp.eq.s32.totalorder %v6688_v62, 1  ;;  %vm22871_vm7 = vnez %v22736_v40  ;;  %vm6578_vm11 = vcmp.eq.f32.partialorder %v19942_v12, %v19813_v8 }
 0x879   :  { %v6685_v16 = vpop.permute.xlu0 %6684  ;;  %11295 = vmatprep.subr.msk.bf16.mxu1 %vm10349_vm12, %v21159_v33  ;;  %vm22868_vm4 = vmpackc.low %vm22866_vm0, %vm22867_vm13 }
 0x87a   :  { %vm6737_vm3 = vcmp.eq.s32.totalorder %v6685_v16, 1  ;;  %11296 = vmatpush3.bf16.msk.msra.mxu1 %vm22868_vm4, %v21159_v33  ;;  %vm22873_vm10 = vmpackc.low %vm22871_vm7, %vm22872_vm8  ;;  %vm22878_vm4 = vnez %v22707_v24  ;;  %vm22879_vm7 = vnez %v22705_v5 }
 0x87b   :  { %vm20319_vm14 = vmand %vm6577_vm2, %vm6737_vm3  ;;  %11303 = vmatprep.subr.msk.bf16.mxu1 %vm22873_vm10, %v21159_v33  ;;  %v6694_v32 = vpop.permute.xlu1 %6693  ;;  %vm6579_vm3 = vcmp.eq.f32.partialorder %v19940_v15, %v19813_v8  ;;  %vm22883_vm10 = vnez %v22740_v14  ;;  %v22889_v14 = vld [vmem:[#allocation8_spill] sm:$0xff] }
 0x87c   :  { %vm10373_vm9 = vmpackc.low %vm20319_vm14, %vm20305_vm5  ;;  %vm6740_vm12 = vcmp.eq.s32.totalorder %v6694_v32, 1  ;;  %vm22902_vm14 = vnez %v22901_v46 }
 0x87d   :  { %vm20337_vm2 = vmand %vm6578_vm11, %vm6738_vm6  ;;  %v6691_v51 = vpop.permute.xlu0 %6690  ;;  %9032 = vmatmul.mubr.bf16.vlgmr.msra.gmra.mrb[4].mxu1 %v10317_v35  ;;  %vm22884_vm11 = vnez %v22738_v30  ;;  %v22890_v30 = vld [vmem:[#allocation72_spill] sm:$0xff] }
 0x87e   :  { %vm20343_vm0 = vmand %vm6580_vm1, %vm6740_vm12  ;;  %vm6739_vm13 = vcmp.eq.s32.totalorder %v6691_v51, 1  ;;  %9078 = vmatprep.mubr.bf16.mxu1 %v10352_v55  ;;  %vm6565_vm1 = vcmp.eq.f32.partialorder %v22886_v3, %v19813_v8 }
 0x87f   :  { %vm22880_vm8 = vmpackc.low %vm22878_vm4, %vm22879_vm7  ;;  %v6649_v15 = vpop.permute.xlu1 %6648  ;;  %vm6581_vm7 = vcmp.eq.f32.partialorder %v22889_v14, %v19813_v8 }
 0x880   :  { %11304 = vmatpush3.bf16.msk.msra.mxu1 %vm22880_vm8, %v21159_v33  ;;  %vm20353_vm6 = vmand %vm6579_vm3, %vm6739_vm13  ;;  %vm6725_vm3 = vcmp.eq.s32.totalorder %v6649_v15, 1 }
 0x881   :  { %vm22885_vm12 = vmpackc.low %vm22883_vm10, %vm22884_vm11  ;;  %v6697_v24 = vpop.permute.xlu0 %6696  ;;  %vm22891_vm11 = vnez %v22890_v30 }
 0x882   :  { %11305 = vmatprep.subr.msk.bf16.mxu1 %vm22885_vm12, %v21159_v33  ;;  %vm20369_vm13 = vmand %vm6565_vm1, %vm6725_vm3  ;;  %vm6741_vm10 = vcmp.eq.s32.totalorder %v6697_v24, 1  ;;  %vm22893_vm12 = vnez %v22892_v22 }
 0x883   :  { %vm22894_vm4 = vmpackc.low %vm22891_vm11, %vm22893_vm12  ;;  %v6703_v44 = vpop.permute.xlu1 %6702 }
 0x884   :  { %11306 = vmatpush3.bf16.msk.msra.mxu1 %vm22894_vm4, %v21159_v33  ;;  %vm20385_vm1 = vmand %vm6581_vm7, %vm6741_vm10  ;;  %vm6743_vm8 = vcmp.eq.s32.totalorder %v6703_v44, 1  ;;  %vm6583_vm4 = vcmp.eq.f32.partialorder %v22897_v60, %v19813_v8  ;;  %vm6582_vm7 = vcmp.eq.f32.partialorder %v22898_v37, %v19813_v8 }
 0x885   :  { %11307 = vmatprep.subr.msk.bf16.mxu1 %vm10373_vm9, %v21159_v33  ;;  %v6700_v19 = vpop.permute.xlu0 %6699  ;;  %vm20403_vm10 = vmand %vm6583_vm4, %vm6743_vm8  ;;  %vm22904_vm9 = vnez %v22903_v63 }
 0x886   :  { %vm6742_vm5 = vcmp.eq.s32.totalorder %v6700_v19, 1  ;;  %vm22905_vm11 = vmpackc.low %vm22902_vm14, %vm22904_vm9  ;;  %vm22916_vm9 = vnez %v22915_v36 }
 0x887   :  { %vm20413_vm12 = vmand %vm6582_vm7, %vm6742_vm5  ;;  %v6655_v0 = vpop.permute.xlu1 %6654  ;;  %vm6567_vm7 = vcmp.eq.f32.partialorder %v22909_v23, %v19813_v8  ;;  %vm6566_vm5 = vcmp.eq.f32.partialorder %v22910_v48, %v19813_v8 }
 0x888   :  { %11308 = vmatpush3.bf16.msk.msra.mxu1 %vm22905_vm11, %v21159_v33  ;;  %vm22908_vm8 = vmpackc.low %vm20353_vm6, %vm20337_vm2  ;;  %vm6727_vm3 = vcmp.eq.s32.totalorder %v6655_v0, 1  ;;  %vm22914_vm6 = vnez %v22913_v42 }
 0x889   :  { %11309 = vmatprep.subr.msk.bf16.mxu1 %vm22908_vm8, %v21159_v33  ;;  %v6652_v41 = vpop.permute.xlu0 %6651  ;;  %vm20431_vm14 = vmand %vm6567_vm7, %vm6727_vm3 }
 0x88a   :  { %vm6726_vm2 = vcmp.eq.s32.totalorder %v6652_v41, 1  ;;  %vm22917_vm11 = vmpackc.low %vm22914_vm6, %vm22916_vm9 }
 0x88b   :  { %vm20441_vm8 = vmand %vm6566_vm5, %vm6726_vm2  ;;  %v6709_v38 = vpop.permute.xlu1 %6708  ;;  %vm6585_vm5 = vcmp.eq.f32.partialorder %v22921_v50, %v19813_v8  ;;  %vm6584_vm2 = vcmp.eq.f32.partialorder %v22922_v59, %v19813_v8 }
 0x88c   :  { %11310 = vmatpush3.bf16.msk.msra.mxu1 %vm22917_vm11, %v21159_v33  ;;  %vm22920_vm3 = vmpackc.low %vm20385_vm1, %vm20343_vm0  ;;  %vm6745_vm4 = vcmp.eq.s32.totalorder %v6709_v38, 1 }
 0x88d   :  { %11311 = vmatprep.subr.msk.bf16.mxu1 %vm22920_vm3, %v21159_v33  ;;  %vm10363_vm7 = vmpackc.low %vm20431_vm14, %vm20441_vm8  ;;  %v6706_v57 = vpop.permute.xlu0 %6705 }
 0x88e   :  { %vm20459_vm6 = vmand %vm6585_vm5, %vm6745_vm4  ;;  %vm6744_vm0 = vcmp.eq.s32.totalorder %v6706_v57, 1  ;;  %vm6569_vm5 = vcmp.eq.f32.partialorder %v22927_v11, %v19813_v8 }
 0x88f   :  { %vm22925_vm1 = vmpackc.low %vm20369_vm13, %vm20298_vm15  ;;  %v6661_v18 = vpop.permute.xlu1 %6660  ;;  %vm6568_vm15 = vcmp.eq.f32.partialorder %v22928_v7, %v19813_v8 }
 0x890   :  { %11312 = vmatpush3.bf16.msk.msra.mxu1 %vm22925_vm1, %v21159_v33  ;;  %vm6776_vm9 = vmand %vm6584_vm2, %vm6744_vm0  ;;  %vm6729_vm3 = vcmp.eq.s32.totalorder %v6661_v18, 1  ;;  %vm6587_vm0 = vcmp.eq.f32.partialorder %v22929_v21, %v19813_v8  ;;  %vm6586_vm1 = vcmp.eq.f32.partialorder %v22930_v25, %v19813_v8 }
 0x891   :  { %vm22926_vm11 = vmpackc.low %vm20403_vm10, %vm20413_vm12  ;;  %v6658_v26 = vpop.permute.xlu0 %6657 }
 0x892   :  { %11313 = vmatprep.subr.msk.bf16.mxu1 %vm22926_vm11, %v21159_v33  ;;  %vm10381_vm4 = vmpackc.low %vm20459_vm6, %vm6776_vm9  ;;  %vm6728_vm2 = vcmp.eq.s32.totalorder %v6658_v26, 1 }
 0x893   :  { %vm6761_vm13 = vmand %vm6569_vm5, %vm6729_vm3  ;;  %v6715_v6 = vpop.permute.xlu1 %6714 }
 0x894   :  { %11314 = vmatpush3.bf16.msk.msra.mxu1 %vm10363_vm7, %v21159_v33  ;;  %vm6760_vm10 = vmand %vm6568_vm15, %vm6728_vm2  ;;  %vm6747_vm6 = vcmp.eq.s32.totalorder %v6715_v6, 1  ;;  %vm6571_vm7 = vcmp.eq.f32.partialorder %v22931_v54, %v19813_v8 }
 0x895   :  { %11315 = vmatprep.subr.msk.bf16.mxu1 %vm10381_vm4, %v21159_v33  ;;  %vm10365_vm12 = vmpackc.low %vm6761_vm13, %vm6760_vm10  ;;  %v6712_v29 = vpop.permute.xlu0 %6711  ;;  %vm6570_vm4 = vcmp.eq.f32.partialorder %v22932_v2, %v19813_v8 }
 0x896   :  { %vm6779_vm9 = vmand %vm6587_vm0, %vm6747_vm6  ;;  %vm6746_vm11 = vcmp.eq.s32.totalorder %v6712_v29, 1 }
 0x897   :  { %vm6778_vm3 = vmand %vm6586_vm1, %vm6746_vm11  ;;  %v6667_v47 = vpop.permute.xlu1 %6666 }
 0x898   :  { %11316 = vmatpush3.bf16.msk.msra.mxu1 %vm10365_vm12, %v21159_v33  ;;  %vm10383_vm14 = vmpackc.low %vm6779_vm9, %vm6778_vm3  ;;  %vm6731_vm8 = vcmp.eq.s32.totalorder %v6667_v47, 1 }
 0x899   :  { %v6664_v28 = vpop.permute.xlu0 %6663  ;;  %11317 = vmatprep.subr.msk.bf16.mxu1 %vm10383_vm14, %v21159_v33  ;;  %vm6763_vm5 = vmand %vm6571_vm7, %vm6731_vm8 }
 0x89a   :  { %vm6730_vm15 = vcmp.eq.s32.totalorder %v6664_v28, 1 }
 0x89b   :  { %vm6762_vm13 = vmand %vm6570_vm4, %vm6730_vm15 }
 0x89c   :  { %vm10367_vm2 = vmpackc.low %vm6763_vm5, %vm6762_vm13 }
 0x89d   :  { %11318 = vmatpush3.bf16.msk.msra.mxu1 %vm10367_vm2, %v21159_v33 }
 0x8a0   :  { %9079 = vmatmul.mubr.bf16.vlgmr.msra.gmra.mrb[8].mxu1 %v10351_v13 }
 0x950   :  { %v11297_v56 = vpop.f32.mrb[4].mxu1 }
 0x951   :  { %v11298_v58 = vpop.f32.mrb[5].mxu1 }
 0x952   :  { %v11299_v52 = vadd.f32 %v11298_v58, %v11297_v56  ;;  %v11300_v61 = vpop.f32.mrb[6].mxu1 }
 0x953   :  { %v11301_v49 = vpop.f32.mrb[7].mxu1 }
 0x973   :  { %v11319_v62 = vpop.f32.mrb[8].mxu1 }
 0x974   :  { %v11320_v27 = vpop.f32.mrb[9].mxu1 }
 0x975   :  { %v11321_v8 = vadd.f32 %v11320_v27, %v11319_v62  ;;  %v11322_v9 = vpop.f32.mrb[10].mxu1 }
 0x976   :  { %v11323_v10 = vpop.f32.mrb[11].mxu1 }
 0x977   :  { %v9081_v16 = vadd.f32 %v11321_v8, %v11299_v52 }
 0x979   :  { %9086 = vst [vmem:[#allocation2] sm:$0xff] %v9081_v16 }
 0x97a   :  { %11356 = shalt.err (!%p11353_p4)
}
 0x97b   :  { %s11357_s20 = scalar_lea.hbm %s20518_s5, 128 }
 0x97c   :  { %p11358_p5 = scmp.ne.s32.totalorder %s20518_s5, %s11357_s20  ;;  %p11361_p6 = scmp.lt.u32.totalorder %s11357_s20, %s20518_s5 }
 0x97e   :  { %p11363_p7 = pnand %p11361_p6, %p11358_p5 }
 0x980   :  { %11366 = shalt.err (!%p11363_p7)
}
 0x981   :  { %9096 = dma.vmem_to_hbm [thread:$0]  %s9094_s17, 128, %s20518_s5, [#allocation3]  }
 0x982   :  { %11367 = dma.done.wait [#allocation3], 128  }
 0x983   :  { %11368 = vsyncadd [#allocation3], 4294967168 }
 0x984   :  { %9100 = vsyncpa [#allocation3], 1 }

</bundles_post_ra>
